<compile_context>
chip_gen: v5e
topology: v5e:2x2
jax: 0.10.0
libtpu: 0.0.40
codegen_flags: <defaults>
</compile_context>

<pallas_src>
import jax
import jax.numpy as jnp
from jax.experimental import pallas as pl
from jax.experimental.pallas import tpu as pltpu

# ------------------------------ static shapes ------------------------------ #
H = W = 16
HW = H * W            # 256 pixels, flat row-major (p = h*W + w)
C = 128               # main channel width
CH = 64               # residual hidden width
NBLOCKS = 5

# Unmasked taps of the 7x7 'A' conv (rows 0..2 full, row 3 cols 0..2).
_TAPS_A = [(kh, kw) for kh in range(3) for kw in range(7)] + [(3, kw) for kw in range(3)]
K7 = len(_TAPS_A)     # 24
# Unmasked taps of the 3x3 'B' conv (row 0 full, row 1 cols 0..1).
_TAPS_B = [(0, 0), (0, 1), (0, 2), (1, 0), (1, 1)]
K3 = len(_TAPS_B) * CH  # 320


# --------------------------------- kernel ---------------------------------- #
def pixelcnn_kernel(patches_ref,   # (1, HW, K7)  bf16  im2col of the input image
                    in_w_ref,      # (K7, C)      bf16  masked 'A' 7x7 weights (packed taps)
                    rw1_ref,       # (NB, C, CH)  bf16  residual 1x1 #1
                    rw2_ref,       # (NB, K3, CH) bf16  residual masked 'B' 3x3 (packed taps)
                    rw3_ref,       # (NB, CH, C)  bf16  residual 1x1 #2
                    lw1_ref,       # (C, C)       bf16
                    lb1_ref,       # (1, C)       f32
                    lw2_ref,       # (C, C)       bf16
                    lb2_ref,       # (1, C)       f32
                    ow_ref,        # (1, C)       bf16  final 1x1 (128 -> 1)
                    ob_ref,        # (1, 1)       f32
                    out_ref,       # (1, 1, HW)   f32   lane-dense output row
                    x_sc):         # scratch (HW, C) f32  persistent activation
    # ---- input conv: masked 'A' 7x7 as one im2col MXU matmul + ReLU ----
    x0 = jnp.dot(patches_ref[0], in_w_ref[...],
                 preferred_element_type=jnp.float32)            # (HW, C) f32
    x_sc[...] = jnp.maximum(x0, 0.0)

    # Column-position masks for the horizontally shifted 3x3 taps.
    col = jax.lax.broadcasted_iota(jnp.int32, (HW, 1), 0) % W   # w coordinate per row
    not_first = col != 0          # valid when tap dw == -1
    not_last = col != (W - 1)     # valid when tap dw == +1

    # For tap (kh, kw): shifted[p] = h1[p - a] with a = -( (kh-1)*W + (kw-1) ).
    tap_shift = (W + 1, W, W - 1, 1, 0)                 # taps (0,0),(0,1),(0,2),(1,0),(1,1)
    tap_mask = (not_first, None, not_last, not_first, None)

    # ---- 5 residual blocks:  x <- x + relu(conv3(relu(conv3x3B(relu(conv1(x)))))) ----
    for b in range(NBLOCKS):
        xb = x_sc[...].astype(jnp.bfloat16)
        h1 = jnp.maximum(jnp.dot(xb, rw1_ref[b],
                                 preferred_element_type=jnp.float32), 0.0)
        h1b = h1.astype(jnp.bfloat16)                    # (HW, CH)

        # Build the 5 shifted windows (zero-padded row shifts + column masks)
        # and im2col them into a single (HW, 5*CH) operand.
        windows = []
        for a, m in zip(tap_shift, tap_mask):
            if a == 0:
                wnd = h1b
            else:
                wnd = jnp.concatenate(
                    [jnp.zeros((a, CH), jnp.bfloat16), h1b[:HW - a, :]], axis=0)
            if m is not None:
                wnd = jnp.where(m, wnd, jnp.zeros_like(wnd))
            windows.append(wnd)
        cat = jnp.concatenate(windows, axis=1)           # (HW, K3) bf16

        h2 = jnp.maximum(jnp.dot(cat, rw2_ref[b],
                                 preferred_element_type=jnp.float32), 0.0)
        y = jnp.maximum(jnp.dot(h2.astype(jnp.bfloat16), rw3_ref[b],
                                preferred_element_type=jnp.float32), 0.0)
        x_sc[...] = x_sc[...] + y                        # residual add in f32

    # ---- last_conv: two 1x1 convs with bias + ReLU ----
    xb = x_sc[...].astype(jnp.bfloat16)
    a1 = jnp.maximum(jnp.dot(xb, lw1_ref[...],
                             preferred_element_type=jnp.float32) + lb1_ref[...], 0.0)
    a2 = jnp.maximum(jnp.dot(a1.astype(jnp.bfloat16), lw2_ref[...],
                             preferred_element_type=jnp.float32) + lb2_ref[...], 0.0)

    # ---- out: 1x1 conv (128 -> 1) + sigmoid, emitted lane-dense as (1, HW) ----
    z = jax.lax.dot_general(ow_ref[...], a2.astype(jnp.bfloat16),
                            dimension_numbers=(((1,), (1,)), ((), ())),
                            preferred_element_type=jnp.float32)  # (1, HW)
    z = z + ob_ref[...]
    sig = pl.reciprocal(1.0 + jnp.exp(-z), approx=True)
    out_ref[0] = jnp.minimum(sig, 1.0)                   # clamp approx-recip overshoot


# ------------------------------- parameters -------------------------------- #
def _mask_a_7x7():
    m = jnp.ones((7, 7, 1, 1), jnp.float32)
    m = m.at[3, 3:].set(0.0)   # center row: zero center and to the right ('A')
    m = m.at[4:].set(0.0)      # rows below center
    return m


def _mask_b_3x3():
    m = jnp.ones((3, 3, 1, 1), jnp.float32)
    m = m.at[1, 2:].set(0.0)   # center row: zero strictly right of center ('B')
    m = m.at[2:].set(0.0)      # rows below center
    return m


def init_params(key):
    keys = jax.random.split(key, 24)
    kit = iter(keys)

    def conv_w(cin, cout, kh, kw):
        bound = 1.0 / float((cin * kh * kw) ** 0.5)
        return jax.random.uniform(next(kit), (kh, kw, cin, cout), jnp.float32, -bound, bound)

    def conv_b(cin, kh, kw, cout):
        bound = 1.0 / float((cin * kh * kw) ** 0.5)
        return jax.random.uniform(next(kit), (cout,), jnp.float32, -bound, bound)

    params = {}
    params["input_w"] = conv_w(1, C, 7, 7) * _mask_a_7x7()
    params["res"] = []
    for _ in range(NBLOCKS):
        params["res"].append({
            "w1": conv_w(C, CH, 1, 1),
            "w2": conv_w(CH, CH, 3, 3) * _mask_b_3x3(),
            "w3": conv_w(CH, C, 1, 1),
        })
    params["last_w1"] = conv_w(C, C, 1, 1)
    params["last_b1"] = conv_b(C, 1, 1, C)
    params["last_w2"] = conv_w(C, C, 1, 1)
    params["last_b2"] = conv_b(C, 1, 1, C)
    params["out_w"] = conv_w(C, 1, 1, 1)
    params["out_b"] = conv_b(C, 1, 1, 1)
    return params


def pack_params(params):
    """Mask-aware repacking of the conv weights into kernel-ready bf16 arrays."""
    bf16 = jnp.bfloat16
    w7 = params["input_w"]                                        # (7,7,1,C), already masked
    in_w = jnp.stack([w7[kh, kw, 0, :] for kh, kw in _TAPS_A]).astype(bf16)   # (K7, C)
    rw1 = jnp.stack([blk["w1"][0, 0] for blk in params["res"]]).astype(bf16)  # (NB, C, CH)
    rw2 = jnp.stack([
        jnp.concatenate([blk["w2"][kh, kw] for kh, kw in _TAPS_B], axis=0)
        for blk in params["res"]]).astype(bf16)                               # (NB, K3, CH)
    rw3 = jnp.stack([blk["w3"][0, 0] for blk in params["res"]]).astype(bf16)  # (NB, CH, C)
    return {
        "in_w": in_w, "rw1": rw1, "rw2": rw2, "rw3": rw3,
        "lw1": params["last_w1"][0, 0].astype(bf16),
        "lb1": params["last_b1"].reshape(1, C).astype(jnp.float32),
        "lw2": params["last_w2"][0, 0].astype(bf16),
        "lb2": params["last_b2"].reshape(1, C).astype(jnp.float32),
        "ow": params["out_w"][0, 0].reshape(1, C).astype(bf16),
        "ob": params["out_b"].reshape(1, 1).astype(jnp.float32),
    }


# --------------------------------- forward --------------------------------- #
def pixelcnn_forward(packed, x_nchw):
    """x_nchw: (N, 1, H, W) f32 -> (N, 1, H, W) f32 in (0, 1]."""
    x = x_nchw.astype(jnp.float32)
    N = x.shape[0]

    # im2col of the zero-padded input for the 7x7 'A' conv: (N, HW, K7).
    xp = jnp.pad(x[:, 0], ((0, 0), (3, 3), (3, 3)))               # (N, H+6, W+6)
    cols = [xp[:, kh:kh + H, kw:kw + W].reshape(N, HW, 1) for kh, kw in _TAPS_A]
    patches = jnp.concatenate(cols, axis=-1).astype(jnp.bfloat16)

    out = pl.pallas_call(
        pixelcnn_kernel,
        out_shape=jax.ShapeDtypeStruct((N, 1, HW), jnp.float32),
        grid=(N,),
        in_specs=[
            pl.BlockSpec((1, HW, K7), lambda n: (n, 0, 0)),       # per-image patches
            pl.BlockSpec((K7, C), lambda n: (0, 0)),              # resident weights
            pl.BlockSpec((NBLOCKS, C, CH), lambda n: (0, 0, 0)),
            pl.BlockSpec((NBLOCKS, K3, CH), lambda n: (0, 0, 0)),
            pl.BlockSpec((NBLOCKS, CH, C), lambda n: (0, 0, 0)),
            pl.BlockSpec((C, C), lambda n: (0, 0)),
            pl.BlockSpec((1, C), lambda n: (0, 0)),
            pl.BlockSpec((C, C), lambda n: (0, 0)),
            pl.BlockSpec((1, C), lambda n: (0, 0)),
            pl.BlockSpec((1, C), lambda n: (0, 0)),
            pl.BlockSpec((1, 1), lambda n: (0, 0)),
        ],
        out_specs=pl.BlockSpec((1, 1, HW), lambda n: (n, 0, 0)),
        scratch_shapes=[pltpu.VMEM((HW, C), jnp.float32)],
        compiler_params=pltpu.CompilerParams(dimension_semantics=("parallel",)),
    )(patches, packed["in_w"], packed["rw1"], packed["rw2"], packed["rw3"],
      packed["lw1"], packed["lb1"], packed["lw2"], packed["lb2"],
      packed["ow"], packed["ob"])

    return out.reshape(N, 1, H, W)                                # NCHW, 1 channel


if __name__ == "__main__":
    key = jax.random.PRNGKey(0)
    pkey, xkey = jax.random.split(key)
    params = init_params(pkey)
    packed = pack_params(params)

    # PyTorch-convention input: NCHW, single channel.
    x = jax.random.uniform(xkey, (2, 1, 16, 16), jnp.float32)

    fwd = jax.jit(pixelcnn_forward)
    y = fwd(packed, x)
    jax.block_until_ready(y)

    assert y.shape == (2, 1, 16, 16), y.shape
    assert bool(jnp.all(jnp.isfinite(y)))
    assert bool(jnp.all((y >= 0.0) & (y <= 1.0)))  # sigmoid output range
    print("KERNEL_OK")
</pallas_src>

<mosaic_0001>
module attributes {stable_mosaic.version = 11 : i64} {
  func.func @pixelcnn_kernel(%arg0: i32, %arg1: memref<1x256x24xbf16, #tpu.memory_space<vmem>>, %arg2: memref<24x128xbf16, #tpu.memory_space<vmem>>, %arg3: memref<5x128x64xbf16, #tpu.memory_space<vmem>>, %arg4: memref<5x320x64xbf16, #tpu.memory_space<vmem>>, %arg5: memref<5x64x128xbf16, #tpu.memory_space<vmem>>, %arg6: memref<128x128xbf16, #tpu.memory_space<vmem>>, %arg7: memref<1x128xf32, #tpu.memory_space<vmem>>, %arg8: memref<128x128xbf16, #tpu.memory_space<vmem>>, %arg9: memref<1x128xf32, #tpu.memory_space<vmem>>, %arg10: memref<1x128xbf16, #tpu.memory_space<vmem>>, %arg11: memref<1x1xf32, #tpu.memory_space<vmem>>, %arg12: memref<1x1x256xf32, #tpu.memory_space<vmem>>, %arg13: memref<256x128xf32, #tpu.memory_space<vmem>>) attributes {dimension_semantics = [#tpu.dimension_semantics<parallel>], iteration_bounds = array<i64: 2>, scalar_prefetch = 0 : i64, scratch_operands = 1 : i64, tpu.core_type = #tpu.core_type<tc>, window_params = [{transform_indices = @transform_0, window_bounds = array<i64: 1, 256, 24>}, {pipeline_mode = #tpu.pipeline_mode<synchronous>, transform_indices = @transform_1, window_bounds = array<i64: 24, 128>}, {pipeline_mode = #tpu.pipeline_mode<synchronous>, transform_indices = @transform_2, window_bounds = array<i64: 5, 128, 64>}, {pipeline_mode = #tpu.pipeline_mode<synchronous>, transform_indices = @transform_3, window_bounds = array<i64: 5, 320, 64>}, {pipeline_mode = #tpu.pipeline_mode<synchronous>, transform_indices = @transform_4, window_bounds = array<i64: 5, 64, 128>}, {pipeline_mode = #tpu.pipeline_mode<synchronous>, transform_indices = @transform_5, window_bounds = array<i64: 128, 128>}, {pipeline_mode = #tpu.pipeline_mode<synchronous>, transform_indices = @transform_6, window_bounds = array<i64: 1, 128>}, {pipeline_mode = #tpu.pipeline_mode<synchronous>, transform_indices = @transform_7, window_bounds = array<i64: 128, 128>}, {pipeline_mode = #tpu.pipeline_mode<synchronous>, transform_indices = @transform_8, window_bounds = array<i64: 1, 128>}, {pipeline_mode = #tpu.pipeline_mode<synchronous>, transform_indices = @transform_9, window_bounds = array<i64: 1, 128>}, {pipeline_mode = #tpu.pipeline_mode<synchronous>, transform_indices = @transform_10, window_bounds = array<i64: 1, 1>}, {transform_indices = @transform_11, window_bounds = array<i64: 1, 1, 256>}]} {
    %c0 = arith.constant 0 : index
    %c0_0 = arith.constant 0 : index
    %c0_1 = arith.constant 0 : index
    %0 = vector.load %arg1[%c0, %c0_0, %c0_1] : memref<1x256x24xbf16, #tpu.memory_space<vmem>>, vector<1x256x24xbf16>
    %1 = vector.shape_cast %0 : vector<1x256x24xbf16> to vector<256x24xbf16>
    %c0_2 = arith.constant 0 : index
    %c0_3 = arith.constant 0 : index
    %2 = vector.load %arg2[%c0_2, %c0_3] : memref<24x128xbf16, #tpu.memory_space<vmem>>, vector<24x128xbf16>
    %cst = arith.constant dense<0.000000e+00> : vector<256x128xf32>
    %3 = tpu.matmul %1, %2, %cst {dimension_numbers = #tpu.dot_dimension_numbers<[1], [0], [0], [1], [0, 0, 1, 1], [], []>} : vector<256x24xbf16>, vector<24x128xbf16>, vector<256x128xf32> -> vector<256x128xf32>
    %cst_4 = arith.constant 0.000000e+00 : f32
    %4 = vector.broadcast %cst_4 : f32 to vector<256x128xf32>
    %5 = arith.maximumf %3, %4 : vector<256x128xf32>
    %c0_5 = arith.constant 0 : index
    %c0_6 = arith.constant 0 : index
    %6 = vector.load %arg13[%c0_5, %c0_6] : memref<256x128xf32, #tpu.memory_space<vmem>>, vector<256x128xf32>
    tpu.vector_store %arg13[%c0_5, %c0_6], %5 {strides = array<i32>} : memref<256x128xf32, #tpu.memory_space<vmem>>, vector<256x128xf32>,
    %7 = tpu.iota {dimensions = array<i32: 0>} : vector<256x1xi32>
    %c16_i32 = arith.constant 16 : i32
    %c0_i32 = arith.constant 0 : i32
    %8 = arith.cmpi eq, %c16_i32, %c0_i32 : i32
    %c1_i32 = arith.constant 1 : i32
    %9 = arith.select %8, %c1_i32, %c16_i32 : i32
    %10 = vector.broadcast %9 : i32 to vector<256x1xi32>
    %11 = arith.remsi %7, %10 : vector<256x1xi32>
    %c0_i32_7 = arith.constant 0 : i32
    %12 = vector.broadcast %c0_i32_7 : i32 to vector<256x1xi32>
    %13 = arith.cmpi ne, %11, %12 : vector<256x1xi32>
    %c0_i32_8 = arith.constant 0 : i32
    %14 = vector.broadcast %c0_i32_8 : i32 to vector<256x1xi32>
    %15 = arith.cmpi slt, %11, %14 : vector<256x1xi32>
    %c0_i32_9 = arith.constant 0 : i32
    %16 = arith.cmpi slt, %9, %c0_i32_9 : i32
    %17 = vector.broadcast %16 : i1 to vector<256x1xi1>
    %18 = vector.broadcast %17 : vector<256x1xi1> to vector<256x1xi1>
    %19 = arith.xori %15, %18 : vector<256x1xi1>
    %20 = arith.andi %19, %13 : vector<256x1xi1>
    %21 = vector.broadcast %9 : i32 to vector<256x1xi32>
    %22 = arith.addi %11, %21 : vector<256x1xi32>
    %23 = arith.select %20, %22, %11 : vector<256x1xi1>, vector<256x1xi32>
    %c0_i32_10 = arith.constant 0 : i32
    %24 = vector.broadcast %c0_i32_10 : i32 to vector<256x1xi32>
    %25 = arith.cmpi ne, %23, %24 : vector<256x1xi32>
    %c15_i32 = arith.constant 15 : i32
    %26 = vector.broadcast %c15_i32 : i32 to vector<256x1xi32>
    %27 = arith.cmpi ne, %23, %26 : vector<256x1xi32>
    %c0_11 = arith.constant 0 : index
    %c0_12 = arith.constant 0 : index
    %28 = vector.load %arg13[%c0_11, %c0_12] : memref<256x128xf32, #tpu.memory_space<vmem>>, vector<256x128xf32>
    %29 = arith.truncf %28 : vector<256x128xf32> to vector<256x128xbf16>
    %c0_13 = arith.constant 0 : index
    %c0_14 = arith.constant 0 : index
    %c0_15 = arith.constant 0 : index
    %30 = vector.load %arg3[%c0_13, %c0_14, %c0_15] : memref<5x128x64xbf16, #tpu.memory_space<vmem>>, vector<1x128x64xbf16>
    %31 = vector.shape_cast %30 : vector<1x128x64xbf16> to vector<128x64xbf16>
    %cst_16 = arith.constant dense<0.000000e+00> : vector<256x64xf32>
    %32 = tpu.matmul %29, %31, %cst_16 {dimension_numbers = #tpu.dot_dimension_numbers<[1], [0], [0], [1], [0, 0, 1, 1], [], []>} : vector<256x128xbf16>, vector<128x64xbf16>, vector<256x64xf32> -> vector<256x64xf32>
    %cst_17 = arith.constant 0.000000e+00 : f32
    %33 = vector.broadcast %cst_17 : f32 to vector<256x64xf32>
    %34 = arith.maximumf %32, %33 : vector<256x64xf32>
    %35 = arith.truncf %34 : vector<256x64xf32> to vector<256x64xbf16>
    %cst_18 = arith.constant 0.000000e+00 : bf16
    %36 = vector.broadcast %cst_18 : bf16 to vector<17x64xbf16>
    %37 = vector.extract_strided_slice %35 {offsets = [0, 0], sizes = [239, 64], strides = [1, 1]} : vector<256x64xbf16> to vector<239x64xbf16>
    %38 = tpu.concatenate %36, %37 in 0 : vector<17x64xbf16>, vector<239x64xbf16> -> vector<256x64xbf16>
    %cst_19 = arith.constant 0.000000e+00 : bf16
    %39 = vector.broadcast %cst_19 : bf16 to vector<256x64xbf16>
    %40 = vector.shape_cast %25 : vector<256x1xi1> to vector<256x1xi1>
    %41 = vector.broadcast %40 : vector<256x1xi1> to vector<256x64xi1>
    %42 = arith.select %41, %38, %39 : vector<256x64xi1>, vector<256x64xbf16>
    %cst_20 = arith.constant 0.000000e+00 : bf16
    %43 = vector.broadcast %cst_20 : bf16 to vector<16x64xbf16>
    %44 = vector.extract_strided_slice %35 {offsets = [0, 0], sizes = [240, 64], strides = [1, 1]} : vector<256x64xbf16> to vector<240x64xbf16>
    %45 = tpu.concatenate %43, %44 in 0 : vector<16x64xbf16>, vector<240x64xbf16> -> vector<256x64xbf16>
    %cst_21 = arith.constant 0.000000e+00 : bf16
    %46 = vector.broadcast %cst_21 : bf16 to vector<15x64xbf16>
    %47 = vector.extract_strided_slice %35 {offsets = [0, 0], sizes = [241, 64], strides = [1, 1]} : vector<256x64xbf16> to vector<241x64xbf16>
    %48 = tpu.concatenate %46, %47 in 0 : vector<15x64xbf16>, vector<241x64xbf16> -> vector<256x64xbf16>
    %cst_22 = arith.constant 0.000000e+00 : bf16
    %49 = vector.broadcast %cst_22 : bf16 to vector<256x64xbf16>
    %50 = vector.shape_cast %27 : vector<256x1xi1> to vector<256x1xi1>
    %51 = vector.broadcast %50 : vector<256x1xi1> to vector<256x64xi1>
    %52 = arith.select %51, %48, %49 : vector<256x64xi1>, vector<256x64xbf16>
    %cst_23 = arith.constant 0.000000e+00 : bf16
    %53 = vector.broadcast %cst_23 : bf16 to vector<1x64xbf16>
    %54 = vector.extract_strided_slice %35 {offsets = [0, 0], sizes = [255, 64], strides = [1, 1]} : vector<256x64xbf16> to vector<255x64xbf16>
    %55 = tpu.concatenate %53, %54 in 0 : vector<1x64xbf16>, vector<255x64xbf16> -> vector<256x64xbf16>
    %cst_24 = arith.constant 0.000000e+00 : bf16
    %56 = vector.broadcast %cst_24 : bf16 to vector<256x64xbf16>
    %57 = vector.shape_cast %25 : vector<256x1xi1> to vector<256x1xi1>
    %58 = vector.broadcast %57 : vector<256x1xi1> to vector<256x64xi1>
    %59 = arith.select %58, %55, %56 : vector<256x64xi1>, vector<256x64xbf16>
    %60 = tpu.concatenate %42, %45, %52, %59, %35 in 1 : vector<256x64xbf16>, vector<256x64xbf16>, vector<256x64xbf16>, vector<256x64xbf16>, vector<256x64xbf16> -> vector<256x320xbf16>
    %c0_25 = arith.constant 0 : index
    %c0_26 = arith.constant 0 : index
    %c0_27 = arith.constant 0 : index
    %61 = vector.load %arg4[%c0_25, %c0_26, %c0_27] : memref<5x320x64xbf16, #tpu.memory_space<vmem>>, vector<1x320x64xbf16>
    %62 = vector.shape_cast %61 : vector<1x320x64xbf16> to vector<320x64xbf16>
    %cst_28 = arith.constant dense<0.000000e+00> : vector<256x64xf32>
    %63 = tpu.matmul %60, %62, %cst_28 {dimension_numbers = #tpu.dot_dimension_numbers<[1], [0], [0], [1], [0, 0, 1, 1], [], []>} : vector<256x320xbf16>, vector<320x64xbf16>, vector<256x64xf32> -> vector<256x64xf32>
    %cst_29 = arith.constant 0.000000e+00 : f32
    %64 = vector.broadcast %cst_29 : f32 to vector<256x64xf32>
    %65 = arith.maximumf %63, %64 : vector<256x64xf32>
    %66 = arith.truncf %65 : vector<256x64xf32> to vector<256x64xbf16>
    %c0_30 = arith.constant 0 : index
    %c0_31 = arith.constant 0 : index
    %c0_32 = arith.constant 0 : index
    %67 = vector.load %arg5[%c0_30, %c0_31, %c0_32] : memref<5x64x128xbf16, #tpu.memory_space<vmem>>, vector<1x64x128xbf16>
    %68 = vector.shape_cast %67 : vector<1x64x128xbf16> to vector<64x128xbf16>
    %cst_33 = arith.constant dense<0.000000e+00> : vector<256x128xf32>
    %69 = tpu.matmul %66, %68, %cst_33 {dimension_numbers = #tpu.dot_dimension_numbers<[1], [0], [0], [1], [0, 0, 1, 1], [], []>} : vector<256x64xbf16>, vector<64x128xbf16>, vector<256x128xf32> -> vector<256x128xf32>
    %cst_34 = arith.constant 0.000000e+00 : f32
    %70 = vector.broadcast %cst_34 : f32 to vector<256x128xf32>
    %71 = arith.maximumf %69, %70 : vector<256x128xf32>
    %c0_35 = arith.constant 0 : index
    %c0_36 = arith.constant 0 : index
    %72 = vector.load %arg13[%c0_35, %c0_36] : memref<256x128xf32, #tpu.memory_space<vmem>>, vector<256x128xf32>
    %73 = arith.addf %72, %71 : vector<256x128xf32>
    %c0_37 = arith.constant 0 : index
    %c0_38 = arith.constant 0 : index
    %74 = vector.load %arg13[%c0_37, %c0_38] : memref<256x128xf32, #tpu.memory_space<vmem>>, vector<256x128xf32>
    tpu.vector_store %arg13[%c0_37, %c0_38], %73 {strides = array<i32>} : memref<256x128xf32, #tpu.memory_space<vmem>>, vector<256x128xf32>,
    %c0_39 = arith.constant 0 : index
    %c0_40 = arith.constant 0 : index
    %75 = vector.load %arg13[%c0_39, %c0_40] : memref<256x128xf32, #tpu.memory_space<vmem>>, vector<256x128xf32>
    %76 = arith.truncf %75 : vector<256x128xf32> to vector<256x128xbf16>
    %c1 = arith.constant 1 : index
    %c0_41 = arith.constant 0 : index
    %c0_42 = arith.constant 0 : index
    %77 = vector.load %arg3[%c1, %c0_41, %c0_42] : memref<5x128x64xbf16, #tpu.memory_space<vmem>>, vector<1x128x64xbf16>
    %78 = vector.shape_cast %77 : vector<1x128x64xbf16> to vector<128x64xbf16>
    %cst_43 = arith.constant dense<0.000000e+00> : vector<256x64xf32>
    %79 = tpu.matmul %76, %78, %cst_43 {dimension_numbers = #tpu.dot_dimension_numbers<[1], [0], [0], [1], [0, 0, 1, 1], [], []>} : vector<256x128xbf16>, vector<128x64xbf16>, vector<256x64xf32> -> vector<256x64xf32>
    %cst_44 = arith.constant 0.000000e+00 : f32
    %80 = vector.broadcast %cst_44 : f32 to vector<256x64xf32>
    %81 = arith.maximumf %79, %80 : vector<256x64xf32>
    %82 = arith.truncf %81 : vector<256x64xf32> to vector<256x64xbf16>
    %cst_45 = arith.constant 0.000000e+00 : bf16
    %83 = vector.broadcast %cst_45 : bf16 to vector<17x64xbf16>
    %84 = vector.extract_strided_slice %82 {offsets = [0, 0], sizes = [239, 64], strides = [1, 1]} : vector<256x64xbf16> to vector<239x64xbf16>
    %85 = tpu.concatenate %83, %84 in 0 : vector<17x64xbf16>, vector<239x64xbf16> -> vector<256x64xbf16>
    %cst_46 = arith.constant 0.000000e+00 : bf16
    %86 = vector.broadcast %cst_46 : bf16 to vector<256x64xbf16>
    %87 = vector.shape_cast %25 : vector<256x1xi1> to vector<256x1xi1>
    %88 = vector.broadcast %87 : vector<256x1xi1> to vector<256x64xi1>
    %89 = arith.select %88, %85, %86 : vector<256x64xi1>, vector<256x64xbf16>
    %cst_47 = arith.constant 0.000000e+00 : bf16
    %90 = vector.broadcast %cst_47 : bf16 to vector<16x64xbf16>
    %91 = vector.extract_strided_slice %82 {offsets = [0, 0], sizes = [240, 64], strides = [1, 1]} : vector<256x64xbf16> to vector<240x64xbf16>
    %92 = tpu.concatenate %90, %91 in 0 : vector<16x64xbf16>, vector<240x64xbf16> -> vector<256x64xbf16>
    %cst_48 = arith.constant 0.000000e+00 : bf16
    %93 = vector.broadcast %cst_48 : bf16 to vector<15x64xbf16>
    %94 = vector.extract_strided_slice %82 {offsets = [0, 0], sizes = [241, 64], strides = [1, 1]} : vector<256x64xbf16> to vector<241x64xbf16>
    %95 = tpu.concatenate %93, %94 in 0 : vector<15x64xbf16>, vector<241x64xbf16> -> vector<256x64xbf16>
    %cst_49 = arith.constant 0.000000e+00 : bf16
    %96 = vector.broadcast %cst_49 : bf16 to vector<256x64xbf16>
    %97 = vector.shape_cast %27 : vector<256x1xi1> to vector<256x1xi1>
    %98 = vector.broadcast %97 : vector<256x1xi1> to vector<256x64xi1>
    %99 = arith.select %98, %95, %96 : vector<256x64xi1>, vector<256x64xbf16>
    %cst_50 = arith.constant 0.000000e+00 : bf16
    %100 = vector.broadcast %cst_50 : bf16 to vector<1x64xbf16>
    %101 = vector.extract_strided_slice %82 {offsets = [0, 0], sizes = [255, 64], strides = [1, 1]} : vector<256x64xbf16> to vector<255x64xbf16>
    %102 = tpu.concatenate %100, %101 in 0 : vector<1x64xbf16>, vector<255x64xbf16> -> vector<256x64xbf16>
    %cst_51 = arith.constant 0.000000e+00 : bf16
    %103 = vector.broadcast %cst_51 : bf16 to vector<256x64xbf16>
    %104 = vector.shape_cast %25 : vector<256x1xi1> to vector<256x1xi1>
    %105 = vector.broadcast %104 : vector<256x1xi1> to vector<256x64xi1>
    %106 = arith.select %105, %102, %103 : vector<256x64xi1>, vector<256x64xbf16>
    %107 = tpu.concatenate %89, %92, %99, %106, %82 in 1 : vector<256x64xbf16>, vector<256x64xbf16>, vector<256x64xbf16>, vector<256x64xbf16>, vector<256x64xbf16> -> vector<256x320xbf16>
    %c1_52 = arith.constant 1 : index
    %c0_53 = arith.constant 0 : index
    %c0_54 = arith.constant 0 : index
    %108 = vector.load %arg4[%c1_52, %c0_53, %c0_54] : memref<5x320x64xbf16, #tpu.memory_space<vmem>>, vector<1x320x64xbf16>
    %109 = vector.shape_cast %108 : vector<1x320x64xbf16> to vector<320x64xbf16>
    %cst_55 = arith.constant dense<0.000000e+00> : vector<256x64xf32>
    %110 = tpu.matmul %107, %109, %cst_55 {dimension_numbers = #tpu.dot_dimension_numbers<[1], [0], [0], [1], [0, 0, 1, 1], [], []>} : vector<256x320xbf16>, vector<320x64xbf16>, vector<256x64xf32> -> vector<256x64xf32>
    %cst_56 = arith.constant 0.000000e+00 : f32
    %111 = vector.broadcast %cst_56 : f32 to vector<256x64xf32>
    %112 = arith.maximumf %110, %111 : vector<256x64xf32>
    %113 = arith.truncf %112 : vector<256x64xf32> to vector<256x64xbf16>
    %c1_57 = arith.constant 1 : index
    %c0_58 = arith.constant 0 : index
    %c0_59 = arith.constant 0 : index
    %114 = vector.load %arg5[%c1_57, %c0_58, %c0_59] : memref<5x64x128xbf16, #tpu.memory_space<vmem>>, vector<1x64x128xbf16>
    %115 = vector.shape_cast %114 : vector<1x64x128xbf16> to vector<64x128xbf16>
    %cst_60 = arith.constant dense<0.000000e+00> : vector<256x128xf32>
    %116 = tpu.matmul %113, %115, %cst_60 {dimension_numbers = #tpu.dot_dimension_numbers<[1], [0], [0], [1], [0, 0, 1, 1], [], []>} : vector<256x64xbf16>, vector<64x128xbf16>, vector<256x128xf32> -> vector<256x128xf32>
    %cst_61 = arith.constant 0.000000e+00 : f32
    %117 = vector.broadcast %cst_61 : f32 to vector<256x128xf32>
    %118 = arith.maximumf %116, %117 : vector<256x128xf32>
    %c0_62 = arith.constant 0 : index
    %c0_63 = arith.constant 0 : index
    %119 = vector.load %arg13[%c0_62, %c0_63] : memref<256x128xf32, #tpu.memory_space<vmem>>, vector<256x128xf32>
    %120 = arith.addf %119, %118 : vector<256x128xf32>
    %c0_64 = arith.constant 0 : index
    %c0_65 = arith.constant 0 : index
    %121 = vector.load %arg13[%c0_64, %c0_65] : memref<256x128xf32, #tpu.memory_space<vmem>>, vector<256x128xf32>
    tpu.vector_store %arg13[%c0_64, %c0_65], %120 {strides = array<i32>} : memref<256x128xf32, #tpu.memory_space<vmem>>, vector<256x128xf32>,
    %c0_66 = arith.constant 0 : index
    %c0_67 = arith.constant 0 : index
    %122 = vector.load %arg13[%c0_66, %c0_67] : memref<256x128xf32, #tpu.memory_space<vmem>>, vector<256x128xf32>
    %123 = arith.truncf %122 : vector<256x128xf32> to vector<256x128xbf16>
    %c2 = arith.constant 2 : index
    %c0_68 = arith.constant 0 : index
    %c0_69 = arith.constant 0 : index
    %124 = vector.load %arg3[%c2, %c0_68, %c0_69] : memref<5x128x64xbf16, #tpu.memory_space<vmem>>, vector<1x128x64xbf16>
    %125 = vector.shape_cast %124 : vector<1x128x64xbf16> to vector<128x64xbf16>
    %cst_70 = arith.constant dense<0.000000e+00> : vector<256x64xf32>
    %126 = tpu.matmul %123, %125, %cst_70 {dimension_numbers = #tpu.dot_dimension_numbers<[1], [0], [0], [1], [0, 0, 1, 1], [], []>} : vector<256x128xbf16>, vector<128x64xbf16>, vector<256x64xf32> -> vector<256x64xf32>
    %cst_71 = arith.constant 0.000000e+00 : f32
    %127 = vector.broadcast %cst_71 : f32 to vector<256x64xf32>
    %128 = arith.maximumf %126, %127 : vector<256x64xf32>
    %129 = arith.truncf %128 : vector<256x64xf32> to vector<256x64xbf16>
    %cst_72 = arith.constant 0.000000e+00 : bf16
    %130 = vector.broadcast %cst_72 : bf16 to vector<17x64xbf16>
    %131 = vector.extract_strided_slice %129 {offsets = [0, 0], sizes = [239, 64], strides = [1, 1]} : vector<256x64xbf16> to vector<239x64xbf16>
    %132 = tpu.concatenate %130, %131 in 0 : vector<17x64xbf16>, vector<239x64xbf16> -> vector<256x64xbf16>
    %cst_73 = arith.constant 0.000000e+00 : bf16
    %133 = vector.broadcast %cst_73 : bf16 to vector<256x64xbf16>
    %134 = vector.shape_cast %25 : vector<256x1xi1> to vector<256x1xi1>
    %135 = vector.broadcast %134 : vector<256x1xi1> to vector<256x64xi1>
    %136 = arith.select %135, %132, %133 : vector<256x64xi1>, vector<256x64xbf16>
    %cst_74 = arith.constant 0.000000e+00 : bf16
    %137 = vector.broadcast %cst_74 : bf16 to vector<16x64xbf16>
    %138 = vector.extract_strided_slice %129 {offsets = [0, 0], sizes = [240, 64], strides = [1, 1]} : vector<256x64xbf16> to vector<240x64xbf16>
    %139 = tpu.concatenate %137, %138 in 0 : vector<16x64xbf16>, vector<240x64xbf16> -> vector<256x64xbf16>
    %cst_75 = arith.constant 0.000000e+00 : bf16
    %140 = vector.broadcast %cst_75 : bf16 to vector<15x64xbf16>
    %141 = vector.extract_strided_slice %129 {offsets = [0, 0], sizes = [241, 64], strides = [1, 1]} : vector<256x64xbf16> to vector<241x64xbf16>
    %142 = tpu.concatenate %140, %141 in 0 : vector<15x64xbf16>, vector<241x64xbf16> -> vector<256x64xbf16>
    %cst_76 = arith.constant 0.000000e+00 : bf16
    %143 = vector.broadcast %cst_76 : bf16 to vector<256x64xbf16>
    %144 = vector.shape_cast %27 : vector<256x1xi1> to vector<256x1xi1>
    %145 = vector.broadcast %144 : vector<256x1xi1> to vector<256x64xi1>
    %146 = arith.select %145, %142, %143 : vector<256x64xi1>, vector<256x64xbf16>
    %cst_77 = arith.constant 0.000000e+00 : bf16
    %147 = vector.broadcast %cst_77 : bf16 to vector<1x64xbf16>
    %148 = vector.extract_strided_slice %129 {offsets = [0, 0], sizes = [255, 64], strides = [1, 1]} : vector<256x64xbf16> to vector<255x64xbf16>
    %149 = tpu.concatenate %147, %148 in 0 : vector<1x64xbf16>, vector<255x64xbf16> -> vector<256x64xbf16>
    %cst_78 = arith.constant 0.000000e+00 : bf16
    %150 = vector.broadcast %cst_78 : bf16 to vector<256x64xbf16>
    %151 = vector.shape_cast %25 : vector<256x1xi1> to vector<256x1xi1>
    %152 = vector.broadcast %151 : vector<256x1xi1> to vector<256x64xi1>
    %153 = arith.select %152, %149, %150 : vector<256x64xi1>, vector<256x64xbf16>
    %154 = tpu.concatenate %136, %139, %146, %153, %129 in 1 : vector<256x64xbf16>, vector<256x64xbf16>, vector<256x64xbf16>, vector<256x64xbf16>, vector<256x64xbf16> -> vector<256x320xbf16>
    %c2_79 = arith.constant 2 : index
    %c0_80 = arith.constant 0 : index
    %c0_81 = arith.constant 0 : index
    %155 = vector.load %arg4[%c2_79, %c0_80, %c0_81] : memref<5x320x64xbf16, #tpu.memory_space<vmem>>, vector<1x320x64xbf16>
    %156 = vector.shape_cast %155 : vector<1x320x64xbf16> to vector<320x64xbf16>
    %cst_82 = arith.constant dense<0.000000e+00> : vector<256x64xf32>
    %157 = tpu.matmul %154, %156, %cst_82 {dimension_numbers = #tpu.dot_dimension_numbers<[1], [0], [0], [1], [0, 0, 1, 1], [], []>} : vector<256x320xbf16>, vector<320x64xbf16>, vector<256x64xf32> -> vector<256x64xf32>
    %cst_83 = arith.constant 0.000000e+00 : f32
    %158 = vector.broadcast %cst_83 : f32 to vector<256x64xf32>
    %159 = arith.maximumf %157, %158 : vector<256x64xf32>
    %160 = arith.truncf %159 : vector<256x64xf32> to vector<256x64xbf16>
    %c2_84 = arith.constant 2 : index
    %c0_85 = arith.constant 0 : index
    %c0_86 = arith.constant 0 : index
    %161 = vector.load %arg5[%c2_84, %c0_85, %c0_86] : memref<5x64x128xbf16, #tpu.memory_space<vmem>>, vector<1x64x128xbf16>
    %162 = vector.shape_cast %161 : vector<1x64x128xbf16> to vector<64x128xbf16>
    %cst_87 = arith.constant dense<0.000000e+00> : vector<256x128xf32>
    %163 = tpu.matmul %160, %162, %cst_87 {dimension_numbers = #tpu.dot_dimension_numbers<[1], [0], [0], [1], [0, 0, 1, 1], [], []>} : vector<256x64xbf16>, vector<64x128xbf16>, vector<256x128xf32> -> vector<256x128xf32>
    %cst_88 = arith.constant 0.000000e+00 : f32
    %164 = vector.broadcast %cst_88 : f32 to vector<256x128xf32>
    %165 = arith.maximumf %163, %164 : vector<256x128xf32>
    %c0_89 = arith.constant 0 : index
    %c0_90 = arith.constant 0 : index
    %166 = vector.load %arg13[%c0_89, %c0_90] : memref<256x128xf32, #tpu.memory_space<vmem>>, vector<256x128xf32>
    %167 = arith.addf %166, %165 : vector<256x128xf32>
    %c0_91 = arith.constant 0 : index
    %c0_92 = arith.constant 0 : index
    %168 = vector.load %arg13[%c0_91, %c0_92] : memref<256x128xf32, #tpu.memory_space<vmem>>, vector<256x128xf32>
    tpu.vector_store %arg13[%c0_91, %c0_92], %167 {strides = array<i32>} : memref<256x128xf32, #tpu.memory_space<vmem>>, vector<256x128xf32>,
    %c0_93 = arith.constant 0 : index
    %c0_94 = arith.constant 0 : index
    %169 = vector.load %arg13[%c0_93, %c0_94] : memref<256x128xf32, #tpu.memory_space<vmem>>, vector<256x128xf32>
    %170 = arith.truncf %169 : vector<256x128xf32> to vector<256x128xbf16>
    %c3 = arith.constant 3 : index
    %c0_95 = arith.constant 0 : index
    %c0_96 = arith.constant 0 : index
    %171 = vector.load %arg3[%c3, %c0_95, %c0_96] : memref<5x128x64xbf16, #tpu.memory_space<vmem>>, vector<1x128x64xbf16>
    %172 = vector.shape_cast %171 : vector<1x128x64xbf16> to vector<128x64xbf16>
    %cst_97 = arith.constant dense<0.000000e+00> : vector<256x64xf32>
    %173 = tpu.matmul %170, %172, %cst_97 {dimension_numbers = #tpu.dot_dimension_numbers<[1], [0], [0], [1], [0, 0, 1, 1], [], []>} : vector<256x128xbf16>, vector<128x64xbf16>, vector<256x64xf32> -> vector<256x64xf32>
    %cst_98 = arith.constant 0.000000e+00 : f32
    %174 = vector.broadcast %cst_98 : f32 to vector<256x64xf32>
    %175 = arith.maximumf %173, %174 : vector<256x64xf32>
    %176 = arith.truncf %175 : vector<256x64xf32> to vector<256x64xbf16>
    %cst_99 = arith.constant 0.000000e+00 : bf16
    %177 = vector.broadcast %cst_99 : bf16 to vector<17x64xbf16>
    %178 = vector.extract_strided_slice %176 {offsets = [0, 0], sizes = [239, 64], strides = [1, 1]} : vector<256x64xbf16> to vector<239x64xbf16>
    %179 = tpu.concatenate %177, %178 in 0 : vector<17x64xbf16>, vector<239x64xbf16> -> vector<256x64xbf16>
    %cst_100 = arith.constant 0.000000e+00 : bf16
    %180 = vector.broadcast %cst_100 : bf16 to vector<256x64xbf16>
    %181 = vector.shape_cast %25 : vector<256x1xi1> to vector<256x1xi1>
    %182 = vector.broadcast %181 : vector<256x1xi1> to vector<256x64xi1>
    %183 = arith.select %182, %179, %180 : vector<256x64xi1>, vector<256x64xbf16>
    %cst_101 = arith.constant 0.000000e+00 : bf16
    %184 = vector.broadcast %cst_101 : bf16 to vector<16x64xbf16>
    %185 = vector.extract_strided_slice %176 {offsets = [0, 0], sizes = [240, 64], strides = [1, 1]} : vector<256x64xbf16> to vector<240x64xbf16>
    %186 = tpu.concatenate %184, %185 in 0 : vector<16x64xbf16>, vector<240x64xbf16> -> vector<256x64xbf16>
    %cst_102 = arith.constant 0.000000e+00 : bf16
    %187 = vector.broadcast %cst_102 : bf16 to vector<15x64xbf16>
    %188 = vector.extract_strided_slice %176 {offsets = [0, 0], sizes = [241, 64], strides = [1, 1]} : vector<256x64xbf16> to vector<241x64xbf16>
    %189 = tpu.concatenate %187, %188 in 0 : vector<15x64xbf16>, vector<241x64xbf16> -> vector<256x64xbf16>
    %cst_103 = arith.constant 0.000000e+00 : bf16
    %190 = vector.broadcast %cst_103 : bf16 to vector<256x64xbf16>
    %191 = vector.shape_cast %27 : vector<256x1xi1> to vector<256x1xi1>
    %192 = vector.broadcast %191 : vector<256x1xi1> to vector<256x64xi1>
    %193 = arith.select %192, %189, %190 : vector<256x64xi1>, vector<256x64xbf16>
    %cst_104 = arith.constant 0.000000e+00 : bf16
    %194 = vector.broadcast %cst_104 : bf16 to vector<1x64xbf16>
    %195 = vector.extract_strided_slice %176 {offsets = [0, 0], sizes = [255, 64], strides = [1, 1]} : vector<256x64xbf16> to vector<255x64xbf16>
    %196 = tpu.concatenate %194, %195 in 0 : vector<1x64xbf16>, vector<255x64xbf16> -> vector<256x64xbf16>
    %cst_105 = arith.constant 0.000000e+00 : bf16
    %197 = vector.broadcast %cst_105 : bf16 to vector<256x64xbf16>
    %198 = vector.shape_cast %25 : vector<256x1xi1> to vector<256x1xi1>
    %199 = vector.broadcast %198 : vector<256x1xi1> to vector<256x64xi1>
    %200 = arith.select %199, %196, %197 : vector<256x64xi1>, vector<256x64xbf16>
    %201 = tpu.concatenate %183, %186, %193, %200, %176 in 1 : vector<256x64xbf16>, vector<256x64xbf16>, vector<256x64xbf16>, vector<256x64xbf16>, vector<256x64xbf16> -> vector<256x320xbf16>
    %c3_106 = arith.constant 3 : index
    %c0_107 = arith.constant 0 : index
    %c0_108 = arith.constant 0 : index
    %202 = vector.load %arg4[%c3_106, %c0_107, %c0_108] : memref<5x320x64xbf16, #tpu.memory_space<vmem>>, vector<1x320x64xbf16>
    %203 = vector.shape_cast %202 : vector<1x320x64xbf16> to vector<320x64xbf16>
    %cst_109 = arith.constant dense<0.000000e+00> : vector<256x64xf32>
    %204 = tpu.matmul %201, %203, %cst_109 {dimension_numbers = #tpu.dot_dimension_numbers<[1], [0], [0], [1], [0, 0, 1, 1], [], []>} : vector<256x320xbf16>, vector<320x64xbf16>, vector<256x64xf32> -> vector<256x64xf32>
    %cst_110 = arith.constant 0.000000e+00 : f32
    %205 = vector.broadcast %cst_110 : f32 to vector<256x64xf32>
    %206 = arith.maximumf %204, %205 : vector<256x64xf32>
    %207 = arith.truncf %206 : vector<256x64xf32> to vector<256x64xbf16>
    %c3_111 = arith.constant 3 : index
    %c0_112 = arith.constant 0 : index
    %c0_113 = arith.constant 0 : index
    %208 = vector.load %arg5[%c3_111, %c0_112, %c0_113] : memref<5x64x128xbf16, #tpu.memory_space<vmem>>, vector<1x64x128xbf16>
    %209 = vector.shape_cast %208 : vector<1x64x128xbf16> to vector<64x128xbf16>
    %cst_114 = arith.constant dense<0.000000e+00> : vector<256x128xf32>
    %210 = tpu.matmul %207, %209, %cst_114 {dimension_numbers = #tpu.dot_dimension_numbers<[1], [0], [0], [1], [0, 0, 1, 1], [], []>} : vector<256x64xbf16>, vector<64x128xbf16>, vector<256x128xf32> -> vector<256x128xf32>
    %cst_115 = arith.constant 0.000000e+00 : f32
    %211 = vector.broadcast %cst_115 : f32 to vector<256x128xf32>
    %212 = arith.maximumf %210, %211 : vector<256x128xf32>
    %c0_116 = arith.constant 0 : index
    %c0_117 = arith.constant 0 : index
    %213 = vector.load %arg13[%c0_116, %c0_117] : memref<256x128xf32, #tpu.memory_space<vmem>>, vector<256x128xf32>
    %214 = arith.addf %213, %212 : vector<256x128xf32>
    %c0_118 = arith.constant 0 : index
    %c0_119 = arith.constant 0 : index
    %215 = vector.load %arg13[%c0_118, %c0_119] : memref<256x128xf32, #tpu.memory_space<vmem>>, vector<256x128xf32>
    tpu.vector_store %arg13[%c0_118, %c0_119], %214 {strides = array<i32>} : memref<256x128xf32, #tpu.memory_space<vmem>>, vector<256x128xf32>,
    %c0_120 = arith.constant 0 : index
    %c0_121 = arith.constant 0 : index
    %216 = vector.load %arg13[%c0_120, %c0_121] : memref<256x128xf32, #tpu.memory_space<vmem>>, vector<256x128xf32>
    %217 = arith.truncf %216 : vector<256x128xf32> to vector<256x128xbf16>
    %c4 = arith.constant 4 : index
    %c0_122 = arith.constant 0 : index
    %c0_123 = arith.constant 0 : index
    %218 = vector.load %arg3[%c4, %c0_122, %c0_123] : memref<5x128x64xbf16, #tpu.memory_space<vmem>>, vector<1x128x64xbf16>
    %219 = vector.shape_cast %218 : vector<1x128x64xbf16> to vector<128x64xbf16>
    %cst_124 = arith.constant dense<0.000000e+00> : vector<256x64xf32>
    %220 = tpu.matmul %217, %219, %cst_124 {dimension_numbers = #tpu.dot_dimension_numbers<[1], [0], [0], [1], [0, 0, 1, 1], [], []>} : vector<256x128xbf16>, vector<128x64xbf16>, vector<256x64xf32> -> vector<256x64xf32>
    %cst_125 = arith.constant 0.000000e+00 : f32
    %221 = vector.broadcast %cst_125 : f32 to vector<256x64xf32>
    %222 = arith.maximumf %220, %221 : vector<256x64xf32>
    %223 = arith.truncf %222 : vector<256x64xf32> to vector<256x64xbf16>
    %cst_126 = arith.constant 0.000000e+00 : bf16
    %224 = vector.broadcast %cst_126 : bf16 to vector<17x64xbf16>
    %225 = vector.extract_strided_slice %223 {offsets = [0, 0], sizes = [239, 64], strides = [1, 1]} : vector<256x64xbf16> to vector<239x64xbf16>
    %226 = tpu.concatenate %224, %225 in 0 : vector<17x64xbf16>, vector<239x64xbf16> -> vector<256x64xbf16>
    %cst_127 = arith.constant 0.000000e+00 : bf16
    %227 = vector.broadcast %cst_127 : bf16 to vector<256x64xbf16>
    %228 = vector.shape_cast %25 : vector<256x1xi1> to vector<256x1xi1>
    %229 = vector.broadcast %228 : vector<256x1xi1> to vector<256x64xi1>
    %230 = arith.select %229, %226, %227 : vector<256x64xi1>, vector<256x64xbf16>
    %cst_128 = arith.constant 0.000000e+00 : bf16
    %231 = vector.broadcast %cst_128 : bf16 to vector<16x64xbf16>
    %232 = vector.extract_strided_slice %223 {offsets = [0, 0], sizes = [240, 64], strides = [1, 1]} : vector<256x64xbf16> to vector<240x64xbf16>
    %233 = tpu.concatenate %231, %232 in 0 : vector<16x64xbf16>, vector<240x64xbf16> -> vector<256x64xbf16>
    %cst_129 = arith.constant 0.000000e+00 : bf16
    %234 = vector.broadcast %cst_129 : bf16 to vector<15x64xbf16>
    %235 = vector.extract_strided_slice %223 {offsets = [0, 0], sizes = [241, 64], strides = [1, 1]} : vector<256x64xbf16> to vector<241x64xbf16>
    %236 = tpu.concatenate %234, %235 in 0 : vector<15x64xbf16>, vector<241x64xbf16> -> vector<256x64xbf16>
    %cst_130 = arith.constant 0.000000e+00 : bf16
    %237 = vector.broadcast %cst_130 : bf16 to vector<256x64xbf16>
    %238 = vector.shape_cast %27 : vector<256x1xi1> to vector<256x1xi1>
    %239 = vector.broadcast %238 : vector<256x1xi1> to vector<256x64xi1>
    %240 = arith.select %239, %236, %237 : vector<256x64xi1>, vector<256x64xbf16>
    %cst_131 = arith.constant 0.000000e+00 : bf16
    %241 = vector.broadcast %cst_131 : bf16 to vector<1x64xbf16>
    %242 = vector.extract_strided_slice %223 {offsets = [0, 0], sizes = [255, 64], strides = [1, 1]} : vector<256x64xbf16> to vector<255x64xbf16>
    %243 = tpu.concatenate %241, %242 in 0 : vector<1x64xbf16>, vector<255x64xbf16> -> vector<256x64xbf16>
    %cst_132 = arith.constant 0.000000e+00 : bf16
    %244 = vector.broadcast %cst_132 : bf16 to vector<256x64xbf16>
    %245 = vector.shape_cast %25 : vector<256x1xi1> to vector<256x1xi1>
    %246 = vector.broadcast %245 : vector<256x1xi1> to vector<256x64xi1>
    %247 = arith.select %246, %243, %244 : vector<256x64xi1>, vector<256x64xbf16>
    %248 = tpu.concatenate %230, %233, %240, %247, %223 in 1 : vector<256x64xbf16>, vector<256x64xbf16>, vector<256x64xbf16>, vector<256x64xbf16>, vector<256x64xbf16> -> vector<256x320xbf16>
    %c4_133 = arith.constant 4 : index
    %c0_134 = arith.constant 0 : index
    %c0_135 = arith.constant 0 : index
    %249 = vector.load %arg4[%c4_133, %c0_134, %c0_135] : memref<5x320x64xbf16, #tpu.memory_space<vmem>>, vector<1x320x64xbf16>
    %250 = vector.shape_cast %249 : vector<1x320x64xbf16> to vector<320x64xbf16>
    %cst_136 = arith.constant dense<0.000000e+00> : vector<256x64xf32>
    %251 = tpu.matmul %248, %250, %cst_136 {dimension_numbers = #tpu.dot_dimension_numbers<[1], [0], [0], [1], [0, 0, 1, 1], [], []>} : vector<256x320xbf16>, vector<320x64xbf16>, vector<256x64xf32> -> vector<256x64xf32>
    %cst_137 = arith.constant 0.000000e+00 : f32
    %252 = vector.broadcast %cst_137 : f32 to vector<256x64xf32>
    %253 = arith.maximumf %251, %252 : vector<256x64xf32>
    %254 = arith.truncf %253 : vector<256x64xf32> to vector<256x64xbf16>
    %c4_138 = arith.constant 4 : index
    %c0_139 = arith.constant 0 : index
    %c0_140 = arith.constant 0 : index
    %255 = vector.load %arg5[%c4_138, %c0_139, %c0_140] : memref<5x64x128xbf16, #tpu.memory_space<vmem>>, vector<1x64x128xbf16>
    %256 = vector.shape_cast %255 : vector<1x64x128xbf16> to vector<64x128xbf16>
    %cst_141 = arith.constant dense<0.000000e+00> : vector<256x128xf32>
    %257 = tpu.matmul %254, %256, %cst_141 {dimension_numbers = #tpu.dot_dimension_numbers<[1], [0], [0], [1], [0, 0, 1, 1], [], []>} : vector<256x64xbf16>, vector<64x128xbf16>, vector<256x128xf32> -> vector<256x128xf32>
    %cst_142 = arith.constant 0.000000e+00 : f32
    %258 = vector.broadcast %cst_142 : f32 to vector<256x128xf32>
    %259 = arith.maximumf %257, %258 : vector<256x128xf32>
    %c0_143 = arith.constant 0 : index
    %c0_144 = arith.constant 0 : index
    %260 = vector.load %arg13[%c0_143, %c0_144] : memref<256x128xf32, #tpu.memory_space<vmem>>, vector<256x128xf32>
    %261 = arith.addf %260, %259 : vector<256x128xf32>
    %c0_145 = arith.constant 0 : index
    %c0_146 = arith.constant 0 : index
    %262 = vector.load %arg13[%c0_145, %c0_146] : memref<256x128xf32, #tpu.memory_space<vmem>>, vector<256x128xf32>
    tpu.vector_store %arg13[%c0_145, %c0_146], %261 {strides = array<i32>} : memref<256x128xf32, #tpu.memory_space<vmem>>, vector<256x128xf32>,
    %c0_147 = arith.constant 0 : index
    %c0_148 = arith.constant 0 : index
    %263 = vector.load %arg13[%c0_147, %c0_148] : memref<256x128xf32, #tpu.memory_space<vmem>>, vector<256x128xf32>
    %264 = arith.truncf %263 : vector<256x128xf32> to vector<256x128xbf16>
    %c0_149 = arith.constant 0 : index
    %c0_150 = arith.constant 0 : index
    %265 = vector.load %arg6[%c0_149, %c0_150] : memref<128x128xbf16, #tpu.memory_space<vmem>>, vector<128x128xbf16>
    %cst_151 = arith.constant dense<0.000000e+00> : vector<256x128xf32>
    %266 = tpu.matmul %264, %265, %cst_151 {dimension_numbers = #tpu.dot_dimension_numbers<[1], [0], [0], [1], [0, 0, 1, 1], [], []>} : vector<256x128xbf16>, vector<128x128xbf16>, vector<256x128xf32> -> vector<256x128xf32>
    %c0_152 = arith.constant 0 : index
    %c0_153 = arith.constant 0 : index
    %267 = vector.load %arg7[%c0_152, %c0_153] : memref<1x128xf32, #tpu.memory_space<vmem>>, vector<1x128xf32>
    %268 = vector.broadcast %267 : vector<1x128xf32> to vector<256x128xf32>
    %269 = arith.addf %266, %268 : vector<256x128xf32>
    %cst_154 = arith.constant 0.000000e+00 : f32
    %270 = vector.broadcast %cst_154 : f32 to vector<256x128xf32>
    %271 = arith.maximumf %269, %270 : vector<256x128xf32>
    %272 = arith.truncf %271 : vector<256x128xf32> to vector<256x128xbf16>
    %c0_155 = arith.constant 0 : index
    %c0_156 = arith.constant 0 : index
    %273 = vector.load %arg8[%c0_155, %c0_156] : memref<128x128xbf16, #tpu.memory_space<vmem>>, vector<128x128xbf16>
    %cst_157 = arith.constant dense<0.000000e+00> : vector<256x128xf32>
    %274 = tpu.matmul %272, %273, %cst_157 {dimension_numbers = #tpu.dot_dimension_numbers<[1], [0], [0], [1], [0, 0, 1, 1], [], []>} : vector<256x128xbf16>, vector<128x128xbf16>, vector<256x128xf32> -> vector<256x128xf32>
    %c0_158 = arith.constant 0 : index
    %c0_159 = arith.constant 0 : index
    %275 = vector.load %arg9[%c0_158, %c0_159] : memref<1x128xf32, #tpu.memory_space<vmem>>, vector<1x128xf32>
    %276 = vector.broadcast %275 : vector<1x128xf32> to vector<256x128xf32>
    %277 = arith.addf %274, %276 : vector<256x128xf32>
    %cst_160 = arith.constant 0.000000e+00 : f32
    %278 = vector.broadcast %cst_160 : f32 to vector<256x128xf32>
    %279 = arith.maximumf %277, %278 : vector<256x128xf32>
    %c0_161 = arith.constant 0 : index
    %c0_162 = arith.constant 0 : index
    %280 = vector.load %arg10[%c0_161, %c0_162] : memref<1x128xbf16, #tpu.memory_space<vmem>>, vector<1x128xbf16>
    %281 = arith.truncf %279 : vector<256x128xf32> to vector<256x128xbf16>
    %cst_163 = arith.constant dense<0.000000e+00> : vector<1x256xf32>
    %282 = tpu.matmul %280, %281, %cst_163 {dimension_numbers = #tpu.dot_dimension_numbers<[1], [1], [0], [0], [0, 0, 1, 0], [], []>} : vector<1x128xbf16>, vector<256x128xbf16>, vector<1x256xf32> -> vector<1x256xf32>
    %c0_164 = arith.constant 0 : index
    %c0_165 = arith.constant 0 : index
    %283 = vector.load %arg11[%c0_164, %c0_165] : memref<1x1xf32, #tpu.memory_space<vmem>>, vector<1x1xf32>
    %284 = vector.broadcast %283 : vector<1x1xf32> to vector<1x256xf32>
    %285 = arith.addf %282, %284 : vector<1x256xf32>
    %cst_166 = arith.constant 0.000000e+00 : f32
    %286 = vector.broadcast %cst_166 : f32 to vector<1x256xf32>
    %287 = arith.subf %286, %285 : vector<1x256xf32>
    %288 = math.exp %287 : vector<1x256xf32>
    %cst_167 = arith.constant 1.000000e+00 : f32
    %289 = vector.broadcast %cst_167 : f32 to vector<1x256xf32>
    %290 = arith.addf %289, %288 : vector<1x256xf32>
    %291 = tpu.reciprocal %290 {approx = true} : vector<1x256xf32> -> vector<1x256xf32>
    %cst_168 = arith.constant 1.000000e+00 : f32
    %292 = vector.broadcast %cst_168 : f32 to vector<1x256xf32>
    %293 = arith.minimumf %291, %292 : vector<1x256xf32>
    %c0_169 = arith.constant 0 : index
    %c0_170 = arith.constant 0 : index
    %c0_171 = arith.constant 0 : index
    %294 = vector.load %arg12[%c0_169, %c0_170, %c0_171] : memref<1x1x256xf32, #tpu.memory_space<vmem>>, vector<1x1x256xf32>
    %295 = vector.shape_cast %294 : vector<1x1x256xf32> to vector<1x256xf32>
    %296 = vector.shape_cast %293 : vector<1x256xf32> to vector<1x1x256xf32>
    tpu.vector_store %arg12[%c0_169, %c0_170, %c0_171], %296 {strides = array<i32>} : memref<1x1x256xf32, #tpu.memory_space<vmem>>, vector<1x1x256xf32>,
    return
  }
  func.func @transform_0(%arg0: i32) -> (i32, i32, i32) {
    %c0_i32 = arith.constant 0 : i32
    %c0_i32_0 = arith.constant 0 : i32
    %c0_i32_1 = arith.constant 0 : i32
    return %arg0, %c0_i32, %c0_i32_0 : i32, i32, i32
  }
  func.func @transform_1(%arg0: i32) -> (i32, i32) {
    %c0_i32 = arith.constant 0 : i32
    %c0_i32_0 = arith.constant 0 : i32
    %c0_i32_1 = arith.constant 0 : i32
    return %c0_i32, %c0_i32_0 : i32, i32
  }
  func.func @transform_2(%arg0: i32) -> (i32, i32, i32) {
    %c0_i32 = arith.constant 0 : i32
    %c0_i32_0 = arith.constant 0 : i32
    %c0_i32_1 = arith.constant 0 : i32
    %c0_i32_2 = arith.constant 0 : i32
    return %c0_i32, %c0_i32_0, %c0_i32_1 : i32, i32, i32
  }
  func.func @transform_3(%arg0: i32) -> (i32, i32, i32) {
    %c0_i32 = arith.constant 0 : i32
    %c0_i32_0 = arith.constant 0 : i32
    %c0_i32_1 = arith.constant 0 : i32
    %c0_i32_2 = arith.constant 0 : i32
    return %c0_i32, %c0_i32_0, %c0_i32_1 : i32, i32, i32
  }
  func.func @transform_4(%arg0: i32) -> (i32, i32, i32) {
    %c0_i32 = arith.constant 0 : i32
    %c0_i32_0 = arith.constant 0 : i32
    %c0_i32_1 = arith.constant 0 : i32
    %c0_i32_2 = arith.constant 0 : i32
    return %c0_i32, %c0_i32_0, %c0_i32_1 : i32, i32, i32
  }
  func.func @transform_5(%arg0: i32) -> (i32, i32) {
    %c0_i32 = arith.constant 0 : i32
    %c0_i32_0 = arith.constant 0 : i32
    %c0_i32_1 = arith.constant 0 : i32
    return %c0_i32, %c0_i32_0 : i32, i32
  }
  func.func @transform_6(%arg0: i32) -> (i32, i32) {
    %c0_i32 = arith.constant 0 : i32
    %c0_i32_0 = arith.constant 0 : i32
    %c0_i32_1 = arith.constant 0 : i32
    return %c0_i32, %c0_i32_0 : i32, i32
  }
  func.func @transform_7(%arg0: i32) -> (i32, i32) {
    %c0_i32 = arith.constant 0 : i32
    %c0_i32_0 = arith.constant 0 : i32
    %c0_i32_1 = arith.constant 0 : i32
    return %c0_i32, %c0_i32_0 : i32, i32
  }
  func.func @transform_8(%arg0: i32) -> (i32, i32) {
    %c0_i32 = arith.constant 0 : i32
    %c0_i32_0 = arith.constant 0 : i32
    %c0_i32_1 = arith.constant 0 : i32
    return %c0_i32, %c0_i32_0 : i32, i32
  }
  func.func @transform_9(%arg0: i32) -> (i32, i32) {
    %c0_i32 = arith.constant 0 : i32
    %c0_i32_0 = arith.constant 0 : i32
    %c0_i32_1 = arith.constant 0 : i32
    return %c0_i32, %c0_i32_0 : i32, i32
  }
  func.func @transform_10(%arg0: i32) -> (i32, i32) {
    %c0_i32 = arith.constant 0 : i32
    %c0_i32_0 = arith.constant 0 : i32
    %c0_i32_1 = arith.constant 0 : i32
    return %c0_i32, %c0_i32_0 : i32, i32
  }
  func.func @transform_11(%arg0: i32) -> (i32, i32, i32) {
    %c0_i32 = arith.constant 0 : i32
    %c0_i32_0 = arith.constant 0 : i32
    %c0_i32_1 = arith.constant 0 : i32
    return %arg0, %c0_i32, %c0_i32_0 : i32, i32, i32
  }
}

</mosaic_0001>

<bundles_post_ra>
// kernel: pixelcnn_forward.1
= control target key start
LH: loop header
LB: loop body
LE: loop exit
PB: predicated region body
PF: predicated region fallthrough
CT: control target
= control target key end

     0   :  { %s11834_s19 = smov 0   ;;  %s15684_s0 = inlined_call_operand.vmem [shape: bf16[2,256,24], index: 0, kind: input, shape index: {}]   ;;  %s15685_s1 = inlined_call_operand.vmem [shape: bf16[24,128], index: 1, kind: input, shape index: {}]   ;;  %s15686_s2 = inlined_call_operand.vmem [shape: bf16[5,128,64], index: 2, kind: input, shape index: {}]   ;;  %s15687_s3 = inlined_call_operand.vmem [shape: bf16[5,320,64], index: 3, kind: input, shape index: {}]   ;;  %s15688_s4 = inlined_call_operand.vmem [shape: bf16[5,64,128], index: 4, kind: input, shape index: {}]   ;;  %s15689_s5 = inlined_call_operand.vmem [shape: bf16[128,128], index: 5, kind: input, shape index: {}]   ;;  %s15690_s6 = inlined_call_operand.vmem [shape: f32[1,128], index: 6, kind: input, shape index: {}]   ;;  %s15691_s7 = inlined_call_operand.vmem [shape: bf16[128,128], index: 7, kind: input, shape index: {}]   ;;  %s15692_s8 = inlined_call_operand.vmem [shape: f32[1,128], index: 8, kind: input, shape index: {}]   ;;  %s15693_s9 = inlined_call_operand.vmem [shape: bf16[1,128], index: 9, kind: input, shape index: {}]   ;;  %s15694_s10 = inlined_call_operand.<no memory space> [shape: f32[1,1], index: 10, kind: input, shape index: {}]   ;;  %s15695_s11 = inlined_call_operand.vmem [shape: f32[2,1,256], index: 11, kind: output, shape index: {}]  }
   0x1   :  { %v16_v0 = vstv %s15694_s10 }
   0x2   :  { %17 = vst [vmem:[#allocation3] sm:$0x1] %v16_v0 }
   0x3 LB: > { %s10256_s20 = sadd.s32 4294967295, %s11766_s19   ;;  %p10260_p0 = scmp.ge.s32.totalorder %s11766_s19, 1  ;;  %s11766_s19 = sphi %s11834_s19, %s23_s19  }
   0x4   : > { %p339_p1 = scmp.lt.s32.totalorder %s11766_s19, 3 }
   0x6   : > { %p340_p2 = pnand %p10260_p0, %p339_p1 }
   0x8   : > { %343 = sbr.rel (%p340_p2) target bundleno = 3702 (0xe76), region = 64 }
   0xd   : > { %v424_v1 = vld [vmem:[%s15685_s1 + $0x8] sm:$0xf]  ;;  %p378_p3 = scmp.lt.s32.totalorder %s10256_s20, 1  ;;  %vm563_vm0 = vcmask 1043456   ;;  %v11561_v5 = vld [vmem:[%s15685_s1] sm:$0xff]  ;;  %vm514_vm1 = vcmask 195584  }
   0xe   : > { %v510_v2 = vunpack.c.l.b16 %v424_v1  ;;  %v11569_v11 = vld [vmem:[%s15686_s2 + $0x38] sm:$0xff]  ;;  %v11568_v12 = vld [vmem:[%s15686_s2 + $0x30] sm:$0xff]  ;;  %v11567_v14 = vld [vmem:[%s15686_s2 + $0x28] sm:$0xff]  ;;  %vm11769_vm4 = vmmov 1   ;;  %vm15744_vm6 = vcmask 523264   ;;  %vm15743_vm8 = vcmask 1040384  }
   0xf   : > { %s17003_s20 = smov (!%p378_p3, %s10256_s20), 1  ;;  %1313 = vmatpush.bf16.msra.mxu1 %v11569_v11  ;;  %v11566_v15 = vld [vmem:[%s15686_s2 + $0x20] sm:$0xff]  ;;  %v11565_v16 = vld [vmem:[%s15686_s2 + $0x18] sm:$0xff]  ;;  %v11564_v18 = vld [vmem:[%s15686_s2 + $0x10] sm:$0xff]  ;;  %vm15752_vm7 = vsmask.f32 256 }
  0x10   : > { %v512_v3 = vpack.c.b16 %v510_v2, %v510_v2  ;;  %s11544_s10 = sshll.u32 %s17003_s20, 7  ;;  %v11563_v19 = vld [vmem:[%s15686_s2 + $0x8] sm:$0xff]  ;;  %v11562_v20 = vld [vmem:[%s15686_s2] sm:$0xff]  ;;  %v11589_v63 = vld [vmem:[%s15687_s3 + $0x98] sm:$0xff]  ;;  %s10263_s25 = sshll.u32 %s17003_s20, 1 }
  0x11   : > { %s11854_s27 = scalar_lea.vmem %s15684_s0, %s11544_s10  ;;  %v11588_v1 = vld [vmem:[%s15687_s3 + $0x90] sm:$0xff]  ;;  %vm1744_vm5 = vmpackc.low %vm11769_vm4, %vm11769_vm4  ;;  %s386_s29 = scalar_lea.vmem %s15695_s11, %s10263_s25 }
  0x12   : > { %v565_v4 = vsel %vm563_vm0, %v512_v3, 0  ;;  %v11545_v6 = vld [vmem:[%s11854_s27] sm:$0xff]  ;;  %v11546_v7 = vld [vmem:[%s11854_s27 + $0x8] sm:$0xff]  ;;  %v11547_v8 = vld [vmem:[%s11854_s27 + $0x10] sm:$0xff] }
  0x13   : > { %573 = vmatpush.bf16.msra.mxu0 %v565_v4  ;;  %v11548_v9 = vld [vmem:[%s11854_s27 + $0x18] sm:$0xff]  ;;  %v11549_v10 = vld [vmem:[%s11854_s27 + $0x20] sm:$0xff]  ;;  %1314 = vmatpush.bf16.msra.mxu1 %v11568_v12  ;;  %v11550_v13 = vld [vmem:[%s11854_s27 + $0x28] sm:$0xff]  ;;  %v15696_v12 = vlaneseq }
  0x14   : > { %v11551_v17 = vld [vmem:[%s11854_s27 + $0x30] sm:$0xff]  ;;  %v11552_v21 = vld [vmem:[%s11854_s27 + $0x38] sm:$0xff]  ;;  %v11553_v22 = vld [vmem:[%s11854_s27 + $0x40] sm:$0xff] }
  0x15   : > { %v11554_v28 = vld [vmem:[%s11854_s27 + $0x48] sm:$0xff]  ;;  %v11555_v34 = vld [vmem:[%s11854_s27 + $0x50] sm:$0xff]  ;;  %v11556_v40 = vld [vmem:[%s11854_s27 + $0x58] sm:$0xff] }
  0x16   : > { %v11557_v46 = vld [vmem:[%s11854_s27 + $0x60] sm:$0xff]  ;;  %v11558_v52 = vld [vmem:[%s11854_s27 + $0x68] sm:$0xff]  ;;  %v11559_v58 = vld [vmem:[%s11854_s27 + $0x70] sm:$0xff] }
  0x17   : > { %574 = vmatpush.bf16.msra.mxu0 %v11561_v5  ;;  %1315 = vmatpush.bf16.msra.mxu1 %v11567_v14  ;;  %v11560_v2 = vld [vmem:[%s11854_s27 + $0x78] sm:$0xff]  ;;  %v11587_v4 = vld [vmem:[%s15687_s3 + $0x88] sm:$0xff]  ;;  %v11586_v5 = vld [vmem:[%s15687_s3 + $0x80] sm:$0xff]  ;;  %s11770_s27 = smov 64  }
  0x18   : > { %vm12057_vm12 = vmand %vm15743_vm8, %vm15752_vm7 }
  0x1a   : > { %10332 = vmatmul.msk.bf16.vlgmr.msra.gmra.mxu0 %vm514_vm1, %v11545_v6 }
  0x1b   : > { %1316 = vmatpush.bf16.msra.mxu1 %v11566_v15  ;;  %2970 = vmatpush.bf16.msrb.mxu0 %v11589_v63 }
  0x1f   : > { %1317 = vmatpush.bf16.msra.mxu1 %v11565_v16  ;;  %2971 = vmatpush.bf16.msrb.mxu0 %v11588_v1 }
  0x23   : > { %1318 = vmatpush.bf16.msra.mxu1 %v11564_v18  ;;  %2972 = vmatpush.bf16.msrb.mxu0 %v11587_v4 }
  0x27   : > { %1319 = vmatpush.bf16.msra.mxu1 %v11563_v19  ;;  %2973 = vmatpush.bf16.msrb.mxu0 %v11586_v5 }
  0x2a   : > { %10333 = vmatmul.msk.bf16.gmra.mxu0 %vm514_vm1, %v11546_v7 }
  0x2b   : > { %1320 = vmatpush.bf16.msra.mxu1 %v11562_v20 }
  0x3a   : > { %10334 = vmatmul.msk.bf16.gmra.mxu0 %vm514_vm1, %v11547_v8 }
  0x4a   : > { %10335 = vmatmul.msk.bf16.gmra.mxu0 %vm514_vm1, %v11548_v9  ;;  %v15726_v9 = vmov 0  }
  0x4b   : > { %11749 = vset.pattern.permute.xlu0 %v15726_v9 }
  0x5a   : > { %10336 = vmatmul.msk.bf16.gmra.mxu0 %vm514_vm1, %v11549_v10 }
  0x6a   : > { %10337 = vmatmul.msk.bf16.gmra.mxu0 %vm514_vm1, %v11550_v13  ;;  %v12008_v13 = vshrl.u32 %v15696_v12, 7 }
  0x6c   : > { %v757_v15 = vand.u32 15, %v12008_v13 }
  0x6e   : > { %vm1137_vm2 = vcmp.ne.s32.totalorder %v757_v15, 0  ;;  %v12034_v15 = vunpack.c.h.b16 %v15726_v9 }
  0x6f   : > { %vm2356_vm3 = vmpackc.low %vm1137_vm2, %vm1137_vm2 }
  0x7a   : > { %10338 = vmatmul.msk.bf16.gmra.mxu0 %vm514_vm1, %v11551_v17 }
  0x8a   : > { %10339 = vmatmul.msk.bf16.gmra.mxu0 %vm514_vm1, %v11552_v21 }
  0x97   : > { %v11897_v23 = vpop.f32.mrf.mxu0 }
  0x98   : > { %v15722_v25 = vmax.f32 %v11897_v23, 0.0 }
  0x9a   : > { %10340 = vmatmul.msk.bf16.gmra.mxu0 %vm514_vm1, %v11553_v22  ;;  %v2358_v22 = vsel %vm2356_vm3, 65537, %v15726_v9 }
  0x9f   : > { %v11900_v24 = vpop.f32.mrf.mxu0 }
  0xa0   : > { %v15721_v26 = vmax.f32 %v11900_v24, 0.0 }
  0xa2   : > { %v1233_v27 = vpack.c.bf16 %v15721_v26, %v15722_v25  ;;  %v11584_v25 = vld [vmem:[%s15687_s3 + $0x70] sm:$0xff] }
  0xa4   : > { %1321 = vmatmul.bf16.vlgmr.msra.gmra.mxu1 %v1233_v27 }
  0xa7   : > { %v11909_v29 = vpop.f32.mrf.mxu0 }
  0xa8   : > { %16015 = vst [vmem:[#allocation4_spill] sm:$0xff] %v11909_v29  ;;  %v15720_v30 = vmax.f32 %v11909_v29, 0.0 }
  0xaa   : > { %10341 = vmatmul.msk.bf16.gmra.mxu0 %vm514_vm1, %v11554_v28 }
  0xaf   : > { %v11913_v31 = vpop.f32.mrf.mxu0 }
  0xb0   : > { %16016 = vst [vmem:[#allocation5_spill] sm:$0xff] %v11913_v31  ;;  %v15719_v32 = vmax.f32 %v11913_v31, 0.0 }
  0xb2   : > { %v1234_v33 = vpack.c.bf16 %v15719_v32, %v15720_v30  ;;  %v11585_v32 = vld [vmem:[%s15687_s3 + $0x78] sm:$0xff] }
  0xb3   : > { %2877 = vmatpush.bf16.msra.mxu3 %v11585_v32  ;;  %v11576_v32 = vld [vmem:[%s15687_s3 + $0x30] sm:$0xff] }
  0xb4   : > { %1326 = vmatmul.bf16.gmra.mxu1 %v1234_v33 }
  0xb7   : > { %v11921_v35 = vpop.f32.mrf.mxu0  ;;  %2878 = vmatpush.bf16.msra.mxu3 %v11584_v25 }
  0xb8   : > { %16017 = vst [vmem:[#allocation6_spill] sm:$0xff] %v11921_v35  ;;  %v15718_v36 = vmax.f32 %v11921_v35, 0.0 }
  0xba   : > { %10342 = vmatmul.msk.bf16.gmra.mxu0 %vm514_vm1, %v11555_v34  ;;  %v1774_v34 = vsel %vm1744_vm5, 65537, %v15726_v9 }
  0xbf   : > { %v11925_v37 = vpop.f32.mrf.mxu0 }
  0xc0   : > { %16018 = vst [vmem:[#allocation7_spill] sm:$0xff] %v11925_v37  ;;  %v15715_v38 = vmax.f32 %v11925_v37, 0.0 }
  0xc2   : > { %v1235_v39 = vpack.c.bf16 %v15715_v38, %v15718_v36 }
  0xc4   : > { %1331 = vmatmul.bf16.gmra.mxu1 %v1235_v39  ;;  %v2360_v39 = vunpack.c.l.b16 %v2358_v22 }
  0xc6   : > { %v10442_v63 = vunpack.i.l.s16 %v2360_v39 }
  0xc7   : > { %v11933_v41 = vpop.f32.mrf.mxu0 }
  0xc8   : > { %16019 = vst [vmem:[#allocation8_spill] sm:$0xff] %v11933_v41  ;;  %v15714_v42 = vmax.f32 %v11933_v41, 0.0 }
  0xca   : > { %10343 = vmatmul.msk.bf16.gmra.mxu0 %vm514_vm1, %v11556_v40 }
  0xcf   : > { %v11937_v43 = vpop.f32.mrf.mxu0 }
  0xd0   : > { %16020 = vst [vmem:[#allocation9_spill] sm:$0xff] %v11937_v43  ;;  %v15713_v44 = vmax.f32 %v11937_v43, 0.0 }
  0xd2   : > { %v1236_v45 = vpack.c.bf16 %v15713_v44, %v15714_v42 }
  0xd4   : > { %1336 = vmatmul.bf16.gmra.mxu1 %v1236_v45  ;;  %v723_v45 = vadd.s32 16, %v12008_v13 }
  0xd7   : > { %v11945_v47 = vpop.f32.mrf.mxu0 }
  0xd8   : > { %16021 = vst [vmem:[#allocation10_spill] sm:$0xff] %v11945_v47  ;;  %v15712_v48 = vmax.f32 %v11945_v47, 0.0 }
  0xda   : > { %10344 = vmatmul.msk.bf16.gmra.mxu0 %vm514_vm1, %v11557_v46  ;;  %v1804_v46 = vunpack.c.l.b16 %v1774_v34  ;;  %v16037_v34 = vmov 0 }
  0xdb   : > { %v16038_v34 = vsel %vm12057_vm12, 4294967295, %v16037_v34 }
  0xdc   : > { %v12028_v5 = vunpack.i.l.s16 %v1804_v46  ;;  %16039 = vst [vmem:[#allocation22_spill] sm:$0xff] %v16038_v34 }
  0xde   : > { %vm12044_vm9 = vcmp.ne.s32.totalorder %v12028_v5, %v12034_v15 }
  0xdf   : > { %v11949_v49 = vpop.f32.mrf.mxu0 }
  0xe0   : > { %16022 = vst [vmem:[#allocation11_spill] sm:$0xff] %v11949_v49  ;;  %v15709_v50 = vmax.f32 %v11949_v49, 0.0 }
  0xe2   : > { %v1237_v51 = vpack.c.bf16 %v15709_v50, %v15712_v48 }
  0xe4   : > { %1341 = vmatmul.bf16.gmra.mxu1 %v1237_v51 }
  0xe7   : > { %v11957_v53 = vpop.f32.mrf.mxu0 }
  0xe8   : > { %16023 = vst [vmem:[#allocation12_spill] sm:$0xff] %v11957_v53  ;;  %v15708_v54 = vmax.f32 %v11957_v53, 0.0 }
  0xea   : > { %10345 = vmatmul.msk.bf16.gmra.mxu0 %vm514_vm1, %v11558_v52 }
  0xef   : > { %v11961_v55 = vpop.f32.mrf.mxu0 }
  0xf0   : > { %16024 = vst [vmem:[#allocation13_spill] sm:$0xff] %v11961_v55  ;;  %v15707_v56 = vmax.f32 %v11961_v55, 0.0 }
  0xf2   : > { %v1238_v57 = vpack.c.bf16 %v15707_v56, %v15708_v54 }
  0xf4   : > { %1346 = vmatmul.bf16.gmra.mxu1 %v1238_v57 }
  0xf7   : > { %v11969_v59 = vpop.f32.mrf.mxu0 }
  0xf8   : > { %16025 = vst [vmem:[#allocation14_spill] sm:$0xff] %v11969_v59  ;;  %v15706_v60 = vmax.f32 %v11969_v59, 0.0 }
  0xfa   : > { %10346 = vmatmul.msk.bf16.gmra.mxu0 %vm514_vm1, %v11559_v58 }
  0xff   : > { %v11973_v61 = vpop.f32.mrf.mxu0 }
 0x100   : > { %16026 = vst [vmem:[#allocation15_spill] sm:$0xff] %v11973_v61  ;;  %v15705_v62 = vmax.f32 %v11973_v61, 0.0 }
 0x102   : > { %v1239_v0 = vpack.c.bf16 %v15705_v62, %v15706_v60 }
 0x104   : > { %1351 = vmatmul.bf16.gmra.mxu1 %v1239_v0 }
 0x107   : > { %v11987_v3 = vpop.f32.mrf.mxu0 }
 0x108   : > { %16027 = vst [vmem:[#allocation16_spill] sm:$0xff] %v11987_v3  ;;  %v15704_v6 = vmax.f32 %v11987_v3, 0.0 }
 0x10a   : > { %10347 = vmatmul.msk.bf16.gmra.mxu0 %vm514_vm1, %v11560_v2  ;;  %v771_v2 = vand.u32 15, %v723_v45  ;;  %v16040_v45 = vmov 0  ;;  %vm15811_vm1 = vsmask.f32 7424 }
 0x10c   : > { %vm12049_vm11 = vcmp.ne.s32.totalorder %v771_v2, 0 }
 0x10d   : > { %vm1743_vm14 = vmpackc.low %vm12049_vm11, %vm12049_vm11 }
 0x10f   : > { %v11997_v7 = vpop.f32.mrf.mxu0 }
 0x110   : > { %16028 = vst [vmem:[#allocation17_spill] sm:$0xff] %v11997_v7  ;;  %v15701_v8 = vmax.f32 %v11997_v7, 0.0 }
 0x112   : > { %v1240_v10 = vpack.c.bf16 %v15701_v8, %v15704_v6 }
 0x114   : > { %1356 = vmatmul.bf16.gmra.mxu1 %v1240_v10  ;;  %v12031_v10 = vunpack.c.l.b16 %v15726_v9 }
 0x116   : > { %vm2367_vm10 = vcmp.ne.s32.totalorder %v10442_v63, %v12031_v10 }
 0x117   : > { %v12005_v11 = vpop.f32.mrf.mxu0  ;;  %vm12063_vm13 = vmpackc.low %vm12044_vm9, %vm2367_vm10 }
 0x118   : > { %16029 = vst [vmem:[#allocation18_spill] sm:$0xff] %v12005_v11  ;;  %v15700_v14 = vmax.f32 %v12005_v11, 0.0  ;;  %v16041_v45 = vsel %vm12063_vm13, 4294967295, %v16040_v45 }
 0x119   : > { %16042 = vst [vmem:[#allocation23_spill] sm:$0xff] %v16041_v45 }
 0x11f   : > { %v12012_v16 = vpop.f32.mrf.mxu0 }
 0x120   : > { %16030 = vst [vmem:[#allocation19_spill] sm:$0xff] %v12012_v16  ;;  %v15699_v17 = vmax.f32 %v12012_v16, 0.0 }
 0x121   : > { %v1322_v18 = vpop.f32.mrf.mxu1 }
 0x122   : > { %v1241_v19 = vpack.c.bf16 %v15699_v17, %v15700_v14  ;;  %v1402_v20 = vmax.f32 %v1322_v18, 0.0 }
 0x124   : > { %1361 = vmatmul.bf16.gmra.mxu1 %v1241_v19  ;;  %v1434_v28 = vpack.c.bf16 %v1402_v20, %v1402_v20 }
 0x126   : > { %v1496_v51 = vunpack.c.l.b16 %v1434_v28 }
 0x127   : > { %v12019_v21 = vpop.f32.mrf.mxu0 }
 0x128   : > { %16031 = vst [vmem:[#allocation20_spill] sm:$0xff] %v12019_v21  ;;  %v15698_v52 = vmax.f32 %v12019_v21, 0.0 }
 0x129   : > { %v1324_v27 = vpop.f32.mrf.mxu1 }
 0x12a   : > { %v1403_v33 = vmax.f32 %v1324_v27, 0.0 }
 0x12c   : > { %v1435_v40 = vpack.c.bf16 %v1403_v33, %v1403_v33 }
 0x12e   : > { %v1497_v57 = vunpack.c.l.b16 %v1435_v40 }
 0x12f   : > { %v12025_v58 = vpop.f32.mrf.mxu0 }
 0x130   : > { %16032 = vst [vmem:[#allocation21_spill] sm:$0xff] %v12025_v58  ;;  %v1526_v0 = vpack.c.b16 %v1497_v57, %v1496_v51  ;;  %v15697_v1 = vmax.f32 %v12025_v58, 0.0 }
 0x131   : > { %v1327_v4 = vpop.f32.mrf.mxu1 }
 0x132   : > { %2389 = vrot.lane.b32.xlu1 %v1526_v0, %s11770_s27  ;;  %10526 = vmatmul.msk.bf16.vlgmr.msrb.gmra.mxu0 %vm15744_vm6, %v1526_v0  ;;  %v1242_v18 = vpack.c.bf16 %v15697_v1, %v15698_v52  ;;  %v1543_v19 = vshrl.u32 %v1526_v0, 16  ;;  %v1546_v20 = vshll.u32 %v1526_v0, 16  ;;  %v1404_v39 = vmax.f32 %v1327_v4, 0.0 }
 0x134   : > { %1366 = vmatmul.bf16.gmra.mxu1 %v1242_v18  ;;  %v1545_v28 = vrot.slane %v1543_v19, 7  ;;  %v12053_v33 = vrot.slane %v1546_v20, 1  ;;  %v1436_v2 = vpack.c.bf16 %v1404_v39, %v1404_v39  ;;  %v1773_v18 = vsel %vm1743_vm14, 65537, %v15726_v9 }
 0x135   : > { %v1803_v27 = vunpack.c.l.b16 %v1773_v18 }
 0x136   : > { %v1548_v40 = vor.u32 %v1546_v20, %v1545_v28  ;;  %v1973_v46 = vor.u32 %v12053_v33, %v1543_v19  ;;  %v725_v20 = vadd.s32 32, %v12008_v13  ;;  %v1498_v12 = vunpack.c.l.b16 %v1436_v2 }
 0x137   : > { %v12068_v51 = vpop.f32.mrf.mxu0  ;;  %v10380_v39 = vunpack.i.l.s16 %v1803_v27 }
 0x138   : > { %16043 = vst [vmem:[#allocation24_spill] sm:$0xff] %v12068_v51  ;;  %v12075_v57 = vsel %vm12057_vm12, 0, %v1548_v40  ;;  %v15703_v1 = vmax.f32 %v12068_v51, 0.0  ;;  %v785_v8 = vand.u32 15, %v725_v20 }
 0x139   : > { %v1329_v63 = vpop.f32.mrf.mxu1  ;;  %v2370_v0 = vsel %vm12063_vm13, %v12075_v57, 0  ;;  %vm1852_vm0 = vcmp.ne.s32.totalorder %v10380_v39, %v12031_v10 }
 0x13a   : > { %v1405_v4 = vmax.f32 %v1329_v63, 0.0  ;;  %2435 = vrot.lane.b32.xlu0 %v2370_v0, %s11770_s27  ;;  %vm12095_vm15 = vcmp.ne.s32.totalorder %v785_v8, 0  ;;  %vm12110_vm3 = vmpackc.low %vm12044_vm9, %vm1852_vm0  ;;  %v16048_v8 = vmov 0 }
 0x13b   : > { %vm1745_vm2 = vmpackc.low %vm12095_vm15, %vm12095_vm15  ;;  %v16049_v8 = vsel %vm12110_vm3, 4294967295, %v16048_v8 }
 0x13c   : > { %v1437_v19 = vpack.c.bf16 %v1405_v4, %v1405_v4  ;;  %16050 = vst [vmem:[#allocation27_spill] sm:$0xff] %v16049_v8 }
 0x13e   : > { %v1499_v40 = vunpack.c.l.b16 %v1437_v19 }
 0x13f   : > { %v12084_v52 = vpop.f32.mrf.mxu0 }
 0x140   : > { %16044 = vst [vmem:[#allocation25_spill] sm:$0xff] %v12084_v52  ;;  %v1527_v17 = vpack.c.b16 %v1499_v40, %v1498_v12  ;;  %v15702_v14 = vmax.f32 %v12084_v52, 0.0 }
 0x141   : > { %v1332_v63 = vpop.f32.mrf.mxu1 }
 0x142   : > { %2387 = vrot.lane.b32.xlu0 %v15726_v9, %s11770_s27  ;;  %2391 = vrot.lane.b32.xlu2 %v1527_v17, %s11770_s27  ;;  %v1243_v0 = vpack.c.bf16 %v15702_v14, %v15703_v1  ;;  %v1550_v2 = vshrl.u32 %v1527_v17, 16  ;;  %v1553_v4 = vshll.u32 %v1527_v17, 16  ;;  %v1406_v20 = vmax.f32 %v1332_v63, 0.0 }
 0x143   : > { %10527 = vmatmul.msk.bf16.gmra.mxu0 %vm15744_vm6, %v1527_v17 }
 0x144   : > { %1371 = vmatmul.bf16.gmra.mxu1 %v1243_v0  ;;  %v1552_v12 = vrot.slane %v1550_v2, 7  ;;  %v1974_v19 = vrot.slane %v1553_v4, 1  ;;  %v1438_v0 = vpack.c.bf16 %v1406_v20, %v1406_v20 }
 0x146   : > { %v1555_v27 = vor.u32 %v1553_v4, %v1552_v12  ;;  %v12101_v40 = vsel %vm15811_vm1, %v1973_v46, %v1974_v19  ;;  %v1976_v17 = vor.u32 %v1974_v19, %v1550_v2  ;;  %v1775_v2 = vsel %vm1745_vm2, 65537, %v15726_v9 }
 0x147   : > { %v12103_v14 = vpop.f32.mrf.mxu0  ;;  %v727_v19 = vadd.s32 48, %v12008_v13  ;;  %v1805_v1 = vunpack.c.l.b16 %v1775_v2  ;;  %v1500_v6 = vunpack.c.l.b16 %v1438_v0 }
 0x148   : > { %16047 = vst [vmem:[#allocation26_spill] sm:$0xff] %v12103_v14  ;;  %v12115_v39 = vsel %vm15752_vm7, %v1545_v28, %v1555_v27  ;;  %v15711_v62 = vmax.f32 %v12103_v14, 0.0 }
 0x149   : > { %v1334_v63 = vpop.f32.mrf.mxu1  ;;  %v2371_v46 = vsel %vm12110_vm3, %v12115_v39, 0  ;;  %v799_v54 = vand.u32 15, %v727_v19 }
 0x14a   : > { %v1407_v4 = vmax.f32 %v1334_v63, 0.0  ;;  %2437 = vrot.lane.b32.xlu1 %v2371_v46, %s11770_s27  ;;  %v10382_v63 = vunpack.i.l.s16 %v1805_v1 }
 0x14b   : > { %vm12133_vm4 = vcmp.ne.s32.totalorder %v799_v54, 0 }
 0x14c   : > { %v1439_v18 = vpack.c.bf16 %v1407_v4, %v1407_v4  ;;  %vm1859_vm5 = vcmp.ne.s32.totalorder %v10382_v63, %v12031_v10  ;;  %vm1747_vm10 = vmpackc.low %vm12133_vm4, %vm12133_vm4 }
 0x14d   : > { %vm12151_vm11 = vmpackc.low %vm12044_vm9, %vm1859_vm5 }
 0x14e   : > { %v1501_v28 = vunpack.c.l.b16 %v1439_v18 }
 0x14f   : > { %v12124_v27 = vpop.f32.mrf.mxu0 }
 0x150   : > { %16051 = vst [vmem:[#allocation28_spill] sm:$0xff] %v12124_v27  ;;  %v1528_v60 = vpack.c.b16 %v1501_v28, %v1500_v6  ;;  %v15710_v56 = vmax.f32 %v12124_v27, 0.0 }
 0x151   : > { %v1337_v20 = vpop.f32.mrf.mxu1 }
 0x152   : > { %2393 = vrot.lane.b32.xlu0 %v1528_v60, %s11770_s27  ;;  %v1244_v46 = vpack.c.bf16 %v15710_v56, %v15711_v62  ;;  %v1558_v4 = vshrl.u32 %v1528_v60, 16  ;;  %v1561_v0 = vshll.u32 %v1528_v60, 16  ;;  %v1408_v1 = vmax.f32 %v1337_v20, 0.0 }
 0x153   : > { %10528 = vmatmul.msk.bf16.gmra.mxu0 %vm15744_vm6, %v1528_v60 }
 0x154   : > { %1376 = vmatmul.bf16.gmra.mxu1 %v1244_v46  ;;  %v1560_v2 = vrot.slane %v1558_v4, 7  ;;  %v1977_v18 = vrot.slane %v1561_v0, 1  ;;  %v16055_v46 = vmov 0  ;;  %v1440_v63 = vpack.c.bf16 %v1408_v1, %v1408_v1 }
 0x155   : > { %v16056_v46 = vsel %vm12151_vm11, 4294967295, %v16055_v46 }
 0x156   : > { %v1563_v19 = vor.u32 %v1561_v0, %v1560_v2  ;;  %v12139_v28 = vsel %vm15811_vm1, %v1976_v17, %v1977_v18  ;;  %v1979_v60 = vor.u32 %v1977_v18, %v1558_v4  ;;  %16057 = vst [vmem:[#allocation30_spill] sm:$0xff] %v16056_v46  ;;  %v1777_v4 = vsel %vm1747_vm10, 65537, %v15726_v9 }
 0x157   : > { %v12141_v50 = vpop.f32.mrf.mxu0  ;;  %v1807_v18 = vunpack.c.l.b16 %v1777_v4 }
 0x158   : > { %16054 = vst [vmem:[#allocation29_spill] sm:$0xff] %v12141_v50  ;;  %v12147_v54 = vsel %vm15752_vm7, %v1552_v12, %v1563_v19  ;;  %v729_v12 = vadd.s32 64, %v12008_v13  ;;  %v1502_v19 = vunpack.c.l.b16 %v1440_v63  ;;  %v15717_v56 = vmax.f32 %v12141_v50, 0.0 }
 0x159   : > { %v1339_v20 = vpop.f32.mrf.mxu1  ;;  %v2372_v17 = vsel %vm12151_vm11, %v12147_v54, 0 }
 0x15a   : > { %v1409_v0 = vmax.f32 %v1339_v20, 0.0  ;;  %2439 = vrot.lane.b32.xlu2 %v2372_v17, %s11770_s27  ;;  %v813_v38 = vand.u32 15, %v729_v12  ;;  %v10384_v20 = vunpack.i.l.s16 %v1807_v18 }
 0x15c   : > { %v1441_v6 = vpack.c.bf16 %v1409_v0, %v1409_v0  ;;  %vm12171_vm14 = vcmp.ne.s32.totalorder %v813_v38, 0  ;;  %vm1866_vm15 = vcmp.ne.s32.totalorder %v10384_v20, %v12031_v10 }
 0x15d   : > { %vm1749_vm0 = vmpackc.low %vm12171_vm14, %vm12171_vm14 }
 0x15e   : > { %v1503_v62 = vunpack.c.l.b16 %v1441_v6  ;;  %vm12189_vm2 = vmpackc.low %vm12044_vm9, %vm1866_vm15 }
 0x15f   : > { %v12162_v48 = vpop.f32.mrf.mxu0 }
 0x160   : > { %16058 = vst [vmem:[#allocation31_spill] sm:$0xff] %v12162_v48  ;;  %v1529_v44 = vpack.c.b16 %v1503_v62, %v1502_v19  ;;  %v15716_v42 = vmax.f32 %v12162_v48, 0.0 }
 0x161   : > { %v1342_v1 = vpop.f32.mrf.mxu1 }
 0x162   : > { %v1245_v17 = vpack.c.bf16 %v15716_v42, %v15717_v56  ;;  %2395 = vrot.lane.b32.xlu2 %v1529_v44, %s11770_s27  ;;  %v1566_v0 = vshrl.u32 %v1529_v44, 16  ;;  %v1569_v63 = vshll.u32 %v1529_v44, 16  ;;  %v1410_v12 = vmax.f32 %v1342_v1, 0.0 }
 0x163   : > { %10529 = vmatmul.msk.bf16.gmra.mxu0 %vm15744_vm6, %v1529_v44 }
 0x164   : > { %1381 = vmatmul.bf16.gmra.mxu1 %v1245_v17  ;;  %v1568_v4 = vrot.slane %v1566_v0, 7  ;;  %v1980_v6 = vrot.slane %v1569_v63, 1  ;;  %v16062_v17 = vmov 0  ;;  %v1442_v20 = vpack.c.bf16 %v1410_v12, %v1410_v12 }
 0x165   : > { %v16063_v17 = vsel %vm12189_vm2, 4294967295, %v16062_v17 }
 0x166   : > { %v1571_v18 = vor.u32 %v1569_v63, %v1568_v4  ;;  %v12177_v19 = vsel %vm15811_vm1, %v1979_v60, %v1980_v6  ;;  %v1982_v44 = vor.u32 %v1980_v6, %v1566_v0  ;;  %16064 = vst [vmem:[#allocation33_spill] sm:$0xff] %v16063_v17  ;;  %v1779_v0 = vsel %vm1749_vm0, 65537, %v15726_v9 }
 0x167   : > { %v12179_v42 = vpop.f32.mrf.mxu0  ;;  %v1809_v6 = vunpack.c.l.b16 %v1779_v0 }
 0x168   : > { %16061 = vst [vmem:[#allocation32_spill] sm:$0xff] %v12179_v42  ;;  %v12185_v38 = vsel %vm15752_vm7, %v1560_v2, %v1571_v18  ;;  %v731_v2 = vadd.s32 80, %v12008_v13  ;;  %v1504_v18 = vunpack.c.l.b16 %v1442_v20  ;;  %v15724_v56 = vmax.f32 %v12179_v42, 0.0 }
 0x169   : > { %v1344_v1 = vpop.f32.mrf.mxu1  ;;  %v2373_v60 = vsel %vm12189_vm2, %v12185_v38, 0 }
 0x16a   : > { %v1411_v63 = vmax.f32 %v1344_v1, 0.0  ;;  %2441 = vrot.lane.b32.xlu1 %v2373_v60, %s11770_s27  ;;  %v827_v60 = vand.u32 15, %v731_v2 }
 0x16c   : > { %v1443_v62 = vpack.c.bf16 %v1411_v63, %v1411_v63  ;;  %v10386_v63 = vunpack.i.l.s16 %v1809_v6  ;;  %vm12217_vm4 = vcmp.ne.s32.totalorder %v827_v60, 0  ;;  %v11577_v6 = vld [vmem:[%s15687_s3 + $0x38] sm:$0xff] }
 0x16d   : > { %vm1751_vm10 = vmpackc.low %vm12217_vm4, %vm12217_vm4  ;;  %2788 = vmatpush.bf16.msra.mxu2 %v11577_v6 }
 0x16e   : > { %v1505_v36 = vunpack.c.l.b16 %v1443_v62  ;;  %vm1873_vm5 = vcmp.ne.s32.totalorder %v10386_v63, %v12031_v10 }
 0x16f   : > { %v12203_v30 = vpop.f32.mrf.mxu0  ;;  %vm12242_vm14 = vmpackc.low %vm12044_vm9, %vm1873_vm5 }
 0x170   : > { %16065 = vst [vmem:[#allocation34_spill] sm:$0xff] %v12203_v30  ;;  %v1530_v12 = vpack.c.b16 %v1505_v36, %v1504_v18  ;;  %v15723_v1 = vmax.f32 %v12203_v30, 0.0  ;;  %v11575_v30 = vld [vmem:[%s15687_s3 + $0x28] sm:$0xff] }
 0x171   : > { %v1347_v26 = vpop.f32.mrf.mxu1  ;;  %2789 = vmatpush.bf16.msra.mxu2 %v11576_v32 }
 0x172   : > { %v1246_v20 = vpack.c.bf16 %v15723_v1, %v15724_v56  ;;  %2397 = vrot.lane.b32.xlu1 %v1530_v12, %s11770_s27  ;;  %v1574_v0 = vshrl.u32 %v1530_v12, 16  ;;  %v1577_v62 = vshll.u32 %v1530_v12, 16  ;;  %v1412_v18 = vmax.f32 %v1347_v26, 0.0 }
 0x173   : > { %10530 = vmatmul.msk.bf16.gmra.mxu0 %vm15744_vm6, %v1530_v12  ;;  %v11583_v12 = vld [vmem:[%s15687_s3 + $0x68] sm:$0xff]  ;;  %v16069_v26 = vmov 0 }
 0x174   : > { %1386 = vmatmul.bf16.gmra.mxu1 %v1246_v20  ;;  %v12215_v36 = vrot.slane %v1574_v0, 7  ;;  %v1983_v2 = vrot.slane %v1577_v62, 1  ;;  %v16070_v26 = vsel %vm12242_vm14, 4294967295, %v16069_v26  ;;  %2879 = vmatpush.bf16.msra.mxu3 %v11583_v12  ;;  %v733_v12 = vadd.s32 96, %v12008_v13 }
 0x175   : > { %16071 = vst [vmem:[#allocation36_spill] sm:$0xff] %v16070_v26  ;;  %2790 = vmatpush.bf16.msra.mxu2 %v11575_v30 }
 0x176   : > { %v1579_v1 = vor.u32 %v1577_v62, %v12215_v36  ;;  %v12230_v60 = vsel %vm15811_vm1, %v1982_v44, %v1983_v2  ;;  %v1985_v25 = vor.u32 %v1983_v2, %v1574_v0  ;;  %v1444_v0 = vpack.c.bf16 %v1412_v18, %v1412_v18 }
 0x177   : > { %v12232_v20 = vpop.f32.mrf.mxu0 }
 0x178   : > { %16068 = vst [vmem:[#allocation35_spill] sm:$0xff] %v12232_v20  ;;  %v12238_v63 = vsel %vm15752_vm7, %v1568_v4, %v1579_v1  ;;  %v1781_v4 = vsel %vm1751_vm10, 65537, %v15726_v9  ;;  %v11582_v1 = vld [vmem:[%s15687_s3 + $0x60] sm:$0xff]  ;;  %v1506_v18 = vunpack.c.l.b16 %v1444_v0  ;;  %v11581_v9 = vld [vmem:[%s15687_s3 + $0x58] sm:$0xff] }
 0x179   : > { %v1349_v44 = vpop.f32.mrf.mxu1  ;;  %v2374_v62 = vsel %vm12242_vm14, %v12238_v63, 0  ;;  %2880 = vmatpush.bf16.msra.mxu3 %v11582_v1  ;;  %v1811_v56 = vunpack.c.l.b16 %v1781_v4  ;;  %v841_v1 = vand.u32 15, %v733_v12  ;;  %v11574_v0 = vld [vmem:[%s15687_s3 + $0x20] sm:$0xff]  ;;  %v11580_v12 = vld [vmem:[%s15687_s3 + $0x50] sm:$0xff] }
 0x17a   : > { %v1413_v2 = vmax.f32 %v1349_v44, 0.0  ;;  %2443 = vrot.lane.b32.xlu0 %v2374_v62, %s11770_s27  ;;  %v15732_v44 = vmax.f32 %v12232_v20, 0.0  ;;  %2791 = vmatpush.bf16.msra.mxu2 %v11574_v0 }
 0x17b   : > { %v10388_v48 = vunpack.i.l.s16 %v1811_v56  ;;  %vm12282_vm15 = vcmp.ne.s32.totalorder %v841_v1, 0 }
 0x17c   : > { %v1445_v6 = vpack.c.bf16 %v1413_v2, %v1413_v2  ;;  %vm1753_vm4 = vmpackc.low %vm12282_vm15, %vm12282_vm15 }
 0x17d   : > { %2881 = vmatpush.bf16.msra.mxu3 %v11581_v9  ;;  %vm1880_vm0 = vcmp.ne.s32.totalorder %v10388_v48, %v12031_v10 }
 0x17e   : > { %v1507_v62 = vunpack.c.l.b16 %v1445_v6  ;;  %vm12308_vm5 = vmpackc.low %vm12044_vm9, %vm1880_vm0 }
 0x17f   : > { %v12265_v42 = vpop.f32.mrf.mxu0 }
 0x180   : > { %16072 = vst [vmem:[#allocation37_spill] sm:$0xff] %v12265_v42  ;;  %v1531_v32 = vpack.c.b16 %v1507_v62, %v1506_v18  ;;  %v15731_v2 = vmax.f32 %v12265_v42, 0.0  ;;  %v11573_v62 = vld [vmem:[%s15687_s3 + $0x18] sm:$0xff]  ;;  %v735_v42 = vadd.s32 112, %v12008_v13 }
 0x181   : > { %v1352_v4 = vpop.f32.mrf.mxu1  ;;  %2882 = vmatpush.bf16.msra.mxu3 %v11580_v12  ;;  %2792 = vmatpush.bf16.msra.mxu2 %v11573_v62  ;;  %v722_v62 = vadd.s32 8, %v12008_v13 }
 0x182   : > { %v1247_v6 = vpack.c.bf16 %v15731_v2, %v15732_v44  ;;  %2399 = vrot.lane.b32.xlu0 %v1531_v32, %s11770_s27  ;;  %v1582_v50 = vshrl.u32 %v1531_v32, 16  ;;  %v1585_v30 = vshll.u32 %v1531_v32, 16  ;;  %v1414_v2 = vmax.f32 %v1352_v4, 0.0 }
 0x183   : > { %10531 = vmatmul.msk.bf16.gmra.mxu0 %vm15744_vm6, %v1531_v32  ;;  %v11579_v32 = vld [vmem:[%s15687_s3 + $0x48] sm:$0xff]  ;;  %v764_v52 = vand.u32 15, %v722_v62 }
 0x184   : > { %1391 = vmatmul.bf16.gmra.mxu1 %v1247_v6  ;;  %v12280_v56 = vrot.slane %v1582_v50, 7  ;;  %v1986_v18 = vrot.slane %v1585_v30, 1  ;;  %v16076_v6 = vmov 0  ;;  %v1446_v12 = vpack.c.bf16 %v1414_v2, %v1414_v2  ;;  %v11571_v2 = vld [vmem:[%s15687_s3 + $0x8] sm:$0xff] }
 0x185   : > { %v16077_v6 = vsel %vm12308_vm5, 4294967295, %v16076_v6  ;;  %2883 = vmatpush.bf16.msra.mxu3 %v11579_v32  ;;  %vm12341_vm10 = vcmp.ne.s32.totalorder %v764_v52, 15 }
 0x186   : > { %v1587_v44 = vor.u32 %v1585_v30, %v12280_v56  ;;  %v12295_v1 = vsel %vm15811_vm1, %v1985_v25, %v1986_v18  ;;  %v1988_v48 = vor.u32 %v1986_v18, %v1582_v50  ;;  %16078 = vst [vmem:[#allocation39_spill] sm:$0xff] %v16077_v6  ;;  %v11572_v50 = vld [vmem:[%s15687_s3 + $0x10] sm:$0xff]  ;;  %v11578_v18 = vld [vmem:[%s15687_s3 + $0x40] sm:$0xff] }
 0x187   : > { %v12297_v0 = vpop.f32.mrf.mxu0  ;;  %2793 = vmatpush.bf16.msra.mxu2 %v11572_v50 }
 0x188   : > { %16075 = vst [vmem:[#allocation38_spill] sm:$0xff] %v12297_v0  ;;  %v12304_v4 = vsel %vm15752_vm7, %v12215_v36, %v1587_v44  ;;  %v16079_v36 = vmov 0  }
 0x189   : > { %v1354_v25 = vpop.f32.mrf.mxu1  ;;  %v2375_v30 = vsel %vm12308_vm5, %v12304_v4, 0  ;;  %v1783_v44 = vsel %vm1753_vm4, 65537, %v16079_v36  ;;  %2884 = vmatpush.bf16.msra.mxu3 %v11578_v18  ;;  %vm2105_vm4 = vmpackc.low %vm12341_vm10, %vm12341_vm10  ;;  %vm16088_vm10 = vcmask 523264  }
 0x18a   : > { %v1415_v9 = vmax.f32 %v1354_v25, 0.0  ;;  %2445 = vrot.lane.b32.xlu2 %v2375_v30, %s11770_s27  ;;  %v1813_v20 = vunpack.c.l.b16 %v1783_v44  ;;  %v1508_v25 = vunpack.c.l.b16 %v1446_v12  ;;  %v15746_v30 = vmax.f32 %v12297_v0, 0.0  ;;  %v11570_v44 = vld [vmem:[%s15687_s3] sm:$0xff] }
 0x18b   : > { %2794 = vmatpush.bf16.msra.mxu2 %v11571_v2 }
 0x18c   : > { %v1447_v32 = vpack.c.bf16 %v1415_v9, %v1415_v9  ;;  %v855_v9 = vand.u32 15, %v735_v42  ;;  %v10390_v34 = vunpack.i.l.s16 %v1813_v20  ;;  %v737_v20 = vadd.s32 128, %v12008_v13 }
 0x18e   : > { %v1509_v27 = vunpack.c.l.b16 %v1447_v32  ;;  %vm12345_vm15 = vcmp.ne.s32.totalorder %v855_v9, 0  ;;  %vm1887_vm0 = vcmp.ne.s32.totalorder %v10390_v34, %v12031_v10  ;;  %v16085_v34 = vmov 0 }
 0x18f   : > { %v12329_v14 = vpop.f32.mrf.mxu0  ;;  %2795 = vmatpush.bf16.msra.mxu2 %v11570_v44  ;;  %vm1755_vm8 = vmpackc.low %vm12345_vm15, %vm12345_vm15  ;;  %v869_v58 = vand.u32 15, %v737_v20 }
 0x190   : > { %16080 = vst [vmem:[#allocation40_spill] sm:$0xff] %v12329_v14  ;;  %v1532_v50 = vpack.c.b16 %v1509_v27, %v1508_v25  ;;  %v15745_v51 = vmax.f32 %v12329_v14, 0.0 }
 0x191   : > { %v1357_v45 = vpop.f32.mrf.mxu1 }
 0x192   : > { %v1248_v12 = vpack.c.bf16 %v15745_v51, %v15746_v30  ;;  %2401 = vrot.lane.b32.xlu2 %v1532_v50, %s11770_s27  ;;  %v1590_v18 = vshrl.u32 %v1532_v50, 16  ;;  %v1593_v32 = vshll.u32 %v1532_v50, 16  ;;  %v1416_v2 = vmax.f32 %v1357_v45, 0.0 }
 0x193   : > { %10532 = vmatmul.msk.bf16.gmra.mxu0 %vm15744_vm6, %v1532_v50  ;;  %vm12365_vm6 = vmpackc.low %vm12044_vm9, %vm1887_vm0  ;;  %vm12383_vm0 = vcmp.ne.s32.totalorder %v869_v58, 0 }
 0x194   : > { %1396 = vmatmul.bf16.gmra.mxu1 %v1248_v12  ;;  %v1592_v42 = vrot.slane %v1590_v18, 7  ;;  %v1989_v62 = vrot.slane %v1593_v32, 1  ;;  %v16086_v34 = vsel %vm12365_vm6, 4294967295, %v16085_v34  ;;  %v1448_v44 = vpack.c.bf16 %v1416_v2, %v1416_v2 }
 0x195   : > { %16087 = vst [vmem:[#allocation41_spill] sm:$0xff] %v16086_v34 }
 0x196   : > { %v1595_v25 = vor.u32 %v1593_v32, %v1592_v42  ;;  %v12354_v52 = vsel %vm15811_vm1, %v1988_v48, %v1989_v62  ;;  %v1991_v50 = vor.u32 %v1989_v62, %v1590_v18  ;;  %v1785_v18 = vsel %vm1755_vm8, 65537, %v16079_v36 }
 0x197   : > { %v724_v32 = vadd.s32 24, %v12008_v13  ;;  %v1815_v62 = vunpack.c.l.b16 %v1785_v18  ;;  %vm2037_vm8 = vcmask 1047552   ;;  %v739_v18 = vadd.s32 144, %v12008_v13 }
 0x198   : > { %v12361_v9 = vsel %vm15752_vm7, %v12280_v56, %v1595_v25  ;;  %v2137_v56 = vsel %vm2105_vm4, 65537, %v16079_v36  ;;  %v1510_v25 = vunpack.c.l.b16 %v1448_v44  ;;  %vm12389_vm7 = vmand %vm2037_vm8, %vm15811_vm1 }
 0x199   : > { %v1359_v45 = vpop.f32.mrf.mxu1  ;;  %v2376_v48 = vsel %vm12365_vm6, %v12361_v9, 0  ;;  %v2169_v30 = vunpack.c.l.b16 %v2137_v56  ;;  %v778_v14 = vand.u32 15, %v724_v32  ;;  %v16093_v56 = vmov 0  ;;  %vm1757_vm8 = vmpackc.low %vm12383_vm0, %vm12383_vm0 }
 0x19a   : > { %v1417_v12 = vmax.f32 %v1359_v45, 0.0  ;;  %2447 = vrot.lane.b32.xlu1 %v2376_v48, %s11770_s27  ;;  %v10392_v45 = vunpack.i.l.s16 %v1815_v62  ;;  %v16094_v56 = vsel %vm12389_vm7, 4294967295, %v16093_v56  ;;  %vm16098_vm6 = vsmask.f32 256 }
 0x19b   : > { %v10411_v16 = vunpack.i.l.s16 %v2169_v30  ;;  %vm12379_vm15 = vcmp.ne.s32.totalorder %v778_v14, 15  ;;  %16095 = vst [vmem:[#allocation42_spill] sm:$0xff] %v16094_v56  ;;  %v883_v7 = vand.u32 15, %v739_v18 }
 0x19c   : > { %v1449_v27 = vpack.c.bf16 %v1417_v12, %v1417_v12  ;;  %vm1894_vm4 = vcmp.ne.s32.totalorder %v10392_v45, %v12031_v10  ;;  %vm2107_vm12 = vmpackc.low %vm12379_vm15, %vm12379_vm15  ;;  %v726_v45 = vadd.s32 40, %v12008_v13 }
 0x19d   : > { %vm2221_vm13 = vcmp.ne.s32.totalorder %v10411_v16, %v12034_v15  ;;  %vm12414_vm5 = vmpackc.low %vm12044_vm9, %vm1894_vm4 }
 0x19e   : > { %v1511_v51 = vunpack.c.l.b16 %v1449_v27  ;;  %v2039_v27 = vsel %vm12389_vm7, 0, %v12053_v33  ;;  %v792_v56 = vand.u32 15, %v726_v45  ;;  %vm16114_vm7 = vsmask.f32 256 }
 0x1a0   : > { %v1533_v0 = vpack.c.b16 %v1511_v51, %v1510_v25  ;;  %v1787_v25 = vsel %vm1757_vm8, 65537, %v16079_v36  ;;  %vm12445_vm4 = vcmp.ne.s32.totalorder %v792_v56, 15  ;;  %vm12451_vm8 = vcmp.ne.s32.totalorder %v883_v7, 0 }
 0x1a1   : > { %v1362_v2 = vpop.f32.mrf.mxu1 }
 0x1a2   : > { %2403 = vrot.lane.b32.xlu1 %v1533_v0, %s11770_s27  ;;  %v1598_v48 = vshrl.u32 %v1533_v0, 16  ;;  %v1601_v21 = vshll.u32 %v1533_v0, 16 }
 0x1a3   : > { %10533 = vmatmul.msk.bf16.gmra.mxu0 %vm16088_vm10, %v1533_v0  ;;  %vm12395_vm10 = vcmp.ne.s32.totalorder %v12028_v5, %v12031_v10  ;;  %v1418_v0 = vmax.f32 %v1362_v2, 0.0  ;;  %v2139_v2 = vsel %vm2107_vm12, 65537, %v16079_v36 }
 0x1a4   : > { %v1600_v44 = vrot.slane %v1598_v48, 7  ;;  %v1992_v51 = vrot.slane %v1601_v21, 1  ;;  %vm12426_vm15 = vmpackc.low %vm2221_vm13, %vm12395_vm10 }
 0x1a5   : > { %v1450_v20 = vpack.c.bf16 %v1418_v0, %v1418_v0  ;;  %v2328_v33 = vsel %vm12426_vm15, %v2039_v27, 0 }
 0x1a6   : > { %v1603_v30 = vor.u32 %v1601_v21, %v1600_v44  ;;  %v12404_v58 = vsel %vm15811_vm1, %v1991_v50, %v1992_v51  ;;  %v1994_v32 = vor.u32 %v1992_v51, %v1598_v48  ;;  %v16099_v21 = vmov 0 }
 0x1a7   : > { %v16100_v21 = vsel %vm12414_vm5, 4294967295, %v16099_v21  ;;  %v1512_v0 = vunpack.c.l.b16 %v1450_v20 }
 0x1a8   : > { %v12410_v5 = vsel %vm16098_vm6, %v1592_v42, %v1603_v30  ;;  %16101 = vst [vmem:[#allocation43_spill] sm:$0xff] %v16100_v21  ;;  %v16102_v42 = vmov 0  ;;  %vm16105_vm6 = vcmask 523264   ;;  %v1817_v30 = vunpack.c.l.b16 %v1787_v25  ;;  %v2390_v25 = vpop.permute.xlu1 %2389 }
 0x1a9   : > { %v1364_v16 = vpop.f32.mrf.mxu1  ;;  %v2377_v50 = vsel %vm12414_vm5, %v12410_v5, 0  ;;  %v16103_v42 = vsel %vm12426_vm15, 4294967295, %v16102_v42  ;;  %vm16106_vm12 = vmmov %vm16105_vm6 }
 0x1aa   : > { %16104 = vst [vmem:[#allocation44_spill] sm:$0xff] %v16103_v42  ;;  %v1419_v62 = vmax.f32 %v1364_v16, 0.0  ;;  %2449 = vrot.lane.b32.xlu0 %v2377_v50, %s11770_s27  ;;  %v2171_v50 = vunpack.c.l.b16 %v2139_v2  ;;  %v10394_v61 = vunpack.i.l.s16 %v1817_v30  ;;  %vm12440_vm13 = vmneg %vm16106_vm12 }
 0x1ab   : > { %vm16109_vm0 = vmmov %vm16105_vm6 }
 0x1ac   : > { %v1451_v48 = vpack.c.bf16 %v1419_v62, %v1419_v62  ;;  %v2436_v12 = vpop.permute.xlu0 %2435  ;;  %v16107_v62 = vmov 0  ;;  %vm1759_vm15 = vmpackc.low %vm12451_vm8, %vm12451_vm8 }
 0x1ad   : > { %v2534_v51 = vsel %vm16105_vm6, %v2328_v33, %v2436_v12  ;;  %v16108_v62 = vsel %vm12440_vm13, 4294967295, %v16107_v62  ;;  %v10413_v12 = vunpack.i.l.s16 %v2171_v50  ;;  %vm1901_vm6 = vcmp.ne.s32.totalorder %v10394_v61, %v12031_v10 }
 0x1ae   : > { %v1513_v16 = vunpack.c.l.b16 %v1451_v48  ;;  %2885 = vmatmul.bf16.vlgmr.msra.gmra.mxu3 %v2534_v51  ;;  %v16115_v61 = vmov 0  ;;  %v728_v50 = vadd.s32 56, %v12008_v13  ;;  %v741_v48 = vadd.s32 160, %v12008_v13 }
 0x1af   : > { %vm2228_vm12 = vcmp.ne.s32.totalorder %v10413_v12, %v12034_v15 }
 0x1b0   : > { %v1534_v11 = vpack.c.b16 %v1513_v16, %v1512_v0  ;;  %v1789_v0 = vsel %vm1759_vm15, 65537, %v16079_v36  ;;  %v806_v59 = vand.u32 15, %v728_v50  ;;  %v897_v53 = vand.u32 15, %v741_v48 }
 0x1b1   : > { %v1367_v3 = vpop.f32.mrf.mxu1 }
 0x1b2   : > { %2405 = vrot.lane.b32.xlu0 %v1534_v11, %s11770_s27  ;;  %v1606_v27 = vshrl.u32 %v1534_v11, 16  ;;  %v1609_v42 = vshll.u32 %v1534_v11, 16  ;;  %vm12501_vm8 = vcmp.ne.s32.totalorder %v806_v59, 15 }
 0x1b3   : > { %10534 = vmatmul.msk.bf16.gmra.mxu0 %vm16109_vm0, %v1534_v11  ;;  %v1420_v11 = vmax.f32 %v1367_v3, 0.0  ;;  %vm2109_vm0 = vmpackc.low %vm12445_vm4, %vm12445_vm4 }
 0x1b4   : > { %v12449_v2 = vpop.permute.xlu0 %2387  ;;  %v1608_v45 = vrot.slane %v1606_v27, 7  ;;  %v1995_v33 = vrot.slane %v1609_v42, 1  ;;  %vm12483_vm4 = vmpackc.low %vm2228_vm12, %vm12395_vm10  ;;  %v2141_v16 = vsel %vm2109_vm0, 65537, %v16079_v36  ;;  %vm12506_vm12 = vcmp.ne.s32.totalorder %v897_v53, 0 }
 0x1b5   : > { %10525 = vmatmul.msk.bf16.vlgmr.msra.gmra.mxu2 %vm12440_vm13, %v12449_v2  ;;  %vm12474_vm13 = vmpackc.low %vm12044_vm9, %vm1901_vm6  ;;  %v1452_v30 = vpack.c.bf16 %v1420_v11, %v1420_v11  ;;  %v2329_v20 = vsel %vm12483_vm4, %v12101_v40, 0  ;;  %v1819_v11 = vunpack.c.l.b16 %v1789_v0 }
 0x1b6   : > { %v1611_v56 = vor.u32 %v1609_v42, %v1608_v45  ;;  %v12464_v7 = vsel %vm15811_vm1, %v1994_v32, %v1995_v33  ;;  %v1997_v18 = vor.u32 %v1995_v33, %v1606_v27  ;;  %v16116_v61 = vsel %vm12474_vm13, 4294967295, %v16115_v61 }
 0x1b7   : > { %16117 = vst [vmem:[#allocation45_spill] sm:$0xff] %v16116_v61  ;;  %v16118_v42 = vmov 0  ;;  %v10396_v47 = vunpack.i.l.s16 %v1819_v11  ;;  %v730_v11 = vadd.s32 72, %v12008_v13 }
 0x1b8   : > { %v12470_v51 = vsel %vm16114_vm7, %v1600_v44, %v1611_v56  ;;  %v16119_v42 = vsel %vm12483_vm4, 4294967295, %v16118_v42  ;;  %vm16121_vm7 = vcmask 523264   ;;  %v1514_v56 = vunpack.c.l.b16 %v1452_v30 }
 0x1b9   : > { %v1369_v3 = vpop.f32.mrf.mxu1  ;;  %v2378_v32 = vsel %vm12474_vm13, %v12470_v51, 0  ;;  %16120 = vst [vmem:[#allocation46_spill] sm:$0xff] %v16119_v42  ;;  %vm16122_vm15 = vmmov %vm16121_vm7  ;;  %vm1908_vm0 = vcmp.ne.s32.totalorder %v10396_v47, %v12031_v10  ;;  %vm16128_vm4 = vsmask.f32 256 }
 0x1ba   : > { %v1421_v44 = vmax.f32 %v1369_v3, 0.0  ;;  %2451 = vrot.lane.b32.xlu2 %v2378_v32, %s11770_s27  ;;  %v2173_v32 = vunpack.c.l.b16 %v2141_v16  ;;  %vm16125_vm6 = vmmov %vm16121_vm7 }
 0x1bc   : > { %v1453_v27 = vpack.c.bf16 %v1421_v44, %v1421_v44  ;;  %v2438_v12 = vpop.permute.xlu1 %2437  ;;  %v2392_v44 = vpop.permute.xlu2 %2391  ;;  %v10415_v40 = vunpack.i.l.s16 %v2173_v32  ;;  %v743_v32 = vadd.s32 176, %v12008_v13 }
 0x1bd   : > { %v2538_v33 = vsel %vm16121_vm7, %v2329_v20, %v2438_v12  ;;  %v1953_v12 = vsel %vm12110_vm3, %v12075_v57, 0  ;;  %vm12526_vm3 = vmpackc.low %vm12044_vm9, %vm1908_vm0 }
 0x1be   : > { %v1515_v3 = vunpack.c.l.b16 %v1453_v27  ;;  %2890 = vmatmul.bf16.gmra.mxu3 %v2538_v33  ;;  %v2474_v0 = vsel %vm16125_vm6, %v1953_v12, %v2390_v25  ;;  %vm2235_vm7 = vcmp.ne.s32.totalorder %v10415_v40, %v12034_v15  ;;  %vm1761_vm6 = vmpackc.low %vm12506_vm12, %vm12506_vm12  ;;  %v16131_v25 = vmov 0 }
 0x1c0   : > { %v1535_v55 = vpack.c.b16 %v1515_v3, %v1514_v56 }
 0x1c1   : > { %v1372_v49 = vpop.f32.mrf.mxu1 }
 0x1c2   : > { %2407 = vrot.lane.b32.xlu2 %v1535_v55, %s11770_s27  ;;  %v1614_v43 = vshrl.u32 %v1535_v55, 16  ;;  %v1617_v42 = vshll.u32 %v1535_v55, 16  ;;  %v1422_v20 = vmax.f32 %v1372_v49, 0.0 }
 0x1c3   : > { %10535 = vmatmul.msk.bf16.gmra.mxu0 %vm16122_vm15, %v1535_v55  ;;  %vm2111_vm15 = vmpackc.low %vm12501_vm8, %vm12501_vm8 }
 0x1c4   : > { %v1616_v16 = vrot.slane %v1614_v43, 7  ;;  %v1998_v27 = vrot.slane %v1617_v42, 1  ;;  %vm12535_vm8 = vmpackc.low %vm2235_vm7, %vm12395_vm10  ;;  %v2143_v33 = vsel %vm2111_vm15, 65537, %v16079_v36 }
 0x1c5   : > { %2801 = vmatmul.bf16.gmra.mxu2 %v2474_v0  ;;  %v16132_v25 = vsel %vm12535_vm8, 4294967295, %v16131_v25  ;;  %v2330_v3 = vsel %vm12535_vm8, %v12139_v28, 0  ;;  %v2175_v50 = vunpack.c.l.b16 %v2143_v33  ;;  %v1954_v28 = vsel %vm12151_vm11, %v12115_v39, 0 }
 0x1c6   : > { %v1619_v48 = vor.u32 %v1617_v42, %v1616_v16  ;;  %v12516_v55 = vsel %vm15811_vm1, %v1997_v18, %v1998_v27  ;;  %v2000_v53 = vor.u32 %v1998_v27, %v1614_v43  ;;  %16133 = vst [vmem:[#allocation47_spill] sm:$0xff] %v16132_v25  ;;  %v2440_v43 = vpop.permute.xlu2 %2439  ;;  %v1791_v42 = vsel %vm1761_vm6, 65537, %v16079_v36 }
 0x1c7   : > { %v1821_v12 = vunpack.c.l.b16 %v1791_v42  ;;  %v820_v27 = vand.u32 15, %v730_v11  ;;  %v10417_v25 = vunpack.i.l.s16 %v2175_v50  ;;  %vm16141_vm8 = vsmask.f32 256 }
 0x1c8   : > { %v12522_v59 = vsel %vm16128_vm4, %v1608_v45, %v1619_v48  ;;  %v1454_v45 = vpack.c.bf16 %v1422_v20, %v1422_v20  ;;  %vm16134_vm4 = vcmask 523264   ;;  %v911_v48 = vand.u32 15, %v743_v32 }
 0x1c9   : > { %v1374_v49 = vpop.f32.mrf.mxu1  ;;  %v2379_v57 = vsel %vm12526_vm3, %v12522_v59, 0  ;;  %v2542_v40 = vsel %vm16134_vm4, %v2330_v3, %v2440_v43  ;;  %vm16135_vm12 = vmmov %vm16134_vm4  ;;  %vm12553_vm0 = vcmp.ne.s32.totalorder %v820_v27, 15  ;;  %v732_v50 = vadd.s32 88, %v12008_v13 }
 0x1ca   : > { %v1423_v18 = vmax.f32 %v1374_v49, 0.0  ;;  %2453 = vrot.lane.b32.xlu1 %v2379_v57, %s11770_s27  ;;  %v1516_v30 = vunpack.c.l.b16 %v1454_v45  ;;  %v10398_v57 = vunpack.i.l.s16 %v1821_v12  ;;  %vm16138_vm7 = vmmov %vm16134_vm4  ;;  %vm12558_vm15 = vcmp.ne.s32.totalorder %v911_v48, 0 }
 0x1cb   : > { %v2478_v45 = vsel %vm16138_vm7, %v1954_v28, %v2392_v44  ;;  %vm2242_vm4 = vcmp.ne.s32.totalorder %v10417_v25, %v12034_v15  ;;  %vm1763_vm7 = vmpackc.low %vm12558_vm15, %vm12558_vm15 }
 0x1cc   : > { %v1455_v56 = vpack.c.bf16 %v1423_v18, %v1423_v18  ;;  %vm1915_vm6 = vcmp.ne.s32.totalorder %v10398_v57, %v12031_v10  ;;  %v12599_v57 = vpop.f32.mrf.mxu0 }
 0x1cd   : > { %vm12578_vm11 = vmpackc.low %vm12044_vm9, %vm1915_vm6 }
 0x1ce   : > { %v1517_v0 = vunpack.c.l.b16 %v1455_v56  ;;  %2895 = vmatmul.bf16.gmra.mxu3 %v2542_v40  ;;  %v16144_v40 = vmov 0 }
 0x1d0   : > { %v1536_v20 = vpack.c.b16 %v1517_v0, %v1516_v30  ;;  %v1793_v30 = vsel %vm1763_vm7, 65537, %v16079_v36 }
 0x1d1   : > { %v1377_v49 = vpop.f32.mrf.mxu1  ;;  %v1823_v28 = vunpack.c.l.b16 %v1793_v30 }
 0x1d2   : > { %2409 = vrot.lane.b32.xlu1 %v1536_v20, %s11770_s27  ;;  %v1622_v18 = vshrl.u32 %v1536_v20, 16  ;;  %v1625_v8 = vshll.u32 %v1536_v20, 16  ;;  %v1424_v56 = vmax.f32 %v1377_v49, 0.0  ;;  %v745_v49 = vadd.s32 192, %v12008_v13 }
 0x1d3   : > { %10536 = vmatmul.msk.bf16.gmra.mxu0 %vm16135_vm12, %v1536_v20  ;;  %vm2113_vm12 = vmpackc.low %vm12553_vm0, %vm12553_vm0 }
 0x1d4   : > { %v1624_v42 = vrot.slane %v1622_v18, 7  ;;  %v2001_v11 = vrot.slane %v1625_v8, 1  ;;  %vm12587_vm0 = vmpackc.low %vm2242_vm4, %vm12395_vm10  ;;  %v1456_v12 = vpack.c.bf16 %v1424_v56, %v1424_v56  ;;  %v2145_v0 = vsel %vm2113_vm12, 65537, %v16079_v36 }
 0x1d5   : > { %2806 = vmatmul.bf16.gmra.mxu2 %v2478_v45  ;;  %v16145_v40 = vsel %vm12587_vm0, 4294967295, %v16144_v40  ;;  %v2331_v48 = vsel %vm12587_vm0, %v12177_v19, 0  ;;  %v2177_v33 = vunpack.c.l.b16 %v2145_v0  ;;  %vm16154_vm0 = vsmask.f32 256 }
 0x1d6   : > { %v1627_v3 = vor.u32 %v1625_v8, %v1624_v42  ;;  %v12568_v39 = vsel %vm15811_vm1, %v2000_v53, %v2001_v11  ;;  %v2003_v44 = vor.u32 %v2001_v11, %v1622_v18  ;;  %16146 = vst [vmem:[#allocation48_spill] sm:$0xff] %v16145_v40  ;;  %v1518_v43 = vunpack.c.l.b16 %v1456_v12 }
 0x1d7   : > { %v834_v11 = vand.u32 15, %v732_v50  ;;  %v10419_v46 = vunpack.i.l.s16 %v2177_v33  ;;  %v1955_v12 = vsel %vm12189_vm2, %v12147_v54, 0 }
 0x1d8   : > { %v12574_v32 = vsel %vm16141_vm8, %v1616_v16, %v1627_v3  ;;  %vm16147_vm8 = vcmask 523264   ;;  %v925_v3 = vand.u32 15, %v745_v49 }
 0x1d9   : > { %v1379_v25 = vpop.f32.mrf.mxu1  ;;  %v2380_v53 = vsel %vm12578_vm11, %v12574_v32, 0  ;;  %vm16148_vm15 = vmmov %vm16147_vm8  ;;  %vm12607_vm6 = vcmp.ne.s32.totalorder %v834_v11, 15 }
 0x1da   : > { %v1425_v16 = vmax.f32 %v1379_v25, 0.0  ;;  %2455 = vrot.lane.b32.xlu0 %v2380_v53, %s11770_s27  ;;  %v2394_v25 = vpop.permute.xlu0 %2393  ;;  %vm16151_vm4 = vmmov %vm16147_vm8  ;;  %vm12612_vm12 = vcmp.ne.s32.totalorder %v925_v3, 0  ;;  %v734_v3 = vadd.s32 104, %v12008_v13 }
 0x1db   : > { %v2482_v0 = vsel %vm16151_vm4, %v1955_v12, %v2394_v25  ;;  %vm1765_vm4 = vmpackc.low %vm12612_vm12, %vm12612_vm12 }
 0x1dc   : > { %v1457_v27 = vpack.c.bf16 %v1425_v16, %v1425_v16  ;;  %v2442_v20 = vpop.permute.xlu1 %2441  ;;  %v10400_v16 = vunpack.i.l.s16 %v1823_v28  ;;  %v1795_v11 = vsel %vm1765_vm4, 65537, %v16079_v36 }
 0x1dd   : > { %v2546_v18 = vsel %vm16147_vm8, %v2331_v48, %v2442_v20  ;;  %vm2249_vm8 = vcmp.ne.s32.totalorder %v10419_v46, %v12034_v15  ;;  %v1825_v12 = vunpack.c.l.b16 %v1795_v11 }
 0x1de   : > { %v1519_v45 = vunpack.c.l.b16 %v1457_v27  ;;  %2900 = vmatmul.bf16.gmra.mxu3 %v2546_v18  ;;  %vm1922_vm7 = vcmp.ne.s32.totalorder %v10400_v16, %v12031_v10  ;;  %v12627_v18 = vpop.f32.mrf.mxu0 }
 0x1df   : > { %vm12637_vm2 = vmpackc.low %vm12044_vm9, %vm1922_vm7 }
 0x1e0   : > { %v1537_v56 = vpack.c.b16 %v1519_v45, %v1518_v43  ;;  %v16157_v45 = vmov 0 }
 0x1e1   : > { %v1382_v53 = vpop.f32.mrf.mxu1 }
 0x1e2   : > { %2411 = vrot.lane.b32.xlu0 %v1537_v56, %s11770_s27  ;;  %v1630_v19 = vshrl.u32 %v1537_v56, 16  ;;  %v1633_v40 = vshll.u32 %v1537_v56, 16  ;;  %v1426_v48 = vmax.f32 %v1382_v53, 0.0 }
 0x1e3   : > { %10537 = vmatmul.msk.bf16.gmra.mxu0 %vm16148_vm15, %v1537_v56  ;;  %vm2115_vm15 = vmpackc.low %vm12607_vm6, %vm12607_vm6 }
 0x1e4   : > { %v12616_v27 = vrot.slane %v1630_v19, 7  ;;  %v2004_v20 = vrot.slane %v1633_v40, 1  ;;  %vm12646_vm6 = vmpackc.low %vm2249_vm8, %vm12395_vm10  ;;  %v1458_v33 = vpack.c.bf16 %v1426_v48, %v1426_v48  ;;  %v2147_v56 = vsel %vm2115_vm15, 65537, %v16079_v36 }
 0x1e5   : > { %2811 = vmatmul.bf16.gmra.mxu2 %v2482_v0  ;;  %v16158_v45 = vsel %vm12646_vm6, 4294967295, %v16157_v45  ;;  %v2332_v16 = vsel %vm12646_vm6, %v12230_v60, 0  ;;  %v848_v48 = vand.u32 15, %v734_v3  ;;  %v10402_v60 = vunpack.i.l.s16 %v1825_v12  ;;  %v2398_v3 = vpop.permute.xlu1 %2397 }
 0x1e6   : > { %v1635_v49 = vor.u32 %v1633_v40, %v12616_v27  ;;  %v12625_v54 = vsel %vm15811_vm1, %v2003_v44, %v2004_v20  ;;  %v2006_v28 = vor.u32 %v2004_v20, %v1630_v19  ;;  %16159 = vst [vmem:[#allocation49_spill] sm:$0xff] %v16158_v45  ;;  %v747_v19 = vadd.s32 208, %v12008_v13  ;;  %v12662_v17 = vpop.f32.mrf.mxu0 }
 0x1e7   : > { %v1520_v0 = vunpack.c.l.b16 %v1458_v33  ;;  %v2179_v20 = vunpack.c.l.b16 %v2147_v56  ;;  %v1956_v56 = vsel %vm12242_vm14, %v12185_v38, 0  ;;  %vm12669_vm7 = vcmp.ne.s32.totalorder %v848_v48, 15 }
 0x1e8   : > { %v12633_v43 = vsel %vm16154_vm0, %v1624_v42, %v1635_v49  ;;  %vm16160_vm0 = vcmask 523264   ;;  %v2396_v49 = vpop.permute.xlu2 %2395  ;;  %vm1929_vm4 = vcmp.ne.s32.totalorder %v10402_v60, %v12031_v10  ;;  %vm16169_vm14 = vsmask.f32 256 }
 0x1e9   : > { %v1384_v40 = vpop.f32.mrf.mxu1  ;;  %v2381_v44 = vsel %vm12637_vm2, %v12633_v43, 0  ;;  %v10421_v33 = vunpack.i.l.s16 %v2179_v20  ;;  %vm16161_vm12 = vmmov %vm16160_vm0 }
 0x1ea   : > { %v1427_v42 = vmax.f32 %v1384_v40, 0.0  ;;  %2457 = vrot.lane.b32.xlu2 %v2381_v44, %s11770_s27  ;;  %v939_v44 = vand.u32 15, %v747_v19  ;;  %vm16164_vm8 = vmmov %vm16160_vm0 }
 0x1eb   : > { %vm12694_vm6 = vmpackc.low %vm12044_vm9, %vm1929_vm4 }
 0x1ec   : > { %v1459_v25 = vpack.c.bf16 %v1427_v42, %v1427_v42  ;;  %v2444_v53 = vpop.permute.xlu0 %2443  ;;  %v11593_v42 = vld [vmem:[%s15688_s4 + $0x18] sm:$0xff]  ;;  %vm12674_vm15 = vcmp.ne.s32.totalorder %v939_v44, 0 }
 0x1ed   : > { %v2550_v30 = vsel %vm16160_vm0, %v2332_v16, %v2444_v53  ;;  %3187 = vmatpush.bf16.msrb.mxu1 %v11593_v42  ;;  %vm2256_vm0 = vcmp.ne.s32.totalorder %v10421_v33, %v12034_v15  ;;  %v736_v33 = vadd.s32 120, %v12008_v13 }
 0x1ee   : > { %v1521_v50 = vunpack.c.l.b16 %v1459_v25  ;;  %2905 = vmatmul.bf16.gmra.mxu3 %v2550_v30  ;;  %v2486_v25 = vsel %vm16164_vm8, %v1956_v56, %v2396_v49  ;;  %vm1767_vm8 = vmpackc.low %vm12674_vm15, %vm12674_vm15  ;;  %v16170_v49 = vmov 0  ;;  %vm16175_vm15 = vnez %v16077_v6 }
 0x1ef   : > { %v1797_v60 = vsel %vm1767_vm8, 65537, %v16079_v36  ;;  %v862_v26 = vand.u32 15, %v736_v33 }
 0x1f0   : > { %v1538_v40 = vpack.c.b16 %v1521_v50, %v1520_v0  ;;  %v1827_v16 = vunpack.c.l.b16 %v1797_v60 }
 0x1f1   : > { %v1387_v45 = vpop.f32.mrf.mxu1 }
 0x1f2   : > { %2413 = vrot.lane.b32.xlu2 %v1538_v40, %s11770_s27  ;;  %v1638_v11 = vshrl.u32 %v1538_v40, 16  ;;  %v1641_v53 = vshll.u32 %v1538_v40, 16  ;;  %v1428_v30 = vmax.f32 %v1387_v45, 0.0  ;;  %v16167_v45 = vmov 0 }
 0x1f3   : > { %10538 = vmatmul.msk.bf16.gmra.mxu0 %vm16161_vm12, %v1538_v40  ;;  %vm2117_vm12 = vmpackc.low %vm12669_vm7, %vm12669_vm7  ;;  %v16168_v45 = vsel %vm12694_vm6, 4294967295, %v16167_v45  ;;  %v2446_v40 = vpop.permute.xlu2 %2445  ;;  %v10404_v37 = vunpack.i.l.s16 %v1827_v16 }
 0x1f4   : > { %v12678_v19 = vrot.slane %v1638_v11, 7  ;;  %v2007_v12 = vrot.slane %v1641_v53, 1  ;;  %v1460_v44 = vpack.c.bf16 %v1428_v30, %v1428_v30 }
 0x1f5   : > { %2816 = vmatmul.bf16.gmra.mxu2 %v2486_v25  ;;  %vm1936_vm8 = vcmp.ne.s32.totalorder %v10404_v37, %v12031_v10  ;;  %v16182_v37 = vmov 0 }
 0x1f6   : > { %v1643_v0 = vor.u32 %v1641_v53, %v12678_v19  ;;  %v12687_v38 = vsel %vm15811_vm1, %v2006_v28, %v2007_v12  ;;  %v2009_v50 = vor.u32 %v2007_v12, %v1638_v11  ;;  %vm12707_vm1 = vmpackc.low %vm2256_vm0, %vm12395_vm10  ;;  %v749_v11 = vadd.s32 224, %v12008_v13 }
 0x1f7   : > { %v16171_v49 = vsel %vm12707_vm1, 4294967295, %v16170_v49  ;;  %v2149_v53 = vsel %vm2117_vm12, 65537, %v16079_v36  ;;  %v2333_v25 = vsel %vm12707_vm1, %v12295_v1, 0  ;;  %v1522_v30 = vunpack.c.l.b16 %v1460_v44 }
 0x1f8   : > { %v12700_v20 = vsel %vm16169_vm14, %v12616_v27, %v1643_v0  ;;  %16172 = vst [vmem:[#allocation50_spill] sm:$0xff] %v16171_v49  ;;  %v12713_v27 = vpop.f32.mrf.mxu0  ;;  %vm16173_vm14 = vcmask 523264   ;;  %v1957_v1 = vsel %vm16175_vm15, %v12238_v63, 0  ;;  %vm12736_vm0 = vcmp.ne.s32.totalorder %v862_v26, 15  ;;  %vm12759_vm15 = vmpackc.low %vm12044_vm9, %vm1936_vm8 }
 0x1f9   : > { %v1389_v48 = vpop.f32.mrf.mxu1  ;;  %v2382_v28 = vsel %vm12694_vm6, %v12700_v20, 0  ;;  %v2554_v12 = vsel %vm16173_vm14, %v2333_v25, %v2446_v40  ;;  %vm16174_vm7 = vmmov %vm16173_vm14  ;;  %vm16181_vm1 = vsmask.f32 7424  ;;  %v16183_v37 = vsel %vm12759_vm15, 4294967295, %v16182_v37 }
 0x1fa   : > { %v1429_v42 = vmax.f32 %v1389_v48, 0.0  ;;  %2459 = vrot.lane.b32.xlu1 %v2382_v28, %s11770_s27  ;;  %v2181_v48 = vunpack.c.l.b16 %v2149_v53  ;;  %v953_v28 = vand.u32 15, %v749_v11  ;;  %vm16180_vm12 = vmmov %vm16174_vm7  ;;  %vm16184_vm6 = vsmask.f32 256 }
 0x1fb   : > { %v2490_v11 = vsel %vm16180_vm12, %v1957_v1, %v2398_v3  ;;  %v16185_v25 = vmov 0 }
 0x1fc   : > { %v1461_v56 = vpack.c.bf16 %v1429_v42, %v1429_v42  ;;  %v10423_v29 = vunpack.i.l.s16 %v2181_v48  ;;  %vm12732_vm4 = vcmp.ne.s32.totalorder %v953_v28, 0 }
 0x1fd   : > { %vm1769_vm12 = vmpackc.low %vm12732_vm4, %vm12732_vm4  ;;  %vm16189_vm4 = vnez %v16086_v34 }
 0x1fe   : > { %v1523_v0 = vunpack.c.l.b16 %v1461_v56  ;;  %2910 = vmatmul.bf16.gmra.mxu3 %v2554_v12  ;;  %vm2263_vm14 = vcmp.ne.s32.totalorder %v10423_v29, %v12034_v15  ;;  %v1799_v12 = vsel %vm1769_vm12, 65537, %v16079_v36 }
 0x1ff   : > { %v1829_v1 = vunpack.c.l.b16 %v1799_v12  ;;  %v1958_v12 = vsel %vm16189_vm4, %v12304_v4, 0 }
 0x200   : > { %v1539_v41 = vpack.c.b16 %v1523_v0, %v1522_v30  ;;  %v12743_v56 = vpop.f32.mrf.mxu0  ;;  %v738_v0 = vadd.s32 136, %v12008_v13 }
 0x201   : > { %v1392_v35 = vpop.f32.mrf.mxu1  ;;  %v10406_v49 = vunpack.i.l.s16 %v1829_v1 }
 0x202   : > { %2415 = vrot.lane.b32.xlu1 %v1539_v41, %s11770_s27  ;;  %v1646_v42 = vshrl.u32 %v1539_v41, 16  ;;  %v1649_v31 = vshll.u32 %v1539_v41, 16  ;;  %v1430_v60 = vmax.f32 %v1392_v35, 0.0 }
 0x203   : > { %10539 = vmatmul.msk.bf16.gmra.mxu0 %vm16174_vm7, %v1539_v41  ;;  %vm2119_vm7 = vmpackc.low %vm12736_vm0, %vm12736_vm0  ;;  %vm1943_vm12 = vcmp.ne.s32.totalorder %v10406_v49, %v12031_v10 }
 0x204   : > { %v12741_v53 = vrot.slane %v1646_v42, 7  ;;  %v2010_v33 = vrot.slane %v1649_v31, 1  ;;  %v2151_v30 = vsel %vm2119_vm7, 65537, %v16079_v36  ;;  %vm12814_vm4 = vmpackc.low %vm12044_vm9, %vm1943_vm12 }
 0x205   : > { %2821 = vmatmul.bf16.gmra.mxu2 %v2490_v11  ;;  %v2183_v44 = vunpack.c.l.b16 %v2151_v30  ;;  %v740_v30 = vadd.s32 152, %v12008_v13 }
 0x206   : > { %v1651_v41 = vor.u32 %v1649_v31, %v12741_v53  ;;  %v12752_v35 = vsel %vm16181_vm1, %v2009_v50, %v2010_v33  ;;  %v2012_v63 = vor.u32 %v2010_v33, %v1646_v42  ;;  %v1462_v31 = vpack.c.bf16 %v1430_v60, %v1430_v60  ;;  %vm12772_vm1 = vmpackc.low %vm2263_vm14, %vm12395_vm10 }
 0x207   : > { %v16186_v25 = vsel %vm12772_vm1, 4294967295, %v16185_v25  ;;  %v2334_v42 = vsel %vm12772_vm1, %v12354_v52, 0  ;;  %vm16196_vm1 = vsmask.f32 7424 }
 0x208   : > { %v12765_v29 = vsel %vm16184_vm6, %v12678_v19, %v1651_v41  ;;  %16187 = vst [vmem:[#allocation51_spill] sm:$0xff] %v16186_v25  ;;  %v751_v19 = vadd.s32 240, %v12008_v13  ;;  %v1524_v48 = vunpack.c.l.b16 %v1462_v31  ;;  %vm16188_vm6 = vcmask 523264   ;;  %v12785_v11 = vpop.f32.mrf.mxu0 }
 0x209   : > { %v1394_v26 = vpop.f32.mrf.mxu1  ;;  %v2383_v50 = vsel %vm12759_vm15, %v12765_v29, 0  ;;  %v876_v41 = vand.u32 15, %v738_v0  ;;  %vm16190_vm0 = vmmov %vm16188_vm6  ;;  %vm16199_vm15 = vsmask.f32 256 }
 0x20a   : > { %v1431_v16 = vmax.f32 %v1394_v26, 0.0  ;;  %2461 = vrot.lane.b32.xlu0 %v2383_v50, %s11770_s27  ;;  %v967_v33 = vand.u32 15, %v751_v19  ;;  %v2400_v50 = vpop.permute.xlu0 %2399  ;;  %vm16195_vm7 = vmmov %vm16190_vm0 }
 0x20b   : > { %vm12796_vm14 = vcmp.ne.s32.totalorder %v876_v41, 15 }
 0x20c   : > { %v1463_v28 = vpack.c.bf16 %v1431_v16, %v1431_v16  ;;  %v2448_v3 = vpop.permute.xlu1 %2447  ;;  %v10425_v16 = vunpack.i.l.s16 %v2183_v44  ;;  %vm12792_vm8 = vcmp.ne.s32.totalorder %v967_v33, 0  ;;  %v16200_v33 = vmov 0 }
 0x20d   : > { %v2558_v40 = vsel %vm16188_vm6, %v2334_v42, %v2448_v3 }
 0x20e   : > { %v1525_v60 = vunpack.c.l.b16 %v1463_v28  ;;  %2915 = vmatmul.bf16.gmra.mxu3 %v2558_v40  ;;  %vm2270_vm6 = vcmp.ne.s32.totalorder %v10425_v16, %v12034_v15 }
 0x210   : > { %v1540_v26 = vpack.c.b16 %v1525_v60, %v1524_v48  ;;  %v2494_v48 = vsel %vm16195_vm7, %v1958_v12, %v2400_v50  ;;  %vm1771_vm7 = vmpackc.low %vm12792_vm8, %vm12792_vm8  ;;  %v12822_v60 = vpop.f32.mrf.mxu0  ;;  %vm16204_vm8 = vsmask.f32 7424 }
 0x211   : > { %v1397_v31 = vpop.f32.mrf.mxu1  ;;  %v1801_v50 = vsel %vm1771_vm7, 65537, %v16079_v36 }
 0x212   : > { %v1432_v6 = vmax.f32 %v1397_v31, 0.0  ;;  %2417 = vrot.lane.b32.xlu0 %v1540_v26, %s11770_s27  ;;  %v1654_v25 = vshrl.u32 %v1540_v26, 16  ;;  %v1657_v52 = vshll.u32 %v1540_v26, 16  ;;  %v1831_v19 = vunpack.c.l.b16 %v1801_v50 }
 0x213   : > { %10540 = vmatmul.msk.bf16.gmra.mxu0 %vm16190_vm0, %v1540_v26  ;;  %vm2121_vm0 = vmpackc.low %vm12796_vm14, %vm12796_vm14 }
 0x214   : > { %v1464_v0 = vpack.c.bf16 %v1432_v6, %v1432_v6  ;;  %v1656_v28 = vrot.slane %v1654_v25, 7  ;;  %v2013_v3 = vrot.slane %v1657_v52, 1  ;;  %v16197_v6 = vmov 0 }
 0x215   : > { %2826 = vmatmul.bf16.gmra.mxu2 %v2494_v48  ;;  %v16198_v6 = vsel %vm12814_vm4, 4294967295, %v16197_v6  ;;  %v11592_v48 = vld [vmem:[%s15688_s4 + $0x10] sm:$0xff] }
 0x216   : > { %v1969_v4 = vunpack.c.l.b16 %v1464_v0  ;;  %v1659_v42 = vor.u32 %v1657_v52, %v1656_v28  ;;  %v12807_v1 = vsel %vm16196_vm1, %v2012_v63, %v2013_v3  ;;  %v2015_v40 = vor.u32 %v2013_v3, %v1654_v25  ;;  %vm12829_vm1 = vmpackc.low %vm2270_vm6, %vm12395_vm10  ;;  %3188 = vmatpush.bf16.msrb.mxu1 %v11592_v48 }
 0x217   : > { %v16201_v33 = vsel %vm12829_vm1, 4294967295, %v16200_v33  ;;  %v2335_v12 = vsel %vm12829_vm1, %v12404_v58, 0  ;;  %v10408_v58 = vunpack.i.l.s16 %v1831_v19  ;;  %v16210_v19 = vmov 0 }
 0x218   : > { %v1970_v49 = vpack.c.b16 %v1969_v4, %v1969_v4  ;;  %v12820_v44 = vsel %vm16199_vm15, %v12741_v53, %v1659_v42  ;;  %16202 = vst [vmem:[#allocation52_spill] sm:$0xff] %v16201_v33  ;;  %v2153_v53 = vsel %vm2121_vm0, 65537, %v16079_v36  ;;  %vm16203_vm15 = vcmask 523264   ;;  %v12850_v33 = vpop.f32.mrf.mxu0 }
 0x219   : > { %v1399_v63 = vpop.f32.mrf.mxu1  ;;  %v2384_v25 = vsel %vm12814_vm4, %v12820_v44, 0  ;;  %v2185_v42 = vunpack.c.l.b16 %v2153_v53  ;;  %v1959_v53 = vsel %vm12414_vm5, %v12361_v9, 0  ;;  %vm16205_vm14 = vmmov %vm16203_vm15  ;;  %vm1950_vm0 = vcmp.ne.s32.totalorder %v10408_v58, %v12031_v10 }
 0x21a   : > { %v2017_v41 = vshll.u32 %v1970_v49, 16  ;;  %v1433_v26 = vmax.f32 %v1399_v63, 0.0  ;;  %2463 = vrot.lane.b32.xlu2 %v2384_v25, %s11770_s27  ;;  %v890_v25 = vand.u32 15, %v740_v30  ;;  %vm16206_vm12 = vmmov %vm16205_vm14  ;;  %v16207_v9 = vmov 0 }
 0x21c   : > { %v2019_v31 = vrot.slane %v2017_v41, 1  ;;  %v1465_v16 = vpack.c.bf16 %v1433_v26, %v1433_v26  ;;  %v2450_v52 = vpop.permute.xlu0 %2449  ;;  %v2402_v41 = vpop.permute.xlu2 %2401  ;;  %v11591_v26 = vld [vmem:[%s15688_s4 + $0x8] sm:$0xff]  ;;  %vm1188_vm6 = vcmp.ne.s32.totalorder %v890_v25, 15 }
 0x21d   : > { %v2562_v0 = vsel %vm16203_vm15, %v2335_v12, %v2450_v52  ;;  %v10427_v12 = vunpack.i.l.s16 %v2185_v42  ;;  %3189 = vmatpush.bf16.msrb.mxu1 %v11591_v26  ;;  %vm2123_vm15 = vmpackc.low %vm1188_vm6, %vm1188_vm6  ;;  %v1960_v26 = vsel %vm12474_vm13, %v12410_v5, 0 }
 0x21e   : > { %v2345_v3 = vunpack.c.l.b16 %v1465_v16  ;;  %2920 = vmatmul.bf16.gmra.mxu3 %v2562_v0  ;;  %v12845_v49 = vsel %vm16204_vm8, %v2015_v40, %v2019_v31  ;;  %v11590_v31 = vld [vmem:[%s15688_s4] sm:$0xff]  ;;  %vm12864_vm8 = vmpackc.low %vm12044_vm9, %vm1950_vm0  ;;  %v2155_v22 = vsel %vm2123_vm15, 65537, %v16079_v36  ;;  %vm16212_vm9 = vcmask 523264  }
 0x21f   : > { %vm2277_vm7 = vcmp.ne.s32.totalorder %v10427_v12, %v12034_v15  ;;  %v16208_v9 = vsel %vm12864_vm8, 4294967295, %v16207_v9  ;;  %v2187_v42 = vunpack.c.l.b16 %v2155_v22  ;;  %vm16213_vm6 = vmmov %vm16212_vm9  ;;  %v16214_v12 = vmov 0 }
 0x220   : > { %v2346_v63 = vpack.c.b16 %v2345_v3, %v1969_v4  ;;  %v2498_v4 = vsel %vm16206_vm12, %v1959_v53, %v2402_v41  ;;  %vm12873_vm12 = vmpackc.low %vm2277_vm7, %vm12395_vm10  ;;  %v742_v3 = vadd.s32 168, %v12008_v13 }
 0x221   : > { %3190 = vmatpush.bf16.msrb.mxu1 %v11590_v31  ;;  %v16211_v19 = vsel %vm12873_vm12, 4294967295, %v16210_v19  ;;  %v2336_v48 = vsel %vm12873_vm12, %v12464_v7, 0  ;;  %v10429_v58 = vunpack.i.l.s16 %v2187_v42 }
 0x222   : > { %v2348_v50 = vshrl.u32 %v2346_v63, 16  ;;  %v2351_v52 = vshll.u32 %v2346_v63, 16  ;;  %v904_v41 = vand.u32 15, %v742_v3 }
 0x223   : > { %10541 = vmatmul.msk.bf16.gmra.mxu0 %vm16205_vm14, %v2346_v63  ;;  %vm16209_vm14 = vsmask.f32 256  ;;  %v2404_v63 = vpop.permute.xlu1 %2403  ;;  %vm2284_vm7 = vcmp.ne.s32.totalorder %v10429_v58, %v12034_v15 }
 0x224   : > { %v2350_v40 = vrot.slane %v2348_v50, 7  ;;  %v2452_v0 = vpop.permute.xlu2 %2451  ;;  %v2502_v50 = vsel %vm16213_vm6, %v1960_v26, %v2404_v63  ;;  %vm1190_vm0 = vcmp.ne.s32.totalorder %v904_v41, 15 }
 0x225   : > { %2831 = vmatmul.bf16.gmra.mxu2 %v2498_v4  ;;  %vm2125_vm15 = vmpackc.low %vm1190_vm0, %vm1190_vm0 }
 0x226   : > { %v2353_v16 = vor.u32 %v2351_v52, %v2350_v40  ;;  %v2157_v53 = vsel %vm2125_vm15, 65537, %v16079_v36 }
 0x228   : > { %v2354_v30 = vsel %vm16209_vm14, %v1656_v28, %v2353_v16  ;;  %v2566_v28 = vsel %vm16212_vm9, %v2336_v48, %v2452_v0  ;;  %vm12891_vm14 = vmpackc.low %vm2284_vm7, %vm12395_vm10  ;;  %v744_v16 = vadd.s32 184, %v12008_v13  ;;  %v2406_v0 = vpop.permute.xlu0 %2405 }
 0x229   : > { %v2385_v10 = vsel %vm12864_vm8, %v2354_v30, 0  ;;  %v16215_v12 = vsel %vm12891_vm14, 4294967295, %v16214_v12  ;;  %v2337_v5 = vsel %vm12891_vm14, %v12516_v55, 0  ;;  %vm16216_vm9 = vmmov %vm16213_vm6  ;;  %v2189_v30 = vunpack.c.l.b16 %v2157_v53 }
 0x22a   : > { %2465 = vrot.lane.b32.xlu1 %v2385_v10, %s11770_s27  ;;  %v918_v3 = vand.u32 15, %v744_v16  ;;  %v1961_v55 = vsel %vm12526_vm3, %v12470_v51, 0 }
 0x22b   : > { %v10431_v42 = vunpack.i.l.s16 %v2189_v30 }
 0x22c   : > { %vm1192_vm0 = vcmp.ne.s32.totalorder %v918_v3, 15  ;;  %v2408_v30 = vpop.permute.xlu2 %2407 }
 0x22d   : > { %vm2291_vm7 = vcmp.ne.s32.totalorder %v10431_v42, %v12034_v15  ;;  %vm2127_vm15 = vmpackc.low %vm1192_vm0, %vm1192_vm0 }
 0x22e   : > { %2925 = vmatmul.bf16.gmra.mxu3 %v2566_v28  ;;  %vm12911_vm14 = vmpackc.low %vm2291_vm7, %vm12395_vm10  ;;  %v2159_v51 = vsel %vm2127_vm15, 65537, %v16079_v36 }
 0x22f   : > { %vm16220_vm0 = vmmov %vm16213_vm6 }
 0x231   : > { %v2886_v25 = vpop.f32.mrf.mxu3 }
 0x235   : > { %2836 = vmatmul.bf16.gmra.mxu2 %v2502_v50 }
 0x238   : > { %v2797_v7 = vpop.f32.mrf.mxu2 }
 0x239   : > { %v2888_v52 = vpop.f32.mrf.mxu3  ;;  %v2887_v40 = vadd.f32 %v2886_v25, %v2797_v7  ;;  %v2506_v25 = vsel %vm16213_vm6, %v1961_v55, %v2406_v0 }
 0x23b   : > { %v2976_v22 = vadd.f32 %v12599_v57, %v2887_v40  ;;  %v2191_v40 = vunpack.c.l.b16 %v2159_v51 }
 0x23c   : > { %v2454_v4 = vpop.permute.xlu1 %2453 }
 0x23d   : > { %v2570_v31 = vsel %vm16216_vm9, %v2337_v5, %v2454_v4  ;;  %v3055_v41 = vmax.f32 %v2976_v22, 0.0  ;;  %vm16217_vm9 = vmmov %vm16213_vm6  ;;  %v746_v5 = vadd.s32 200, %v12008_v13  ;;  %v10433_v3 = vunpack.i.l.s16 %v2191_v40 }
 0x23e   : > { %2930 = vmatmul.bf16.gmra.mxu3 %v2570_v31  ;;  %v12921_v31 = vpop.f32.mrf.mxu0 }
 0x23f   : > { %vm2298_vm15 = vcmp.ne.s32.totalorder %v10433_v3, %v12034_v15 }
 0x240   : > { %v2799_v10 = vpop.f32.mrf.mxu2 }
 0x241   : > { %v2889_v48 = vadd.f32 %v2888_v52, %v2799_v10  ;;  %v2891_v28 = vpop.f32.mrf.mxu3  ;;  %v2338_v52 = vsel %vm12911_vm14, %v12568_v39, 0  ;;  %v1962_v39 = vsel %vm12578_vm11, %v12522_v59, 0 }
 0x243   : > { %v2978_v63 = vadd.f32 %v12627_v18, %v2889_v48  ;;  %v16218_v18 = vmov 0  ;;  %v932_v48 = vand.u32 15, %v746_v5 }
 0x244   : > { %v16219_v18 = vsel %vm12911_vm14, 4294967295, %v16218_v18  ;;  %vm12933_vm14 = vmpackc.low %vm2298_vm15, %vm12395_vm10 }
 0x245   : > { %v3056_v58 = vmax.f32 %v2978_v63, 0.0  ;;  %2841 = vmatmul.bf16.gmra.mxu2 %v2506_v25  ;;  %vm1194_vm7 = vcmp.ne.s32.totalorder %v932_v48, 15 }
 0x246   : > { %v12937_v59 = vpop.f32.mrf.mxu0 }
 0x247   : > { %v3087_v26 = vpack.c.bf16 %v3056_v58, %v3055_v41  ;;  %v2458_v58 = vpop.permute.xlu2 %2457 }
 0x248   : > { %v2802_v57 = vpop.f32.mrf.mxu2 }
 0x249   : > { %v2893_v50 = vpop.f32.mrf.mxu3  ;;  %10558 = vmatmul.msk.bf16.vlgmr.msrb.gmra.mxu1 %vm16217_vm9, %v3087_v26  ;;  %v2892_v53 = vadd.f32 %v2891_v28, %v2802_v57  ;;  %v2510_v28 = vsel %vm16220_vm0, %v1962_v39, %v2408_v30  ;;  %vm2129_vm9 = vmpackc.low %vm1194_vm7, %vm1194_vm7  ;;  %v2339_v57 = vsel %vm12933_vm14, %v12625_v54, 0  ;;  %v1963_v54 = vsel %vm12637_vm2, %v12574_v32, 0 }
 0x24a   : > { %v2161_v26 = vsel %vm2129_vm9, 65537, %v16079_v36  ;;  %v2578_v51 = vsel %vm16220_vm0, %v2339_v57, %v2458_v58  ;;  %vm16224_vm7 = vmmov %vm16220_vm0  ;;  %v16225_v32 = vmov 0  ;;  %v11609_v57 = vld [vmem:[%s15687_s3 + $0xd8] sm:$0xff] }
 0x24b   : > { %v2981_v10 = vadd.f32 %v12662_v17, %v2892_v53  ;;  %4367 = vmatpush.bf16.msrb.mxu3 %v11609_v57 }
 0x24c   : > { %v2456_v7 = vpop.permute.xlu0 %2455 }
 0x24d   : > { %v2574_v4 = vsel %vm16213_vm6, %v2338_v52, %v2456_v7  ;;  %v3057_v63 = vmax.f32 %v2981_v10, 0.0  ;;  %vm16221_vm6 = vmmov %vm16220_vm0  ;;  %v748_v7 = vadd.s32 216, %v12008_v13  ;;  %v2193_v52 = vunpack.c.l.b16 %v2161_v26 }
 0x24e   : > { %2935 = vmatmul.bf16.gmra.mxu3 %v2574_v4  ;;  %v2410_v4 = vpop.permute.xlu1 %2409 }
 0x24f   : > { %v946_v30 = vand.u32 15, %v748_v7  ;;  %v10435_v10 = vunpack.i.l.s16 %v2193_v52  ;;  %v2514_v48 = vsel %vm16224_vm7, %v1963_v54, %v2410_v4  ;;  %vm16227_vm7 = vmmov %vm16220_vm0  ;;  %v2414_v57 = vpop.permute.xlu2 %2413 }
 0x250   : > { %v2804_v16 = vpop.f32.mrf.mxu2 }
 0x251   : > { %v2894_v0 = vadd.f32 %v2893_v50, %v2804_v16  ;;  %v2896_v22 = vpop.f32.mrf.mxu3  ;;  %vm1196_vm15 = vcmp.ne.s32.totalorder %v946_v30, 15  ;;  %vm2305_vm9 = vcmp.ne.s32.totalorder %v10435_v10, %v12034_v15 }
 0x253   : > { %v2983_v42 = vadd.f32 %v12713_v27, %v2894_v0  ;;  %v16222_v27 = vmov 0 }
 0x254   : > { %v16223_v27 = vsel %vm12933_vm14, 4294967295, %v16222_v27  ;;  %vm12957_vm14 = vmpackc.low %vm2305_vm9, %vm12395_vm10 }
 0x255   : > { %v3058_v55 = vmax.f32 %v2983_v42, 0.0  ;;  %2846 = vmatmul.bf16.gmra.mxu2 %v2510_v28  ;;  %v16226_v32 = vsel %vm12957_vm14, 4294967295, %v16225_v32  ;;  %vm16229_vm9 = vmmov %vm16220_vm0 }
 0x257   : > { %v3088_v25 = vpack.c.bf16 %v3058_v55, %v3057_v63  ;;  %v2340_v55 = vsel %vm12957_vm14, %v12687_v38, 0 }
 0x258   : > { %v2807_v17 = vpop.f32.mrf.mxu2 }
 0x259   : > { %v2898_v41 = vpop.f32.mrf.mxu3  ;;  %10559 = vmatmul.msk.bf16.gmra.mxu1 %vm16221_vm6, %v3088_v25  ;;  %v2897_v50 = vadd.f32 %v2896_v22, %v2807_v17  ;;  %v12950_v22 = vpop.f32.mrf.mxu0  ;;  %vm2131_vm6 = vmpackc.low %vm1196_vm15, %vm1196_vm15  ;;  %vm16228_vm15 = vnez %v16168_v45 }
 0x25b   : > { %v2986_v5 = vadd.f32 %v12743_v56, %v2897_v50 }
 0x25d   : > { %v3059_v3 = vmax.f32 %v2986_v5, 0.0  ;;  %v11608_v5 = vld [vmem:[%s15687_s3 + $0xd0] sm:$0xff] }
 0x25e   : > { %2940 = vmatmul.bf16.gmra.mxu3 %v2578_v51  ;;  %v2412_v51 = vpop.permute.xlu0 %2411 }
 0x25f   : > { %4368 = vmatpush.bf16.msrb.mxu3 %v11608_v5 }
 0x260   : > { %v2809_v53 = vpop.f32.mrf.mxu2 }
 0x261   : > { %v2899_v40 = vadd.f32 %v2898_v41, %v2809_v53  ;;  %v2901_v16 = vpop.f32.mrf.mxu3  ;;  %v750_v41 = vadd.s32 232, %v12008_v13  ;;  %v12967_v58 = vpop.f32.mrf.mxu0 }
 0x263   : > { %v2988_v0 = vadd.f32 %v12785_v11, %v2899_v40  ;;  %v2163_v11 = vsel %vm2131_vm6, 65537, %v16079_v36  ;;  %v960_v53 = vand.u32 15, %v750_v41  ;;  %v1964_v40 = vsel %vm16228_vm15, %v12633_v43, 0  ;;  %v11601_v43 = vld [vmem:[%s15686_s2 + $0x78] sm:$0xff] }
 0x264   : > { %v2195_v26 = vunpack.c.l.b16 %v2163_v11  ;;  %v2518_v30 = vsel %vm16229_vm9, %v1964_v40, %v2412_v51  ;;  %3481 = vmatpush.bf16.msrb.mxu2 %v11601_v43  ;;  %v11605_v41 = vld [vmem:[%s15687_s3 + $0xb8] sm:$0xff] }
 0x265   : > { %v3060_v42 = vmax.f32 %v2988_v0, 0.0  ;;  %2851 = vmatmul.bf16.gmra.mxu2 %v2514_v48  ;;  %vm1198_vm6 = vcmp.ne.s32.totalorder %v960_v53, 15 }
 0x266   : > { %v10437_v4 = vunpack.i.l.s16 %v2195_v26 }
 0x267   : > { %v3089_v56 = vpack.c.bf16 %v3060_v42, %v3059_v3  ;;  %v16230_v42 = vmov 0 }
 0x268   : > { %v2812_v39 = vpop.f32.mrf.mxu2 }
 0x269   : > { %v2903_v28 = vpop.f32.mrf.mxu3  ;;  %10560 = vmatmul.msk.bf16.gmra.mxu1 %vm16220_vm0, %v3089_v56  ;;  %v2902_v25 = vadd.f32 %v2901_v16, %v2812_v39  ;;  %vm2312_vm0 = vcmp.ne.s32.totalorder %v10437_v4, %v12034_v15  ;;  %v12988_v48 = vpop.f32.mrf.mxu0  ;;  %v11606_v56 = vld [vmem:[%s15687_s3 + $0xc0] sm:$0xff] }
 0x26a   : > { %vm12993_vm14 = vmpackc.low %vm2312_vm0, %vm12395_vm10  ;;  %vm16233_vm0 = vnez %v16183_v37 }
 0x26b   : > { %v2991_v7 = vadd.f32 %v12822_v60, %v2902_v25  ;;  %v11607_v60 = vld [vmem:[%s15687_s3 + $0xc8] sm:$0xff]  ;;  %v16231_v42 = vsel %vm12993_vm14, 4294967295, %v16230_v42  ;;  %v2341_v11 = vsel %vm12993_vm14, %v12752_v35, 0  ;;  %v752_v25 = vadd.s32 248, %v12008_v13  ;;  %v11604_v13 = vld [vmem:[%s15687_s3 + $0xb0] sm:$0xff] }
 0x26c   : > { %v2460_v63 = vpop.permute.xlu1 %2459  ;;  %4369 = vmatpush.bf16.msrb.mxu3 %v11607_v60  ;;  %v1965_v53 = vsel %vm16233_vm0, %v12700_v20, 0  ;;  %v11602_v60 = vld [vmem:[%s15687_s3 + $0xa0] sm:$0xff]  ;;  %vm16375_vm0 = vsmask.f32 7424 }
 0x26d   : > { %v2582_v17 = vsel %vm16227_vm7, %v2340_v55, %v2460_v63  ;;  %v3061_v10 = vmax.f32 %v2991_v7, 0.0  ;;  %vm2133_vm7 = vmpackc.low %vm1198_vm6, %vm1198_vm6  ;;  %v974_v35 = vand.u32 15, %v752_v25 }
 0x26e   : > { %2945 = vmatmul.bf16.gmra.mxu3 %v2582_v17  ;;  %v2165_v39 = vsel %vm2133_vm7, 65537, %v16079_v36  ;;  %vm16232_vm6 = vmmov %vm16229_vm9 }
 0x26f   : > { %v2197_v17 = vunpack.c.l.b16 %v2165_v39  ;;  %vm16234_vm7 = vmmov %vm16232_vm6 }
 0x270   : > { %v2814_v50 = vpop.f32.mrf.mxu2  ;;  %4370 = vmatpush.bf16.msrb.mxu3 %v11606_v56  ;;  %v2522_v5 = vsel %vm16234_vm7, %v1965_v53, %v2414_v57  ;;  %vm16235_vm12 = vmmov %vm16234_vm7  ;;  %v11599_v53 = vld [vmem:[%s15686_s2 + $0x68] sm:$0xff] }
 0x271   : > { %v2904_v52 = vadd.f32 %v2903_v28, %v2814_v50  ;;  %v2906_v38 = vpop.f32.mrf.mxu3 }
 0x273   : > { %v2993_v16 = vadd.f32 %v12850_v33, %v2904_v52  ;;  %v13010_v52 = vpop.f32.mrf.mxu0 }
 0x274   : > { %4371 = vmatpush.bf16.msrb.mxu3 %v11605_v41 }
 0x275   : > { %v3062_v0 = vmax.f32 %v2993_v16, 0.0  ;;  %2856 = vmatmul.bf16.gmra.mxu2 %v2518_v30  ;;  %v11603_v16 = vld [vmem:[%s15687_s3 + $0xa8] sm:$0xff] }
 0x277   : > { %v3090_v54 = vpack.c.bf16 %v3062_v0, %v3061_v10  ;;  %v2464_v0 = vpop.permute.xlu2 %2463 }
 0x278   : > { %v2817_v33 = vpop.f32.mrf.mxu2  ;;  %4372 = vmatpush.bf16.msrb.mxu3 %v11604_v13 }
 0x279   : > { %v2908_v3 = vpop.f32.mrf.mxu3  ;;  %10561 = vmatmul.msk.bf16.gmra.mxu1 %vm16229_vm9, %v3090_v54  ;;  %v2907_v63 = vadd.f32 %v2906_v38, %v2817_v33  ;;  %v10439_v38 = vunpack.i.l.s16 %v2197_v17  ;;  %vm1200_vm9 = vcmp.ne.s32.totalorder %v974_v35, 15 }
 0x27a   : > { %vm2135_vm14 = vmpackc.low %vm1200_vm9, %vm1200_vm9 }
 0x27b   : > { %v2996_v50 = vadd.f32 %v12921_v31, %v2907_v63  ;;  %v2167_v54 = vsel %vm2135_vm14, 65537, %v16079_v36  ;;  %v13035_v43 = vpop.f32.mrf.mxu0  ;;  %v1966_v36 = vsel %vm12814_vm4, %v12765_v29, 0  ;;  %vm16238_vm14 = vmmov %vm16235_vm12  ;;  %v16240_v29 = vmov 0 }
 0x27c   : > { %v2462_v28 = vpop.permute.xlu0 %2461  ;;  %4373 = vmatpush.bf16.msrb.mxu3 %v11603_v16  ;;  %v2199_v39 = vunpack.c.l.b16 %v2167_v54 }
 0x27d   : > { %v2586_v55 = vsel %vm16232_vm6, %v2341_v11, %v2462_v28  ;;  %v3063_v31 = vmax.f32 %v2996_v50, 0.0  ;;  %vm2319_vm6 = vcmp.ne.s32.totalorder %v10439_v38, %v12034_v15  ;;  %v2416_v11 = vpop.permute.xlu1 %2415 }
 0x27e   : > { %2950 = vmatmul.bf16.gmra.mxu3 %v2586_v55  ;;  %vm13027_vm7 = vmpackc.low %vm2319_vm6, %vm12395_vm10  ;;  %v10441_v17 = vunpack.i.l.s16 %v2199_v39  ;;  %v11595_v39 = vld [vmem:[%s15686_s2 + $0x48] sm:$0xff] }
 0x27f   : > { %v2342_v33 = vsel %vm13027_vm7, %v12807_v1, 0  ;;  %v2526_v1 = vsel %vm16238_vm14, %v1966_v36, %v2416_v11  ;;  %vm16239_vm6 = vmmov %vm16235_vm12 }
 0x280   : > { %v2819_v26 = vpop.f32.mrf.mxu2  ;;  %4374 = vmatpush.bf16.msrb.mxu3 %v11602_v60  ;;  %v2590_v56 = vsel %vm16235_vm12, %v2342_v33, %v2464_v0  ;;  %vm2326_vm9 = vcmp.ne.s32.totalorder %v10441_v17, %v12034_v15  ;;  %vm16242_vm14 = vmmov %vm16239_vm6 }
 0x281   : > { %v2909_v51 = vadd.f32 %v2908_v3, %v2819_v26  ;;  %v2911_v7 = vpop.f32.mrf.mxu3 }
 0x283   : > { %v2998_v4 = vadd.f32 %v12937_v59, %v2909_v51  ;;  %v16236_v59 = vmov 0  ;;  %v3012_v50 = vpop.f32.mrf.mxu0 }
 0x284   : > { %v16237_v59 = vsel %vm13027_vm7, 4294967295, %v16236_v59  ;;  %vm16350_vm7 = vsmask.f32 256 }
 0x285   : > { %v3064_v40 = vmax.f32 %v2998_v4, 0.0  ;;  %2861 = vmatmul.bf16.gmra.mxu2 %v2522_v5  ;;  %v2418_v5 = vpop.permute.xlu0 %2417 }
 0x287   : > { %v3091_v30 = vpack.c.bf16 %v3064_v40, %v3063_v31 }
 0x288   : > { %v2822_v10 = vpop.f32.mrf.mxu2 }
 0x289   : > { %v2913_v20 = vpop.f32.mrf.mxu3  ;;  %10562 = vmatmul.msk.bf16.gmra.mxu1 %vm16235_vm12, %v3091_v30  ;;  %v2912_v3 = vadd.f32 %v2911_v7, %v2822_v10  ;;  %vm13054_vm12 = vmpackc.low %vm2326_vm9, %vm12395_vm10  ;;  %v1967_v30 = vsel %vm12864_vm8, %v12820_v44, 0  ;;  %v11596_v44 = vld [vmem:[%s15686_s2 + $0x50] sm:$0xff]  ;;  %vm16360_vm8 = vsmask.f32 256 }
 0x28a   : > { %v16241_v29 = vsel %vm13054_vm12, 4294967295, %v16240_v29  ;;  %v2343_v15 = vsel %vm13054_vm12, %v12845_v49, 0  ;;  %v11598_v49 = vld [vmem:[%s15686_s2 + $0x60] sm:$0xff]  ;;  %vm16243_vm10 = vmmov %vm16239_vm6 }
 0x28b   : > { %v3001_v63 = vadd.f32 %v12950_v22, %v2912_v3  ;;  %v11600_v22 = vld [vmem:[%s15686_s2 + $0x70] sm:$0xff]  ;;  %v3015_v14 = vpop.f32.mrf.mxu0  ;;  %vm16244_vm9 = vmmov %vm16239_vm6 }
 0x28c   : > { %3482 = vmatpush.bf16.msrb.mxu2 %v11600_v22 }
 0x28d   : > { %v3065_v26 = vmax.f32 %v3001_v63, 0.0 }
 0x28e   : > { %2955 = vmatmul.bf16.gmra.mxu3 %v2590_v56 }
 0x290   : > { %v2824_v28 = vpop.f32.mrf.mxu2  ;;  %3483 = vmatpush.bf16.msrb.mxu2 %v11599_v53 }
 0x291   : > { %v2914_v55 = vadd.f32 %v2913_v20, %v2824_v28  ;;  %v2916_v25 = vpop.f32.mrf.mxu3  ;;  %v2530_v20 = vsel %vm16243_vm10, %v1967_v30, %v2418_v5  ;;  %vm16247_vm10 = vmmov %vm16244_vm9 }
 0x293   : > { %v3003_v41 = vadd.f32 %v12967_v58, %v2914_v55 }
 0x294   : > { %3484 = vmatpush.bf16.msrb.mxu2 %v11598_v49 }
 0x295   : > { %v3066_v57 = vmax.f32 %v3003_v41, 0.0  ;;  %2866 = vmatmul.bf16.gmra.mxu2 %v2526_v1 }
 0x297   : > { %v3092_v51 = vpack.c.bf16 %v3066_v57, %v3065_v26 }
 0x298   : > { %v2827_v7 = vpop.f32.mrf.mxu2 }
 0x299   : > { %v2918_v35 = vpop.f32.mrf.mxu3  ;;  %10563 = vmatmul.msk.bf16.gmra.mxu1 %vm16239_vm6, %v3092_v51  ;;  %v2917_v38 = vadd.f32 %v2916_v25, %v2827_v7  ;;  %vm16245_vm6 = vnez %v16108_v62  ;;  %v11594_v25 = vld [vmem:[%s15686_s2 + $0x40] sm:$0xff] }
 0x29b   : > { %v3006_v31 = vadd.f32 %v12988_v48, %v2917_v38  ;;  %v11597_v48 = vld [vmem:[%s15686_s2 + $0x58] sm:$0xff] }
 0x29c   : > { %v2466_v58 = vpop.permute.xlu1 %2465  ;;  %3485 = vmatpush.bf16.msrb.mxu2 %v11597_v48  ;;  %v16249_v48 = vmax.f32 %v11900_v24, 0.0 }
 0x29d   : > { %v2594_v13 = vsel %vm16242_vm14, %v2343_v15, %v2466_v58  ;;  %v3067_v0 = vmax.f32 %v3006_v31, 0.0  ;;  %vm16246_vm14 = vmmov %vm16244_vm9 }
 0x29e   : > { %2960 = vmatmul.bf16.gmra.mxu3 %v2594_v13 }
 0x2a0   : > { %v2829_v4 = vpop.f32.mrf.mxu2  ;;  %3486 = vmatpush.bf16.msrb.mxu2 %v11596_v44 }
 0x2a1   : > { %v2919_v40 = vadd.f32 %v2918_v35, %v2829_v4  ;;  %v2921_v16 = vpop.f32.mrf.mxu3 }
 0x2a3   : > { %v3008_v10 = vadd.f32 %v13010_v52, %v2919_v40  ;;  %v3017_v52 = vpop.f32.mrf.mxu0 }
 0x2a4   : > { %3487 = vmatpush.bf16.msrb.mxu2 %v11595_v39 }
 0x2a5   : > { %v3068_v60 = vmax.f32 %v3008_v10, 0.0  ;;  %2871 = vmatmul.bf16.gmra.mxu2 %v2530_v20 }
 0x2a7   : > { %v3093_v54 = vpack.c.bf16 %v3068_v60, %v3067_v0  ;;  %v16248_v0 = vmax.f32 %v11897_v23, 0.0 }
 0x2a8   : > { %v2832_v33 = vpop.f32.mrf.mxu2  ;;  %3488 = vmatpush.bf16.msrb.mxu2 %v11594_v25 }
 0x2a9   : > { %v2923_v3 = vpop.f32.mrf.mxu3  ;;  %10564 = vmatmul.msk.bf16.gmra.mxu1 %vm16244_vm9, %v3093_v54  ;;  %v2922_v56 = vadd.f32 %v2921_v16, %v2832_v33 }
 0x2ab   : > { %v3011_v11 = vadd.f32 %v13035_v43, %v2922_v56  ;;  %v3020_v36 = vpop.f32.mrf.mxu0 }
 0x2ad   : > { %v3069_v41 = vmax.f32 %v3011_v11, 0.0 }
 0x2ae   : > { %10743 = vmatmul.msk.bf16.vlgmr.msrb.gmra.mxu3 %vm16245_vm6, %v12449_v2  ;;  %vm16329_vm6 = vsmask.f32 256 }
 0x2b0   : > { %v2834_v28 = vpop.f32.mrf.mxu2 }
 0x2b1   : > { %v2924_v63 = vadd.f32 %v2923_v3, %v2834_v28  ;;  %v2926_v55 = vpop.f32.mrf.mxu3 }
 0x2b3   : > { %v3013_v17 = vadd.f32 %v3012_v50, %v2924_v63  ;;  %v3022_v7 = vpop.f32.mrf.mxu0 }
 0x2b5   : > { %v3070_v1 = vmax.f32 %v3013_v17, 0.0 }
 0x2b7   : > { %v3094_v26 = vpack.c.bf16 %v3070_v1, %v3069_v41 }
 0x2b8   : > { %v2837_v57 = vpop.f32.mrf.mxu2 }
 0x2b9   : > { %v2928_v51 = vpop.f32.mrf.mxu3  ;;  %10565 = vmatmul.msk.bf16.gmra.mxu1 %vm16246_vm14, %v3094_v26  ;;  %v2927_v22 = vadd.f32 %v2926_v55, %v2837_v57  ;;  %v16250_v26 = vld [vmem:[#allocation4_spill] sm:$0xff]  ;;  %vm16255_vm14 = vmmov %vm16244_vm9 }
 0x2ba   : > { %v16251_v57 = vmax.f32 %v16250_v26, 0.0 }
 0x2bb   : > { %v3016_v43 = vadd.f32 %v3015_v14, %v2927_v22  ;;  %v3025_v5 = vpop.f32.mrf.mxu0 }
 0x2bd   : > { %v3071_v13 = vmax.f32 %v3016_v43, 0.0 }
 0x2c0   : > { %v2839_v35 = vpop.f32.mrf.mxu2 }
 0x2c1   : > { %v2929_v58 = vadd.f32 %v2928_v51, %v2839_v35  ;;  %v2931_v15 = vpop.f32.mrf.mxu3 }
 0x2c3   : > { %v3018_v38 = vadd.f32 %v3017_v52, %v2929_v58  ;;  %v3027_v44 = vpop.f32.mrf.mxu0 }
 0x2c5   : > { %v3072_v53 = vmax.f32 %v3018_v38, 0.0 }
 0x2c6   : > { %v3192_v4 = vpop.f32.mrf.mxu1 }
 0x2c7   : > { %v3095_v50 = vpack.c.bf16 %v3072_v53, %v3071_v13  ;;  %v3272_v16 = vmax.f32 %v3192_v4, 0.0 }
 0x2c8   : > { %v2842_v31 = vpop.f32.mrf.mxu2 }
 0x2c9   : > { %v2933_v40 = vpop.f32.mrf.mxu3  ;;  %10566 = vmatmul.msk.bf16.gmra.mxu1 %vm16247_vm10, %v3095_v50  ;;  %v2932_v49 = vadd.f32 %v2931_v15, %v2842_v31  ;;  %v13095_v14 = vadd.f32 %v3272_v16, %v16248_v0  ;;  %vm16262_vm10 = vmmov %vm16244_vm9 }
 0x2cb   : > { %v3021_v60 = vadd.f32 %v3020_v36, %v2932_v49  ;;  %v3030_v25 = vpop.f32.mrf.mxu0 }
 0x2cd   : > { %v3073_v39 = vmax.f32 %v3021_v60, 0.0 }
 0x2ce   : > { %v3194_v30 = vpop.f32.mrf.mxu1 }
 0x2cf   : > { %v3273_v10 = vmax.f32 %v3194_v30, 0.0 }
 0x2d0   : > { %v2844_v20 = vpop.f32.mrf.mxu2 }
 0x2d1   : > { %v13099_v54 = vadd.f32 %v3273_v10, %v16249_v48  ;;  %v2934_v33 = vadd.f32 %v2933_v40, %v2844_v20  ;;  %v2936_v3 = vpop.f32.mrf.mxu3  ;;  %v16256_v48 = vld [vmem:[#allocation6_spill] sm:$0xff] }
 0x2d3   : > { %v3400_v52 = vpack.c.bf16 %v13099_v54, %v13095_v14  ;;  %v3023_v56 = vadd.f32 %v3022_v7, %v2934_v33  ;;  %v16252_v7 = vld [vmem:[#allocation5_spill] sm:$0xff]  ;;  %v3032_v50 = vpop.f32.mrf.mxu0  ;;  %v16257_v33 = vmax.f32 %v16256_v48, 0.0 }
 0x2d4   : > { %v16253_v35 = vmax.f32 %v16252_v7, 0.0 }
 0x2d5   : > { %v3074_v28 = vmax.f32 %v3023_v56, 0.0  ;;  %3489 = vmatmul.bf16.vlgmr.msrb.gmra.mxu2 %v3400_v52  ;;  %v16259_v52 = vld [vmem:[#allocation7_spill] sm:$0xff] }
 0x2d6   : > { %v3197_v11 = vpop.f32.mrf.mxu1  ;;  %v16260_v56 = vmax.f32 %v16259_v52, 0.0 }
 0x2d7   : > { %v3096_v63 = vpack.c.bf16 %v3074_v28, %v3073_v39  ;;  %v3274_v24 = vmax.f32 %v3197_v11, 0.0 }
 0x2d8   : > { %v2847_v23 = vpop.f32.mrf.mxu2 }
 0x2d9   : > { %v2938_v55 = vpop.f32.mrf.mxu3  ;;  %10567 = vmatmul.msk.bf16.gmra.mxu1 %vm16244_vm9, %v3096_v63  ;;  %v2937_v17 = vadd.f32 %v2936_v3, %v2847_v23  ;;  %v13106_v51 = vadd.f32 %v3274_v24, %v16251_v57 }
 0x2db   : > { %v3026_v22 = vadd.f32 %v3025_v5, %v2937_v17  ;;  %v3035_v0 = vpop.f32.mrf.mxu0 }
 0x2dd   : > { %v3075_v53 = vmax.f32 %v3026_v22, 0.0 }
 0x2de   : > { %v3199_v36 = vpop.f32.mrf.mxu1 }
 0x2df   : > { %v3275_v41 = vmax.f32 %v3199_v36, 0.0 }
 0x2e0   : > { %v2849_v1 = vpop.f32.mrf.mxu2 }
 0x2e1   : > { %v13110_v43 = vadd.f32 %v3275_v41, %v16253_v35  ;;  %v2939_v58 = vadd.f32 %v2938_v55, %v2849_v1  ;;  %v2941_v15 = vpop.f32.mrf.mxu3 }
 0x2e3   : > { %16254 = vst [vmem:[#allocation4_spill] sm:$0xff] %v13110_v43  ;;  %v3028_v38 = vadd.f32 %v3027_v44, %v2939_v58  ;;  %v3401_v13 = vpack.c.bf16 %v13110_v43, %v13106_v51  ;;  %v16263_v58 = vld [vmem:[#allocation8_spill] sm:$0xff] }
 0x2e5   : > { %v3076_v4 = vmax.f32 %v3028_v38, 0.0  ;;  %3494 = vmatmul.bf16.gmra.mxu2 %v3401_v13 }
 0x2e6   : > { %v3202_v31 = vpop.f32.mrf.mxu1 }
 0x2e7   : > { %v3097_v40 = vpack.c.bf16 %v3076_v4, %v3075_v53  ;;  %v3276_v5 = vmax.f32 %v3202_v31, 0.0  ;;  %v16266_v53 = vld [vmem:[#allocation9_spill] sm:$0xff] }
 0x2e8   : > { %v2852_v16 = vpop.f32.mrf.mxu2  ;;  %v16267_v4 = vmax.f32 %v16266_v53, 0.0 }
 0x2e9   : > { %v2943_v49 = vpop.f32.mrf.mxu3  ;;  %10568 = vmatmul.msk.bf16.gmra.mxu1 %vm16255_vm14, %v3097_v40  ;;  %v2942_v30 = vadd.f32 %v2941_v15, %v2852_v16  ;;  %v13117_v3 = vadd.f32 %v3276_v5, %v16257_v33  ;;  %v16264_v15 = vmax.f32 %v16263_v58, 0.0  ;;  %vm16275_vm14 = vmmov %vm16244_vm9 }
 0x2eb   : > { %16258 = vst [vmem:[#allocation5_spill] sm:$0xff] %v13117_v3  ;;  %v3031_v44 = vadd.f32 %v3030_v25, %v2942_v30  ;;  %v3037_v25 = vpop.f32.mrf.mxu0 }
 0x2ed   : > { %v3077_v55 = vmax.f32 %v3031_v44, 0.0 }
 0x2ee   : > { %v3204_v10 = vpop.f32.mrf.mxu1 }
 0x2ef   : > { %v3277_v20 = vmax.f32 %v3204_v10, 0.0 }
 0x2f0   : > { %v2854_v60 = vpop.f32.mrf.mxu2 }
 0x2f1   : > { %v13121_v39 = vadd.f32 %v3277_v20, %v16260_v56  ;;  %v2944_v28 = vadd.f32 %v2943_v49, %v2854_v60  ;;  %v2946_v11 = vpop.f32.mrf.mxu3 }
 0x2f3   : > { %16261 = vst [vmem:[#allocation6_spill] sm:$0xff] %v13121_v39  ;;  %v3033_v63 = vadd.f32 %v3032_v50, %v2944_v28  ;;  %v3402_v23 = vpack.c.bf16 %v13121_v39, %v13117_v3  ;;  %v3040_v5 = vpop.f32.mrf.mxu0 }
 0x2f5   : > { %v3078_v24 = vmax.f32 %v3033_v63, 0.0  ;;  %3499 = vmatmul.bf16.gmra.mxu2 %v3402_v23  ;;  %v16269_v63 = vld [vmem:[#allocation10_spill] sm:$0xff] }
 0x2f6   : > { %v3207_v17 = vpop.f32.mrf.mxu1  ;;  %v16270_v23 = vmax.f32 %v16269_v63, 0.0 }
 0x2f7   : > { %v3098_v36 = vpack.c.bf16 %v3078_v24, %v3077_v55  ;;  %v3278_v26 = vmax.f32 %v3207_v17, 0.0  ;;  %v16272_v17 = vld [vmem:[#allocation11_spill] sm:$0xff] }
 0x2f8   : > { %v2857_v41 = vpop.f32.mrf.mxu2 }
 0x2f9   : > { %v2948_v1 = vpop.f32.mrf.mxu3  ;;  %10569 = vmatmul.msk.bf16.gmra.mxu1 %vm16262_vm10, %v3098_v36  ;;  %v2947_v57 = vadd.f32 %v2946_v11, %v2857_v41  ;;  %v13128_v38 = vadd.f32 %v3278_v26, %v16264_v15  ;;  %v16273_v36 = vmax.f32 %v16272_v17, 0.0  ;;  %vm16282_vm10 = vmmov %vm16244_vm9 }
 0x2fb   : > { %16265 = vst [vmem:[#allocation7_spill] sm:$0xff] %v13128_v38  ;;  %v3036_v13 = vadd.f32 %v3035_v0, %v2947_v57  ;;  %v3042_v52 = vpop.f32.mrf.mxu0 }
 0x2fd   : > { %v3079_v30 = vmax.f32 %v3036_v13, 0.0 }
 0x2fe   : > { %v3209_v22 = vpop.f32.mrf.mxu1 }
 0x2ff   : > { %v3279_v7 = vmax.f32 %v3209_v22, 0.0 }
 0x300   : > { %v2859_v35 = vpop.f32.mrf.mxu2 }
 0x301   : > { %v13132_v50 = vadd.f32 %v3279_v7, %v16267_v4  ;;  %v2949_v31 = vadd.f32 %v2948_v1, %v2859_v35  ;;  %v2951_v40 = vpop.f32.mrf.mxu3 }
 0x303   : > { %16268 = vst [vmem:[#allocation8_spill] sm:$0xff] %v13132_v50  ;;  %v3038_v16 = vadd.f32 %v3037_v25, %v2949_v31  ;;  %v3403_v49 = vpack.c.bf16 %v13132_v50, %v13128_v38  ;;  %v3045_v35 = vpop.f32.mrf.mxu0 }
 0x305   : > { %v3080_v10 = vmax.f32 %v3038_v16, 0.0  ;;  %3504 = vmatmul.bf16.gmra.mxu2 %v3403_v49 }
 0x306   : > { %v3212_v20 = vpop.f32.mrf.mxu1 }
 0x307   : > { %v3099_v60 = vpack.c.bf16 %v3080_v10, %v3079_v30  ;;  %v3280_v0 = vmax.f32 %v3212_v20, 0.0  ;;  %v16276_v30 = vld [vmem:[#allocation12_spill] sm:$0xff] }
 0x308   : > { %v2862_v48 = vpop.f32.mrf.mxu2  ;;  %v16277_v10 = vmax.f32 %v16276_v30, 0.0 }
 0x309   : > { %v2953_v33 = vpop.f32.mrf.mxu3  ;;  %10570 = vmatmul.msk.bf16.gmra.mxu1 %vm16244_vm9, %v3099_v60  ;;  %v2952_v44 = vadd.f32 %v2951_v40, %v2862_v48  ;;  %v13139_v55 = vadd.f32 %v3280_v0, %v16270_v23  ;;  %v16279_v48 = vld [vmem:[#allocation13_spill] sm:$0xff] }
 0x30b   : > { %16271 = vst [vmem:[#allocation9_spill] sm:$0xff] %v13139_v55  ;;  %v3041_v24 = vadd.f32 %v3040_v5, %v2952_v44  ;;  %v3047_v49 = vpop.f32.mrf.mxu0 }
 0x30d   : > { %v3081_v22 = vmax.f32 %v3041_v24, 0.0 }
 0x30e   : > { %v3214_v56 = vpop.f32.mrf.mxu1 }
 0x30f   : > { %v3281_v28 = vmax.f32 %v3214_v56, 0.0 }
 0x310   : > { %v2864_v11 = vpop.f32.mrf.mxu2 }
 0x311   : > { %v13143_v41 = vadd.f32 %v3281_v28, %v16273_v36  ;;  %v2954_v1 = vadd.f32 %v2953_v33, %v2864_v11  ;;  %v2956_v25 = vpop.f32.mrf.mxu3  ;;  %v16280_v33 = vmax.f32 %v16279_v48, 0.0 }
 0x313   : > { %16274 = vst [vmem:[#allocation10_spill] sm:$0xff] %v13143_v41  ;;  %v3043_v26 = vadd.f32 %v3042_v52, %v2954_v1  ;;  %v3404_v57 = vpack.c.bf16 %v13143_v41, %v13139_v55  ;;  %v3050_v17 = vpop.f32.mrf.mxu0 }
 0x315   : > { %v3082_v7 = vmax.f32 %v3043_v26, 0.0  ;;  %3509 = vmatmul.bf16.gmra.mxu2 %v3404_v57 }
 0x316   : > { %v3217_v58 = vpop.f32.mrf.mxu1 }
 0x317   : > { %v3100_v15 = vpack.c.bf16 %v3082_v7, %v3081_v22  ;;  %v3282_v4 = vmax.f32 %v3217_v58, 0.0 }
 0x318   : > { %v2867_v13 = vpop.f32.mrf.mxu2 }
 0x319   : > { %10571 = vmatmul.msk.bf16.gmra.mxu1 %vm16275_vm14, %v3100_v15  ;;  %v2958_v53 = vpop.f32.mrf.mxu3  ;;  %v2957_v31 = vadd.f32 %v2956_v25, %v2867_v13  ;;  %v13150_v20 = vadd.f32 %v3282_v4, %v16277_v10  ;;  %vm16307_vm14 = vmmov %vm16244_vm9 }
 0x31b   : > { %16278 = vst [vmem:[#allocation11_spill] sm:$0xff] %v13150_v20  ;;  %v3046_v60 = vadd.f32 %v3045_v35, %v2957_v31  ;;  %v16283_v35 = vld [vmem:[#allocation14_spill] sm:$0xff] }
 0x31c   : > { %v16284_v58 = vmax.f32 %v16283_v35, 0.0 }
 0x31d   : > { %v3083_v28 = vmax.f32 %v3046_v60, 0.0 }
 0x31e   : > { %v3219_v40 = vpop.f32.mrf.mxu1 }
 0x31f   : > { %v3283_v16 = vmax.f32 %v3219_v40, 0.0 }
 0x320   : > { %v2869_v5 = vpop.f32.mrf.mxu2 }
 0x321   : > { %v13154_v0 = vadd.f32 %v3283_v16, %v16280_v33  ;;  %v2959_v44 = vadd.f32 %v2958_v53, %v2869_v5  ;;  %v2961_v63 = vpop.f32.mrf.mxu3  ;;  %v16286_v53 = vld [vmem:[#allocation15_spill] sm:$0xff]  ;;  %v3052_v16 = vpop.f32.mrf.mxu0 }
 0x322   : > { %v16287_v4 = vmax.f32 %v16286_v53, 0.0  ;;  %v11621_v33 = vld [vmem:[%s15687_s3 + $0x138] sm:$0xff] }
 0x323   : > { %16281 = vst [vmem:[#allocation12_spill] sm:$0xff] %v13154_v0  ;;  %v3048_v52 = vadd.f32 %v3047_v49, %v2959_v44  ;;  %v3405_v56 = vpack.c.bf16 %v13154_v0, %v13150_v20  ;;  %4549 = vmatpush.bf16.msra.mxu1 %v11621_v33 }
 0x325   : > { %v3084_v11 = vmax.f32 %v3048_v52, 0.0  ;;  %3514 = vmatmul.bf16.gmra.mxu2 %v3405_v56  ;;  %v11620_v52 = vld [vmem:[%s15687_s3 + $0x130] sm:$0xff] }
 0x326   : > { %v3222_v23 = vpop.f32.mrf.mxu1 }
 0x327   : > { %v3101_v24 = vpack.c.bf16 %v3084_v11, %v3083_v28  ;;  %v3284_v1 = vmax.f32 %v3222_v23, 0.0  ;;  %4550 = vmatpush.bf16.msra.mxu1 %v11620_v52  ;;  %v16289_v11 = vld [vmem:[#allocation16_spill] sm:$0xff] }
 0x328   : > { %v2872_v36 = vpop.f32.mrf.mxu2  ;;  %v16301_v52 = vld [vmem:[#allocation20_spill] sm:$0xff] }
 0x329   : > { %10572 = vmatmul.msk.bf16.gmra.mxu1 %vm16282_vm10, %v3101_v24  ;;  %v2962_v25 = vadd.f32 %v2961_v63, %v2872_v36  ;;  %v2963_v22 = vpop.f32.mrf.mxu3  ;;  %v13161_v15 = vadd.f32 %v3284_v1, %v16284_v58  ;;  %v16290_v63 = vmax.f32 %v16289_v11, 0.0  ;;  %v16292_v24 = vld [vmem:[#allocation17_spill] sm:$0xff]  ;;  %v16295_v58 = vld [vmem:[#allocation18_spill] sm:$0xff] }
 0x32a   : > { %v11619_v1 = vld [vmem:[%s15687_s3 + $0x128] sm:$0xff] }
 0x32b   : > { %16285 = vst [vmem:[#allocation13_spill] sm:$0xff] %v13161_v15  ;;  %v3051_v13 = vadd.f32 %v3050_v17, %v2962_v25  ;;  %v16293_v17 = vmax.f32 %v16292_v24, 0.0  ;;  %4551 = vmatpush.bf16.msra.mxu1 %v11619_v1 }
 0x32d   : > { %v3085_v30 = vmax.f32 %v3051_v13, 0.0  ;;  %v16296_v13 = vmax.f32 %v16295_v58, 0.0 }
 0x32e   : > { %v3224_v26 = vpop.f32.mrf.mxu1 }
 0x32f   : > { %v3285_v57 = vmax.f32 %v3224_v26, 0.0  ;;  %v11618_v26 = vld [vmem:[%s15687_s3 + $0x120] sm:$0xff] }
 0x330   : > { %v2874_v7 = vpop.f32.mrf.mxu2  ;;  %4552 = vmatpush.bf16.msra.mxu1 %v11618_v26 }
 0x331   : > { %v13165_v31 = vadd.f32 %v3285_v57, %v16287_v4  ;;  %v2964_v40 = vadd.f32 %v2963_v22, %v2874_v7  ;;  %v16298_v4 = vld [vmem:[#allocation19_spill] sm:$0xff] }
 0x333   : > { %16288 = vst [vmem:[#allocation14_spill] sm:$0xff] %v13165_v31  ;;  %v3053_v49 = vadd.f32 %v3052_v16, %v2964_v40  ;;  %v3406_v5 = vpack.c.bf16 %v13165_v31, %v13161_v15  ;;  %v16299_v40 = vmax.f32 %v16298_v4, 0.0  ;;  %v16353_v15 = vld [vmem:[#allocation35_spill] sm:$0xff] }
 0x335   : > { %v3086_v10 = vmax.f32 %v3053_v49, 0.0  ;;  %3519 = vmatmul.bf16.gmra.mxu2 %v3406_v5 }
 0x336   : > { %v3227_v60 = vpop.f32.mrf.mxu1 }
 0x337   : > { %v3102_v48 = vpack.c.bf16 %v3086_v10, %v3085_v30  ;;  %v3286_v44 = vmax.f32 %v3227_v60, 0.0 }
 0x339   : > { %10573 = vmatmul.msk.bf16.gmra.mxu1 %vm16244_vm9, %v3102_v48  ;;  %v13178_v23 = vadd.f32 %v3286_v44, %v16290_v63  ;;  %v16304_v63 = vld [vmem:[#allocation21_spill] sm:$0xff] }
 0x33a   : > { %v16305_v24 = vmax.f32 %v16304_v63, 0.0 }
 0x33b   : > { %16291 = vst [vmem:[#allocation15_spill] sm:$0xff] %v13178_v23 }
 0x33e   : > { %v3229_v56 = vpop.f32.mrf.mxu1 }
 0x33f   : > { %v3287_v28 = vmax.f32 %v3229_v56, 0.0  ;;  %v16302_v56 = vmax.f32 %v16301_v52, 0.0 }
 0x341   : > { %v13182_v36 = vadd.f32 %v3287_v28, %v16293_v17 }
 0x343   : > { %16294 = vst [vmem:[#allocation16_spill] sm:$0xff] %v13182_v36  ;;  %v3407_v25 = vpack.c.bf16 %v13182_v36, %v13178_v23  ;;  %v16345_v23 = vld [vmem:[#allocation34_spill] sm:$0xff] }
 0x345   : > { %3524 = vmatmul.bf16.gmra.mxu2 %v3407_v25 }
 0x346   : > { %v3232_v57 = vpop.f32.mrf.mxu1 }
 0x347   : > { %v3288_v22 = vmax.f32 %v3232_v57, 0.0 }
 0x349   : > { %v13194_v53 = vadd.f32 %v3288_v22, %v16296_v13 }
 0x34b   : > { %16297 = vst [vmem:[#allocation17_spill] sm:$0xff] %v13194_v53 }
 0x34e   : > { %v3234_v7 = vpop.f32.mrf.mxu1 }
 0x34f   : > { %v3289_v35 = vmax.f32 %v3234_v7, 0.0 }
 0x351   : > { %v13198_v16 = vadd.f32 %v3289_v35, %v16299_v40 }
 0x353   : > { %16300 = vst [vmem:[#allocation18_spill] sm:$0xff] %v13198_v16  ;;  %v3408_v49 = vpack.c.bf16 %v13198_v16, %v13194_v53 }
 0x355   : > { %3529 = vmatmul.bf16.gmra.mxu2 %v3408_v49 }
 0x356   : > { %v3237_v5 = vpop.f32.mrf.mxu1 }
 0x357   : > { %v3290_v10 = vmax.f32 %v3237_v5, 0.0 }
 0x358   : > { %v3490_v30 = vpop.f32.mrf.mxu2 }
 0x359   : > { %v3570_v60 = vmax.f32 %v3490_v30, 0.0  ;;  %v13204_v28 = vadd.f32 %v3290_v10, %v16302_v56 }
 0x35b   : > { %16303 = vst [vmem:[#allocation19_spill] sm:$0xff] %v13204_v28  ;;  %v3602_v11 = vpack.c.bf16 %v3570_v60, %v3570_v60 }
 0x35d   : > { %v3664_v57 = vunpack.c.l.b16 %v3602_v11  ;;  %v16310_v11 = vld [vmem:[#allocation23_spill] sm:$0xff] }
 0x35e   : > { %v3239_v48 = vpop.f32.mrf.mxu1  ;;  %vm16311_vm9 = vnez %v16310_v11 }
 0x35f   : > { %v3291_v33 = vmax.f32 %v3239_v48, 0.0 }
 0x360   : > { %v3492_v44 = vpop.f32.mrf.mxu2 }
 0x361   : > { %v13208_v17 = vadd.f32 %v3291_v33, %v16305_v24  ;;  %v3571_v1 = vmax.f32 %v3492_v44, 0.0  ;;  %v16308_v44 = vld [vmem:[#allocation22_spill] sm:$0xff]  ;;  %v16312_v24 = vld [vmem:[#allocation24_spill] sm:$0xff] }
 0x362   : > { %vm16309_vm10 = vnez %v16308_v44 }
 0x363   : > { %16306 = vst [vmem:[#allocation20_spill] sm:$0xff] %v13208_v17  ;;  %v3603_v25 = vpack.c.bf16 %v3571_v1, %v3571_v1  ;;  %v3409_v26 = vpack.c.bf16 %v13208_v17, %v13204_v28  ;;  %v16313_v1 = vmax.f32 %v16312_v24, 0.0 }
 0x365   : > { %v3665_v22 = vunpack.c.l.b16 %v3603_v25  ;;  %3534 = vmatmul.bf16.gmra.mxu2 %v3409_v26 }
 0x366   : > { %v3242_v7 = vpop.f32.mrf.mxu1 }
 0x367   : > { %v3694_v35 = vpack.c.b16 %v3665_v22, %v3664_v57  ;;  %v3292_v5 = vmax.f32 %v3242_v7, 0.0  ;;  %v16315_v57 = vld [vmem:[#allocation25_spill] sm:$0xff] }
 0x368   : > { %v3495_v58 = vpop.f32.mrf.mxu2  ;;  %v16316_v22 = vmax.f32 %v16315_v57, 0.0 }
 0x369   : > { %3972 = vrot.lane.b32.xlu0 %v3694_v35, %s11770_s27  ;;  %10744 = vmatmul.msk.bf16.vlgmr.msra.gmra.mxu1 %vm16307_vm14, %v3694_v35  ;;  %v3710_v13 = vshrl.u32 %v3694_v35, 16  ;;  %v3713_v4 = vshll.u32 %v3694_v35, 16  ;;  %v3572_v30 = vmax.f32 %v3495_v58, 0.0  ;;  %v13226_v25 = vadd.f32 %v3292_v5, %v16313_v1 }
 0x36b   : > { %v3712_v40 = vrot.slane %v3710_v13, 7  ;;  %v13214_v49 = vrot.slane %v3713_v4, 1  ;;  %16314 = vst [vmem:[#allocation21_spill] sm:$0xff] %v13226_v25  ;;  %v3604_v26 = vpack.c.bf16 %v3572_v30, %v3572_v30 }
 0x36d   : > { %v3715_v10 = vor.u32 %v3713_v4, %v3712_v40  ;;  %v3863_v60 = vor.u32 %v13214_v49, %v3710_v13  ;;  %v3666_v4 = vunpack.c.l.b16 %v3604_v26 }
 0x36e   : > { %v3244_v48 = vpop.f32.mrf.mxu1 }
 0x36f   : > { %v3293_v33 = vmax.f32 %v3244_v48, 0.0  ;;  %v13219_v52 = vsel %vm16309_vm10, 0, %v3715_v10  ;;  %vm16319_vm10 = vsmask.f32 256 }
 0x370   : > { %v3497_v56 = vpop.f32.mrf.mxu2  ;;  %v3956_v63 = vsel %vm16311_vm9, %v13219_v52, 0  ;;  %vm16318_vm9 = vsmask.f32 7424 }
 0x371   : > { %v13230_v7 = vadd.f32 %v3293_v33, %v16316_v22  ;;  %v3573_v35 = vmax.f32 %v3497_v56, 0.0  ;;  %4018 = vrot.lane.b32.xlu2 %v3956_v63, %s11770_s27 }
 0x373   : > { %16317 = vst [vmem:[#allocation24_spill] sm:$0xff] %v13230_v7  ;;  %v3605_v58 = vpack.c.bf16 %v3573_v35, %v3573_v35  ;;  %v3410_v13 = vpack.c.bf16 %v13230_v7, %v13226_v25 }
 0x375   : > { %v3667_v10 = vunpack.c.l.b16 %v3605_v58  ;;  %3539 = vmatmul.bf16.gmra.mxu2 %v3410_v13 }
 0x376   : > { %v3247_v48 = vpop.f32.mrf.mxu1 }
 0x377   : > { %v3695_v17 = vpack.c.b16 %v3667_v10, %v3666_v4  ;;  %v3294_v1 = vmax.f32 %v3247_v48, 0.0  ;;  %v16320_v10 = vld [vmem:[#allocation27_spill] sm:$0xff] }
 0x378   : > { %v3500_v24 = vpop.f32.mrf.mxu2 }
 0x379   : > { %3974 = vrot.lane.b32.xlu2 %v3695_v17, %s11770_s27  ;;  %10745 = vmatmul.msk.bf16.gmra.mxu1 %vm16307_vm14, %v3695_v17  ;;  %v3717_v5 = vshrl.u32 %v3695_v17, 16  ;;  %v3720_v30 = vshll.u32 %v3695_v17, 16  ;;  %v3574_v63 = vmax.f32 %v3500_v24, 0.0  ;;  %vm16321_vm14 = vnez %v16320_v10  ;;  %v16322_v17 = vld [vmem:[#allocation26_spill] sm:$0xff]  ;;  %v16325_v24 = vld [vmem:[#allocation28_spill] sm:$0xff] }
 0x37a   : > { %v16323_v25 = vmax.f32 %v16322_v17, 0.0 }
 0x37b   : > { %v3719_v33 = vrot.slane %v3717_v5, 7  ;;  %v3864_v56 = vrot.slane %v3720_v30, 1  ;;  %v3606_v48 = vpack.c.bf16 %v3574_v63, %v3574_v63 }
 0x37c   : > { %v13248_v28 = vadd.f32 %v3294_v1, %v16323_v25 }
 0x37d   : > { %v3722_v57 = vor.u32 %v3720_v30, %v3719_v33  ;;  %v13238_v22 = vsel %vm16318_vm9, %v3863_v60, %v3864_v56  ;;  %v3866_v26 = vor.u32 %v3864_v56, %v3717_v5  ;;  %v16326_v30 = vmax.f32 %v16325_v24, 0.0 }
 0x37e   : > { %v3249_v35 = vpop.f32.mrf.mxu1  ;;  %16324 = vst [vmem:[#allocation25_spill] sm:$0xff] %v13248_v28 }
 0x37f   : > { %v3295_v58 = vmax.f32 %v3249_v35, 0.0  ;;  %v13241_v13 = vsel %vm16319_vm10, %v3712_v40, %v3722_v57  ;;  %v3668_v57 = vunpack.c.l.b16 %v3606_v48  ;;  %vm16328_vm10 = vcmask 523264  }
 0x380   : > { %v3502_v4 = vpop.f32.mrf.mxu2  ;;  %v3957_v7 = vsel %vm16321_vm14, %v13241_v13, 0 }
 0x381   : > { %v13252_v60 = vadd.f32 %v3295_v58, %v16326_v30  ;;  %v3575_v5 = vmax.f32 %v3502_v4, 0.0  ;;  %4020 = vrot.lane.b32.xlu1 %v3957_v7, %s11770_s27  ;;  %v11617_v7 = vld [vmem:[%s15687_s3 + $0x118] sm:$0xff] }
 0x382   : > { %4456 = vmatpush.bf16.msra.mxu0 %v11617_v7 }
 0x383   : > { %16327 = vst [vmem:[#allocation26_spill] sm:$0xff] %v13252_v60  ;;  %v3607_v56 = vpack.c.bf16 %v3575_v5, %v3575_v5  ;;  %v3411_v40 = vpack.c.bf16 %v13252_v60, %v13248_v28  ;;  %v16332_v28 = vld [vmem:[#allocation29_spill] sm:$0xff] }
 0x384   : > { %v16333_v7 = vmax.f32 %v16332_v28, 0.0 }
 0x385   : > { %v3669_v35 = vunpack.c.l.b16 %v3607_v56  ;;  %3544 = vmatmul.bf16.gmra.mxu2 %v3411_v40 }
 0x386   : > { %v3252_v11 = vpop.f32.mrf.mxu1 }
 0x387   : > { %v3696_v44 = vpack.c.b16 %v3669_v35, %v3668_v57  ;;  %v3296_v4 = vmax.f32 %v3252_v11, 0.0  ;;  %v16330_v35 = vld [vmem:[#allocation30_spill] sm:$0xff] }
 0x388   : > { %v3505_v17 = vpop.f32.mrf.mxu2 }
 0x389   : > { %3976 = vrot.lane.b32.xlu1 %v3696_v44, %s11770_s27  ;;  %10746 = vmatmul.msk.bf16.gmra.mxu1 %vm16328_vm10, %v3696_v44  ;;  %v3725_v25 = vshrl.u32 %v3696_v44, 16  ;;  %v3728_v1 = vshll.u32 %v3696_v44, 16  ;;  %v3576_v48 = vmax.f32 %v3505_v17, 0.0  ;;  %vm16331_vm10 = vnez %v16330_v35  ;;  %v16335_v17 = vld [vmem:[#allocation31_spill] sm:$0xff] }
 0x38a   : > { %v13273_v16 = vadd.f32 %v3296_v4, %v16333_v7 }
 0x38b   : > { %v3727_v63 = vrot.slane %v3725_v25, 7  ;;  %v3867_v58 = vrot.slane %v3728_v1, 1  ;;  %v3608_v11 = vpack.c.bf16 %v3576_v48, %v3576_v48  ;;  %v11615_v48 = vld [vmem:[%s15687_s3 + $0x108] sm:$0xff] }
 0x38c   : > { %16334 = vst [vmem:[#allocation28_spill] sm:$0xff] %v13273_v16 }
 0x38d   : > { %v3730_v24 = vor.u32 %v3728_v1, %v3727_v63  ;;  %v13263_v30 = vsel %vm16318_vm9, %v3866_v26, %v3867_v58  ;;  %v3869_v5 = vor.u32 %v3867_v58, %v3725_v25  ;;  %v16336_v1 = vmax.f32 %v16335_v17, 0.0 }
 0x38e   : > { %v3254_v56 = vpop.f32.mrf.mxu1  ;;  %v3670_v28 = vunpack.c.l.b16 %v3608_v11  ;;  %v11614_v11 = vld [vmem:[%s15687_s3 + $0x100] sm:$0xff] }
 0x38f   : > { %v3297_v40 = vmax.f32 %v3254_v56, 0.0  ;;  %v13266_v57 = vsel %vm16329_vm6, %v3719_v33, %v3730_v24  ;;  %v11616_v33 = vld [vmem:[%s15687_s3 + $0x110] sm:$0xff]  ;;  %vm16338_vm6 = vcmask 523264  }
 0x390   : > { %v3507_v44 = vpop.f32.mrf.mxu2  ;;  %v3958_v60 = vsel %vm16331_vm10, %v13266_v57, 0  ;;  %4457 = vmatpush.bf16.msra.mxu0 %v11616_v33 }
 0x391   : > { %v13277_v26 = vadd.f32 %v3297_v40, %v16336_v1  ;;  %v3577_v25 = vmax.f32 %v3507_v44, 0.0  ;;  %4022 = vrot.lane.b32.xlu0 %v3958_v60, %s11770_s27 }
 0x393   : > { %16337 = vst [vmem:[#allocation29_spill] sm:$0xff] %v13277_v26  ;;  %v3609_v58 = vpack.c.bf16 %v3577_v25, %v3577_v25  ;;  %v3412_v24 = vpack.c.bf16 %v13277_v26, %v13273_v16 }
 0x394   : > { %4458 = vmatpush.bf16.msra.mxu0 %v11615_v48 }
 0x395   : > { %v3671_v4 = vunpack.c.l.b16 %v3609_v58  ;;  %3549 = vmatmul.bf16.gmra.mxu2 %v3412_v24  ;;  %v11613_v24 = vld [vmem:[%s15687_s3 + $0xf8] sm:$0xff] }
 0x396   : > { %v3257_v56 = vpop.f32.mrf.mxu1 }
 0x397   : > { %v3697_v40 = vpack.c.b16 %v3671_v4, %v3670_v28  ;;  %v3298_v25 = vmax.f32 %v3257_v56, 0.0 }
 0x398   : > { %v3510_v60 = vpop.f32.mrf.mxu2  ;;  %4459 = vmatpush.bf16.msra.mxu0 %v11614_v11  ;;  %v16340_v11 = vld [vmem:[#allocation33_spill] sm:$0xff] }
 0x399   : > { %3978 = vrot.lane.b32.xlu0 %v3697_v40, %s11770_s27  ;;  %10747 = vmatmul.msk.bf16.gmra.mxu1 %vm16338_vm6, %v3697_v40  ;;  %v3733_v44 = vshrl.u32 %v3697_v40, 16  ;;  %v3736_v7 = vshll.u32 %v3697_v40, 16  ;;  %v3578_v33 = vmax.f32 %v3510_v60, 0.0  ;;  %vm16339_vm6 = vsmask.f32 256  ;;  %v16342_v60 = vld [vmem:[#allocation32_spill] sm:$0xff] }
 0x39a   : > { %vm16341_vm12 = vnez %v16340_v11 }
 0x39b   : > { %v3735_v17 = vrot.slane %v3733_v44, 7  ;;  %v3870_v1 = vrot.slane %v3736_v7, 1  ;;  %v3610_v36 = vpack.c.bf16 %v3578_v33, %v3578_v33 }
 0x39c   : > { %4460 = vmatpush.bf16.msra.mxu0 %v11613_v24 }
 0x39d   : > { %v3738_v58 = vor.u32 %v3736_v7, %v3735_v17  ;;  %v13297_v28 = vsel %vm16318_vm9, %v3869_v5, %v3870_v1  ;;  %v3872_v4 = vor.u32 %v3870_v1, %v3733_v44  ;;  %v16343_v7 = vmax.f32 %v16342_v60, 0.0 }
 0x39e   : > { %v3259_v48 = vpop.f32.mrf.mxu1  ;;  %v16346_v5 = vmax.f32 %v16345_v23, 0.0  ;;  %v3672_v24 = vunpack.c.l.b16 %v3610_v36  ;;  %v11611_v23 = vld [vmem:[%s15687_s3 + $0xe8] sm:$0xff]  ;;  %vm16348_vm9 = vcmask 523264   ;;  %v11610_v36 = vld [vmem:[%s15687_s3 + $0xe0] sm:$0xff] }
 0x39f   : > { %v3299_v40 = vmax.f32 %v3259_v48, 0.0  ;;  %v13300_v26 = vsel %vm16339_vm6, %v3727_v63, %v3738_v58  ;;  %v13307_v53 = vadd.f32 %v3298_v25, %v16343_v7  ;;  %v11612_v63 = vld [vmem:[%s15687_s3 + $0xf0] sm:$0xff]  ;;  %vm16349_vm6 = vsmask.f32 7424 }
 0x3a0   : > { %v3512_v16 = vpop.f32.mrf.mxu2  ;;  %v3959_v56 = vsel %vm16341_vm12, %v13300_v26, 0  ;;  %4461 = vmatpush.bf16.msra.mxu0 %v11612_v63 }
 0x3a1   : > { %16344 = vst [vmem:[#allocation31_spill] sm:$0xff] %v13307_v53  ;;  %v13311_v31 = vadd.f32 %v3299_v40, %v16346_v5  ;;  %v3579_v44 = vmax.f32 %v3512_v16, 0.0  ;;  %4024 = vrot.lane.b32.xlu2 %v3959_v56, %s11770_s27 }
 0x3a3   : > { %16347 = vst [vmem:[#allocation32_spill] sm:$0xff] %v13311_v31  ;;  %v3611_v1 = vpack.c.bf16 %v3579_v44, %v3579_v44  ;;  %v3413_v58 = vpack.c.bf16 %v13311_v31, %v13307_v53  ;;  %v16351_v31 = vld [vmem:[#allocation36_spill] sm:$0xff] }
 0x3a4   : > { %4462 = vmatpush.bf16.msra.mxu0 %v11611_v23 }
 0x3a5   : > { %v3673_v25 = vunpack.c.l.b16 %v3611_v1  ;;  %3554 = vmatmul.bf16.gmra.mxu2 %v3413_v58 }
 0x3a6   : > { %v3262_v33 = vpop.f32.mrf.mxu1 }
 0x3a7   : > { %v3698_v16 = vpack.c.b16 %v3673_v25, %v3672_v24  ;;  %v3300_v5 = vmax.f32 %v3262_v33, 0.0 }
 0x3a8   : > { %v3515_v48 = vpop.f32.mrf.mxu2  ;;  %4463 = vmatpush.bf16.msra.mxu0 %v11610_v36  ;;  %v16354_v36 = vmax.f32 %v16353_v15, 0.0 }
 0x3a9   : > { %3980 = vrot.lane.b32.xlu2 %v3698_v16, %s11770_s27  ;;  %10748 = vmatmul.msk.bf16.gmra.mxu1 %vm16348_vm9, %v3698_v16  ;;  %v3741_v40 = vshrl.u32 %v3698_v16, 16  ;;  %v3744_v56 = vshll.u32 %v3698_v16, 16  ;;  %v3580_v44 = vmax.f32 %v3515_v48, 0.0  ;;  %vm16352_vm9 = vnez %v16351_v31  ;;  %v16356_v48 = vld [vmem:[#allocation37_spill] sm:$0xff] }
 0x3aa   : > { %v13338_v0 = vadd.f32 %v3300_v5, %v16354_v36 }
 0x3ab   : > { %v3743_v60 = vrot.slane %v3741_v40, 7  ;;  %v3873_v7 = vrot.slane %v3744_v56, 1  ;;  %v3612_v33 = vpack.c.bf16 %v3580_v44, %v3580_v44 }
 0x3ac   : > { %16355 = vst [vmem:[#allocation34_spill] sm:$0xff] %v13338_v0 }
 0x3ad   : > { %v3746_v63 = vor.u32 %v3744_v56, %v3743_v60  ;;  %v13328_v1 = vsel %vm16349_vm6, %v3872_v4, %v3873_v7  ;;  %v3875_v58 = vor.u32 %v3873_v7, %v3741_v40  ;;  %v16357_v56 = vmax.f32 %v16356_v48, 0.0 }
 0x3ae   : > { %v3264_v24 = vpop.f32.mrf.mxu1 }
 0x3af   : > { %v3301_v25 = vmax.f32 %v3264_v24, 0.0  ;;  %v13331_v23 = vsel %vm16350_vm7, %v3735_v17, %v3746_v63  ;;  %v3674_v63 = vunpack.c.l.b16 %v3612_v33  ;;  %vm16359_vm7 = vcmask 523264  }
 0x3b0   : > { %v3517_v16 = vpop.f32.mrf.mxu2  ;;  %v3960_v53 = vsel %vm16352_vm9, %v13331_v23, 0 }
 0x3b1   : > { %v13342_v4 = vadd.f32 %v3301_v25, %v16357_v56  ;;  %v3581_v40 = vmax.f32 %v3517_v16, 0.0  ;;  %4026 = vrot.lane.b32.xlu1 %v3960_v53, %s11770_s27 }
 0x3b3   : > { %16358 = vst [vmem:[#allocation35_spill] sm:$0xff] %v13342_v4  ;;  %v3613_v7 = vpack.c.bf16 %v3581_v40, %v3581_v40  ;;  %v3414_v17 = vpack.c.bf16 %v13342_v4, %v13338_v0 }
 0x3b5   : > { %v3675_v24 = vunpack.c.l.b16 %v3613_v7  ;;  %3559 = vmatmul.bf16.gmra.mxu2 %v3414_v17 }
 0x3b6   : > { %v3267_v20 = vpop.f32.mrf.mxu1 }
 0x3b7   : > { %v3699_v41 = vpack.c.b16 %v3675_v24, %v3674_v63  ;;  %v3302_v36 = vmax.f32 %v3267_v20, 0.0  ;;  %v16361_v24 = vld [vmem:[#allocation39_spill] sm:$0xff] }
 0x3b8   : > { %v3520_v15 = vpop.f32.mrf.mxu2 }
 0x3b9   : > { %3982 = vrot.lane.b32.xlu1 %v3699_v41, %s11770_s27  ;;  %10749 = vmatmul.msk.bf16.gmra.mxu1 %vm16359_vm7, %v3699_v41  ;;  %v3749_v5 = vshrl.u32 %v3699_v41, 16  ;;  %v3752_v44 = vshll.u32 %v3699_v41, 16  ;;  %v3582_v53 = vmax.f32 %v3520_v15, 0.0  ;;  %vm16362_vm7 = vnez %v16361_v24  ;;  %v16363_v41 = vld [vmem:[#allocation38_spill] sm:$0xff]  ;;  %v16366_v15 = vld [vmem:[#allocation40_spill] sm:$0xff] }
 0x3ba   : > { %v16364_v0 = vmax.f32 %v16363_v41, 0.0 }
 0x3bb   : > { %v3751_v25 = vrot.slane %v3749_v5, 7  ;;  %v3876_v16 = vrot.slane %v3752_v44, 1  ;;  %v3614_v20 = vpack.c.bf16 %v3582_v53, %v3582_v53 }
 0x3bc   : > { %v13360_v55 = vadd.f32 %v3302_v36, %v16364_v0  ;;  %v16369_v0 = vld [vmem:[#allocation42_spill] sm:$0xff] }
 0x3bd   : > { %v3754_v48 = vor.u32 %v3752_v44, %v3751_v25  ;;  %v13350_v56 = vsel %vm16349_vm6, %v3875_v58, %v3876_v16  ;;  %v3878_v33 = vor.u32 %v3876_v16, %v3749_v5  ;;  %v16367_v44 = vmax.f32 %v16366_v15, 0.0 }
 0x3be   : > { %v3269_v40 = vpop.f32.mrf.mxu1  ;;  %16365 = vst [vmem:[#allocation37_spill] sm:$0xff] %v13360_v55  ;;  %vm16371_vm6 = vcmask 523264  }
 0x3bf   : > { %v3303_v7 = vmax.f32 %v3269_v40, 0.0  ;;  %v13353_v17 = vsel %vm16360_vm8, %v3743_v60, %v3754_v48  ;;  %v3676_v48 = vunpack.c.l.b16 %v3614_v20  ;;  %vm16370_vm8 = vnez %v16369_v0  ;;  %vm16374_vm4 = vmmov %vm16371_vm6 }
 0x3c0   : > { %v3522_v63 = vpop.f32.mrf.mxu2  ;;  %v3961_v4 = vsel %vm16362_vm7, %v13353_v17, 0  ;;  %v3927_v36 = vsel %vm16370_vm8, 0, %v13214_v49  ;;  %vm16376_vm8 = vsmask.f32 256 }
 0x3c1   : > { %v13364_v58 = vadd.f32 %v3303_v7, %v16367_v44  ;;  %v3583_v5 = vmax.f32 %v3522_v63, 0.0  ;;  %4028 = vrot.lane.b32.xlu0 %v3961_v4, %s11770_s27  ;;  %v16372_v4 = vld [vmem:[#allocation44_spill] sm:$0xff] }
 0x3c2   : > { %vm16373_vm1 = vnez %v16372_v4 }
 0x3c3   : > { %16368 = vst [vmem:[#allocation38_spill] sm:$0xff] %v13364_v58  ;;  %v3615_v16 = vpack.c.bf16 %v3583_v5, %v3583_v5  ;;  %v3415_v60 = vpack.c.bf16 %v13364_v58, %v13360_v55  ;;  %v3928_v63 = vsel %vm16373_vm1, %v3927_v36, 0  ;;  %vm16380_vm1 = vsmask.f32 256 }
 0x3c5   : > { %v3677_v40 = vunpack.c.l.b16 %v3615_v16  ;;  %3564 = vmatmul.bf16.gmra.mxu2 %v3415_v60 }
 0x3c7   : > { %v3700_v50 = vpack.c.b16 %v3677_v40, %v3676_v48 }
 0x3c8   : > { %v3525_v38 = vpop.f32.mrf.mxu2 }
 0x3c9   : > { %3984 = vrot.lane.b32.xlu0 %v3700_v50, %s11770_s27  ;;  %10750 = vmatmul.msk.bf16.gmra.mxu1 %vm16371_vm6, %v3700_v50  ;;  %v3757_v53 = vshrl.u32 %v3700_v50, 16  ;;  %v3760_v7 = vshll.u32 %v3700_v50, 16  ;;  %v3584_v5 = vmax.f32 %v3525_v38, 0.0  ;;  %vm16377_vm6 = vnez %v16086_v34 }
 0x3cb   : > { %v4019_v41 = vpop.permute.xlu2 %4018  ;;  %v3759_v15 = vrot.slane %v3757_v53, 7  ;;  %v3879_v20 = vrot.slane %v3760_v7, 1  ;;  %v3616_v36 = vpack.c.bf16 %v3584_v5, %v3584_v5 }
 0x3cc   : > { %v4112_v44 = vsel %vm16374_vm4, %v3928_v63, %v4019_v41 }
 0x3cd   : > { %4464 = vmatmul.bf16.vlgmr.msra.gmra.mxu0 %v4112_v44  ;;  %v3762_v16 = vor.u32 %v3760_v7, %v3759_v15  ;;  %v13378_v60 = vsel %vm16375_vm0, %v3878_v33, %v3879_v20  ;;  %v3881_v49 = vor.u32 %v3879_v20, %v3757_v53  ;;  %v3678_v38 = vunpack.c.l.b16 %v3616_v36  ;;  %vm16378_vm0 = vmmov %vm16374_vm4 }
 0x3ce   : > { %v3844_v53 = vsel %vm16321_vm14, %v13219_v52, 0 }
 0x3cf   : > { %v13381_v48 = vsel %vm16376_vm8, %v3751_v25, %v3762_v16  ;;  %vm16379_vm8 = vsmask.f32 7424 }
 0x3d0   : > { %v3527_v40 = vpop.f32.mrf.mxu2  ;;  %v3962_v50 = vsel %vm16377_vm6, %v13381_v48, 0 }
 0x3d1   : > { %v3585_v4 = vmax.f32 %v3527_v40, 0.0  ;;  %4030 = vrot.lane.b32.xlu2 %v3962_v50, %s11770_s27 }
 0x3d3   : > { %v3617_v63 = vpack.c.bf16 %v3585_v4, %v3585_v4 }
 0x3d5   : > { %v3679_v41 = vunpack.c.l.b16 %v3617_v63 }
 0x3d7   : > { %v3701_v7 = vpack.c.b16 %v3679_v41, %v3678_v38 }
 0x3d8   : > { %v3530_v44 = vpop.f32.mrf.mxu2 }
 0x3d9   : > { %3986 = vrot.lane.b32.xlu2 %v3701_v7, %s11770_s27  ;;  %10751 = vmatmul.msk.bf16.gmra.mxu1 %vm16374_vm4, %v3701_v7  ;;  %v3765_v25 = vshrl.u32 %v3701_v7, 16  ;;  %v3768_v33 = vshll.u32 %v3701_v7, 16  ;;  %v3586_v4 = vmax.f32 %v3530_v44, 0.0  ;;  %vm16381_vm4 = vmmov %vm16378_vm0 }
 0x3db   : > { %v3973_v20 = vpop.permute.xlu0 %3972  ;;  %v3767_v5 = vrot.slane %v3765_v25, 7  ;;  %v3882_v16 = vrot.slane %v3768_v33, 1  ;;  %v3618_v7 = vpack.c.bf16 %v3586_v4, %v3586_v4 }
 0x3dc   : > { %v4052_v40 = vsel %vm16378_vm0, %v3844_v53, %v3973_v20 }
 0x3dd   : > { %4380 = vmatmul.bf16.gmra.mxu3 %v4052_v40  ;;  %v3770_v50 = vor.u32 %v3768_v33, %v3767_v5  ;;  %v13394_v36 = vsel %vm16379_vm8, %v3881_v49, %v3882_v16  ;;  %v3884_v63 = vor.u32 %v3882_v16, %v3765_v25  ;;  %v3680_v44 = vunpack.c.l.b16 %v3618_v7  ;;  %v3975_v49 = vpop.permute.xlu2 %3974 }
 0x3de   : > { %v3845_v16 = vsel %vm16331_vm10, %v13241_v13, 0 }
 0x3df   : > { %v13397_v38 = vsel %vm16380_vm1, %v3759_v15, %v3770_v50  ;;  %vm16382_vm1 = vmmov %vm16378_vm0 }
 0x3e0   : > { %v3532_v41 = vpop.f32.mrf.mxu2  ;;  %v3963_v52 = vsel %vm12414_vm5, %v13397_v38, 0  ;;  %vm16383_vm0 = vmmov %vm16379_vm8  ;;  %vm16384_vm8 = vsmask.f32 256 }
 0x3e1   : > { %v3587_v0 = vmax.f32 %v3532_v41, 0.0  ;;  %4032 = vrot.lane.b32.xlu1 %v3963_v52, %s11770_s27  ;;  %v4056_v41 = vsel %vm16382_vm1, %v3845_v16, %v3975_v49 }
 0x3e3   : > { %v3619_v53 = vpack.c.bf16 %v3587_v0, %v3587_v0 }
 0x3e5   : > { %v3681_v20 = vunpack.c.l.b16 %v3619_v53 }
 0x3e7   : > { %v3702_v33 = vpack.c.b16 %v3681_v20, %v3680_v44 }
 0x3e8   : > { %v3535_v40 = vpop.f32.mrf.mxu2 }
 0x3e9   : > { %3988 = vrot.lane.b32.xlu1 %v3702_v33, %s11770_s27  ;;  %10752 = vmatmul.msk.bf16.gmra.mxu1 %vm16381_vm4, %v3702_v33  ;;  %v3773_v15 = vshrl.u32 %v3702_v33, 16  ;;  %v3776_v25 = vshll.u32 %v3702_v33, 16  ;;  %v3588_v0 = vmax.f32 %v3535_v40, 0.0 }
 0x3eb   : > { %v3775_v4 = vrot.slane %v3773_v15, 7  ;;  %v3885_v50 = vrot.slane %v3776_v25, 1  ;;  %v3620_v13 = vpack.c.bf16 %v3588_v0, %v3588_v0 }
 0x3ed   : > { %4385 = vmatmul.bf16.gmra.mxu3 %v4056_v41  ;;  %v3778_v52 = vor.u32 %v3776_v25, %v3775_v4  ;;  %v13410_v7 = vsel %vm16383_vm0, %v3884_v63, %v3885_v50  ;;  %v3887_v53 = vor.u32 %v3885_v50, %v3773_v15  ;;  %v16385_v25 = vld [vmem:[#allocation46_spill] sm:$0xff]  ;;  %v3682_v16 = vunpack.c.l.b16 %v3620_v13  ;;  %vm16387_vm0 = vmmov %vm16382_vm1 }
 0x3ee   : > { %vm16386_vm4 = vnez %v16385_v25 }
 0x3ef   : > { %v13413_v44 = vsel %vm16384_vm8, %v3767_v5, %v3778_v52  ;;  %v3929_v63 = vsel %vm16386_vm4, %v13238_v22, 0  ;;  %vm16388_vm8 = vmmov %vm16387_vm0  ;;  %vm16390_vm4 = vsmask.f32 256 }
 0x3f0   : > { %v3537_v20 = vpop.f32.mrf.mxu2  ;;  %v3964_v33 = vsel %vm12474_vm13, %v13413_v44, 0 }
 0x3f1   : > { %v3589_v58 = vmax.f32 %v3537_v20, 0.0  ;;  %4034 = vrot.lane.b32.xlu0 %v3964_v33, %s11770_s27 }
 0x3f3   : > { %v3621_v49 = vpack.c.bf16 %v3589_v58, %v3589_v58  ;;  %v4021_v40 = vpop.permute.xlu1 %4020  ;;  %v3846_v58 = vsel %vm16341_vm12, %v13266_v57, 0 }
 0x3f4   : > { %v4116_v15 = vsel %vm16382_vm1, %v3929_v63, %v4021_v40  ;;  %vm16389_vm1 = vsmask.f32 7424 }
 0x3f5   : > { %v3683_v5 = vunpack.c.l.b16 %v3621_v49  ;;  %4469 = vmatmul.bf16.gmra.mxu0 %v4116_v15 }
 0x3f7   : > { %v3703_v50 = vpack.c.b16 %v3683_v5, %v3682_v16 }
 0x3f8   : > { %v3540_v41 = vpop.f32.mrf.mxu2 }
 0x3f9   : > { %3990 = vrot.lane.b32.xlu0 %v3703_v50, %s11770_s27  ;;  %10753 = vmatmul.msk.bf16.gmra.mxu1 %vm16387_vm0, %v3703_v50  ;;  %v3781_v0 = vshrl.u32 %v3703_v50, 16  ;;  %v3784_v52 = vshll.u32 %v3703_v50, 16  ;;  %v3590_v13 = vmax.f32 %v3540_v41, 0.0 }
 0x3fb   : > { %v3977_v20 = vpop.permute.xlu1 %3976  ;;  %v3783_v33 = vrot.slane %v3781_v0, 7  ;;  %v3888_v22 = vrot.slane %v3784_v52, 1  ;;  %v3622_v50 = vpack.c.bf16 %v3590_v13, %v3590_v13 }
 0x3fc   : > { %v4060_v40 = vsel %vm16388_vm8, %v3846_v58, %v3977_v20 }
 0x3fd   : > { %4390 = vmatmul.bf16.gmra.mxu3 %v4060_v40  ;;  %v3786_v49 = vor.u32 %v3784_v52, %v3783_v33  ;;  %v13430_v63 = vsel %vm16389_vm1, %v3887_v53, %v3888_v22  ;;  %v3890_v15 = vor.u32 %v3888_v22, %v3781_v0  ;;  %v16391_v52 = vld [vmem:[#allocation47_spill] sm:$0xff]  ;;  %v3684_v20 = vunpack.c.l.b16 %v3622_v50 }
 0x3fe   : > { %vm16392_vm0 = vnez %v16391_v52 }
 0x3ff   : > { %v13433_v16 = vsel %vm16390_vm4, %v3775_v4, %v3786_v49  ;;  %v3930_v53 = vsel %vm16392_vm0, %v13263_v30, 0  ;;  %vm16393_vm4 = vmmov %vm16388_vm8  ;;  %vm16409_vm0 = vsmask.f32 256 }
 0x400   : > { %v3542_v5 = vpop.f32.mrf.mxu2  ;;  %v3965_v57 = vsel %vm12526_vm3, %v13433_v16, 0  ;;  %vm16394_vm1 = vmmov %vm16393_vm4 }
 0x401   : > { %v3591_v25 = vmax.f32 %v3542_v5, 0.0  ;;  %4036 = vrot.lane.b32.xlu2 %v3965_v57, %s11770_s27 }
 0x403   : > { %v3623_v58 = vpack.c.bf16 %v3591_v25, %v3591_v25  ;;  %v4023_v41 = vpop.permute.xlu0 %4022  ;;  %v3847_v25 = vsel %vm16352_vm9, %v13300_v26, 0 }
 0x404   : > { %v4120_v0 = vsel %vm16388_vm8, %v3930_v53, %v4023_v41  ;;  %vm16395_vm8 = vsmask.f32 7424 }
 0x405   : > { %v3685_v4 = vunpack.c.l.b16 %v3623_v58  ;;  %4474 = vmatmul.bf16.gmra.mxu0 %v4120_v0 }
 0x407   : > { %v3704_v22 = vpack.c.b16 %v3685_v4, %v3684_v20  ;;  %v4025_v20 = vpop.permute.xlu2 %4024 }
 0x408   : > { %v3545_v40 = vpop.f32.mrf.mxu2 }
 0x409   : > { %3992 = vrot.lane.b32.xlu2 %v3704_v22, %s11770_s27  ;;  %10754 = vmatmul.msk.bf16.gmra.mxu1 %vm16393_vm4, %v3704_v22  ;;  %v3789_v13 = vshrl.u32 %v3704_v22, 16  ;;  %v3792_v49 = vshll.u32 %v3704_v22, 16  ;;  %v3592_v50 = vmax.f32 %v3545_v40, 0.0  ;;  %vm16396_vm4 = vsmask.f32 256  ;;  %v13459_v40 = vpop.f32.mrf.mxu1 }
 0x40b   : > { %v3979_v5 = vpop.permute.xlu0 %3978  ;;  %v3791_v57 = vrot.slane %v3789_v13, 7  ;;  %v3891_v30 = vrot.slane %v3792_v49, 1  ;;  %v3624_v52 = vpack.c.bf16 %v3592_v50, %v3592_v50 }
 0x40c   : > { %v4064_v41 = vsel %vm16394_vm1, %v3847_v25, %v3979_v5 }
 0x40d   : > { %4395 = vmatmul.bf16.gmra.mxu3 %v4064_v41  ;;  %v3794_v58 = vor.u32 %v3792_v49, %v3791_v57  ;;  %v13450_v53 = vsel %vm16395_vm8, %v3890_v15, %v3891_v30  ;;  %v3893_v0 = vor.u32 %v3891_v30, %v3789_v13  ;;  %v16397_v15 = vld [vmem:[#allocation48_spill] sm:$0xff]  ;;  %vm16399_vm8 = vcmask 523264   ;;  %v11625_v41 = vld [vmem:[%s15688_s4 + $0x38] sm:$0xff] }
 0x40e   : > { %vm16398_vm1 = vnez %v16397_v15  ;;  %4767 = vmatpush.bf16.msra.mxu2 %v11625_v41 }
 0x40f   : > { %v13453_v4 = vsel %vm16396_vm4, %v3783_v33, %v3794_v58  ;;  %v3931_v13 = vsel %vm16398_vm1, %v13297_v28, 0  ;;  %v3686_v33 = vunpack.c.l.b16 %v3624_v52  ;;  %v3981_v58 = vpop.permute.xlu2 %3980  ;;  %vm16400_vm4 = vmmov %vm16399_vm8  ;;  %v3848_v28 = vsel %vm16362_vm7, %v13331_v23, 0 }
 0x410   : > { %v3547_v22 = vpop.f32.mrf.mxu2  ;;  %v3966_v26 = vsel %vm12578_vm11, %v13453_v4, 0  ;;  %v4124_v25 = vsel %vm16399_vm8, %v3931_v13, %v4025_v20  ;;  %vm16401_vm8 = vmmov %vm16400_vm4  ;;  %vm16402_vm1 = vsmask.f32 7424 }
 0x411   : > { %v3593_v55 = vmax.f32 %v3547_v22, 0.0  ;;  %4038 = vrot.lane.b32.xlu1 %v3966_v26, %s11770_s27  ;;  %v4068_v26 = vsel %vm16401_vm8, %v3848_v28, %v3981_v58 }
 0x413   : > { %v3625_v49 = vpack.c.bf16 %v3593_v55, %v3593_v55 }
 0x415   : > { %v3687_v5 = vunpack.c.l.b16 %v3625_v49  ;;  %4479 = vmatmul.bf16.gmra.mxu0 %v4124_v25  ;;  %v13474_v49 = vpop.f32.mrf.mxu1 }
 0x417   : > { %v3705_v30 = vpack.c.b16 %v3687_v5, %v3686_v33 }
 0x418   : > { %v3550_v50 = vpop.f32.mrf.mxu2 }
 0x419   : > { %3994 = vrot.lane.b32.xlu1 %v3705_v30, %s11770_s27  ;;  %10755 = vmatmul.msk.bf16.gmra.mxu1 %vm16400_vm4, %v3705_v30  ;;  %v3797_v55 = vshrl.u32 %v3705_v30, 16  ;;  %v3800_v22 = vshll.u32 %v3705_v30, 16  ;;  %v3594_v13 = vmax.f32 %v3550_v50, 0.0  ;;  %vm16403_vm4 = vsmask.f32 256 }
 0x41b   : > { %v3799_v52 = vrot.slane %v3797_v55, 7  ;;  %v3894_v20 = vrot.slane %v3800_v22, 1  ;;  %v3626_v15 = vpack.c.bf16 %v3594_v13, %v3594_v13 }
 0x41d   : > { %4400 = vmatmul.bf16.gmra.mxu3 %v4068_v26  ;;  %v3802_v25 = vor.u32 %v3800_v22, %v3799_v52  ;;  %v13477_v33 = vsel %vm16402_vm1, %v3893_v0, %v3894_v20  ;;  %v3896_v5 = vor.u32 %v3894_v20, %v3797_v55  ;;  %v16404_v22 = vld [vmem:[#allocation49_spill] sm:$0xff]  ;;  %vm16406_vm1 = vcmask 523264   ;;  %v13490_v20 = vpop.f32.mrf.mxu1 }
 0x41e   : > { %vm16405_vm8 = vnez %v16404_v22  ;;  %v3688_v28 = vunpack.c.l.b16 %v3626_v15 }
 0x41f   : > { %v13480_v30 = vsel %vm16403_vm4, %v3791_v57, %v3802_v25  ;;  %v3932_v0 = vsel %vm16405_vm8, %v13328_v1, 0  ;;  %vm16407_vm4 = vmmov %vm16406_vm1  ;;  %vm16408_vm8 = vsmask.f32 7424 }
 0x420   : > { %v3552_v41 = vpop.f32.mrf.mxu2  ;;  %v3967_v23 = vsel %vm12637_vm2, %v13480_v30, 0 }
 0x421   : > { %v3595_v24 = vmax.f32 %v3552_v41, 0.0  ;;  %4040 = vrot.lane.b32.xlu0 %v3967_v23, %s11770_s27  ;;  %v3849_v41 = vsel %vm16377_vm6, %v13353_v17, 0  ;;  %vm16432_vm6 = vnez %v16208_v9 }
 0x423   : > { %v3627_v58 = vpack.c.bf16 %v3595_v24, %v3595_v24  ;;  %v4027_v50 = vpop.permute.xlu1 %4026 }
 0x424   : > { %v4128_v55 = vsel %vm16406_vm1, %v3932_v0, %v4027_v50 }
 0x425   : > { %v3689_v57 = vunpack.c.l.b16 %v3627_v58  ;;  %4484 = vmatmul.bf16.gmra.mxu0 %v4128_v55 }
 0x427   : > { %v3706_v26 = vpack.c.b16 %v3689_v57, %v3688_v28 }
 0x428   : > { %v3555_v25 = vpop.f32.mrf.mxu2 }
 0x429   : > { %3996 = vrot.lane.b32.xlu0 %v3706_v26, %s11770_s27  ;;  %10756 = vmatmul.msk.bf16.gmra.mxu1 %vm16407_vm4, %v3706_v26  ;;  %v3805_v13 = vshrl.u32 %v3706_v26, 16  ;;  %v3808_v24 = vshll.u32 %v3706_v26, 16  ;;  %v3596_v58 = vmax.f32 %v3555_v25, 0.0  ;;  %v11624_v26 = vld [vmem:[%s15688_s4 + $0x30] sm:$0xff]  ;;  %vm16413_vm4 = vmmov %vm16406_vm1 }
 0x42a   : > { %4768 = vmatpush.bf16.msra.mxu2 %v11624_v26 }
 0x42b   : > { %v3983_v1 = vpop.permute.xlu1 %3982  ;;  %v3807_v23 = vrot.slane %v3805_v13, 7  ;;  %v3897_v50 = vrot.slane %v3808_v24, 1  ;;  %v3628_v25 = vpack.c.bf16 %v3596_v58, %v3596_v58 }
 0x42c   : > { %v4072_v15 = vsel %vm16406_vm1, %v3849_v41, %v3983_v1  ;;  %v13510_v41 = vpop.f32.mrf.mxu1 }
 0x42d   : > { %4405 = vmatmul.bf16.gmra.mxu3 %v4072_v15  ;;  %v3810_v0 = vor.u32 %v3808_v24, %v3807_v23  ;;  %v13499_v55 = vsel %vm16408_vm8, %v3896_v5, %v3897_v50  ;;  %v3899_v28 = vor.u32 %v3897_v50, %v3805_v13  ;;  %v11623_v50 = vld [vmem:[%s15688_s4 + $0x28] sm:$0xff]  ;;  %vm16412_vm8 = vmmov %vm16406_vm1 }
 0x42e   : > { %4769 = vmatpush.bf16.msra.mxu2 %v11623_v50 }
 0x42f   : > { %v13502_v57 = vsel %vm16409_vm0, %v3799_v52, %v3810_v0  ;;  %v16410_v52 = vld [vmem:[#allocation50_spill] sm:$0xff]  ;;  %v3690_v0 = vunpack.c.l.b16 %v3628_v25  ;;  %v3850_v25 = vsel %vm12414_vm5, %v13381_v48, 0  ;;  %vm16431_vm5 = vsmask.f32 256 }
 0x430   : > { %v3557_v17 = vpop.f32.mrf.mxu2  ;;  %v3968_v22 = vsel %vm16228_vm15, %v13502_v57, 0  ;;  %vm16411_vm0 = vnez %v16410_v52 }
 0x431   : > { %v3597_v24 = vmax.f32 %v3557_v17, 0.0  ;;  %4042 = vrot.lane.b32.xlu2 %v3968_v22, %s11770_s27  ;;  %v3933_v1 = vsel %vm16411_vm0, %v13350_v56, 0  ;;  %v11622_v22 = vld [vmem:[%s15688_s4 + $0x20] sm:$0xff]  ;;  %vm16416_vm0 = vnez %v16183_v37 }
 0x432   : > { %4770 = vmatpush.bf16.msra.mxu2 %v11622_v22  ;;  %v11726_v37 = vld [vmem:[%s15689_s5 + $0x20] sm:$0xff] }
 0x433   : > { %v3629_v5 = vpack.c.bf16 %v3597_v24, %v3597_v24  ;;  %v4029_v13 = vpop.permute.xlu0 %4028 }
 0x434   : > { %v4132_v15 = vsel %vm16412_vm8, %v3933_v1, %v4029_v13  ;;  %v13528_v24 = vpop.f32.mrf.mxu1  ;;  %vm16414_vm8 = vsmask.f32 7424 }
 0x435   : > { %v3691_v34 = vunpack.c.l.b16 %v3629_v5  ;;  %4489 = vmatmul.bf16.gmra.mxu0 %v4132_v15 }
 0x437   : > { %v3707_v58 = vpack.c.b16 %v3691_v34, %v3690_v0 }
 0x438   : > { %v3560_v26 = vpop.f32.mrf.mxu2 }
 0x439   : > { %3998 = vrot.lane.b32.xlu2 %v3707_v58, %s11770_s27  ;;  %10757 = vmatmul.msk.bf16.gmra.mxu1 %vm16413_vm4, %v3707_v58  ;;  %v3813_v56 = vshrl.u32 %v3707_v58, 16  ;;  %v3816_v17 = vshll.u32 %v3707_v58, 16  ;;  %v3598_v50 = vmax.f32 %v3560_v26, 0.0  ;;  %v4031_v58 = vpop.permute.xlu2 %4030  ;;  %vm16415_vm4 = vsmask.f32 256 }
 0x43b   : > { %v3985_v5 = vpop.permute.xlu0 %3984  ;;  %v3815_v34 = vrot.slane %v3813_v56, 7  ;;  %v3900_v13 = vrot.slane %v3816_v17, 1  ;;  %v3630_v31 = vpack.c.bf16 %v3598_v50, %v3598_v50 }
 0x43c   : > { %v4076_v1 = vsel %vm16406_vm1, %v3850_v25, %v3985_v5  ;;  %v13545_v25 = vpop.f32.mrf.mxu1 }
 0x43d   : > { %4410 = vmatmul.bf16.gmra.mxu3 %v4076_v1  ;;  %v3818_v15 = vor.u32 %v3816_v17, %v3815_v34  ;;  %v13532_v0 = vsel %vm16414_vm8, %v3899_v28, %v3900_v13  ;;  %v3902_v52 = vor.u32 %v3900_v13, %v3813_v56  ;;  %v16417_v17 = vld [vmem:[#allocation51_spill] sm:$0xff]  ;;  %vm16419_vm8 = vcmask 523264   ;;  %v4376_v1 = vpop.f32.mrf.mxu3 }
 0x43e   : > { %vm16418_vm1 = vnez %v16417_v17 }
 0x43f   : > { %v13535_v22 = vsel %vm16415_vm4, %v3807_v23, %v3818_v15  ;;  %v3934_v28 = vsel %vm16418_vm1, %v13378_v60, 0  ;;  %v3692_v23 = vunpack.c.l.b16 %v3630_v31  ;;  %vm16420_vm4 = vmmov %vm16419_vm8  ;;  %v3851_v60 = vsel %vm12474_vm13, %v13397_v38, 0 }
 0x440   : > { %v3562_v21 = vpop.f32.mrf.mxu2  ;;  %v3969_v48 = vsel %vm16416_vm0, %v13535_v22, 0  ;;  %v4136_v56 = vsel %vm16419_vm8, %v3934_v28, %v4031_v58  ;;  %vm16421_vm8 = vmmov %vm16420_vm4  ;;  %vm16422_vm1 = vsmask.f32 7424  ;;  %vm16424_vm13 = vnez %v16198_v6  ;;  %v11722_v6 = vld [vmem:[%s15689_s5] sm:$0xff] }
 0x441   : > { %v3599_v11 = vmax.f32 %v3562_v21, 0.0  ;;  %4044 = vrot.lane.b32.xlu1 %v3969_v48, %s11770_s27  ;;  %v3987_v35 = vpop.permute.xlu2 %3986 }
 0x442   : > { %v4080_v28 = vsel %vm16421_vm8, %v3851_v60, %v3987_v35 }
 0x443   : > { %v3631_v26 = vpack.c.bf16 %v3599_v11, %v3599_v11 }
 0x444   : > { %v13556_v17 = vpop.f32.mrf.mxu1 }
 0x445   : > { %v3693_v5 = vunpack.c.l.b16 %v3631_v26  ;;  %4494 = vmatmul.bf16.gmra.mxu0 %v4136_v56 }
 0x447   : > { %v3708_v13 = vpack.c.b16 %v3693_v5, %v3692_v23 }
 0x448   : > { %v3565_v15 = vpop.f32.mrf.mxu2 }
 0x449   : > { %v3600_v50 = vmax.f32 %v3565_v15, 0.0  ;;  %4000 = vrot.lane.b32.xlu1 %v3708_v13, %s11770_s27  ;;  %10758 = vmatmul.msk.bf16.gmra.mxu1 %vm16420_vm4, %v3708_v13  ;;  %v3821_v21 = vshrl.u32 %v3708_v13, 16  ;;  %v3824_v11 = vshll.u32 %v3708_v13, 16  ;;  %vm16423_vm4 = vsmask.f32 256 }
 0x44a   : > { %v4465_v48 = vpop.f32.mrf.mxu0 }
 0x44b   : > { %v3632_v58 = vpack.c.bf16 %v3600_v50, %v3600_v50  ;;  %v3823_v31 = vrot.slane %v3821_v21, 7  ;;  %v3903_v26 = vrot.slane %v3824_v11, 1  ;;  %v4466_v10 = vadd.f32 %v4465_v48, %v4376_v1 }
 0x44d   : > { %v3860_v56 = vunpack.c.l.b16 %v3632_v58  ;;  %4415 = vmatmul.bf16.gmra.mxu3 %v4080_v28  ;;  %v3826_v23 = vor.u32 %v3824_v11, %v3823_v31  ;;  %v13554_v5 = vsel %vm16422_vm1, %v3902_v52, %v3903_v26  ;;  %v3905_v15 = vor.u32 %v3903_v26, %v3821_v21  ;;  %v4378_v11 = vpop.f32.mrf.mxu3  ;;  %v16425_v21 = vld [vmem:[#allocation52_spill] sm:$0xff] }
 0x44e   : > { %vm16426_vm1 = vnez %v16425_v21  ;;  %v4555_v1 = vadd.f32 %v13459_v40, %v4466_v10  ;;  %v13574_v21 = vpop.f32.mrf.mxu1  ;;  %v3852_v10 = vsel %vm12526_vm3, %v13413_v44, 0 }
 0x44f   : > { %v3861_v13 = vpack.c.b16 %v3860_v56, %v3860_v56  ;;  %v13559_v39 = vsel %vm16423_vm4, %v3815_v34, %v3826_v23  ;;  %v3935_v58 = vsel %vm16426_vm1, %v13394_v36, 0  ;;  %vm16427_vm4 = vsmask.f32 7424  ;;  %vm16428_vm1 = vmmov %vm16421_vm8 }
 0x450   : > { %v3567_v38 = vpop.f32.mrf.mxu2  ;;  %v3970_v50 = vsel %vm16424_vm13, %v13559_v39, 0 }
 0x451   : > { %v3907_v35 = vshll.u32 %v3861_v13, 16  ;;  %v3601_v60 = vmax.f32 %v3567_v38, 0.0  ;;  %4046 = vrot.lane.b32.xlu0 %v3970_v50, %s11770_s27  ;;  %v4634_v50 = vmax.f32 %v4555_v1, 0.0 }
 0x452   : > { %v4467_v52 = vpop.f32.mrf.mxu0 }
 0x453   : > { %v3909_v26 = vrot.slane %v3907_v35, 1  ;;  %v3633_v34 = vpack.c.bf16 %v3601_v60, %v3601_v60  ;;  %v4468_v48 = vadd.f32 %v4467_v52, %v4378_v11  ;;  %v4033_v28 = vpop.permute.xlu1 %4032 }
 0x454   : > { %v4140_v23 = vsel %vm16421_vm8, %v3935_v58, %v4033_v28  ;;  %vm16429_vm8 = vmmov %vm16428_vm1 }
 0x455   : > { %v3945_v61 = vunpack.c.l.b16 %v3633_v34  ;;  %v4557_v13 = vadd.f32 %v13474_v49, %v4468_v48  ;;  %4499 = vmatmul.bf16.gmra.mxu0 %v4140_v23  ;;  %v13572_v38 = vsel %vm16427_vm4, %v3905_v15, %v3909_v26  ;;  %vm16430_vm4 = vmmov %vm16428_vm1  ;;  %v3853_v26 = vsel %vm12578_vm11, %v13433_v16, 0 }
 0x457   : > { %v3946_v3 = vpack.c.b16 %v3945_v61, %v3860_v56  ;;  %v4635_v43 = vmax.f32 %v4557_v13, 0.0  ;;  %v13598_v13 = vpop.f32.mrf.mxu1 }
 0x459   : > { %v3948_v36 = vshrl.u32 %v3946_v3, 16  ;;  %v4666_v35 = vpack.c.bf16 %v4635_v43, %v4634_v50  ;;  %10759 = vmatmul.msk.bf16.gmra.mxu1 %vm16428_vm1, %v3946_v3  ;;  %v3951_v60 = vshll.u32 %v3946_v3, 16  ;;  %vm16433_vm1 = vnez %v16211_v19 }
 0x45a   : > { %v3936_v44 = vsel %vm16433_vm1, %v13410_v7, 0 }
 0x45b   : > { %10784 = vmatmul.msk.bf16.vlgmr.msra.gmra.mxu2 %vm16429_vm8, %v4666_v35  ;;  %v3989_v40 = vpop.permute.xlu1 %3988  ;;  %v3950_v49 = vrot.slane %v3948_v36, 7  ;;  %vm16434_vm8 = vmmov %vm16430_vm4  ;;  %v4037_v34 = vpop.permute.xlu2 %4036 }
 0x45c   : > { %v4084_v15 = vsel %vm16430_vm4, %v3852_v10, %v3989_v40  ;;  %v3854_v10 = vsel %vm12637_vm2, %v13453_v4, 0 }
 0x45d   : > { %4420 = vmatmul.bf16.gmra.mxu3 %v4084_v15  ;;  %v3953_v61 = vor.u32 %v3951_v60, %v3950_v49 }
 0x45f   : > { %v3954_v56 = vsel %vm16431_vm5, %v3823_v31, %v3953_v61  ;;  %vm16435_vm5 = vmmov %vm16430_vm4  ;;  %vm16436_vm4 = vnez %v16215_v12 }
 0x460   : > { %v4381_v11 = vpop.f32.mrf.mxu3  ;;  %v3971_v43 = vsel %vm16432_vm6, %v3954_v56, 0  ;;  %v3937_v23 = vsel %vm16436_vm4, %v13430_v63, 0  ;;  %vm16437_vm1 = vmmov %vm16435_vm5  ;;  %v13606_v56 = vpop.f32.mrf.mxu1 }
 0x461   : > { %4048 = vrot.lane.b32.xlu2 %v3971_v43, %s11770_s27  ;;  %v4148_v7 = vsel %vm16437_vm1, %v3937_v23, %v4037_v34  ;;  %vm16440_vm4 = vmmov %vm16437_vm1 }
 0x463   : > { %v4035_v52 = vpop.permute.xlu0 %4034  ;;  %v3993_v35 = vpop.permute.xlu2 %3992 }
 0x464   : > { %v4144_v58 = vsel %vm16434_vm8, %v3936_v44, %v4035_v52  ;;  %vm16438_vm8 = vmmov %vm16437_vm1 }
 0x465   : > { %4504 = vmatmul.bf16.gmra.mxu0 %v4144_v58  ;;  %v4092_v60 = vsel %vm16438_vm8, %v3854_v10, %v3993_v35  ;;  %vm16441_vm8 = vmmov %vm16437_vm1 }
 0x468   : > { %v4383_v3 = vpop.f32.mrf.mxu3 }
 0x46b   : > { %v3991_v31 = vpop.permute.xlu0 %3990 }
 0x46c   : > { %v4088_v1 = vsel %vm16435_vm5, %v3853_v26, %v3991_v31  ;;  %vm16439_vm5 = vnez %v16219_v18  ;;  %v3855_v31 = vsel %vm16228_vm15, %v13480_v30, 0 }
 0x46d   : > { %4425 = vmatmul.bf16.gmra.mxu3 %v4088_v1  ;;  %v3938_v4 = vsel %vm16439_vm5, %v13450_v53, 0 }
 0x470   : > { %v4386_v48 = vpop.f32.mrf.mxu3 }
 0x472   : > { %v4470_v28 = vpop.f32.mrf.mxu0 }
 0x473   : > { %v4471_v50 = vadd.f32 %v4470_v28, %v4381_v11 }
 0x475   : > { %4509 = vmatmul.bf16.gmra.mxu0 %v4148_v7  ;;  %v4560_v40 = vadd.f32 %v13490_v20, %v4471_v50 }
 0x477   : > { %v4636_v15 = vmax.f32 %v4560_v40, 0.0 }
 0x478   : > { %v4388_v36 = vpop.f32.mrf.mxu3 }
 0x47a   : > { %v4472_v16 = vpop.f32.mrf.mxu0 }
 0x47b   : > { %v4473_v49 = vadd.f32 %v4472_v16, %v4383_v3  ;;  %v13613_v3 = vpop.f32.mrf.mxu1 }
 0x47d   : > { %v4562_v63 = vadd.f32 %v13510_v41, %v4473_v49  ;;  %4430 = vmatmul.bf16.gmra.mxu3 %v4092_v60  ;;  %v3856_v60 = vsel %vm16416_vm0, %v13502_v57, 0 }
 0x47f   : > { %v4637_v61 = vmax.f32 %v4562_v63, 0.0 }
 0x480   : > { %v4391_v11 = vpop.f32.mrf.mxu3 }
 0x481   : > { %v4667_v43 = vpack.c.bf16 %v4637_v61, %v4636_v15 }
 0x482   : > { %v4475_v52 = vpop.f32.mrf.mxu0 }
 0x483   : > { %10785 = vmatmul.msk.bf16.gmra.mxu2 %vm16437_vm1, %v4667_v43  ;;  %v4039_v44 = vpop.permute.xlu1 %4038  ;;  %v4476_v58 = vadd.f32 %v4475_v52, %v4386_v48 }
 0x484   : > { %v4152_v20 = vsel %vm16440_vm4, %v3938_v4, %v4039_v44  ;;  %vm16442_vm4 = vmmov %vm16437_vm1  ;;  %vm16443_vm1 = vnez %v16223_v27 }
 0x485   : > { %4514 = vmatmul.bf16.gmra.mxu0 %v4152_v20  ;;  %v4565_v1 = vadd.f32 %v13528_v24, %v4476_v58  ;;  %v3939_v30 = vsel %vm16443_vm1, %v13477_v33, 0  ;;  %v13625_v24 = vpop.f32.mrf.mxu1  ;;  %vm16444_vm5 = vmmov %vm16442_vm4 }
 0x487   : > { %v4638_v7 = vmax.f32 %v4565_v1, 0.0 }
 0x488   : > { %v4393_v41 = vpop.f32.mrf.mxu3 }
 0x48a   : > { %v4477_v26 = vpop.f32.mrf.mxu0 }
 0x48b   : > { %v4478_v34 = vadd.f32 %v4477_v26, %v4388_v36  ;;  %v3995_v28 = vpop.permute.xlu1 %3994  ;;  %v4043_v44 = vpop.permute.xlu2 %4042 }
 0x48c   : > { %v4096_v23 = vsel %vm16441_vm8, %v3855_v31, %v3995_v28  ;;  %vm16445_vm8 = vmmov %vm16442_vm4  ;;  %v11633_v31 = vld [vmem:[%s15686_s2 + $0xb8] sm:$0xff] }
 0x48d   : > { %v4567_v53 = vadd.f32 %v13545_v25, %v4478_v34  ;;  %4435 = vmatmul.bf16.gmra.mxu3 %v4096_v23  ;;  %v13634_v52 = vpop.f32.mrf.mxu1 }
 0x48e   : > { %5061 = vmatpush.bf16.msra.mxu3 %v11633_v31 }
 0x48f   : > { %v4639_v50 = vmax.f32 %v4567_v53, 0.0  ;;  %v3857_v53 = vsel %vm16424_vm13, %v13535_v22, 0  ;;  %v11632_v22 = vld [vmem:[%s15686_s2 + $0xb0] sm:$0xff] }
 0x490   : > { %v4396_v48 = vpop.f32.mrf.mxu3 }
 0x491   : > { %v4668_v35 = vpack.c.bf16 %v4639_v50, %v4638_v7 }
 0x492   : > { %v4480_v16 = vpop.f32.mrf.mxu0  ;;  %5062 = vmatpush.bf16.msra.mxu3 %v11632_v22 }
 0x493   : > { %v4041_v10 = vpop.permute.xlu0 %4040  ;;  %10786 = vmatmul.msk.bf16.gmra.mxu2 %vm16442_vm4, %v4668_v35  ;;  %v4481_v40 = vadd.f32 %v4480_v16, %v4391_v11  ;;  %v3999_v28 = vpop.permute.xlu2 %3998  ;;  %v11639_v16 = vld [vmem:[%s15687_s3 + $0x168] sm:$0xff] }
 0x494   : > { %v4156_v36 = vsel %vm16444_vm5, %v3939_v30, %v4041_v10  ;;  %vm16446_vm5 = vmmov %vm16442_vm4  ;;  %vm16447_vm4 = vnez %v16226_v32 }
 0x495   : > { %4519 = vmatmul.bf16.gmra.mxu0 %v4156_v36  ;;  %v4570_v63 = vadd.f32 %v13556_v17, %v4481_v40  ;;  %v3940_v57 = vsel %vm16447_vm4, %v13499_v55, 0  ;;  %vm16448_vm1 = vmmov %vm16446_vm5  ;;  %v13647_v1 = vpop.f32.mrf.mxu1  ;;  %v11640_v55 = vld [vmem:[%s15687_s3 + $0x170] sm:$0xff]  ;;  %vm16541_vm4 = vsmask.f32 7424 }
 0x496   : > { %v4160_v17 = vsel %vm16448_vm1, %v3940_v57, %v4043_v44  ;;  %v11636_v44 = vld [vmem:[%s15687_s3 + $0x150] sm:$0xff] }
 0x497   : > { %v4640_v4 = vmax.f32 %v4570_v63, 0.0 }
 0x498   : > { %v4398_v25 = vpop.f32.mrf.mxu3 }
 0x49a   : > { %v4482_v49 = vpop.f32.mrf.mxu0 }
 0x49b   : > { %v4483_v15 = vadd.f32 %v4482_v49, %v4393_v41  ;;  %v3997_v61 = vpop.permute.xlu0 %3996 }
 0x49c   : > { %v4100_v43 = vsel %vm16445_vm8, %v3856_v60, %v3997_v61  ;;  %vm16449_vm8 = vmmov %vm16448_vm1  ;;  %v11637_v61 = vld [vmem:[%s15687_s3 + $0x158] sm:$0xff] }
 0x49d   : > { %v4572_v33 = vadd.f32 %v13574_v21, %v4483_v15  ;;  %4440 = vmatmul.bf16.gmra.mxu3 %v4100_v43  ;;  %v11641_v21 = vld [vmem:[%s15687_s3 + $0x178] sm:$0xff]  ;;  %v11631_v15 = vld [vmem:[%s15686_s2 + $0xa8] sm:$0xff] }
 0x49e   : > { %5947 = vmatpush.bf16.msrb.mxu0 %v11641_v21  ;;  %5063 = vmatpush.bf16.msra.mxu3 %v11631_v15 }
 0x49f   : > { %v4641_v11 = vmax.f32 %v4572_v33, 0.0 }
 0x4a0   : > { %v4401_v20 = vpop.f32.mrf.mxu3 }
 0x4a1   : > { %v4669_v58 = vpack.c.bf16 %v4641_v11, %v4640_v4  ;;  %v3858_v11 = vsel %vm16432_vm6, %v13559_v39, 0  ;;  %v11635_v39 = vld [vmem:[%s15687_s3 + $0x148] sm:$0xff]  ;;  %vm16549_vm6 = vsmask.f32 256 }
 0x4a2   : > { %v4485_v26 = vpop.f32.mrf.mxu0  ;;  %5948 = vmatpush.bf16.msrb.mxu0 %v11640_v55  ;;  %v11628_v55 = vld [vmem:[%s15686_s2 + $0x90] sm:$0xff] }
 0x4a3   : > { %10787 = vmatmul.msk.bf16.gmra.mxu2 %vm16446_vm5, %v4669_v58  ;;  %v4486_v41 = vadd.f32 %v4485_v26, %v4396_v48  ;;  %v4104_v48 = vsel %vm16448_vm1, %v3857_v53, %v3999_v28  ;;  %vm16450_vm5 = vnez %v16231_v42 }
 0x4a4   : > { %v3941_v60 = vsel %vm16450_vm5, %v13532_v0, 0  ;;  %v11630_v0 = vld [vmem:[%s15686_s2 + $0xa0] sm:$0xff]  ;;  %vm16453_vm5 = vmmov %vm16448_vm1 }
 0x4a5   : > { %4524 = vmatmul.bf16.gmra.mxu0 %v4160_v17  ;;  %v4575_v7 = vadd.f32 %v13598_v13, %v4486_v41  ;;  %v11638_v13 = vld [vmem:[%s15687_s3 + $0x160] sm:$0xff]  ;;  %5064 = vmatpush.bf16.msra.mxu3 %v11630_v0  ;;  %v11629_v41 = vld [vmem:[%s15686_s2 + $0x98] sm:$0xff] }
 0x4a6   : > { %5949 = vmatpush.bf16.msrb.mxu0 %v11639_v16 }
 0x4a7   : > { %v4642_v10 = vmax.f32 %v4575_v7, 0.0 }
 0x4a8   : > { %v4403_v34 = vpop.f32.mrf.mxu3 }
 0x4a9   : > { %5065 = vmatpush.bf16.msra.mxu3 %v11629_v41 }
 0x4aa   : > { %v4487_v23 = vpop.f32.mrf.mxu0  ;;  %5950 = vmatpush.bf16.msrb.mxu0 %v11638_v13 }
 0x4ab   : > { %v4488_v50 = vadd.f32 %v4487_v23, %v4398_v25  ;;  %v13667_v25 = vpop.f32.mrf.mxu1 }
 0x4ad   : > { %v4577_v35 = vadd.f32 %v13606_v56, %v4488_v50  ;;  %4445 = vmatmul.bf16.gmra.mxu3 %v4104_v48  ;;  %v11627_v48 = vld [vmem:[%s15686_s2 + $0x88] sm:$0xff] }
 0x4ae   : > { %5951 = vmatpush.bf16.msrb.mxu0 %v11637_v61  ;;  %5066 = vmatpush.bf16.msra.mxu3 %v11628_v55 }
 0x4af   : > { %v4643_v30 = vmax.f32 %v4577_v35, 0.0 }
 0x4b0   : > { %v4406_v36 = vpop.f32.mrf.mxu3 }
 0x4b1   : > { %v4670_v40 = vpack.c.bf16 %v4643_v30, %v4642_v10  ;;  %v11626_v30 = vld [vmem:[%s15686_s2 + $0x80] sm:$0xff] }
 0x4b2   : > { %v4490_v56 = vpop.f32.mrf.mxu0  ;;  %5952 = vmatpush.bf16.msrb.mxu0 %v11636_v44  ;;  %5067 = vmatpush.bf16.msra.mxu3 %v11627_v48 }
 0x4b3   : > { %10788 = vmatmul.msk.bf16.gmra.mxu2 %vm16449_vm8, %v4670_v40  ;;  %v4045_v49 = vpop.permute.xlu1 %4044  ;;  %v4491_v43 = vadd.f32 %v4490_v56, %v4401_v20  ;;  %v4591_v57 = vpop.f32.mrf.mxu1  ;;  %vm16451_vm8 = vmmov %vm16448_vm1 }
 0x4b4   : > { %v4164_v63 = vsel %vm16448_vm1, %v3941_v60, %v4045_v49 }
 0x4b5   : > { %4529 = vmatmul.bf16.gmra.mxu0 %v4164_v63  ;;  %v4580_v58 = vadd.f32 %v13613_v3, %v4491_v43 }
 0x4b6   : > { %5953 = vmatpush.bf16.msrb.mxu0 %v11635_v39  ;;  %5068 = vmatpush.bf16.msra.mxu3 %v11626_v30 }
 0x4b7   : > { %v4644_v31 = vmax.f32 %v4580_v58, 0.0 }
 0x4b8   : > { %v4408_v33 = vpop.f32.mrf.mxu3 }
 0x4ba   : > { %v4492_v4 = vpop.f32.mrf.mxu0 }
 0x4bb   : > { %v4493_v26 = vadd.f32 %v4492_v4, %v4403_v34  ;;  %v4001_v20 = vpop.permute.xlu1 %4000  ;;  %v4594_v35 = vpop.f32.mrf.mxu1 }
 0x4bc   : > { %v4108_v17 = vsel %vm16451_vm8, %v3858_v11, %v4001_v20  ;;  %vm16452_vm8 = vnez %v16237_v59  ;;  %v4049_v15 = vpop.permute.xlu2 %4048 }
 0x4bd   : > { %v4582_v21 = vadd.f32 %v13625_v24, %v4493_v26  ;;  %4450 = vmatmul.bf16.gmra.mxu3 %v4108_v17  ;;  %v11634_v24 = vld [vmem:[%s15687_s3 + $0x140] sm:$0xff]  ;;  %v3942_v7 = vsel %vm16452_vm8, %v13554_v5, 0 }
 0x4be   : > { %5954 = vmatpush.bf16.msrb.mxu0 %v11634_v24 }
 0x4bf   : > { %v4645_v3 = vmax.f32 %v4582_v21, 0.0 }
 0x4c0   : > { %v4411_v34 = vpop.f32.mrf.mxu3 }
 0x4c1   : > { %v4671_v28 = vpack.c.bf16 %v4645_v3, %v4644_v31 }
 0x4c2   : > { %v4495_v23 = vpop.f32.mrf.mxu0 }
 0x4c3   : > { %v4047_v53 = vpop.permute.xlu0 %4046  ;;  %10789 = vmatmul.msk.bf16.gmra.mxu2 %vm16448_vm1, %v4671_v28  ;;  %v4496_v16 = vadd.f32 %v4495_v23, %v4406_v36  ;;  %v4596_v60 = vpop.f32.mrf.mxu1 }
 0x4c4   : > { %v4168_v50 = vsel %vm16453_vm5, %v3942_v7, %v4047_v53  ;;  %vm16454_vm5 = vmmov %vm16448_vm1  ;;  %vm16455_vm1 = vnez %v16241_v29 }
 0x4c5   : > { %4534 = vmatmul.bf16.gmra.mxu0 %v4168_v50  ;;  %v4585_v5 = vadd.f32 %v13634_v52, %v4496_v16  ;;  %v3943_v43 = vsel %vm16455_vm1, %v13572_v38, 0  ;;  %vm16456_vm8 = vmmov %vm16454_vm5  ;;  %vm16508_vm1 = vsmask.f32 256 }
 0x4c6   : > { %v4172_v0 = vsel %vm16456_vm8, %v3943_v43, %v4049_v15  ;;  %vm16457_vm8 = vnez %v16108_v62 }
 0x4c7   : > { %v4646_v56 = vmax.f32 %v4585_v5, 0.0 }
 0x4c8   : > { %v4413_v10 = vpop.f32.mrf.mxu3 }
 0x4ca   : > { %v4497_v40 = vpop.f32.mrf.mxu0 }
 0x4cb   : > { %v4498_v22 = vadd.f32 %v4497_v40, %v4408_v33  ;;  %v4599_v44 = vpop.f32.mrf.mxu1 }
 0x4cd   : > { %v4587_v13 = vadd.f32 %v13647_v1, %v4498_v22 }
 0x4cf   : > { %v4647_v49 = vmax.f32 %v4587_v13, 0.0 }
 0x4d0   : > { %v4416_v63 = vpop.f32.mrf.mxu3 }
 0x4d1   : > { %v4672_v61 = vpack.c.bf16 %v4647_v49, %v4646_v56 }
 0x4d2   : > { %v4500_v36 = vpop.f32.mrf.mxu0 }
 0x4d3   : > { %10790 = vmatmul.msk.bf16.gmra.mxu2 %vm16454_vm5, %v4672_v61  ;;  %v4501_v52 = vadd.f32 %v4500_v36, %v4411_v34  ;;  %v4601_v38 = vpop.f32.mrf.mxu1 }
 0x4d5   : > { %4539 = vmatmul.bf16.gmra.mxu0 %v4172_v0  ;;  %v4590_v4 = vadd.f32 %v13667_v25, %v4501_v52 }
 0x4d7   : > { %v4648_v20 = vmax.f32 %v4590_v4, 0.0 }
 0x4d8   : > { %v4418_v33 = vpop.f32.mrf.mxu3 }
 0x4da   : > { %v4502_v1 = vpop.f32.mrf.mxu0 }
 0x4db   : > { %v4503_v11 = vadd.f32 %v4502_v1, %v4413_v10  ;;  %v4604_v48 = vpop.f32.mrf.mxu1 }
 0x4dd   : > { %v4592_v58 = vadd.f32 %v4591_v57, %v4503_v11 }
 0x4de   : > { %v4772_v26 = vpop.f32.mrf.mxu2 }
 0x4df   : > { %v4649_v17 = vmax.f32 %v4592_v58, 0.0  ;;  %v4852_v31 = vmax.f32 %v4772_v26, 0.0 }
 0x4e0   : > { %v4421_v21 = vpop.f32.mrf.mxu3 }
 0x4e1   : > { %v4673_v41 = vpack.c.bf16 %v4649_v17, %v4648_v20  ;;  %v13728_v57 = vadd.f32 %v4852_v31, %v13095_v14  ;;  %v16460_v31 = vld [vmem:[#allocation4_spill] sm:$0xff] }
 0x4e2   : > { %v4505_v39 = vpop.f32.mrf.mxu0 }
 0x4e3   : > { %10791 = vmatmul.msk.bf16.gmra.mxu2 %vm16454_vm5, %v4673_v41  ;;  %v4506_v34 = vadd.f32 %v4505_v39, %v4416_v63  ;;  %v4606_v22 = vpop.f32.mrf.mxu1 }
 0x4e5   : > { %10969 = vmatmul.msk.bf16.vlgmr.msrb.gmra.mxu0 %vm16457_vm8, %v12449_v2  ;;  %v4595_v23 = vadd.f32 %v4594_v35, %v4506_v34  ;;  %vm16458_vm8 = vmmov %vm16454_vm5 }
 0x4e6   : > { %v4774_v3 = vpop.f32.mrf.mxu2 }
 0x4e7   : > { %v4853_v28 = vmax.f32 %v4774_v3, 0.0  ;;  %v4650_v16 = vmax.f32 %v4595_v23, 0.0 }
 0x4e8   : > { %v4423_v25 = vpop.f32.mrf.mxu3 }
 0x4e9   : > { %v13731_v55 = vadd.f32 %v4853_v28, %v13099_v54 }
 0x4ea   : > { %v4507_v24 = vpop.f32.mrf.mxu0 }
 0x4eb   : > { %v4980_v53 = vpack.c.bf16 %v13731_v55, %v13728_v57  ;;  %v4508_v7 = vadd.f32 %v4507_v24, %v4418_v33  ;;  %v4609_v36 = vpop.f32.mrf.mxu1 }
 0x4ed   : > { %v4597_v50 = vadd.f32 %v4596_v60, %v4508_v7  ;;  %5069 = vmatmul.bf16.vlgmr.msra.gmra.mxu3 %v4980_v53 }
 0x4ef   : > { %v4651_v10 = vmax.f32 %v4597_v50, 0.0 }
 0x4f0   : > { %v4426_v30 = vpop.f32.mrf.mxu3 }
 0x4f1   : > { %v4674_v40 = vpack.c.bf16 %v4651_v10, %v4650_v16 }
 0x4f2   : > { %v4510_v5 = vpop.f32.mrf.mxu0 }
 0x4f3   : > { %10792 = vmatmul.msk.bf16.gmra.mxu2 %vm16454_vm5, %v4674_v40  ;;  %v4511_v14 = vadd.f32 %v4510_v5, %v4421_v21  ;;  %v4611_v58 = vpop.f32.mrf.mxu1 }
 0x4f5   : > { %v4600_v56 = vadd.f32 %v4599_v44, %v4511_v14 }
 0x4f7   : > { %v4652_v63 = vmax.f32 %v4600_v56, 0.0 }
 0x4f8   : > { %v4428_v54 = vpop.f32.mrf.mxu3 }
 0x4fa   : > { %v4512_v13 = vpop.f32.mrf.mxu0 }
 0x4fb   : > { %v4513_v35 = vadd.f32 %v4512_v13, %v4423_v25  ;;  %v4614_v24 = vpop.f32.mrf.mxu1 }
 0x4fd   : > { %v4602_v49 = vadd.f32 %v4601_v38, %v4513_v35  ;;  %v16465_v35 = vld [vmem:[#allocation6_spill] sm:$0xff] }
 0x4ff   : > { %v4653_v15 = vmax.f32 %v4602_v49, 0.0 }
 0x500   : > { %v4431_v61 = vpop.f32.mrf.mxu3 }
 0x501   : > { %v4675_v60 = vpack.c.bf16 %v4653_v15, %v4652_v63 }
 0x502   : > { %v4515_v43 = vpop.f32.mrf.mxu0 }
 0x503   : > { %10793 = vmatmul.msk.bf16.gmra.mxu2 %vm16458_vm8, %v4675_v60  ;;  %v4516_v52 = vadd.f32 %v4515_v43, %v4426_v30  ;;  %vm16462_vm8 = vmmov %vm16454_vm5 }
 0x505   : > { %v4605_v4 = vadd.f32 %v4604_v48, %v4516_v52 }
 0x506   : > { %v4777_v0 = vpop.f32.mrf.mxu2 }
 0x507   : > { %v4854_v26 = vmax.f32 %v4777_v0, 0.0  ;;  %v4654_v17 = vmax.f32 %v4605_v4, 0.0 }
 0x508   : > { %v4433_v33 = vpop.f32.mrf.mxu3 }
 0x509   : > { %v13738_v39 = vadd.f32 %v4854_v26, %v13106_v51 }
 0x50a   : > { %v4517_v1 = vpop.f32.mrf.mxu0 }
 0x50b   : > { %v4518_v11 = vadd.f32 %v4517_v1, %v4428_v54  ;;  %16459 = vst [vmem:[#allocation40_spill] sm:$0xff] %v13738_v39  ;;  %v16463_v54 = vld [vmem:[#allocation5_spill] sm:$0xff] }
 0x50d   : > { %v4607_v20 = vadd.f32 %v4606_v22, %v4518_v11  ;;  %v4616_v22 = vpop.f32.mrf.mxu1 }
 0x50e   : > { %v4779_v44 = vpop.f32.mrf.mxu2 }
 0x50f   : > { %v4655_v21 = vmax.f32 %v4607_v20, 0.0  ;;  %v4855_v41 = vmax.f32 %v4779_v44, 0.0  ;;  %v16467_v44 = vld [vmem:[#allocation7_spill] sm:$0xff] }
 0x510   : > { %v4436_v25 = vpop.f32.mrf.mxu3 }
 0x511   : > { %v4676_v38 = vpack.c.bf16 %v4655_v21, %v4654_v17  ;;  %v13741_v3 = vadd.f32 %v4855_v41, %v16460_v31  ;;  %v16469_v41 = vld [vmem:[#allocation8_spill] sm:$0xff] }
 0x512   : > { %v4520_v34 = vpop.f32.mrf.mxu0 }
 0x513   : > { %16461 = vst [vmem:[#allocation4_spill] sm:$0xff] %v13741_v3  ;;  %10794 = vmatmul.msk.bf16.gmra.mxu2 %vm16462_vm8, %v4676_v38  ;;  %v4981_v28 = vpack.c.bf16 %v13741_v3, %v13738_v39  ;;  %v4521_v53 = vadd.f32 %v4520_v34, %v4431_v61  ;;  %vm16471_vm8 = vmmov %vm16454_vm5 }
 0x515   : > { %5074 = vmatmul.bf16.gmra.mxu3 %v4981_v28  ;;  %v4610_v50 = vadd.f32 %v4609_v36, %v4521_v53  ;;  %v4619_v43 = vpop.f32.mrf.mxu1 }
 0x516   : > { %v4782_v23 = vpop.f32.mrf.mxu2 }
 0x517   : > { %v4856_v51 = vmax.f32 %v4782_v23, 0.0  ;;  %v4656_v40 = vmax.f32 %v4610_v50, 0.0 }
 0x518   : > { %v4438_v10 = vpop.f32.mrf.mxu3 }
 0x519   : > { %v13747_v13 = vadd.f32 %v4856_v51, %v16463_v54 }
 0x51a   : > { %v4522_v7 = vpop.f32.mrf.mxu0 }
 0x51b   : > { %v4523_v48 = vadd.f32 %v4522_v7, %v4433_v33  ;;  %16464 = vst [vmem:[#allocation5_spill] sm:$0xff] %v13747_v13 }
 0x51d   : > { %v4612_v16 = vadd.f32 %v4611_v58, %v4523_v48 }
 0x51e   : > { %v4784_v30 = vpop.f32.mrf.mxu2 }
 0x51f   : > { %v4657_v5 = vmax.f32 %v4612_v16, 0.0  ;;  %v4857_v14 = vmax.f32 %v4784_v30, 0.0 }
 0x520   : > { %v4441_v36 = vpop.f32.mrf.mxu3 }
 0x521   : > { %v4677_v56 = vpack.c.bf16 %v4657_v5, %v4656_v40  ;;  %v13750_v49 = vadd.f32 %v4857_v14, %v16465_v35  ;;  %v16474_v35 = vld [vmem:[#allocation10_spill] sm:$0xff] }
 0x522   : > { %v4525_v63 = vpop.f32.mrf.mxu0 }
 0x523   : > { %16466 = vst [vmem:[#allocation6_spill] sm:$0xff] %v13750_v49  ;;  %10795 = vmatmul.msk.bf16.gmra.mxu2 %vm16454_vm5, %v4677_v56  ;;  %v4982_v15 = vpack.c.bf16 %v13750_v49, %v13747_v13  ;;  %v4526_v60 = vadd.f32 %v4525_v63, %v4436_v25  ;;  %v4621_v25 = vpop.f32.mrf.mxu1 }
 0x525   : > { %5079 = vmatmul.bf16.gmra.mxu3 %v4982_v15  ;;  %v4615_v52 = vadd.f32 %v4614_v24, %v4526_v60 }
 0x526   : > { %v4787_v61 = vpop.f32.mrf.mxu2 }
 0x527   : > { %v4858_v1 = vmax.f32 %v4787_v61, 0.0  ;;  %v4658_v58 = vmax.f32 %v4615_v52, 0.0 }
 0x528   : > { %v4443_v31 = vpop.f32.mrf.mxu3 }
 0x529   : > { %v13756_v17 = vadd.f32 %v4858_v1, %v16467_v44 }
 0x52a   : > { %v4527_v0 = vpop.f32.mrf.mxu0 }
 0x52b   : > { %v4528_v33 = vadd.f32 %v4527_v0, %v4438_v10  ;;  %16468 = vst [vmem:[#allocation7_spill] sm:$0xff] %v13756_v17  ;;  %v4624_v10 = vpop.f32.mrf.mxu1 }
 0x52d   : > { %v4617_v4 = vadd.f32 %v4616_v22, %v4528_v33  ;;  %v16472_v22 = vld [vmem:[#allocation9_spill] sm:$0xff] }
 0x52e   : > { %v4789_v11 = vpop.f32.mrf.mxu2 }
 0x52f   : > { %v4659_v26 = vmax.f32 %v4617_v4, 0.0  ;;  %v4859_v20 = vmax.f32 %v4789_v11, 0.0 }
 0x530   : > { %v4446_v48 = vpop.f32.mrf.mxu3 }
 0x531   : > { %v4678_v21 = vpack.c.bf16 %v4659_v26, %v4658_v58  ;;  %v13759_v38 = vadd.f32 %v4859_v20, %v16469_v41  ;;  %v16476_v41 = vld [vmem:[#allocation11_spill] sm:$0xff] }
 0x532   : > { %v4530_v34 = vpop.f32.mrf.mxu0 }
 0x533   : > { %16470 = vst [vmem:[#allocation8_spill] sm:$0xff] %v13759_v38  ;;  %10796 = vmatmul.msk.bf16.gmra.mxu2 %vm16471_vm8, %v4678_v21  ;;  %v4983_v28 = vpack.c.bf16 %v13759_v38, %v13756_v17  ;;  %v4531_v23 = vadd.f32 %v4530_v34, %v4441_v36  ;;  %v4626_v0 = vpop.f32.mrf.mxu1  ;;  %vm16480_vm8 = vmmov %vm16454_vm5 }
 0x535   : > { %5084 = vmatmul.bf16.gmra.mxu3 %v4983_v28  ;;  %v4620_v7 = vadd.f32 %v4619_v43, %v4531_v23  ;;  %v16478_v28 = vld [vmem:[#allocation12_spill] sm:$0xff] }
 0x536   : > { %v4792_v24 = vpop.f32.mrf.mxu2 }
 0x537   : > { %v4860_v51 = vmax.f32 %v4792_v24, 0.0  ;;  %v4660_v40 = vmax.f32 %v4620_v7, 0.0  ;;  %v11653_v24 = vld [vmem:[%s15687_s3 + $0x1d8] sm:$0xff] }
 0x538   : > { %v4448_v60 = vpop.f32.mrf.mxu3  ;;  %6129 = vmatpush.bf16.msrb.mxu2 %v11653_v24 }
 0x539   : > { %v13765_v54 = vadd.f32 %v4860_v51, %v16472_v22 }
 0x53a   : > { %v4532_v53 = vpop.f32.mrf.mxu0 }
 0x53b   : > { %v4533_v50 = vadd.f32 %v4532_v53, %v4443_v31  ;;  %16473 = vst [vmem:[#allocation9_spill] sm:$0xff] %v13765_v54  ;;  %v4629_v23 = vpop.f32.mrf.mxu1 }
 0x53d   : > { %v4622_v16 = vadd.f32 %v4621_v25, %v4533_v50  ;;  %v11652_v50 = vld [vmem:[%s15687_s3 + $0x1d0] sm:$0xff] }
 0x53e   : > { %v4794_v30 = vpop.f32.mrf.mxu2  ;;  %6130 = vmatpush.bf16.msrb.mxu2 %v11652_v50 }
 0x53f   : > { %v4661_v5 = vmax.f32 %v4622_v16, 0.0  ;;  %v4861_v14 = vmax.f32 %v4794_v30, 0.0  ;;  %v11651_v16 = vld [vmem:[%s15687_s3 + $0x1c8] sm:$0xff] }
 0x540   : > { %v4451_v21 = vpop.f32.mrf.mxu3 }
 0x541   : > { %v4679_v56 = vpack.c.bf16 %v4661_v5, %v4660_v40  ;;  %v13768_v63 = vadd.f32 %v4861_v14, %v16474_v35  ;;  %v11650_v35 = vld [vmem:[%s15687_s3 + $0x1c0] sm:$0xff] }
 0x542   : > { %v4535_v15 = vpop.f32.mrf.mxu0  ;;  %6131 = vmatpush.bf16.msrb.mxu2 %v11651_v16 }
 0x543   : > { %16475 = vst [vmem:[#allocation10_spill] sm:$0xff] %v13768_v63  ;;  %10797 = vmatmul.msk.bf16.gmra.mxu2 %vm16454_vm5, %v4679_v56  ;;  %v4984_v61 = vpack.c.bf16 %v13768_v63, %v13765_v54  ;;  %v4536_v43 = vadd.f32 %v4535_v15, %v4446_v48  ;;  %v4631_v14 = vpop.f32.mrf.mxu1 }
 0x545   : > { %5089 = vmatmul.bf16.gmra.mxu3 %v4984_v61  ;;  %v4625_v33 = vadd.f32 %v4624_v10, %v4536_v43  ;;  %v16481_v43 = vld [vmem:[#allocation13_spill] sm:$0xff] }
 0x546   : > { %v4797_v36 = vpop.f32.mrf.mxu2  ;;  %6132 = vmatpush.bf16.msrb.mxu2 %v11650_v35  ;;  %v16491_v35 = vld [vmem:[#allocation18_spill] sm:$0xff] }
 0x547   : > { %v4862_v4 = vmax.f32 %v4797_v36, 0.0  ;;  %v4662_v26 = vmax.f32 %v4625_v33, 0.0  ;;  %v16483_v33 = vld [vmem:[#allocation14_spill] sm:$0xff] }
 0x548   : > { %v4453_v10 = vpop.f32.mrf.mxu3 }
 0x549   : > { %v13774_v31 = vadd.f32 %v4862_v4, %v16476_v41 }
 0x54a   : > { %v4537_v52 = vpop.f32.mrf.mxu0 }
 0x54b   : > { %v4538_v1 = vadd.f32 %v4537_v52, %v4448_v60  ;;  %16477 = vst [vmem:[#allocation11_spill] sm:$0xff] %v13774_v31 }
 0x54d   : > { %v4627_v11 = vadd.f32 %v4626_v0, %v4538_v1 }
 0x54e   : > { %v4799_v58 = vpop.f32.mrf.mxu2 }
 0x54f   : > { %v4663_v20 = vmax.f32 %v4627_v11, 0.0  ;;  %v4863_v44 = vmax.f32 %v4799_v58, 0.0 }
 0x551   : > { %v4680_v34 = vpack.c.bf16 %v4663_v20, %v4662_v26  ;;  %v13777_v25 = vadd.f32 %v4863_v44, %v16478_v28 }
 0x552   : > { %v4540_v53 = vpop.f32.mrf.mxu0 }
 0x553   : > { %16479 = vst [vmem:[#allocation12_spill] sm:$0xff] %v13777_v25  ;;  %10798 = vmatmul.msk.bf16.gmra.mxu2 %vm16480_vm8, %v4680_v34  ;;  %v4985_v7 = vpack.c.bf16 %v13777_v25, %v13774_v31  ;;  %v4541_v51 = vadd.f32 %v4540_v53, %v4451_v21  ;;  %v16485_v21 = vld [vmem:[#allocation15_spill] sm:$0xff]  ;;  %v16487_v34 = vld [vmem:[#allocation16_spill] sm:$0xff]  ;;  %vm16493_vm8 = vmmov %vm16454_vm5 }
 0x555   : > { %5094 = vmatmul.bf16.gmra.mxu3 %v4985_v7  ;;  %v4630_v40 = vadd.f32 %v4629_v23, %v4541_v51 }
 0x556   : > { %v4802_v48 = vpop.f32.mrf.mxu2 }
 0x557   : > { %v4864_v22 = vmax.f32 %v4802_v48, 0.0  ;;  %v4664_v61 = vmax.f32 %v4630_v40, 0.0 }
 0x559   : > { %v13795_v0 = vadd.f32 %v4864_v22, %v16481_v43  ;;  %v16489_v22 = vld [vmem:[#allocation17_spill] sm:$0xff] }
 0x55a   : > { %v4542_v30 = vpop.f32.mrf.mxu0 }
 0x55b   : > { %v4543_v5 = vadd.f32 %v4542_v30, %v4453_v10  ;;  %16482 = vst [vmem:[#allocation13_spill] sm:$0xff] %v13795_v0 }
 0x55d   : > { %v4632_v56 = vadd.f32 %v4631_v14, %v4543_v5 }
 0x55e   : > { %v4804_v15 = vpop.f32.mrf.mxu2 }
 0x55f   : > { %v4665_v60 = vmax.f32 %v4632_v56, 0.0  ;;  %v4865_v36 = vmax.f32 %v4804_v15, 0.0 }
 0x561   : > { %v4681_v52 = vpack.c.bf16 %v4665_v60, %v4664_v61  ;;  %v13798_v1 = vadd.f32 %v4865_v36, %v16483_v33 }
 0x563   : > { %16484 = vst [vmem:[#allocation14_spill] sm:$0xff] %v13798_v1  ;;  %10799 = vmatmul.msk.bf16.gmra.mxu2 %vm16454_vm5, %v4681_v52  ;;  %v4986_v4 = vpack.c.bf16 %v13798_v1, %v13795_v0 }
 0x565   : > { %5099 = vmatmul.bf16.gmra.mxu3 %v4986_v4 }
 0x566   : > { %v4807_v11 = vpop.f32.mrf.mxu2 }
 0x567   : > { %v4866_v58 = vmax.f32 %v4807_v11, 0.0 }
 0x569   : > { %v13804_v41 = vadd.f32 %v4866_v58, %v16485_v21  ;;  %v16494_v58 = vld [vmem:[#allocation22_spill] sm:$0xff] }
 0x56a   : > { %vm16495_vm5 = vnez %v16494_v58  ;;  %v16524_v58 = vld [vmem:[#allocation32_spill] sm:$0xff] }
 0x56b   : > { %16486 = vst [vmem:[#allocation15_spill] sm:$0xff] %v13804_v41 }
 0x56e   : > { %v4809_v26 = vpop.f32.mrf.mxu2 }
 0x56f   : > { %v4867_v20 = vmax.f32 %v4809_v26, 0.0 }
 0x570   : > { %v5070_v44 = vpop.f32.mrf.mxu3 }
 0x571   : > { %v13807_v28 = vadd.f32 %v4867_v20, %v16487_v34  ;;  %v5150_v23 = vmax.f32 %v5070_v44, 0.0  ;;  %v16496_v20 = vld [vmem:[#allocation23_spill] sm:$0xff] }
 0x573   : > { %16488 = vst [vmem:[#allocation16_spill] sm:$0xff] %v13807_v28  ;;  %v4987_v24 = vpack.c.bf16 %v13807_v28, %v13804_v41  ;;  %v5182_v50 = vpack.c.bf16 %v5150_v23, %v5150_v23  ;;  %v16498_v23 = vld [vmem:[#allocation19_spill] sm:$0xff]  ;;  %v16527_v28 = vld [vmem:[#allocation34_spill] sm:$0xff] }
 0x575   : > { %5104 = vmatmul.bf16.gmra.mxu3 %v4987_v24  ;;  %v5244_v16 = vunpack.c.l.b16 %v5182_v50 }
 0x576   : > { %v4812_v53 = vpop.f32.mrf.mxu2 }
 0x577   : > { %v4868_v10 = vmax.f32 %v4812_v53, 0.0 }
 0x578   : > { %v5072_v7 = vpop.f32.mrf.mxu3 }
 0x579   : > { %v5151_v48 = vmax.f32 %v5072_v7, 0.0  ;;  %v13812_v56 = vadd.f32 %v4868_v10, %v16489_v22  ;;  %v16500_v7 = vld [vmem:[#allocation20_spill] sm:$0xff]  ;;  %v16502_v22 = vld [vmem:[#allocation21_spill] sm:$0xff] }
 0x57b   : > { %v5183_v51 = vpack.c.bf16 %v5151_v48, %v5151_v48  ;;  %16490 = vst [vmem:[#allocation17_spill] sm:$0xff] %v13812_v56 }
 0x57d   : > { %v5245_v30 = vunpack.c.l.b16 %v5183_v51 }
 0x57e   : > { %v4814_v40 = vpop.f32.mrf.mxu2 }
 0x57f   : > { %v5274_v5 = vpack.c.b16 %v5245_v30, %v5244_v16  ;;  %v4869_v14 = vmax.f32 %v4814_v40, 0.0 }
 0x581   : > { %v13815_v15 = vadd.f32 %v4869_v14, %v16491_v35  ;;  %5552 = vrot.lane.b32.xlu1 %v5274_v5, %s11770_s27  ;;  %10970 = vmatmul.msk.bf16.vlgmr.msrb.gmra.mxu2 %vm16493_vm8, %v5274_v5  ;;  %v5290_v61 = vshrl.u32 %v5274_v5, 16  ;;  %v5293_v60 = vshll.u32 %v5274_v5, 16  ;;  %vm16497_vm8 = vnez %v16496_v20 }
 0x583   : > { %16492 = vst [vmem:[#allocation18_spill] sm:$0xff] %v13815_v15  ;;  %v4988_v36 = vpack.c.bf16 %v13815_v15, %v13812_v56  ;;  %v5292_v43 = vrot.slane %v5290_v61, 7  ;;  %v13821_v52 = vrot.slane %v5293_v60, 1 }
 0x585   : > { %5109 = vmatmul.bf16.gmra.mxu3 %v4988_v36  ;;  %v5295_v33 = vor.u32 %v5293_v60, %v5292_v43  ;;  %v5443_v4 = vor.u32 %v13821_v52, %v5290_v61  ;;  %v16504_v60 = vld [vmem:[#allocation24_spill] sm:$0xff] }
 0x586   : > { %v4817_v11 = vpop.f32.mrf.mxu2 }
 0x587   : > { %v13826_v26 = vsel %vm16495_vm5, 0, %v5295_v33  ;;  %v4870_v21 = vmax.f32 %v4817_v11, 0.0  ;;  %vm16507_vm5 = vsmask.f32 7424 }
 0x588   : > { %v5536_v44 = vsel %vm16497_vm8, %v13826_v26, 0  ;;  %vm16506_vm8 = vcmask 523264  }
 0x589   : > { %5598 = vrot.lane.b32.xlu0 %v5536_v44, %s11770_s27  ;;  %v13833_v53 = vadd.f32 %v4870_v21, %v16498_v23 }
 0x58b   : > { %16499 = vst [vmem:[#allocation19_spill] sm:$0xff] %v13833_v53 }
 0x58e   : > { %v4819_v34 = vpop.f32.mrf.mxu2 }
 0x58f   : > { %v4871_v24 = vmax.f32 %v4819_v34, 0.0 }
 0x591   : > { %v13836_v50 = vadd.f32 %v4871_v24, %v16500_v7 }
 0x593   : > { %16501 = vst [vmem:[#allocation20_spill] sm:$0xff] %v13836_v50  ;;  %v4989_v48 = vpack.c.bf16 %v13836_v50, %v13833_v53  ;;  %v16517_v50 = vld [vmem:[#allocation28_spill] sm:$0xff] }
 0x595   : > { %5114 = vmatmul.bf16.gmra.mxu3 %v4989_v48 }
 0x596   : > { %v4822_v51 = vpop.f32.mrf.mxu2 }
 0x597   : > { %v4872_v10 = vmax.f32 %v4822_v51, 0.0 }
 0x598   : > { %v5075_v16 = vpop.f32.mrf.mxu3 }
 0x599   : > { %v5152_v30 = vmax.f32 %v5075_v16, 0.0  ;;  %v13841_v35 = vadd.f32 %v4872_v10, %v16502_v22 }
 0x59b   : > { %16503 = vst [vmem:[#allocation21_spill] sm:$0xff] %v13841_v35  ;;  %v5184_v61 = vpack.c.bf16 %v5152_v30, %v5152_v30 }
 0x59d   : > { %v5246_v21 = vunpack.c.l.b16 %v5184_v61 }
 0x59e   : > { %v4824_v40 = vpop.f32.mrf.mxu2 }
 0x59f   : > { %v4873_v5 = vmax.f32 %v4824_v40, 0.0 }
 0x5a0   : > { %v5077_v14 = vpop.f32.mrf.mxu3 }
 0x5a1   : > { %v13844_v36 = vadd.f32 %v4873_v5, %v16504_v60  ;;  %v5153_v33 = vmax.f32 %v5077_v14, 0.0 }
 0x5a3   : > { %16505 = vst [vmem:[#allocation24_spill] sm:$0xff] %v13844_v36  ;;  %v5185_v11 = vpack.c.bf16 %v5153_v33, %v5153_v33  ;;  %v4990_v44 = vpack.c.bf16 %v13844_v36, %v13841_v35 }
 0x5a5   : > { %v5247_v34 = vunpack.c.l.b16 %v5185_v11  ;;  %5119 = vmatmul.bf16.gmra.mxu3 %v4990_v44  ;;  %v16550_v44 = vld [vmem:[#allocation43_spill] sm:$0xff] }
 0x5a6   : > { %v4827_v24 = vpop.f32.mrf.mxu2 }
 0x5a7   : > { %v5275_v23 = vpack.c.b16 %v5247_v34, %v5246_v21  ;;  %v4874_v30 = vmax.f32 %v4827_v24, 0.0  ;;  %v16510_v34 = vld [vmem:[#allocation25_spill] sm:$0xff] }
 0x5a8   : > { %v5080_v7 = vpop.f32.mrf.mxu3 }
 0x5a9   : > { %5554 = vrot.lane.b32.xlu0 %v5275_v23, %s11770_s27  ;;  %10971 = vmatmul.msk.bf16.gmra.mxu2 %vm16506_vm8, %v5275_v23  ;;  %v5297_v48 = vshrl.u32 %v5275_v23, 16  ;;  %v5300_v51 = vshll.u32 %v5275_v23, 16  ;;  %v5154_v40 = vmax.f32 %v5080_v7, 0.0  ;;  %v13860_v23 = vadd.f32 %v4874_v30, %v16510_v34  ;;  %v16512_v7 = vld [vmem:[#allocation26_spill] sm:$0xff] }
 0x5ab   : > { %v5299_v16 = vrot.slane %v5297_v48, 7  ;;  %v5444_v10 = vrot.slane %v5300_v51, 1  ;;  %16511 = vst [vmem:[#allocation25_spill] sm:$0xff] %v13860_v23  ;;  %v5186_v24 = vpack.c.bf16 %v5154_v40, %v5154_v40 }
 0x5ad   : > { %v5302_v5 = vor.u32 %v5300_v51, %v5299_v16  ;;  %v13851_v14 = vsel %vm16507_vm5, %v5443_v4, %v5444_v10  ;;  %v5446_v22 = vor.u32 %v5444_v10, %v5297_v48  ;;  %v5248_v10 = vunpack.c.l.b16 %v5186_v24 }
 0x5ae   : > { %v4829_v61 = vpop.f32.mrf.mxu2 }
 0x5af   : > { %v4875_v60 = vmax.f32 %v4829_v61, 0.0  ;;  %v13854_v33 = vsel %vm16508_vm1, %v5292_v43, %v5302_v5  ;;  %vm16514_vm1 = vmmov %vm16506_vm8  ;;  %vm16515_vm8 = vsmask.f32 256 }
 0x5b0   : > { %v5082_v11 = vpop.f32.mrf.mxu3  ;;  %v5537_v21 = vsel %vm16321_vm14, %v13854_v33, 0 }
 0x5b1   : > { %v13863_v51 = vadd.f32 %v4875_v60, %v16512_v7  ;;  %v5155_v4 = vmax.f32 %v5082_v11, 0.0  ;;  %5600 = vrot.lane.b32.xlu2 %v5537_v21, %s11770_s27  ;;  %v11649_v60 = vld [vmem:[%s15687_s3 + $0x1b8] sm:$0xff] }
 0x5b2   : > { %6036 = vmatpush.bf16.msrb.mxu1 %v11649_v60 }
 0x5b3   : > { %16513 = vst [vmem:[#allocation26_spill] sm:$0xff] %v13863_v51  ;;  %v5187_v48 = vpack.c.bf16 %v5155_v4, %v5155_v4  ;;  %v4991_v43 = vpack.c.bf16 %v13863_v51, %v13860_v23 }
 0x5b5   : > { %v5249_v5 = vunpack.c.l.b16 %v5187_v48  ;;  %5124 = vmatmul.bf16.gmra.mxu3 %v4991_v43 }
 0x5b6   : > { %v4832_v61 = vpop.f32.mrf.mxu2 }
 0x5b7   : > { %v5276_v36 = vpack.c.b16 %v5249_v5, %v5248_v10  ;;  %v4876_v34 = vmax.f32 %v4832_v61, 0.0 }
 0x5b8   : > { %v5085_v35 = vpop.f32.mrf.mxu3 }
 0x5b9   : > { %5556 = vrot.lane.b32.xlu2 %v5276_v36, %s11770_s27  ;;  %10972 = vmatmul.msk.bf16.gmra.mxu2 %vm16514_vm1, %v5276_v36  ;;  %v5305_v30 = vshrl.u32 %v5276_v36, 16  ;;  %v5308_v40 = vshll.u32 %v5276_v36, 16  ;;  %v5156_v24 = vmax.f32 %v5085_v35, 0.0  ;;  %v13883_v60 = vadd.f32 %v4876_v34, %v16517_v50  ;;  %v16519_v35 = vld [vmem:[#allocation29_spill] sm:$0xff] }
 0x5ba   : > { %v11647_v50 = vld [vmem:[%s15687_s3 + $0x1a8] sm:$0xff] }
 0x5bb   : > { %v5307_v11 = vrot.slane %v5305_v30, 7  ;;  %v5447_v21 = vrot.slane %v5308_v40, 1  ;;  %16518 = vst [vmem:[#allocation28_spill] sm:$0xff] %v13883_v60  ;;  %v5188_v61 = vpack.c.bf16 %v5156_v24, %v5156_v24 }
 0x5bd   : > { %v5310_v7 = vor.u32 %v5308_v40, %v5307_v11  ;;  %v13874_v4 = vsel %vm16507_vm5, %v5446_v22, %v5447_v21  ;;  %v5449_v48 = vor.u32 %v5447_v21, %v5305_v30 }
 0x5be   : > { %v4834_v43 = vpop.f32.mrf.mxu2 }
 0x5bf   : > { %v4877_v10 = vmax.f32 %v4834_v43, 0.0  ;;  %v13877_v5 = vsel %vm16515_vm8, %v5299_v16, %v5310_v7  ;;  %v11648_v16 = vld [vmem:[%s15687_s3 + $0x1b0] sm:$0xff]  ;;  %v5250_v7 = vunpack.c.l.b16 %v5188_v61  ;;  %v11646_v61 = vld [vmem:[%s15687_s3 + $0x1a0] sm:$0xff] }
 0x5c0   : > { %v5087_v36 = vpop.f32.mrf.mxu3  ;;  %v5538_v23 = vsel %vm16331_vm10, %v13877_v5, 0  ;;  %6037 = vmatpush.bf16.msrb.mxu1 %v11648_v16 }
 0x5c1   : > { %v13886_v40 = vadd.f32 %v4877_v10, %v16519_v35  ;;  %v5157_v22 = vmax.f32 %v5087_v36, 0.0  ;;  %5602 = vrot.lane.b32.xlu1 %v5538_v23, %s11770_s27 }
 0x5c3   : > { %16520 = vst [vmem:[#allocation29_spill] sm:$0xff] %v13886_v40  ;;  %v5189_v30 = vpack.c.bf16 %v5157_v22, %v5157_v22  ;;  %v4992_v21 = vpack.c.bf16 %v13886_v40, %v13883_v60 }
 0x5c4   : > { %6038 = vmatpush.bf16.msrb.mxu1 %v11647_v50 }
 0x5c5   : > { %v5251_v43 = vunpack.c.l.b16 %v5189_v30  ;;  %5129 = vmatmul.bf16.gmra.mxu3 %v4992_v21 }
 0x5c6   : > { %v4837_v34 = vpop.f32.mrf.mxu2 }
 0x5c7   : > { %v5277_v24 = vpack.c.b16 %v5251_v43, %v5250_v7  ;;  %v4878_v16 = vmax.f32 %v4837_v34, 0.0  ;;  %v11645_v7 = vld [vmem:[%s15687_s3 + $0x198] sm:$0xff] }
 0x5c8   : > { %v5090_v23 = vpop.f32.mrf.mxu3  ;;  %6039 = vmatpush.bf16.msrb.mxu1 %v11646_v61 }
 0x5c9   : > { %5558 = vrot.lane.b32.xlu1 %v5277_v24, %s11770_s27  ;;  %10973 = vmatmul.msk.bf16.gmra.mxu2 %vm16514_vm1, %v5277_v24  ;;  %v5313_v10 = vshrl.u32 %v5277_v24, 16  ;;  %v5316_v36 = vshll.u32 %v5277_v24, 16  ;;  %v5158_v30 = vmax.f32 %v5090_v23, 0.0  ;;  %v16522_v23 = vld [vmem:[#allocation31_spill] sm:$0xff] }
 0x5cb   : > { %v5315_v35 = vrot.slane %v5313_v10, 7  ;;  %v5450_v22 = vrot.slane %v5316_v36, 1  ;;  %v5190_v20 = vpack.c.bf16 %v5158_v30, %v5158_v30 }
 0x5cc   : > { %6040 = vmatpush.bf16.msrb.mxu1 %v11645_v7 }
 0x5cd   : > { %v5318_v21 = vor.u32 %v5316_v36, %v5315_v35  ;;  %v13906_v43 = vsel %vm16507_vm5, %v5449_v48, %v5450_v22  ;;  %v5452_v50 = vor.u32 %v5450_v22, %v5313_v10  ;;  %v13915_v36 = vadd.f32 %v4878_v16, %v16522_v23 }
 0x5ce   : > { %v4839_v40 = vpop.f32.mrf.mxu2  ;;  %v5252_v22 = vunpack.c.l.b16 %v5190_v20  ;;  %v11642_v20 = vld [vmem:[%s15687_s3 + $0x180] sm:$0xff] }
 0x5cf   : > { %v4879_v24 = vmax.f32 %v4839_v40, 0.0  ;;  %v13909_v60 = vsel %vm16515_vm8, %v5307_v11, %v5318_v21  ;;  %16523 = vst [vmem:[#allocation31_spill] sm:$0xff] %v13915_v36  ;;  %v11644_v11 = vld [vmem:[%s15687_s3 + $0x190] sm:$0xff] }
 0x5d0   : > { %v5092_v53 = vpop.f32.mrf.mxu3  ;;  %v5539_v34 = vsel %vm16341_vm12, %v13909_v60, 0  ;;  %6041 = vmatpush.bf16.msrb.mxu1 %v11644_v11 }
 0x5d1   : > { %v13918_v15 = vadd.f32 %v4879_v24, %v16524_v58  ;;  %v5159_v48 = vmax.f32 %v5092_v53, 0.0  ;;  %5604 = vrot.lane.b32.xlu0 %v5539_v34, %s11770_s27  ;;  %v11643_v58 = vld [vmem:[%s15687_s3 + $0x188] sm:$0xff] }
 0x5d3   : > { %16525 = vst [vmem:[#allocation32_spill] sm:$0xff] %v13918_v15  ;;  %v5191_v40 = vpack.c.bf16 %v5159_v48, %v5159_v48  ;;  %v4993_v10 = vpack.c.bf16 %v13918_v15, %v13915_v36 }
 0x5d4   : > { %6042 = vmatpush.bf16.msrb.mxu1 %v11643_v58 }
 0x5d5   : > { %v5253_v21 = vunpack.c.l.b16 %v5191_v40  ;;  %5134 = vmatmul.bf16.gmra.mxu3 %v4993_v10 }
 0x5d6   : > { %v4842_v16 = vpop.f32.mrf.mxu2 }
 0x5d7   : > { %v5278_v53 = vpack.c.b16 %v5253_v21, %v5252_v22  ;;  %v4880_v48 = vmax.f32 %v4842_v16, 0.0 }
 0x5d8   : > { %v5095_v30 = vpop.f32.mrf.mxu3  ;;  %6043 = vmatpush.bf16.msrb.mxu1 %v11642_v20 }
 0x5d9   : > { %5560 = vrot.lane.b32.xlu0 %v5278_v53, %s11770_s27  ;;  %10974 = vmatmul.msk.bf16.gmra.mxu2 %vm16514_vm1, %v5278_v53  ;;  %v5321_v7 = vshrl.u32 %v5278_v53, 16  ;;  %v5324_v24 = vshll.u32 %v5278_v53, 16  ;;  %v5160_v11 = vmax.f32 %v5095_v30, 0.0  ;;  %v13944_v20 = vadd.f32 %v4880_v48, %v16527_v28  ;;  %v16529_v30 = vld [vmem:[#allocation35_spill] sm:$0xff] }
 0x5db   : > { %v5323_v34 = vrot.slane %v5321_v7, 7  ;;  %v5453_v23 = vrot.slane %v5324_v24, 1  ;;  %16528 = vst [vmem:[#allocation34_spill] sm:$0xff] %v13944_v20  ;;  %v5192_v16 = vpack.c.bf16 %v5160_v11, %v5160_v11 }
 0x5dd   : > { %v5326_v40 = vor.u32 %v5324_v24, %v5323_v34  ;;  %v13935_v10 = vsel %vm16507_vm5, %v5452_v50, %v5453_v23  ;;  %v5455_v22 = vor.u32 %v5453_v23, %v5321_v7  ;;  %v5254_v23 = vunpack.c.l.b16 %v5192_v16 }
 0x5de   : > { %v4844_v21 = vpop.f32.mrf.mxu2 }
 0x5df   : > { %v4881_v58 = vmax.f32 %v4844_v21, 0.0  ;;  %v13938_v15 = vsel %vm16515_vm8, %v5315_v35, %v5326_v40 }
 0x5e0   : > { %v5097_v53 = vpop.f32.mrf.mxu3  ;;  %v5540_v56 = vsel %vm16352_vm9, %v13938_v15, 0 }
 0x5e1   : > { %v13947_v24 = vadd.f32 %v4881_v58, %v16529_v30  ;;  %v5161_v50 = vmax.f32 %v5097_v53, 0.0  ;;  %5606 = vrot.lane.b32.xlu2 %v5540_v56, %s11770_s27 }
 0x5e3   : > { %16530 = vst [vmem:[#allocation35_spill] sm:$0xff] %v13947_v24  ;;  %v5193_v7 = vpack.c.bf16 %v5161_v50, %v5161_v50  ;;  %v4994_v35 = vpack.c.bf16 %v13947_v24, %v13944_v20 }
 0x5e5   : > { %v5255_v40 = vunpack.c.l.b16 %v5193_v7  ;;  %5139 = vmatmul.bf16.gmra.mxu3 %v4994_v35 }
 0x5e6   : > { %v4847_v21 = vpop.f32.mrf.mxu2 }
 0x5e7   : > { %v5279_v41 = vpack.c.b16 %v5255_v40, %v5254_v23  ;;  %v4882_v53 = vmax.f32 %v4847_v21, 0.0 }
 0x5e8   : > { %v5100_v1 = vpop.f32.mrf.mxu3 }
 0x5e9   : > { %5562 = vrot.lane.b32.xlu2 %v5279_v41, %s11770_s27  ;;  %10975 = vmatmul.msk.bf16.gmra.mxu2 %vm16514_vm1, %v5279_v41  ;;  %v5329_v28 = vshrl.u32 %v5279_v41, 16  ;;  %v5332_v48 = vshll.u32 %v5279_v41, 16  ;;  %v5162_v56 = vmax.f32 %v5100_v1, 0.0  ;;  %v16532_v41 = vld [vmem:[#allocation37_spill] sm:$0xff]  ;;  %v16534_v1 = vld [vmem:[#allocation38_spill] sm:$0xff] }
 0x5ea   : > { %v13964_v0 = vadd.f32 %v4882_v53, %v16532_v41 }
 0x5eb   : > { %v5331_v11 = vrot.slane %v5329_v28, 7  ;;  %v5456_v58 = vrot.slane %v5332_v48, 1  ;;  %v5194_v21 = vpack.c.bf16 %v5162_v56, %v5162_v56 }
 0x5ec   : > { %16533 = vst [vmem:[#allocation37_spill] sm:$0xff] %v13964_v0 }
 0x5ed   : > { %v5334_v30 = vor.u32 %v5332_v48, %v5331_v11  ;;  %v13955_v50 = vsel %vm16507_vm5, %v5455_v22, %v5456_v58  ;;  %v5458_v16 = vor.u32 %v5456_v58, %v5329_v28  ;;  %v5256_v53 = vunpack.c.l.b16 %v5194_v21 }
 0x5ee   : > { %v4849_v7 = vpop.f32.mrf.mxu2 }
 0x5ef   : > { %v4883_v35 = vmax.f32 %v4849_v7, 0.0  ;;  %v13958_v23 = vsel %vm16515_vm8, %v5323_v34, %v5334_v30  ;;  %v5424_v34 = vsel %vm16321_vm14, %v13826_v26, 0  ;;  %vm16538_vm8 = vmmov %vm16514_vm1 }
 0x5f0   : > { %v5102_v40 = vpop.f32.mrf.mxu3  ;;  %v5541_v20 = vsel %vm16362_vm7, %v13958_v23, 0 }
 0x5f1   : > { %v13967_v48 = vadd.f32 %v4883_v35, %v16534_v1  ;;  %v5163_v22 = vmax.f32 %v5102_v40, 0.0  ;;  %5608 = vrot.lane.b32.xlu1 %v5541_v20, %s11770_s27  ;;  %v16536_v40 = vld [vmem:[#allocation42_spill] sm:$0xff] }
 0x5f2   : > { %vm16537_vm5 = vnez %v16536_v40 }
 0x5f3   : > { %16535 = vst [vmem:[#allocation38_spill] sm:$0xff] %v13967_v48  ;;  %v5195_v28 = vpack.c.bf16 %v5163_v22, %v5163_v22  ;;  %v5553_v58 = vpop.permute.xlu1 %5552  ;;  %v4995_v30 = vpack.c.bf16 %v13967_v48, %v13964_v0  ;;  %v5507_v20 = vsel %vm16537_vm5, 0, %v13821_v52  ;;  %v16539_v22 = vld [vmem:[#allocation44_spill] sm:$0xff]  ;;  %vm16542_vm5 = vsmask.f32 256 }
 0x5f4   : > { %v5632_v7 = vsel %vm16514_vm1, %v5424_v34, %v5553_v58  ;;  %vm16540_vm14 = vnez %v16539_v22 }
 0x5f5   : > { %v5257_v41 = vunpack.c.l.b16 %v5195_v28  ;;  %5144 = vmatmul.bf16.gmra.mxu3 %v4995_v30  ;;  %5960 = vmatmul.bf16.gmra.mxu0 %v5632_v7  ;;  %v5508_v48 = vsel %vm16540_vm14, %v5507_v20, 0  ;;  %vm16548_vm14 = vsmask.f32 7424 }
 0x5f7   : > { %v5280_v56 = vpack.c.b16 %v5257_v41, %v5256_v53 }
 0x5f8   : > { %v5105_v35 = vpop.f32.mrf.mxu3 }
 0x5f9   : > { %5564 = vrot.lane.b32.xlu1 %v5280_v56, %s11770_s27  ;;  %10976 = vmatmul.msk.bf16.gmra.mxu2 %vm16538_vm8, %v5280_v56  ;;  %v5337_v26 = vshrl.u32 %v5280_v56, 16  ;;  %v5340_v1 = vshll.u32 %v5280_v56, 16  ;;  %v5164_v30 = vmax.f32 %v5105_v35, 0.0  ;;  %v16543_v56 = vld [vmem:[#allocation41_spill] sm:$0xff] }
 0x5fa   : > { %vm16544_vm8 = vnez %v16543_v56 }
 0x5fb   : > { %v5599_v34 = vpop.permute.xlu0 %5598  ;;  %v5339_v21 = vrot.slane %v5337_v26, 7  ;;  %v5459_v28 = vrot.slane %v5340_v1, 1  ;;  %v5196_v22 = vpack.c.bf16 %v5164_v30, %v5164_v30 }
 0x5fc   : > { %v5692_v58 = vsel %vm16514_vm1, %v5508_v48, %v5599_v34 }
 0x5fd   : > { %6044 = vmatmul.bf16.vlgmr.msrb.gmra.mxu1 %v5692_v58  ;;  %v5342_v7 = vor.u32 %v5340_v1, %v5339_v21  ;;  %v13985_v53 = vsel %vm16541_vm4, %v5458_v16, %v5459_v28  ;;  %v5461_v52 = vor.u32 %v5459_v28, %v5337_v26  ;;  %v5258_v35 = vunpack.c.l.b16 %v5196_v22  ;;  %vm16545_vm4 = vmmov %vm16514_vm1  ;;  %v16546_v28 = vld [vmem:[#allocation46_spill] sm:$0xff] }
 0x5ff   : > { %v13988_v41 = vsel %vm16542_vm5, %v5331_v11, %v5342_v7  ;;  %vm16547_vm5 = vnez %v16546_v28 }
 0x600   : > { %v5107_v40 = vpop.f32.mrf.mxu3  ;;  %v5542_v20 = vsel %vm16544_vm8, %v13988_v41, 0  ;;  %v5509_v7 = vsel %vm16547_vm5, %v13851_v14, 0  ;;  %vm16555_vm5 = vsmask.f32 256 }
 0x601   : > { %v5165_v0 = vmax.f32 %v5107_v40, 0.0  ;;  %5610 = vrot.lane.b32.xlu0 %v5542_v20, %s11770_s27 }
 0x603   : > { %v5197_v48 = vpack.c.bf16 %v5165_v0, %v5165_v0 }
 0x605   : > { %v5259_v34 = vunpack.c.l.b16 %v5197_v48 }
 0x607   : > { %v5281_v1 = vpack.c.b16 %v5259_v34, %v5258_v35 }
 0x608   : > { %v5110_v58 = vpop.f32.mrf.mxu3 }
 0x609   : > { %5566 = vrot.lane.b32.xlu0 %v5281_v1, %s11770_s27  ;;  %10977 = vmatmul.msk.bf16.gmra.mxu2 %vm16545_vm4, %v5281_v1  ;;  %v5345_v11 = vshrl.u32 %v5281_v1, 16  ;;  %v5348_v16 = vshll.u32 %v5281_v1, 16  ;;  %v5166_v0 = vmax.f32 %v5110_v58, 0.0  ;;  %vm16551_vm4 = vnez %v16550_v44 }
 0x60b   : > { %v5601_v26 = vpop.permute.xlu2 %5600  ;;  %v5347_v30 = vrot.slane %v5345_v11, 7  ;;  %v5462_v40 = vrot.slane %v5348_v16, 1  ;;  %v5198_v14 = vpack.c.bf16 %v5166_v0, %v5166_v0 }
 0x60c   : > { %v5696_v20 = vsel %vm16514_vm1, %v5509_v7, %v5601_v26 }
 0x60d   : > { %6049 = vmatmul.bf16.gmra.mxu1 %v5696_v20  ;;  %v5350_v22 = vor.u32 %v5348_v16, %v5347_v30  ;;  %v14001_v48 = vsel %vm16548_vm14, %v5461_v52, %v5462_v40  ;;  %v5464_v35 = vor.u32 %v5462_v40, %v5345_v11  ;;  %v5260_v58 = vunpack.c.l.b16 %v5198_v14  ;;  %vm16552_vm14 = vmmov %vm16514_vm1 }
 0x60e   : > { %v5425_v11 = vsel %vm16331_vm10, %v13854_v33, 0  ;;  %vm16559_vm10 = vsmask.f32 256 }
 0x60f   : > { %v14004_v34 = vsel %vm16549_vm6, %v5339_v21, %v5350_v22  ;;  %vm16553_vm6 = vmmov %vm16514_vm1  ;;  %vm16554_vm1 = vsmask.f32 7424 }
 0x610   : > { %v5112_v1 = vpop.f32.mrf.mxu3  ;;  %v5543_v28 = vsel %vm16551_vm4, %v14004_v34, 0 }
 0x611   : > { %v5167_v25 = vmax.f32 %v5112_v1, 0.0  ;;  %5612 = vrot.lane.b32.xlu2 %v5543_v28, %s11770_s27 }
 0x613   : > { %v5199_v26 = vpack.c.bf16 %v5167_v25, %v5167_v25 }
 0x615   : > { %v5261_v7 = vunpack.c.l.b16 %v5199_v26 }
 0x617   : > { %v5282_v16 = vpack.c.b16 %v5261_v7, %v5260_v58 }
 0x618   : > { %v5115_v20 = vpop.f32.mrf.mxu3 }
 0x619   : > { %5568 = vrot.lane.b32.xlu2 %v5282_v16, %s11770_s27  ;;  %10978 = vmatmul.msk.bf16.gmra.mxu2 %vm16552_vm14, %v5282_v16  ;;  %v5353_v21 = vshrl.u32 %v5282_v16, 16  ;;  %v5356_v52 = vshll.u32 %v5282_v16, 16  ;;  %v5168_v25 = vmax.f32 %v5115_v20, 0.0  ;;  %v16556_v16 = vld [vmem:[#allocation45_spill] sm:$0xff] }
 0x61a   : > { %vm16557_vm14 = vnez %v16556_v16 }
 0x61b   : > { %v5555_v40 = vpop.permute.xlu0 %5554  ;;  %v5355_v0 = vrot.slane %v5353_v21, 7  ;;  %v5465_v22 = vrot.slane %v5356_v52, 1  ;;  %v5200_v51 = vpack.c.bf16 %v5168_v25, %v5168_v25 }
 0x61c   : > { %v5636_v28 = vsel %vm16553_vm6, %v5425_v11, %v5555_v40 }
 0x61d   : > { %5965 = vmatmul.bf16.gmra.mxu0 %v5636_v28  ;;  %v5358_v1 = vor.u32 %v5356_v52, %v5355_v0  ;;  %v14017_v14 = vsel %vm16554_vm1, %v5464_v35, %v5465_v22  ;;  %v5467_v26 = vor.u32 %v5465_v22, %v5353_v21  ;;  %v5262_v20 = vunpack.c.l.b16 %v5200_v51  ;;  %v5557_v35 = vpop.permute.xlu2 %5556 }
 0x61e   : > { %v5426_v22 = vsel %vm16341_vm12, %v13877_v5, 0 }
 0x61f   : > { %v14020_v58 = vsel %vm16555_vm5, %v5347_v30, %v5358_v1  ;;  %vm16558_vm5 = vmmov %vm16553_vm6 }
 0x620   : > { %v5117_v7 = vpop.f32.mrf.mxu3  ;;  %v5544_v33 = vsel %vm16557_vm14, %v14020_v58, 0 }
 0x621   : > { %v5169_v31 = vmax.f32 %v5117_v7, 0.0  ;;  %5614 = vrot.lane.b32.xlu1 %v5544_v33, %s11770_s27  ;;  %v5640_v7 = vsel %vm16558_vm5, %v5426_v22, %v5557_v35 }
 0x623   : > { %v5201_v11 = vpack.c.bf16 %v5169_v31, %v5169_v31 }
 0x625   : > { %v5263_v40 = vunpack.c.l.b16 %v5201_v11 }
 0x627   : > { %v5283_v52 = vpack.c.b16 %v5263_v40, %v5262_v20 }
 0x628   : > { %v5120_v28 = vpop.f32.mrf.mxu3 }
 0x629   : > { %5570 = vrot.lane.b32.xlu1 %v5283_v52, %s11770_s27  ;;  %10979 = vmatmul.msk.bf16.gmra.mxu2 %vm16553_vm6, %v5283_v52  ;;  %v5361_v30 = vshrl.u32 %v5283_v52, 16  ;;  %v5364_v21 = vshll.u32 %v5283_v52, 16  ;;  %v5170_v31 = vmax.f32 %v5120_v28, 0.0 }
 0x62b   : > { %v5363_v25 = vrot.slane %v5361_v30, 7  ;;  %v5468_v1 = vrot.slane %v5364_v21, 1  ;;  %v5202_v5 = vpack.c.bf16 %v5170_v31, %v5170_v31 }
 0x62d   : > { %5970 = vmatmul.bf16.gmra.mxu0 %v5640_v7  ;;  %v5366_v51 = vor.u32 %v5364_v21, %v5363_v25  ;;  %v14033_v33 = vsel %vm16554_vm1, %v5467_v26, %v5468_v1  ;;  %v5470_v11 = vor.u32 %v5468_v1, %v5361_v30  ;;  %v16560_v21 = vld [vmem:[#allocation47_spill] sm:$0xff]  ;;  %v5264_v22 = vunpack.c.l.b16 %v5202_v5  ;;  %vm16563_vm1 = vmmov %vm16558_vm5 }
 0x62e   : > { %vm16561_vm6 = vnez %v16560_v21 }
 0x62f   : > { %v14036_v20 = vsel %vm16559_vm10, %v5355_v0, %v5366_v51  ;;  %v5510_v26 = vsel %vm16561_vm6, %v13874_v4, 0  ;;  %vm16562_vm10 = vmmov %vm16558_vm5  ;;  %vm16565_vm6 = vsmask.f32 256 }
 0x630   : > { %v5122_v40 = vpop.f32.mrf.mxu3  ;;  %v5545_v52 = vsel %vm12526_vm3, %v14036_v20, 0 }
 0x631   : > { %v5171_v61 = vmax.f32 %v5122_v40, 0.0  ;;  %5616 = vrot.lane.b32.xlu0 %v5545_v52, %s11770_s27 }
 0x633   : > { %v5203_v35 = vpack.c.bf16 %v5171_v61, %v5171_v61  ;;  %v5603_v28 = vpop.permute.xlu1 %5602  ;;  %v5427_v61 = vsel %vm16352_vm9, %v13909_v60, 0 }
 0x634   : > { %v5700_v30 = vsel %vm16558_vm5, %v5510_v26, %v5603_v28  ;;  %vm16564_vm5 = vsmask.f32 7424 }
 0x635   : > { %v5265_v0 = vunpack.c.l.b16 %v5203_v35  ;;  %6054 = vmatmul.bf16.gmra.mxu1 %v5700_v30 }
 0x637   : > { %v5284_v1 = vpack.c.b16 %v5265_v0, %v5264_v22 }
 0x638   : > { %v5125_v7 = vpop.f32.mrf.mxu3 }
 0x639   : > { %5572 = vrot.lane.b32.xlu0 %v5284_v1, %s11770_s27  ;;  %10980 = vmatmul.msk.bf16.gmra.mxu2 %vm16562_vm10, %v5284_v1  ;;  %v5369_v31 = vshrl.u32 %v5284_v1, 16  ;;  %v5372_v51 = vshll.u32 %v5284_v1, 16  ;;  %v5172_v5 = vmax.f32 %v5125_v7, 0.0 }
 0x63b   : > { %v5559_v40 = vpop.permute.xlu1 %5558  ;;  %v5371_v52 = vrot.slane %v5369_v31, 7  ;;  %v5471_v4 = vrot.slane %v5372_v51, 1  ;;  %v5204_v1 = vpack.c.bf16 %v5172_v5, %v5172_v5  ;;  %v11657_v5 = vld [vmem:[%s15688_s4 + $0x58] sm:$0xff] }
 0x63c   : > { %v5644_v28 = vsel %vm16563_vm1, %v5427_v61, %v5559_v40  ;;  %v14066_v40 = vpop.f32.mrf.mxu2  ;;  %6347 = vmatpush.bf16.msrb.mxu3 %v11657_v5 }
 0x63d   : > { %5975 = vmatmul.bf16.gmra.mxu0 %v5644_v28  ;;  %v5374_v35 = vor.u32 %v5372_v51, %v5371_v52  ;;  %v14053_v26 = vsel %vm16564_vm5, %v5470_v11, %v5471_v4  ;;  %v5473_v30 = vor.u32 %v5471_v4, %v5369_v31  ;;  %v16566_v51 = vld [vmem:[#allocation48_spill] sm:$0xff]  ;;  %vm16569_vm5 = vmmov %vm16563_vm1 }
 0x63e   : > { %vm16567_vm10 = vnez %v16566_v51 }
 0x63f   : > { %v14056_v22 = vsel %vm16565_vm6, %v5363_v25, %v5374_v35  ;;  %v5511_v11 = vsel %vm16567_vm10, %v13906_v43, 0  ;;  %v5266_v25 = vunpack.c.l.b16 %v5204_v1  ;;  %vm16568_vm6 = vmmov %vm16563_vm1  ;;  %v5428_v43 = vsel %vm16362_vm7, %v13938_v15, 0 }
 0x640   : > { %v5127_v0 = vpop.f32.mrf.mxu3  ;;  %v5546_v60 = vsel %vm12578_vm11, %v14056_v22, 0  ;;  %vm16577_vm10 = vsmask.f32 256 }
 0x641   : > { %v5173_v21 = vmax.f32 %v5127_v0, 0.0  ;;  %5618 = vrot.lane.b32.xlu2 %v5546_v60, %s11770_s27 }
 0x643   : > { %v5205_v61 = vpack.c.bf16 %v5173_v21, %v5173_v21  ;;  %v5605_v7 = vpop.permute.xlu0 %5604 }
 0x644   : > { %v5704_v31 = vsel %vm16563_vm1, %v5511_v11, %v5605_v7  ;;  %vm16570_vm1 = vsmask.f32 7424  ;;  %v14080_v51 = vpop.f32.mrf.mxu2 }
 0x645   : > { %v5267_v4 = vunpack.c.l.b16 %v5205_v61  ;;  %6059 = vmatmul.bf16.gmra.mxu1 %v5704_v31 }
 0x647   : > { %v5285_v28 = vpack.c.b16 %v5267_v4, %v5266_v25 }
 0x648   : > { %v5130_v35 = vpop.f32.mrf.mxu3 }
 0x649   : > { %5574 = vrot.lane.b32.xlu2 %v5285_v28, %s11770_s27  ;;  %10981 = vmatmul.msk.bf16.gmra.mxu2 %vm16568_vm6, %v5285_v28  ;;  %v5377_v21 = vshrl.u32 %v5285_v28, 16  ;;  %v5380_v0 = vshll.u32 %v5285_v28, 16  ;;  %v5174_v11 = vmax.f32 %v5130_v35, 0.0  ;;  %v5607_v28 = vpop.permute.xlu2 %5606  ;;  %vm16571_vm6 = vsmask.f32 256 }
 0x64b   : > { %v5561_v60 = vpop.permute.xlu0 %5560  ;;  %v5379_v1 = vrot.slane %v5377_v21, 7  ;;  %v5474_v61 = vrot.slane %v5380_v0, 1  ;;  %v5206_v36 = vpack.c.bf16 %v5174_v11, %v5174_v11 }
 0x64c   : > { %v5648_v7 = vsel %vm16569_vm5, %v5428_v43, %v5561_v60 }
 0x64d   : > { %5980 = vmatmul.bf16.gmra.mxu0 %v5648_v7  ;;  %v5382_v31 = vor.u32 %v5380_v0, %v5379_v1  ;;  %v14078_v25 = vsel %vm16570_vm1, %v5473_v30, %v5474_v61  ;;  %v5476_v4 = vor.u32 %v5474_v61, %v5377_v21  ;;  %v16572_v30 = vld [vmem:[#allocation49_spill] sm:$0xff]  ;;  %vm16574_vm1 = vcmask 523264  }
 0x64e   : > { %vm16573_vm5 = vnez %v16572_v30  ;;  %v5268_v60 = vunpack.c.l.b16 %v5206_v36 }
 0x64f   : > { %v14083_v5 = vsel %vm16571_vm6, %v5371_v52, %v5382_v31  ;;  %v5512_v21 = vsel %vm16573_vm5, %v13935_v10, 0  ;;  %v14093_v52 = vpop.f32.mrf.mxu2  ;;  %vm16575_vm6 = vmmov %vm16574_vm1  ;;  %v5429_v10 = vsel %vm16544_vm8, %v13958_v23, 0  ;;  %vm16576_vm5 = vsmask.f32 7424 }
 0x650   : > { %v5132_v24 = vpop.f32.mrf.mxu3  ;;  %v5547_v15 = vsel %vm12637_vm2, %v14083_v5, 0  ;;  %v5708_v0 = vsel %vm16574_vm1, %v5512_v21, %v5607_v28 }
 0x651   : > { %v5175_v43 = vmax.f32 %v5132_v24, 0.0  ;;  %5620 = vrot.lane.b32.xlu1 %v5547_v15, %s11770_s27  ;;  %v5563_v63 = vpop.permute.xlu2 %5562 }
 0x652   : > { %v5652_v36 = vsel %vm16574_vm1, %v5429_v10, %v5563_v63 }
 0x653   : > { %v5207_v35 = vpack.c.bf16 %v5175_v43, %v5175_v43 }
 0x655   : > { %v5269_v61 = vunpack.c.l.b16 %v5207_v35  ;;  %6064 = vmatmul.bf16.gmra.mxu1 %v5708_v0 }
 0x657   : > { %v5286_v7 = vpack.c.b16 %v5269_v61, %v5268_v60  ;;  %v11656_v61 = vld [vmem:[%s15688_s4 + $0x50] sm:$0xff]  ;;  %v14113_v63 = vpop.f32.mrf.mxu2 }
 0x658   : > { %v5135_v31 = vpop.f32.mrf.mxu3  ;;  %6348 = vmatpush.bf16.msrb.mxu3 %v11656_v61  ;;  %v11654_v61 = vld [vmem:[%s15688_s4 + $0x40] sm:$0xff] }
 0x659   : > { %5576 = vrot.lane.b32.xlu1 %v5286_v7, %s11770_s27  ;;  %10982 = vmatmul.msk.bf16.gmra.mxu2 %vm16575_vm6, %v5286_v7  ;;  %v5385_v24 = vshrl.u32 %v5286_v7, 16  ;;  %v5388_v11 = vshll.u32 %v5286_v7, 16  ;;  %v5176_v43 = vmax.f32 %v5135_v31, 0.0  ;;  %vm16581_vm6 = vmmov %vm16574_vm1 }
 0x65b   : > { %v5387_v15 = vrot.slane %v5385_v24, 7  ;;  %v5477_v28 = vrot.slane %v5388_v11, 1  ;;  %v5208_v31 = vpack.c.bf16 %v5176_v43, %v5176_v43 }
 0x65d   : > { %5985 = vmatmul.bf16.gmra.mxu0 %v5652_v36  ;;  %v5390_v35 = vor.u32 %v5388_v11, %v5387_v15  ;;  %v14102_v21 = vsel %vm16576_vm5, %v5476_v4, %v5477_v28  ;;  %v5479_v0 = vor.u32 %v5477_v28, %v5385_v24  ;;  %v11655_v28 = vld [vmem:[%s15688_s4 + $0x48] sm:$0xff]  ;;  %vm16580_vm5 = vmmov %vm16574_vm1 }
 0x65e   : > { %6349 = vmatpush.bf16.msrb.mxu3 %v11655_v28 }
 0x65f   : > { %v14105_v60 = vsel %vm16577_vm10, %v5379_v1, %v5390_v35  ;;  %v16578_v1 = vld [vmem:[#allocation50_spill] sm:$0xff]  ;;  %v5270_v35 = vunpack.c.l.b16 %v5208_v31  ;;  %v5430_v31 = vsel %vm16551_vm4, %v13988_v41, 0 }
 0x660   : > { %v5137_v7 = vpop.f32.mrf.mxu3  ;;  %v5548_v23 = vsel %vm16228_vm15, %v14105_v60, 0  ;;  %vm16579_vm10 = vnez %v16578_v1 }
 0x661   : > { %v5177_v11 = vmax.f32 %v5137_v7, 0.0  ;;  %5622 = vrot.lane.b32.xlu0 %v5548_v23, %s11770_s27  ;;  %v5513_v10 = vsel %vm16579_vm10, %v13955_v50, 0  ;;  %vm16596_vm10 = vsmask.f32 256 }
 0x662   : > { %6350 = vmatpush.bf16.msrb.mxu3 %v11654_v61 }
 0x663   : > { %v5209_v4 = vpack.c.bf16 %v5177_v11, %v5177_v11  ;;  %v5609_v24 = vpop.permute.xlu1 %5608  ;;  %v14131_v11 = vpop.f32.mrf.mxu2 }
 0x664   : > { %v5712_v36 = vsel %vm16580_vm5, %v5513_v10, %v5609_v24  ;;  %vm16582_vm5 = vsmask.f32 7424 }
 0x665   : > { %v5271_v30 = vunpack.c.l.b16 %v5209_v4  ;;  %6069 = vmatmul.bf16.gmra.mxu1 %v5712_v36 }
 0x667   : > { %v5287_v43 = vpack.c.b16 %v5271_v30, %v5270_v35 }
 0x668   : > { %v5140_v7 = vpop.f32.mrf.mxu3 }
 0x669   : > { %5578 = vrot.lane.b32.xlu0 %v5287_v43, %s11770_s27  ;;  %10983 = vmatmul.msk.bf16.gmra.mxu2 %vm16581_vm6, %v5287_v43  ;;  %v5393_v50 = vshrl.u32 %v5287_v43, 16  ;;  %v5396_v23 = vshll.u32 %v5287_v43, 16  ;;  %v5178_v28 = vmax.f32 %v5140_v7, 0.0  ;;  %vm16583_vm6 = vsmask.f32 256 }
 0x66b   : > { %v5565_v4 = vpop.permute.xlu1 %5564  ;;  %v5395_v30 = vrot.slane %v5393_v50, 7  ;;  %v5480_v24 = vrot.slane %v5396_v23, 1  ;;  %v5210_v44 = vpack.c.bf16 %v5178_v28, %v5178_v28 }
 0x66c   : > { %v5656_v10 = vsel %vm16574_vm1, %v5430_v31, %v5565_v4  ;;  %v14148_v4 = vpop.f32.mrf.mxu2 }
 0x66d   : > { %5990 = vmatmul.bf16.gmra.mxu0 %v5656_v10  ;;  %v5398_v36 = vor.u32 %v5396_v23, %v5395_v30  ;;  %v14135_v35 = vsel %vm16582_vm5, %v5479_v0, %v5480_v24  ;;  %v5482_v1 = vor.u32 %v5480_v24, %v5393_v50  ;;  %v16584_v23 = vld [vmem:[#allocation51_spill] sm:$0xff]  ;;  %vm16586_vm5 = vcmask 523264   ;;  %v5956_v10 = vpop.f32.mrf.mxu0 }
 0x66e   : > { %vm16585_vm1 = vnez %v16584_v23 }
 0x66f   : > { %v14138_v43 = vsel %vm16583_vm6, %v5387_v15, %v5398_v36  ;;  %v5514_v0 = vsel %vm16585_vm1, %v13985_v53, 0  ;;  %v5272_v15 = vunpack.c.l.b16 %v5210_v44  ;;  %vm16587_vm6 = vmmov %vm16586_vm5  ;;  %v5431_v53 = vsel %vm16557_vm14, %v14004_v34, 0 }
 0x670   : > { %v5142_v61 = vpop.f32.mrf.mxu3  ;;  %v5549_v41 = vsel %vm16416_vm0, %v14138_v43, 0  ;;  %vm16588_vm1 = vsmask.f32 7424  ;;  %vm16597_vm14 = vnez %v16208_v9 }
 0x671   : > { %v5179_v56 = vmax.f32 %v5142_v61, 0.0  ;;  %5624 = vrot.lane.b32.xlu2 %v5549_v41, %s11770_s27 }
 0x673   : > { %v5211_v31 = vpack.c.bf16 %v5179_v56, %v5179_v56  ;;  %v5611_v7 = vpop.permute.xlu0 %5610 }
 0x674   : > { %v5716_v50 = vsel %vm16586_vm5, %v5514_v0, %v5611_v7  ;;  %v14159_v38 = vpop.f32.mrf.mxu2 }
 0x675   : > { %v5273_v24 = vunpack.c.l.b16 %v5211_v31  ;;  %6074 = vmatmul.bf16.gmra.mxu1 %v5716_v50 }
 0x677   : > { %v5288_v36 = vpack.c.b16 %v5273_v24, %v5272_v15 }
 0x678   : > { %v5145_v54 = vpop.f32.mrf.mxu3 }
 0x679   : > { %v5180_v28 = vmax.f32 %v5145_v54, 0.0  ;;  %5580 = vrot.lane.b32.xlu2 %v5288_v36, %s11770_s27  ;;  %10984 = vmatmul.msk.bf16.gmra.mxu2 %vm16587_vm6, %v5288_v36  ;;  %v5401_v56 = vshrl.u32 %v5288_v36, 16  ;;  %v5404_v61 = vshll.u32 %v5288_v36, 16  ;;  %v5613_v36 = vpop.permute.xlu2 %5612  ;;  %vm16589_vm6 = vsmask.f32 256 }
 0x67a   : > { %v6045_v41 = vpop.f32.mrf.mxu1 }
 0x67b   : > { %v5212_v7 = vpack.c.bf16 %v5180_v28, %v5180_v28  ;;  %v5567_v0 = vpop.permute.xlu0 %5566  ;;  %v5403_v44 = vrot.slane %v5401_v56, 7  ;;  %v5483_v31 = vrot.slane %v5404_v61, 1  ;;  %v6046_v49 = vadd.f32 %v6045_v41, %v5956_v10  ;;  %v5958_v28 = vpop.f32.mrf.mxu0 }
 0x67c   : > { %v5660_v50 = vsel %vm16586_vm5, %v5431_v53, %v5567_v0 }
 0x67d   : > { %v5440_v15 = vunpack.c.l.b16 %v5212_v7  ;;  %5995 = vmatmul.bf16.gmra.mxu0 %v5660_v50  ;;  %v5406_v54 = vor.u32 %v5404_v61, %v5403_v44  ;;  %v14157_v24 = vsel %vm16588_vm1, %v5482_v1, %v5483_v31  ;;  %v5485_v23 = vor.u32 %v5483_v31, %v5401_v56  ;;  %v16590_v56 = vld [vmem:[#allocation52_spill] sm:$0xff] }
 0x67e   : > { %vm16591_vm1 = vnez %v16590_v56  ;;  %v6135_v10 = vadd.f32 %v14066_v40, %v6046_v49  ;;  %v14177_v56 = vpop.f32.mrf.mxu2 }
 0x67f   : > { %v5441_v17 = vpack.c.b16 %v5440_v15, %v5440_v15  ;;  %v14162_v34 = vsel %vm16589_vm6, %v5395_v30, %v5406_v54  ;;  %v5515_v0 = vsel %vm16591_vm1, %v14001_v48, 0  ;;  %vm16592_vm6 = vsmask.f32 7424  ;;  %vm16593_vm1 = vmmov %vm16586_vm5 }
 0x680   : > { %v5147_v16 = vpop.f32.mrf.mxu3  ;;  %v5550_v53 = vsel %vm16424_vm13, %v14162_v34, 0  ;;  %v5720_v50 = vsel %vm16586_vm5, %v5515_v0, %v5613_v36  ;;  %vm16594_vm5 = vmmov %vm16593_vm1 }
 0x681   : > { %v5487_v7 = vshll.u32 %v5441_v17, 16  ;;  %v5181_v61 = vmax.f32 %v5147_v16, 0.0  ;;  %5626 = vrot.lane.b32.xlu1 %v5550_v53, %s11770_s27  ;;  %v6214_v16 = vmax.f32 %v6135_v10, 0.0  ;;  %v5569_v48 = vpop.permute.xlu2 %5568 }
 0x682   : > { %v6047_v1 = vpop.f32.mrf.mxu1 }
 0x683   : > { %v5489_v31 = vrot.slane %v5487_v7, 1  ;;  %v5213_v30 = vpack.c.bf16 %v5181_v61, %v5181_v61  ;;  %v6048_v41 = vadd.f32 %v6047_v1, %v5958_v28  ;;  %v5961_v39 = vpop.f32.mrf.mxu0 }
 0x685   : > { %v5525_v54 = vunpack.c.l.b16 %v5213_v30  ;;  %v6137_v13 = vadd.f32 %v14080_v51, %v6048_v41  ;;  %6079 = vmatmul.bf16.gmra.mxu1 %v5720_v50  ;;  %v14175_v17 = vsel %vm16592_vm6, %v5485_v23, %v5489_v31  ;;  %v5432_v51 = vsel %vm12526_vm3, %v14020_v58, 0  ;;  %vm16595_vm6 = vmmov %vm16593_vm1 }
 0x687   : > { %v5526_v53 = vpack.c.b16 %v5525_v54, %v5440_v15  ;;  %v6215_v3 = vmax.f32 %v6137_v13, 0.0  ;;  %v5664_v15 = vsel %vm16595_vm6, %v5432_v51, %v5569_v48  ;;  %vm16600_vm6 = vmmov %vm16594_vm5 }
 0x689   : > { %v5528_v7 = vshrl.u32 %v5526_v53, 16  ;;  %v6246_v49 = vpack.c.bf16 %v6215_v3, %v6214_v16  ;;  %10985 = vmatmul.msk.bf16.gmra.mxu2 %vm16593_vm1, %v5526_v53  ;;  %v5531_v36 = vshll.u32 %v5526_v53, 16  ;;  %vm16598_vm1 = vnez %v16211_v19 }
 0x68a   : > { %v6050_v40 = vpop.f32.mrf.mxu1  ;;  %v5516_v30 = vsel %vm16598_vm1, %v14017_v14, 0  ;;  %v5433_v53 = vsel %vm12578_vm11, %v14036_v20, 0  ;;  %vm16602_vm1 = vmmov %vm16600_vm6  ;;  %v5434_v20 = vsel %vm12637_vm2, %v14056_v22, 0 }
 0x68b   : > { %11010 = vmatmul.msk.bf16.vlgmr.msrb.gmra.mxu3 %vm16594_vm5, %v6246_v49  ;;  %v5530_v23 = vrot.slane %v5528_v7, 7  ;;  %v6051_v28 = vadd.f32 %v6050_v40, %v5961_v39  ;;  %v5963_v1 = vpop.f32.mrf.mxu0  ;;  %v14204_v40 = vpop.f32.mrf.mxu2 }
 0x68d   : > { %6000 = vmatmul.bf16.gmra.mxu0 %v5664_v15  ;;  %v5533_v13 = vor.u32 %v5531_v36, %v5530_v23  ;;  %v6140_v58 = vadd.f32 %v14093_v52, %v6051_v28 }
 0x68f   : > { %v5534_v61 = vsel %vm16596_vm10, %v5403_v44, %v5533_v13  ;;  %v6216_v44 = vmax.f32 %v6140_v58, 0.0  ;;  %vm16599_vm10 = vmmov %vm16594_vm5 }
 0x690   : > { %v5551_v3 = vsel %vm16597_vm14, %v5534_v61, 0 }
 0x691   : > { %5628 = vrot.lane.b32.xlu0 %v5551_v3, %s11770_s27 }
 0x692   : > { %v6052_v0 = vpop.f32.mrf.mxu1 }
 0x693   : > { %v6053_v31 = vadd.f32 %v6052_v0, %v5963_v1  ;;  %v5615_v10 = vpop.permute.xlu1 %5614  ;;  %v14210_v15 = vpop.f32.mrf.mxu2 }
 0x694   : > { %v5724_v41 = vsel %vm16594_vm5, %v5516_v30, %v5615_v10  ;;  %vm16601_vm5 = vnez %v16215_v12  ;;  %v5435_v10 = vsel %vm16228_vm15, %v14083_v5, 0 }
 0x695   : > { %v6142_v39 = vadd.f32 %v14113_v63, %v6053_v31  ;;  %6084 = vmatmul.bf16.gmra.mxu1 %v5724_v41  ;;  %v5517_v63 = vsel %vm16601_vm5, %v14033_v33, 0  ;;  %vm16607_vm5 = vmmov %vm16600_vm6 }
 0x697   : > { %v6217_v50 = vmax.f32 %v6142_v39, 0.0 }
 0x699   : > { %v6247_v54 = vpack.c.bf16 %v6217_v50, %v6216_v44 }
 0x69a   : > { %v5966_v16 = vpop.f32.mrf.mxu0 }
 0x69b   : > { %v5571_v52 = vpop.permute.xlu1 %5570  ;;  %11011 = vmatmul.msk.bf16.gmra.mxu3 %vm16599_vm10, %v6247_v54  ;;  %vm16603_vm10 = vmmov %vm16602_vm1  ;;  %v5619_v13 = vpop.permute.xlu2 %5618 }
 0x69c   : > { %v5668_v48 = vsel %vm16600_vm6, %v5433_v53, %v5571_v52  ;;  %v14216_v0 = vpop.f32.mrf.mxu2 }
 0x69d   : > { %6005 = vmatmul.bf16.gmra.mxu0 %v5668_v48 }
 0x6a2   : > { %v5968_v14 = vpop.f32.mrf.mxu0 }
 0x6a3   : > { %v5617_v7 = vpop.permute.xlu0 %5616  ;;  %v5575_v22 = vpop.permute.xlu2 %5574 }
 0x6a4   : > { %v5728_v49 = vsel %vm16602_vm1, %v5517_v63, %v5617_v7  ;;  %vm16604_vm1 = vnez %v16219_v18  ;;  %v14224_v52 = vpop.f32.mrf.mxu2  ;;  %v5436_v63 = vsel %vm16416_vm0, %v14105_v60, 0 }
 0x6a5   : > { %6089 = vmatmul.bf16.gmra.mxu1 %v5728_v49  ;;  %v5518_v33 = vsel %vm16604_vm1, %v14053_v26, 0  ;;  %vm16606_vm1 = vnez %v16223_v27 }
 0x6a6   : > { %v5732_v3 = vsel %vm16600_vm6, %v5518_v33, %v5619_v13  ;;  %v5519_v5 = vsel %vm16606_vm1, %v14078_v25, 0  ;;  %vm16610_vm1 = vmmov %vm16607_vm5 }
 0x6aa   : > { %v5971_v51 = vpop.f32.mrf.mxu0 }
 0x6ab   : > { %v5573_v23 = vpop.permute.xlu0 %5572 }
 0x6ac   : > { %v5672_v36 = vsel %vm16603_vm10, %v5434_v20, %v5573_v23  ;;  %vm16605_vm10 = vmmov %vm16600_vm6  ;;  %v14236_v13 = vpop.f32.mrf.mxu2 }
 0x6ad   : > { %6010 = vmatmul.bf16.gmra.mxu0 %v5672_v36  ;;  %v5676_v39 = vsel %vm16605_vm10, %v5435_v10, %v5575_v22  ;;  %vm16608_vm10 = vmmov %vm16607_vm5  ;;  %v11665_v10 = vld [vmem:[%s15686_s2 + $0xf8] sm:$0xff] }
 0x6ae   : > { %6641 = vmatpush.bf16.msra.mxu0 %v11665_v10  ;;  %v11667_v10 = vld [vmem:[%s15687_s3 + $0x1e8] sm:$0xff] }
 0x6b2   : > { %v5973_v28 = vpop.f32.mrf.mxu0  ;;  %v6055_v61 = vpop.f32.mrf.mxu1 }
 0x6b3   : > { %v6056_v1 = vadd.f32 %v6055_v61, %v5966_v16 }
 0x6b5   : > { %6094 = vmatmul.bf16.gmra.mxu1 %v5732_v3  ;;  %v6145_v30 = vadd.f32 %v14131_v11, %v6056_v1 }
 0x6b7   : > { %v6218_v44 = vmax.f32 %v6145_v30, 0.0 }
 0x6ba   : > { %v5976_v58 = vpop.f32.mrf.mxu0  ;;  %v6057_v31 = vpop.f32.mrf.mxu1 }
 0x6bb   : > { %v6058_v41 = vadd.f32 %v6057_v31, %v5968_v14 }
 0x6bd   : > { %v6147_v26 = vadd.f32 %v14148_v4, %v6058_v41  ;;  %6015 = vmatmul.bf16.gmra.mxu0 %v5676_v39  ;;  %v5437_v39 = vsel %vm16424_vm13, %v14138_v43, 0 }
 0x6bf   : > { %v6219_v50 = vmax.f32 %v6147_v26, 0.0 }
 0x6c1   : > { %v6248_v54 = vpack.c.bf16 %v6219_v50, %v6218_v44 }
 0x6c2   : > { %v5978_v16 = vpop.f32.mrf.mxu0  ;;  %v6060_v53 = vpop.f32.mrf.mxu1 }
 0x6c3   : > { %v5621_v48 = vpop.permute.xlu1 %5620  ;;  %11012 = vmatmul.msk.bf16.gmra.mxu3 %vm16600_vm6, %v6248_v54  ;;  %v6061_v14 = vadd.f32 %v6060_v53, %v5971_v51  ;;  %vm16609_vm6 = vnez %v16226_v32  ;;  %v11671_v53 = vld [vmem:[%s15687_s3 + $0x208] sm:$0xff] }
 0x6c4   : > { %v5736_v11 = vsel %vm16607_vm5, %v5519_v5, %v5621_v48 }
 0x6c5   : > { %6099 = vmatmul.bf16.gmra.mxu1 %v5736_v11  ;;  %v6150_v49 = vadd.f32 %v14159_v38, %v6061_v14  ;;  %v5520_v38 = vsel %vm16609_vm6, %v14102_v21, 0  ;;  %v11672_v21 = vld [vmem:[%s15687_s3 + $0x210] sm:$0xff]  ;;  %vm16680_vm6 = vsmask.f32 256 }
 0x6c7   : > { %v6220_v61 = vmax.f32 %v6150_v49, 0.0 }
 0x6ca   : > { %v5981_v4 = vpop.f32.mrf.mxu0  ;;  %v6062_v7 = vpop.f32.mrf.mxu1 }
 0x6cb   : > { %v6063_v20 = vadd.f32 %v6062_v7, %v5973_v28  ;;  %v5577_v23 = vpop.permute.xlu1 %5576  ;;  %v14247_v28 = vpop.f32.mrf.mxu2 }
 0x6cc   : > { %v5680_v36 = vsel %vm16608_vm10, %v5436_v63, %v5577_v23  ;;  %v5625_v48 = vpop.permute.xlu2 %5624  ;;  %vm16611_vm10 = vmmov %vm16610_vm1  ;;  %v11669_v23 = vld [vmem:[%s15687_s3 + $0x1f8] sm:$0xff] }
 0x6cd   : > { %v6152_v25 = vadd.f32 %v14177_v56, %v6063_v20  ;;  %6020 = vmatmul.bf16.gmra.mxu0 %v5680_v36  ;;  %v11673_v56 = vld [vmem:[%s15687_s3 + $0x218] sm:$0xff]  ;;  %v11663_v20 = vld [vmem:[%s15686_s2 + $0xe8] sm:$0xff] }
 0x6ce   : > { %7527 = vmatpush.bf16.msra.mxu1 %v11673_v56 }
 0x6cf   : > { %v6221_v33 = vmax.f32 %v6152_v25, 0.0 }
 0x6d1   : > { %v6249_v51 = vpack.c.bf16 %v6221_v33, %v6220_v61  ;;  %v11668_v61 = vld [vmem:[%s15687_s3 + $0x1f0] sm:$0xff] }
 0x6d2   : > { %v5983_v3 = vpop.f32.mrf.mxu0  ;;  %v6065_v1 = vpop.f32.mrf.mxu1  ;;  %7528 = vmatpush.bf16.msra.mxu1 %v11672_v21 }
 0x6d3   : > { %v5623_v22 = vpop.permute.xlu0 %5622  ;;  %11013 = vmatmul.msk.bf16.gmra.mxu3 %vm16607_vm5, %v6249_v51  ;;  %v6066_v31 = vadd.f32 %v6065_v1, %v5976_v58  ;;  %v14266_v14 = vpop.f32.mrf.mxu2  ;;  %vm16612_vm5 = vnez %v16231_v42  ;;  %v5438_v1 = vsel %vm16597_vm14, %v14162_v34, 0  ;;  %vm16704_vm14 = vsmask.f32 256 }
 0x6d4   : > { %v5740_v60 = vsel %vm16610_vm1, %v5520_v38, %v5623_v22  ;;  %v5521_v63 = vsel %vm16612_vm5, %v14135_v35, 0  ;;  %v5581_v25 = vpop.permute.xlu2 %5580  ;;  %v11662_v35 = vld [vmem:[%s15686_s2 + $0xe0] sm:$0xff]  ;;  %vm16615_vm5 = vmmov %vm16610_vm1 }
 0x6d5   : > { %6104 = vmatmul.bf16.gmra.mxu1 %v5740_v60  ;;  %v6155_v26 = vadd.f32 %v14204_v40, %v6066_v31  ;;  %v11664_v40 = vld [vmem:[%s15686_s2 + $0xf0] sm:$0xff]  ;;  %v5744_v49 = vsel %vm16610_vm1, %v5521_v63, %v5625_v48  ;;  %v11661_v31 = vld [vmem:[%s15686_s2 + $0xd8] sm:$0xff]  ;;  %v11658_v48 = vld [vmem:[%s15686_s2 + $0xc0] sm:$0xff] }
 0x6d6   : > { %7529 = vmatpush.bf16.msra.mxu1 %v11671_v53  ;;  %6642 = vmatpush.bf16.msra.mxu0 %v11664_v40 }
 0x6d7   : > { %v6222_v5 = vmax.f32 %v6155_v26, 0.0 }
 0x6da   : > { %v14255_v30 = vpop.f32.mrf.mxu0  ;;  %v6067_v41 = vpop.f32.mrf.mxu1  ;;  %6643 = vmatpush.bf16.msra.mxu0 %v11663_v20 }
 0x6db   : > { %v6068_v58 = vadd.f32 %v6067_v41, %v5978_v16  ;;  %v5579_v44 = vpop.permute.xlu0 %5578  ;;  %v6171_v22 = vpop.f32.mrf.mxu2 }
 0x6dc   : > { %v5684_v50 = vsel %vm16610_vm1, %v5437_v39, %v5579_v44 }
 0x6dd   : > { %v6157_v54 = vadd.f32 %v14210_v15, %v6068_v58  ;;  %6025 = vmatmul.bf16.gmra.mxu0 %v5684_v50  ;;  %v11670_v15 = vld [vmem:[%s15687_s3 + $0x200] sm:$0xff] }
 0x6de   : > { %7530 = vmatpush.bf16.msra.mxu1 %v11670_v15  ;;  %6644 = vmatpush.bf16.msra.mxu0 %v11662_v35 }
 0x6df   : > { %v6223_v11 = vmax.f32 %v6157_v54, 0.0  ;;  %v11659_v54 = vld [vmem:[%s15686_s2 + $0xc8] sm:$0xff] }
 0x6e1   : > { %v6250_v43 = vpack.c.bf16 %v6223_v11, %v6222_v5 }
 0x6e2   : > { %v5988_v16 = vpop.f32.mrf.mxu0  ;;  %v6070_v7 = vpop.f32.mrf.mxu1  ;;  %7531 = vmatpush.bf16.msra.mxu1 %v11669_v23  ;;  %6645 = vmatpush.bf16.msra.mxu0 %v11661_v31 }
 0x6e3   : > { %11014 = vmatmul.msk.bf16.gmra.mxu3 %vm16611_vm10, %v6250_v43  ;;  %v6071_v36 = vadd.f32 %v6070_v7, %v5981_v4  ;;  %vm16613_vm10 = vmmov %vm16610_vm1  ;;  %v6174_v50 = vpop.f32.mrf.mxu2 }
 0x6e4   : > { %v5688_v60 = vsel %vm16613_vm10, %v5438_v1, %v5581_v25  ;;  %vm16614_vm10 = vnez %v16237_v59 }
 0x6e5   : > { %6109 = vmatmul.bf16.gmra.mxu1 %v5744_v49  ;;  %v6160_v4 = vadd.f32 %v14216_v0, %v6071_v36  ;;  %v5522_v58 = vsel %vm16614_vm10, %v14157_v24, 0 }
 0x6e6   : > { %7532 = vmatpush.bf16.msra.mxu1 %v11668_v61 }
 0x6e7   : > { %v6224_v34 = vmax.f32 %v6160_v4, 0.0 }
 0x6ea   : > { %v5991_v33 = vpop.f32.mrf.mxu0  ;;  %v6072_v51 = vpop.f32.mrf.mxu1  ;;  %7533 = vmatpush.bf16.msra.mxu1 %v11667_v10 }
 0x6eb   : > { %v6073_v38 = vadd.f32 %v6072_v51, %v5983_v3  ;;  %v11660_v3 = vld [vmem:[%s15686_s2 + $0xd0] sm:$0xff]  ;;  %v6176_v15 = vpop.f32.mrf.mxu2 }
 0x6ec   : > { %6646 = vmatpush.bf16.msra.mxu0 %v11660_v3 }
 0x6ed   : > { %v6162_v56 = vadd.f32 %v14224_v52, %v6073_v38  ;;  %6030 = vmatmul.bf16.gmra.mxu0 %v5688_v60  ;;  %v11666_v52 = vld [vmem:[%s15687_s3 + $0x1e0] sm:$0xff] }
 0x6ee   : > { %7534 = vmatpush.bf16.msra.mxu1 %v11666_v52 }
 0x6ef   : > { %v6225_v21 = vmax.f32 %v6162_v56, 0.0 }
 0x6f0   : > { %6647 = vmatpush.bf16.msra.mxu0 %v11659_v54 }
 0x6f1   : > { %v6251_v0 = vpack.c.bf16 %v6225_v21, %v6224_v34 }
 0x6f2   : > { %v5993_v41 = vpop.f32.mrf.mxu0  ;;  %v6075_v39 = vpop.f32.mrf.mxu1 }
 0x6f3   : > { %v5627_v26 = vpop.permute.xlu1 %5626  ;;  %11015 = vmatmul.msk.bf16.gmra.mxu3 %vm16610_vm1, %v6251_v0  ;;  %v6076_v53 = vadd.f32 %v6075_v39, %v14255_v30 }
 0x6f4   : > { %v5748_v44 = vsel %vm16615_vm5, %v5522_v58, %v5627_v26  ;;  %6648 = vmatpush.bf16.msra.mxu0 %v11658_v48  ;;  %vm16616_vm5 = vmmov %vm16610_vm1  ;;  %vm16617_vm1 = vnez %v16241_v29 }
 0x6f5   : > { %6114 = vmatmul.bf16.gmra.mxu1 %v5748_v44  ;;  %v6165_v24 = vadd.f32 %v14236_v13, %v6076_v53  ;;  %v5523_v36 = vsel %vm16617_vm1, %v14175_v17, 0  ;;  %vm16618_vm10 = vmmov %vm16616_vm5  ;;  %vm16668_vm1 = vsmask.f32 256 }
 0x6f7   : > { %v6226_v7 = vmax.f32 %v6165_v24, 0.0 }
 0x6fa   : > { %v5996_v5 = vpop.f32.mrf.mxu0  ;;  %v6077_v11 = vpop.f32.mrf.mxu1 }
 0x6fb   : > { %v6078_v43 = vadd.f32 %v6077_v11, %v5988_v16  ;;  %v6179_v16 = vpop.f32.mrf.mxu2 }
 0x6fd   : > { %v6167_v40 = vadd.f32 %v14247_v28, %v6078_v43 }
 0x6ff   : > { %v6227_v63 = vmax.f32 %v6167_v40, 0.0 }
 0x701   : > { %v6252_v49 = vpack.c.bf16 %v6227_v63, %v6226_v7  ;;  %v16622_v7 = vld [vmem:[#allocation40_spill] sm:$0xff] }
 0x702   : > { %v5998_v20 = vpop.f32.mrf.mxu0  ;;  %v6080_v23 = vpop.f32.mrf.mxu1 }
 0x703   : > { %11016 = vmatmul.msk.bf16.gmra.mxu3 %vm16616_vm5, %v6252_v49  ;;  %v5629_v30 = vpop.permute.xlu0 %5628  ;;  %v6081_v13 = vadd.f32 %v6080_v23, %v5991_v33  ;;  %v6181_v17 = vpop.f32.mrf.mxu2  ;;  %v16624_v49 = vld [vmem:[#allocation4_spill] sm:$0xff] }
 0x704   : > { %v5752_v25 = vsel %vm16618_vm10, %v5523_v36, %v5629_v30  ;;  %vm16619_vm10 = vnez %v16108_v62 }
 0x705   : > { %6119 = vmatmul.bf16.gmra.mxu1 %v5752_v25  ;;  %v6170_v61 = vadd.f32 %v14266_v14, %v6081_v13 }
 0x707   : > { %v6228_v38 = vmax.f32 %v6170_v61, 0.0 }
 0x70a   : > { %v6001_v35 = vpop.f32.mrf.mxu0  ;;  %v6082_v28 = vpop.f32.mrf.mxu1 }
 0x70b   : > { %v6083_v51 = vadd.f32 %v6082_v28, %v5993_v41  ;;  %v6184_v44 = vpop.f32.mrf.mxu2 }
 0x70d   : > { %v6172_v1 = vadd.f32 %v6171_v22, %v6083_v51 }
 0x70e   : > { %v6352_v4 = vpop.f32.mrf.mxu3 }
 0x70f   : > { %v6229_v60 = vmax.f32 %v6172_v1, 0.0  ;;  %v6432_v34 = vmax.f32 %v6352_v4, 0.0 }
 0x711   : > { %v6253_v56 = vpack.c.bf16 %v6229_v60, %v6228_v38  ;;  %v14334_v14 = vadd.f32 %v6432_v34, %v13728_v57 }
 0x712   : > { %v6003_v31 = vpop.f32.mrf.mxu0  ;;  %v6085_v10 = vpop.f32.mrf.mxu1 }
 0x713   : > { %11017 = vmatmul.msk.bf16.gmra.mxu3 %vm16616_vm5, %v6253_v56  ;;  %v6086_v21 = vadd.f32 %v6085_v10, %v5996_v5  ;;  %16620 = vst [vmem:[#allocation53_spill] sm:$0xff] %v14334_v14  ;;  %v6186_v40 = vpop.f32.mrf.mxu2 }
 0x715   : > { %11195 = vmatmul.msk.bf16.vlgmr.msra.gmra.mxu1 %vm16619_vm10, %v12449_v2  ;;  %v6175_v52 = vadd.f32 %v6174_v50, %v6086_v21  ;;  %vm16626_vm10 = vmmov %vm16616_vm5 }
 0x716   : > { %v6354_v33 = vpop.f32.mrf.mxu3 }
 0x717   : > { %v6433_v0 = vmax.f32 %v6354_v33, 0.0  ;;  %v6230_v53 = vmax.f32 %v6175_v52, 0.0 }
 0x719   : > { %v14337_v22 = vadd.f32 %v6433_v0, %v13731_v55 }
 0x71a   : > { %v6087_v3 = vpop.f32.mrf.mxu1  ;;  %v6006_v26 = vpop.f32.mrf.mxu0 }
 0x71b   : > { %16621 = vst [vmem:[#allocation54_spill] sm:$0xff] %v14337_v22  ;;  %v6560_v41 = vpack.c.bf16 %v14337_v22, %v14334_v14  ;;  %v6088_v39 = vadd.f32 %v6087_v3, %v5998_v20  ;;  %v6189_v51 = vpop.f32.mrf.mxu2 }
 0x71d   : > { %v6177_v58 = vadd.f32 %v6176_v15, %v6088_v39  ;;  %6649 = vmatmul.bf16.vlgmr.msra.gmra.mxu0 %v6560_v41 }
 0x71e   : > { %v6357_v54 = vpop.f32.mrf.mxu3 }
 0x71f   : > { %v6231_v48 = vmax.f32 %v6177_v58, 0.0  ;;  %v6434_v57 = vmax.f32 %v6357_v54, 0.0 }
 0x721   : > { %v6254_v5 = vpack.c.bf16 %v6231_v48, %v6230_v53  ;;  %v14343_v63 = vadd.f32 %v6434_v57, %v16622_v7 }
 0x722   : > { %v6090_v11 = vpop.f32.mrf.mxu1  ;;  %v6008_v55 = vpop.f32.mrf.mxu0 }
 0x723   : > { %11018 = vmatmul.msk.bf16.gmra.mxu3 %vm16616_vm5, %v6254_v5  ;;  %v6091_v43 = vadd.f32 %v6090_v11, %v6001_v35  ;;  %16623 = vst [vmem:[#allocation40_spill] sm:$0xff] %v14343_v63 }
 0x725   : > { %v6180_v23 = vadd.f32 %v6179_v16, %v6091_v43  ;;  %v6191_v16 = vpop.f32.mrf.mxu2 }
 0x726   : > { %v6359_v24 = vpop.f32.mrf.mxu3 }
 0x727   : > { %v6435_v50 = vmax.f32 %v6359_v24, 0.0  ;;  %v6232_v13 = vmax.f32 %v6180_v23, 0.0  ;;  %v16627_v24 = vld [vmem:[#allocation5_spill] sm:$0xff] }
 0x729   : > { %v14346_v15 = vadd.f32 %v6435_v50, %v16624_v49 }
 0x72a   : > { %v6092_v20 = vpop.f32.mrf.mxu1  ;;  %v6011_v61 = vpop.f32.mrf.mxu0 }
 0x72b   : > { %16625 = vst [vmem:[#allocation4_spill] sm:$0xff] %v14346_v15  ;;  %v6093_v30 = vadd.f32 %v6092_v20, %v6003_v31  ;;  %v6561_v36 = vpack.c.bf16 %v14346_v15, %v14343_v63 }
 0x72d   : > { %v6182_v25 = vadd.f32 %v6181_v17, %v6093_v30  ;;  %6654 = vmatmul.bf16.gmra.mxu0 %v6561_v36  ;;  %v6194_v3 = vpop.f32.mrf.mxu2 }
 0x72f   : > { %v6233_v28 = vmax.f32 %v6182_v25, 0.0 }
 0x731   : > { %v6255_v35 = vpack.c.bf16 %v6233_v28, %v6232_v13 }
 0x732   : > { %v6095_v1 = vpop.f32.mrf.mxu1  ;;  %v6013_v38 = vpop.f32.mrf.mxu0 }
 0x733   : > { %11019 = vmatmul.msk.bf16.gmra.mxu3 %vm16616_vm5, %v6255_v35  ;;  %v6096_v4 = vadd.f32 %v6095_v1, %v6006_v26 }
 0x735   : > { %v6185_v56 = vadd.f32 %v6184_v44, %v6096_v4 }
 0x737   : > { %v6234_v34 = vmax.f32 %v6185_v56, 0.0  ;;  %v16632_v56 = vld [vmem:[#allocation7_spill] sm:$0xff] }
 0x73a   : > { %v6097_v60 = vpop.f32.mrf.mxu1  ;;  %v6016_v0 = vpop.f32.mrf.mxu0 }
 0x73b   : > { %v6098_v10 = vadd.f32 %v6097_v60, %v6008_v55  ;;  %v6196_v55 = vpop.f32.mrf.mxu2 }
 0x73d   : > { %v6187_v31 = vadd.f32 %v6186_v40, %v6098_v10  ;;  %v16629_v40 = vld [vmem:[#allocation6_spill] sm:$0xff] }
 0x73f   : > { %v6235_v33 = vmax.f32 %v6187_v31, 0.0  ;;  %v16634_v31 = vld [vmem:[#allocation8_spill] sm:$0xff] }
 0x741   : > { %v6256_v21 = vpack.c.bf16 %v6235_v33, %v6234_v34 }
 0x742   : > { %v6100_v17 = vpop.f32.mrf.mxu1  ;;  %v6018_v48 = vpop.f32.mrf.mxu0 }
 0x743   : > { %11020 = vmatmul.msk.bf16.gmra.mxu3 %vm16626_vm10, %v6256_v21  ;;  %v6101_v41 = vadd.f32 %v6100_v17, %v6011_v61  ;;  %vm16631_vm10 = vmmov %vm16616_vm5  ;;  %v6199_v25 = vpop.f32.mrf.mxu2 }
 0x745   : > { %v6190_v58 = vadd.f32 %v6189_v51, %v6101_v41 }
 0x746   : > { %v6362_v52 = vpop.f32.mrf.mxu3 }
 0x747   : > { %v6436_v26 = vmax.f32 %v6362_v52, 0.0  ;;  %v6236_v5 = vmax.f32 %v6190_v58, 0.0 }
 0x749   : > { %v14353_v43 = vadd.f32 %v6436_v26, %v16627_v24 }
 0x74a   : > { %v6102_v39 = vpop.f32.mrf.mxu1  ;;  %v6021_v36 = vpop.f32.mrf.mxu0 }
 0x74b   : > { %v6103_v54 = vadd.f32 %v6102_v39, %v6013_v38  ;;  %16628 = vst [vmem:[#allocation5_spill] sm:$0xff] %v14353_v43 }
 0x74d   : > { %v6192_v53 = vadd.f32 %v6191_v16, %v6103_v54 }
 0x74e   : > { %v6364_v44 = vpop.f32.mrf.mxu3 }
 0x74f   : > { %v6237_v11 = vmax.f32 %v6192_v53, 0.0  ;;  %v6437_v57 = vmax.f32 %v6364_v44, 0.0 }
 0x751   : > { %v6257_v50 = vpack.c.bf16 %v6237_v11, %v6236_v5  ;;  %v14356_v7 = vadd.f32 %v6437_v57, %v16629_v40  ;;  %v16638_v40 = vld [vmem:[#allocation10_spill] sm:$0xff] }
 0x752   : > { %v6105_v49 = vpop.f32.mrf.mxu1  ;;  %v6023_v33 = vpop.f32.mrf.mxu0 }
 0x753   : > { %16630 = vst [vmem:[#allocation6_spill] sm:$0xff] %v14356_v7  ;;  %11021 = vmatmul.msk.bf16.gmra.mxu3 %vm16631_vm10, %v6257_v50  ;;  %v6562_v20 = vpack.c.bf16 %v14356_v7, %v14353_v43  ;;  %v6106_v30 = vadd.f32 %v6105_v49, %v6016_v0  ;;  %v6201_v0 = vpop.f32.mrf.mxu2  ;;  %vm16640_vm10 = vmmov %vm16616_vm5 }
 0x755   : > { %6659 = vmatmul.bf16.gmra.mxu0 %v6562_v20  ;;  %v6195_v28 = vadd.f32 %v6194_v3, %v6106_v30 }
 0x756   : > { %v6367_v23 = vpop.f32.mrf.mxu3 }
 0x757   : > { %v6438_v35 = vmax.f32 %v6367_v23, 0.0  ;;  %v6238_v4 = vmax.f32 %v6195_v28, 0.0 }
 0x759   : > { %v14362_v10 = vadd.f32 %v6438_v35, %v16632_v56 }
 0x75a   : > { %v6107_v13 = vpop.f32.mrf.mxu1  ;;  %v6026_v54 = vpop.f32.mrf.mxu0 }
 0x75b   : > { %v6108_v61 = vadd.f32 %v6107_v13, %v6018_v48  ;;  %16633 = vst [vmem:[#allocation7_spill] sm:$0xff] %v14362_v10  ;;  %v6204_v48 = vpop.f32.mrf.mxu2 }
 0x75d   : > { %v6197_v51 = vadd.f32 %v6196_v55, %v6108_v61  ;;  %v16636_v55 = vld [vmem:[#allocation9_spill] sm:$0xff] }
 0x75e   : > { %v6369_v1 = vpop.f32.mrf.mxu3 }
 0x75f   : > { %v6239_v38 = vmax.f32 %v6197_v51, 0.0  ;;  %v6439_v60 = vmax.f32 %v6369_v1, 0.0  ;;  %v11685_v51 = vld [vmem:[%s15687_s3 + $0x278] sm:$0xff] }
 0x760   : > { %7709 = vmatpush.bf16.msra.mxu3 %v11685_v51 }
 0x761   : > { %v6258_v16 = vpack.c.bf16 %v6239_v38, %v6238_v4  ;;  %v14365_v34 = vadd.f32 %v6439_v60, %v16634_v31  ;;  %v11684_v31 = vld [vmem:[%s15687_s3 + $0x270] sm:$0xff] }
 0x762   : > { %v6110_v21 = vpop.f32.mrf.mxu1  ;;  %v6028_v30 = vpop.f32.mrf.mxu0 }
 0x763   : > { %16635 = vst [vmem:[#allocation8_spill] sm:$0xff] %v14365_v34  ;;  %11022 = vmatmul.msk.bf16.gmra.mxu3 %vm16616_vm5, %v6258_v16  ;;  %v6563_v17 = vpack.c.bf16 %v14365_v34, %v14362_v10  ;;  %v6111_v52 = vadd.f32 %v6110_v21, %v6021_v36  ;;  %v6206_v13 = vpop.f32.mrf.mxu2  ;;  %v16641_v21 = vld [vmem:[#allocation11_spill] sm:$0xff] }
 0x764   : > { %7710 = vmatpush.bf16.msra.mxu3 %v11684_v31  ;;  %v16650_v31 = vld [vmem:[#allocation15_spill] sm:$0xff] }
 0x765   : > { %6664 = vmatmul.bf16.gmra.mxu0 %v6563_v17  ;;  %v6200_v39 = vadd.f32 %v6199_v25, %v6111_v52 }
 0x766   : > { %v6372_v3 = vpop.f32.mrf.mxu3 }
 0x767   : > { %v6440_v26 = vmax.f32 %v6372_v3, 0.0  ;;  %v6240_v5 = vmax.f32 %v6200_v39, 0.0  ;;  %v16643_v3 = vld [vmem:[#allocation12_spill] sm:$0xff] }
 0x769   : > { %v14371_v24 = vadd.f32 %v6440_v26, %v16636_v55 }
 0x76a   : > { %v6112_v41 = vpop.f32.mrf.mxu1 }
 0x76b   : > { %v6113_v58 = vadd.f32 %v6112_v41, %v6023_v33  ;;  %16637 = vst [vmem:[#allocation9_spill] sm:$0xff] %v14371_v24  ;;  %v6031_v33 = vpop.f32.mrf.mxu0  ;;  %v6209_v41 = vpop.f32.mrf.mxu2 }
 0x76d   : > { %v6202_v53 = vadd.f32 %v6201_v0, %v6113_v58 }
 0x76e   : > { %v6374_v44 = vpop.f32.mrf.mxu3 }
 0x76f   : > { %v6241_v11 = vmax.f32 %v6202_v53, 0.0  ;;  %v6441_v57 = vmax.f32 %v6374_v44, 0.0 }
 0x771   : > { %v6259_v50 = vpack.c.bf16 %v6241_v11, %v6240_v5  ;;  %v14374_v49 = vadd.f32 %v6441_v57, %v16638_v40 }
 0x772   : > { %v6115_v20 = vpop.f32.mrf.mxu1 }
 0x773   : > { %16639 = vst [vmem:[#allocation10_spill] sm:$0xff] %v14374_v49  ;;  %11023 = vmatmul.msk.bf16.gmra.mxu3 %vm16640_vm10, %v6259_v50  ;;  %v6564_v23 = vpack.c.bf16 %v14374_v49, %v14371_v24  ;;  %v6116_v25 = vadd.f32 %v6115_v20, %v6026_v54  ;;  %v11683_v54 = vld [vmem:[%s15687_s3 + $0x268] sm:$0xff]  ;;  %v6033_v44 = vpop.f32.mrf.mxu0  ;;  %v6211_v55 = vpop.f32.mrf.mxu2  ;;  %vm16649_vm10 = vmmov %vm16616_vm5 }
 0x774   : > { %7711 = vmatpush.bf16.msra.mxu3 %v11683_v54 }
 0x775   : > { %6669 = vmatmul.bf16.gmra.mxu0 %v6564_v23  ;;  %v6205_v61 = vadd.f32 %v6204_v48, %v6116_v25  ;;  %v11682_v48 = vld [vmem:[%s15687_s3 + $0x260] sm:$0xff]  ;;  %v16645_v25 = vld [vmem:[#allocation13_spill] sm:$0xff] }
 0x776   : > { %v6377_v36 = vpop.f32.mrf.mxu3 }
 0x777   : > { %v6442_v1 = vmax.f32 %v6377_v36, 0.0  ;;  %v6242_v60 = vmax.f32 %v6205_v61, 0.0  ;;  %v16647_v61 = vld [vmem:[#allocation14_spill] sm:$0xff] }
 0x778   : > { %7712 = vmatpush.bf16.msra.mxu3 %v11682_v48 }
 0x779   : > { %v14386_v17 = vadd.f32 %v6442_v1, %v16641_v21  ;;  %v16652_v21 = vld [vmem:[#allocation16_spill] sm:$0xff] }
 0x77a   : > { %v6117_v28 = vpop.f32.mrf.mxu1 }
 0x77b   : > { %v6118_v35 = vadd.f32 %v6117_v28, %v6028_v30  ;;  %16642 = vst [vmem:[#allocation11_spill] sm:$0xff] %v14386_v17 }
 0x77d   : > { %v6207_v4 = vadd.f32 %v6206_v13, %v6118_v35 }
 0x77e   : > { %v6379_v38 = vpop.f32.mrf.mxu3 }
 0x77f   : > { %v6243_v56 = vmax.f32 %v6207_v4, 0.0  ;;  %v6443_v16 = vmax.f32 %v6379_v38, 0.0 }
 0x781   : > { %v6260_v0 = vpack.c.bf16 %v6243_v56, %v6242_v60  ;;  %v14389_v52 = vadd.f32 %v6443_v16, %v16643_v3 }
 0x782   : > { %v6120_v39 = vpop.f32.mrf.mxu1 }
 0x783   : > { %16644 = vst [vmem:[#allocation12_spill] sm:$0xff] %v14389_v52  ;;  %11024 = vmatmul.msk.bf16.gmra.mxu3 %vm16616_vm5, %v6260_v0  ;;  %v6565_v58 = vpack.c.bf16 %v14389_v52, %v14386_v17  ;;  %v6121_v53 = vadd.f32 %v6120_v39, %v6031_v33  ;;  %v16706_v52 = vld [vmem:[#allocation37_spill] sm:$0xff] }
 0x785   : > { %6674 = vmatmul.bf16.gmra.mxu0 %v6565_v58  ;;  %v6210_v11 = vadd.f32 %v6209_v41, %v6121_v53 }
 0x786   : > { %v6382_v26 = vpop.f32.mrf.mxu3 }
 0x787   : > { %v6444_v50 = vmax.f32 %v6382_v26, 0.0  ;;  %v6244_v23 = vmax.f32 %v6210_v11, 0.0 }
 0x789   : > { %v14401_v13 = vadd.f32 %v6444_v50, %v16645_v25 }
 0x78a   : > { %v6122_v5 = vpop.f32.mrf.mxu1 }
 0x78b   : > { %v6123_v57 = vadd.f32 %v6122_v5, %v6033_v44  ;;  %16646 = vst [vmem:[#allocation13_spill] sm:$0xff] %v14401_v13 }
 0x78d   : > { %v6212_v40 = vadd.f32 %v6211_v55, %v6123_v57 }
 0x78e   : > { %v6384_v20 = vpop.f32.mrf.mxu3 }
 0x78f   : > { %v6245_v30 = vmax.f32 %v6212_v40, 0.0  ;;  %v6445_v36 = vmax.f32 %v6384_v20, 0.0 }
 0x791   : > { %v6261_v28 = vpack.c.bf16 %v6245_v30, %v6244_v23  ;;  %v14404_v35 = vadd.f32 %v6445_v36, %v16647_v61 }
 0x793   : > { %16648 = vst [vmem:[#allocation14_spill] sm:$0xff] %v14404_v35  ;;  %11025 = vmatmul.msk.bf16.gmra.mxu3 %vm16649_vm10, %v6261_v28  ;;  %v6566_v51 = vpack.c.bf16 %v14404_v35, %v14401_v13  ;;  %v16654_v28 = vld [vmem:[#allocation17_spill] sm:$0xff]  ;;  %v16698_v35 = vld [vmem:[#allocation34_spill] sm:$0xff] }
 0x795   : > { %6679 = vmatmul.bf16.gmra.mxu0 %v6566_v51  ;;  %v16656_v51 = vld [vmem:[#allocation18_spill] sm:$0xff] }
 0x796   : > { %v6387_v1 = vpop.f32.mrf.mxu3 }
 0x797   : > { %v6446_v38 = vmax.f32 %v6387_v1, 0.0 }
 0x799   : > { %v14410_v33 = vadd.f32 %v6446_v38, %v16650_v31 }
 0x79a   : > { %v6650_v4 = vpop.f32.mrf.mxu0 }
 0x79b   : > { %v6730_v56 = vmax.f32 %v6650_v4, 0.0  ;;  %16651 = vst [vmem:[#allocation15_spill] sm:$0xff] %v14410_v33  ;;  %v16658_v4 = vld [vmem:[#allocation22_spill] sm:$0xff] }
 0x79c   : > { %vm16659_vm10 = vnez %v16658_v4  ;;  %v16690_v4 = vld [vmem:[#allocation31_spill] sm:$0xff] }
 0x79d   : > { %v6762_v41 = vpack.c.bf16 %v6730_v56, %v6730_v56  ;;  %v16660_v56 = vld [vmem:[#allocation23_spill] sm:$0xff] }
 0x79e   : > { %v6389_v60 = vpop.f32.mrf.mxu3 }
 0x79f   : > { %v6447_v16 = vmax.f32 %v6389_v60, 0.0  ;;  %v6824_v53 = vunpack.c.l.b16 %v6762_v41 }
 0x7a1   : > { %v14413_v0 = vadd.f32 %v6447_v16, %v16652_v21 }
 0x7a2   : > { %v6652_v3 = vpop.f32.mrf.mxu0 }
 0x7a3   : > { %16653 = vst [vmem:[#allocation16_spill] sm:$0xff] %v14413_v0  ;;  %v6731_v39 = vmax.f32 %v6652_v3, 0.0  ;;  %v6567_v58 = vpack.c.bf16 %v14413_v0, %v14410_v33 }
 0x7a5   : > { %v6763_v54 = vpack.c.bf16 %v6731_v39, %v6731_v39  ;;  %6684 = vmatmul.bf16.gmra.mxu0 %v6567_v58 }
 0x7a6   : > { %v6392_v26 = vpop.f32.mrf.mxu3 }
 0x7a7   : > { %v6825_v48 = vunpack.c.l.b16 %v6763_v54  ;;  %v6448_v55 = vmax.f32 %v6392_v26, 0.0 }
 0x7a9   : > { %v6854_v44 = vpack.c.b16 %v6825_v48, %v6824_v53  ;;  %v14423_v61 = vadd.f32 %v6448_v55, %v16654_v28 }
 0x7aa   : > { %v6655_v5 = vpop.f32.mrf.mxu0 }
 0x7ab   : > { %7132 = vrot.lane.b32.xlu0 %v6854_v44, %s11770_s27  ;;  %11196 = vmatmul.msk.bf16.vlgmr.msra.gmra.mxu3 %vm16616_vm5, %v6854_v44  ;;  %v6870_v11 = vshrl.u32 %v6854_v44, 16  ;;  %v6873_v57 = vshll.u32 %v6854_v44, 16  ;;  %v6732_v23 = vmax.f32 %v6655_v5, 0.0  ;;  %16655 = vst [vmem:[#allocation17_spill] sm:$0xff] %v14423_v61  ;;  %vm16661_vm5 = vnez %v16660_v56 }
 0x7ad   : > { %v6872_v50 = vrot.slane %v6870_v11, 7  ;;  %v14419_v40 = vrot.slane %v6873_v57, 1  ;;  %v6764_v31 = vpack.c.bf16 %v6732_v23, %v6732_v23 }
 0x7ae   : > { %v6394_v20 = vpop.f32.mrf.mxu3 }
 0x7af   : > { %v6449_v30 = vmax.f32 %v6394_v20, 0.0  ;;  %v6875_v36 = vor.u32 %v6873_v57, %v6872_v50  ;;  %v7023_v25 = vor.u32 %v14419_v40, %v6870_v11  ;;  %v6826_v58 = vunpack.c.l.b16 %v6764_v31  ;;  %v16669_v31 = vld [vmem:[#allocation27_spill] sm:$0xff] }
 0x7b1   : > { %v14426_v1 = vadd.f32 %v6449_v30, %v16656_v51  ;;  %v14430_v38 = vsel %vm16659_vm10, 0, %v6875_v36  ;;  %vm16662_vm10 = vcmask 523264   ;;  %v16664_v36 = vld [vmem:[#allocation19_spill] sm:$0xff]  ;;  %v16666_v51 = vld [vmem:[#allocation20_spill] sm:$0xff] }
 0x7b2   : > { %v6657_v60 = vpop.f32.mrf.mxu0  ;;  %v7116_v16 = vsel %vm16661_vm5, %v14430_v38, 0  ;;  %vm16663_vm5 = vsmask.f32 7424 }
 0x7b3   : > { %16657 = vst [vmem:[#allocation18_spill] sm:$0xff] %v14426_v1  ;;  %v6733_v21 = vmax.f32 %v6657_v60, 0.0  ;;  %7178 = vrot.lane.b32.xlu1 %v7116_v16, %s11770_s27  ;;  %v6568_v3 = vpack.c.bf16 %v14426_v1, %v14423_v61 }
 0x7b5   : > { %v6765_v41 = vpack.c.bf16 %v6733_v21, %v6733_v21  ;;  %6689 = vmatmul.bf16.gmra.mxu0 %v6568_v3 }
 0x7b6   : > { %v6397_v39 = vpop.f32.mrf.mxu3 }
 0x7b7   : > { %v6827_v54 = vunpack.c.l.b16 %v6765_v41  ;;  %v6450_v44 = vmax.f32 %v6397_v39, 0.0 }
 0x7b9   : > { %v6855_v26 = vpack.c.b16 %v6827_v54, %v6826_v58  ;;  %v14443_v28 = vadd.f32 %v6450_v44, %v16664_v36  ;;  %v16671_v54 = vld [vmem:[#allocation21_spill] sm:$0xff] }
 0x7bb   : > { %11197 = vmatmul.msk.bf16.gmra.mxu3 %vm16662_vm10, %v6855_v26  ;;  %v6877_v53 = vshrl.u32 %v6855_v26, 16  ;;  %v6880_v48 = vshll.u32 %v6855_v26, 16  ;;  %16665 = vst [vmem:[#allocation19_spill] sm:$0xff] %v14443_v28  ;;  %vm16670_vm10 = vnez %v16669_v31 }
 0x7bd   : > { %v6879_v5 = vrot.slane %v6877_v53, 7  ;;  %v7024_v11 = vrot.slane %v6880_v48, 1 }
 0x7be   : > { %v6399_v57 = vpop.f32.mrf.mxu3 }
 0x7bf   : > { %v6451_v55 = vmax.f32 %v6399_v57, 0.0  ;;  %v6882_v20 = vor.u32 %v6880_v48, %v6879_v5  ;;  %v14440_v23 = vsel %vm16663_vm5, %v7023_v25, %v7024_v11  ;;  %v7026_v30 = vor.u32 %v7024_v11, %v6877_v53 }
 0x7c1   : > { %v14446_v60 = vadd.f32 %v6451_v55, %v16666_v51  ;;  %v14449_v16 = vsel %vm16668_vm1, %v6872_v50, %v6882_v20  ;;  %v16673_v50 = vld [vmem:[#allocation24_spill] sm:$0xff]  ;;  %vm16679_vm1 = vcmask 523264  }
 0x7c2   : > { %v7117_v21 = vsel %vm16670_vm10, %v14449_v16, 0 }
 0x7c3   : > { %16667 = vst [vmem:[#allocation20_spill] sm:$0xff] %v14446_v60  ;;  %7180 = vrot.lane.b32.xlu2 %v7117_v21, %s11770_s27  ;;  %v6569_v25 = vpack.c.bf16 %v14446_v60, %v14443_v28 }
 0x7c5   : > { %6694 = vmatmul.bf16.gmra.mxu0 %v6569_v25 }
 0x7c6   : > { %v6402_v3 = vpop.f32.mrf.mxu3 }
 0x7c7   : > { %v6452_v41 = vmax.f32 %v6402_v3, 0.0 }
 0x7c9   : > { %v14459_v53 = vadd.f32 %v6452_v41, %v16671_v54  ;;  %v16675_v54 = vld [vmem:[#allocation25_spill] sm:$0xff] }
 0x7cb   : > { %7134 = vrot.lane.b32.xlu2 %v6855_v26, %s11770_s27  ;;  %16672 = vst [vmem:[#allocation21_spill] sm:$0xff] %v14459_v53 }
 0x7ce   : > { %v6404_v39 = vpop.f32.mrf.mxu3 }
 0x7cf   : > { %v6453_v58 = vmax.f32 %v6404_v39, 0.0 }
 0x7d1   : > { %v14462_v48 = vadd.f32 %v6453_v58, %v16673_v50  ;;  %v16677_v50 = vld [vmem:[#allocation26_spill] sm:$0xff] }
 0x7d2   : > { %v6660_v44 = vpop.f32.mrf.mxu0 }
 0x7d3   : > { %16674 = vst [vmem:[#allocation24_spill] sm:$0xff] %v14462_v48  ;;  %v6570_v11 = vpack.c.bf16 %v14462_v48, %v14459_v53  ;;  %v6734_v55 = vmax.f32 %v6660_v44, 0.0  ;;  %v11681_v44 = vld [vmem:[%s15687_s3 + $0x258] sm:$0xff]  ;;  %v16683_v48 = vld [vmem:[#allocation28_spill] sm:$0xff] }
 0x7d4   : > { %7616 = vmatpush.bf16.msra.mxu2 %v11681_v44 }
 0x7d5   : > { %6699 = vmatmul.bf16.gmra.mxu0 %v6570_v11  ;;  %v6766_v36 = vpack.c.bf16 %v6734_v55, %v6734_v55 }
 0x7d6   : > { %v6407_v57 = vpop.f32.mrf.mxu3 }
 0x7d7   : > { %v6454_v26 = vmax.f32 %v6407_v57, 0.0  ;;  %v6828_v3 = vunpack.c.l.b16 %v6766_v36 }
 0x7d9   : > { %v14467_v60 = vadd.f32 %v6454_v26, %v16675_v54 }
 0x7da   : > { %v6662_v20 = vpop.f32.mrf.mxu0 }
 0x7db   : > { %v6735_v51 = vmax.f32 %v6662_v20, 0.0  ;;  %16676 = vst [vmem:[#allocation25_spill] sm:$0xff] %v14467_v60 }
 0x7dd   : > { %v6767_v21 = vpack.c.bf16 %v6735_v51, %v6735_v51 }
 0x7de   : > { %v6409_v25 = vpop.f32.mrf.mxu3 }
 0x7df   : > { %v6829_v39 = vunpack.c.l.b16 %v6767_v21  ;;  %v6455_v41 = vmax.f32 %v6409_v25, 0.0 }
 0x7e1   : > { %v6856_v58 = vpack.c.b16 %v6829_v39, %v6828_v3  ;;  %v14470_v28 = vadd.f32 %v6455_v41, %v16677_v50  ;;  %v16681_v50 = vld [vmem:[#allocation30_spill] sm:$0xff] }
 0x7e2   : > { %v6665_v11 = vpop.f32.mrf.mxu0 }
 0x7e3   : > { %16678 = vst [vmem:[#allocation26_spill] sm:$0xff] %v14470_v28  ;;  %11198 = vmatmul.msk.bf16.gmra.mxu3 %vm16679_vm1, %v6856_v58  ;;  %v6571_v57 = vpack.c.bf16 %v14470_v28, %v14467_v60  ;;  %v6885_v55 = vshrl.u32 %v6856_v58, 16  ;;  %v6888_v20 = vshll.u32 %v6856_v58, 16  ;;  %v6736_v21 = vmax.f32 %v6665_v11, 0.0  ;;  %v11680_v11 = vld [vmem:[%s15687_s3 + $0x250] sm:$0xff] }
 0x7e4   : > { %vm16682_vm1 = vnez %v16681_v50  ;;  %7617 = vmatpush.bf16.msra.mxu2 %v11680_v11 }
 0x7e5   : > { %6704 = vmatmul.bf16.gmra.mxu0 %v6571_v57  ;;  %v6887_v36 = vrot.slane %v6885_v55, 7  ;;  %v7027_v51 = vrot.slane %v6888_v20, 1  ;;  %v6768_v60 = vpack.c.bf16 %v6736_v21, %v6736_v21 }
 0x7e6   : > { %v6412_v26 = vpop.f32.mrf.mxu3 }
 0x7e7   : > { %v6890_v25 = vor.u32 %v6888_v20, %v6887_v36  ;;  %v14479_v3 = vsel %vm16663_vm5, %v7026_v30, %v7027_v51  ;;  %v7029_v39 = vor.u32 %v7027_v51, %v6885_v55  ;;  %v6456_v57 = vmax.f32 %v6412_v26, 0.0 }
 0x7e8   : > { %v6830_v20 = vunpack.c.l.b16 %v6768_v60 }
 0x7e9   : > { %v14482_v41 = vsel %vm16680_vm6, %v6879_v5, %v6890_v25  ;;  %v11679_v25 = vld [vmem:[%s15687_s3 + $0x248] sm:$0xff]  ;;  %v14495_v21 = vadd.f32 %v6456_v57, %v16683_v48  ;;  %vm16687_vm6 = vcmask 523264   ;;  %v11678_v48 = vld [vmem:[%s15687_s3 + $0x240] sm:$0xff] }
 0x7ea   : > { %v6667_v54 = vpop.f32.mrf.mxu0  ;;  %v7118_v28 = vsel %vm16682_vm1, %v14482_v41, 0  ;;  %7618 = vmatpush.bf16.msra.mxu2 %v11679_v25 }
 0x7eb   : > { %v6737_v44 = vmax.f32 %v6667_v54, 0.0  ;;  %7182 = vrot.lane.b32.xlu1 %v7118_v28, %s11770_s27  ;;  %16684 = vst [vmem:[#allocation28_spill] sm:$0xff] %v14495_v21  ;;  %v16685_v28 = vld [vmem:[#allocation29_spill] sm:$0xff] }
 0x7ed   : > { %v6769_v30 = vpack.c.bf16 %v6737_v44, %v6737_v44 }
 0x7ee   : > { %v6414_v55 = vpop.f32.mrf.mxu3  ;;  %7619 = vmatpush.bf16.msra.mxu2 %v11678_v48 }
 0x7ef   : > { %v6831_v5 = vunpack.c.l.b16 %v6769_v30  ;;  %v6457_v51 = vmax.f32 %v6414_v55, 0.0 }
 0x7f1   : > { %v6857_v54 = vpack.c.b16 %v6831_v5, %v6830_v20  ;;  %v14498_v53 = vadd.f32 %v6457_v51, %v16685_v28 }
 0x7f2   : > { %v6670_v56 = vpop.f32.mrf.mxu0 }
 0x7f3   : > { %16686 = vst [vmem:[#allocation29_spill] sm:$0xff] %v14498_v53  ;;  %7136 = vrot.lane.b32.xlu1 %v6856_v58, %s11770_s27  ;;  %11199 = vmatmul.msk.bf16.gmra.mxu3 %vm16687_vm6, %v6857_v54  ;;  %v6572_v60 = vpack.c.bf16 %v14498_v53, %v14495_v21  ;;  %v6893_v26 = vshrl.u32 %v6857_v54, 16  ;;  %v6896_v44 = vshll.u32 %v6857_v54, 16  ;;  %v6738_v55 = vmax.f32 %v6670_v56, 0.0  ;;  %v11677_v58 = vld [vmem:[%s15687_s3 + $0x238] sm:$0xff] }
 0x7f4   : > { %vm16688_vm6 = vsmask.f32 256  ;;  %7620 = vmatpush.bf16.msra.mxu2 %v11677_v58  ;;  %v11675_v58 = vld [vmem:[%s15687_s3 + $0x228] sm:$0xff] }
 0x7f5   : > { %6709 = vmatmul.bf16.gmra.mxu0 %v6572_v60  ;;  %v6895_v11 = vrot.slane %v6893_v26, 7  ;;  %v7030_v57 = vrot.slane %v6896_v44, 1  ;;  %v6770_v53 = vpack.c.bf16 %v6738_v55, %v6738_v55 }
 0x7f6   : > { %v6417_v30 = vpop.f32.mrf.mxu3 }
 0x7f7   : > { %v6898_v20 = vor.u32 %v6896_v44, %v6895_v11  ;;  %v14511_v5 = vsel %vm16663_vm5, %v7029_v39, %v7030_v57  ;;  %v7032_v51 = vor.u32 %v7030_v57, %v6893_v26  ;;  %v11676_v44 = vld [vmem:[%s15687_s3 + $0x230] sm:$0xff]  ;;  %v6458_v39 = vmax.f32 %v6417_v30, 0.0 }
 0x7f8   : > { %7621 = vmatpush.bf16.msra.mxu2 %v11676_v44  ;;  %vm16694_vm5 = vcmask 523264  }
 0x7f9   : > { %v14514_v25 = vsel %vm16688_vm6, %v6887_v36, %v6898_v20  ;;  %v6832_v36 = vunpack.c.l.b16 %v6770_v53  ;;  %v14527_v55 = vadd.f32 %v6458_v39, %v16690_v4  ;;  %v11674_v4 = vld [vmem:[%s15687_s3 + $0x220] sm:$0xff]  ;;  %vm16695_vm6 = vsmask.f32 7424 }
 0x7fa   : > { %v6672_v28 = vpop.f32.mrf.mxu0  ;;  %v7119_v48 = vsel %vm16341_vm12, %v14514_v25, 0 }
 0x7fb   : > { %v6739_v56 = vmax.f32 %v6672_v28, 0.0  ;;  %7184 = vrot.lane.b32.xlu0 %v7119_v48, %s11770_s27  ;;  %16691 = vst [vmem:[#allocation31_spill] sm:$0xff] %v14527_v55  ;;  %v16692_v48 = vld [vmem:[#allocation32_spill] sm:$0xff] }
 0x7fc   : > { %7622 = vmatpush.bf16.msra.mxu2 %v11675_v58 }
 0x7fd   : > { %v6771_v21 = vpack.c.bf16 %v6739_v56, %v6739_v56 }
 0x7fe   : > { %v6419_v26 = vpop.f32.mrf.mxu3 }
 0x7ff   : > { %v6833_v57 = vunpack.c.l.b16 %v6771_v21  ;;  %v6459_v20 = vmax.f32 %v6419_v26, 0.0 }
 0x800   : > { %7623 = vmatpush.bf16.msra.mxu2 %v11674_v4 }
 0x801   : > { %v6858_v28 = vpack.c.b16 %v6833_v57, %v6832_v36  ;;  %v14530_v1 = vadd.f32 %v6459_v20, %v16692_v48 }
 0x802   : > { %v6675_v61 = vpop.f32.mrf.mxu0 }
 0x803   : > { %16693 = vst [vmem:[#allocation32_spill] sm:$0xff] %v14530_v1  ;;  %7138 = vrot.lane.b32.xlu0 %v6857_v54, %s11770_s27  ;;  %11200 = vmatmul.msk.bf16.gmra.mxu3 %vm16694_vm5, %v6858_v28  ;;  %v6573_v53 = vpack.c.bf16 %v14530_v1, %v14527_v55  ;;  %v6901_v21 = vshrl.u32 %v6858_v28, 16  ;;  %v6904_v30 = vshll.u32 %v6858_v28, 16  ;;  %v6740_v26 = vmax.f32 %v6675_v61, 0.0 }
 0x804   : > { %vm16696_vm5 = vsmask.f32 256 }
 0x805   : > { %6714 = vmatmul.bf16.gmra.mxu0 %v6573_v53  ;;  %v6903_v56 = vrot.slane %v6901_v21, 7  ;;  %v7033_v44 = vrot.slane %v6904_v30, 1  ;;  %v6772_v55 = vpack.c.bf16 %v6740_v26, %v6740_v26 }
 0x806   : > { %v6422_v39 = vpop.f32.mrf.mxu3 }
 0x807   : > { %v6906_v36 = vor.u32 %v6904_v30, %v6903_v56  ;;  %v14540_v54 = vsel %vm16695_vm6, %v7032_v51, %v7033_v44  ;;  %v7035_v57 = vor.u32 %v7033_v44, %v6901_v21  ;;  %v6460_v4 = vmax.f32 %v6422_v39, 0.0  ;;  %v16700_v44 = vld [vmem:[#allocation35_spill] sm:$0xff] }
 0x808   : > { %v6834_v30 = vunpack.c.l.b16 %v6772_v55  ;;  %vm16702_vm6 = vcmask 523264  }
 0x809   : > { %v14543_v20 = vsel %vm16696_vm5, %v6895_v11, %v6906_v36  ;;  %v14550_v21 = vadd.f32 %v6460_v4, %v16698_v35  ;;  %vm16703_vm5 = vsmask.f32 7424 }
 0x80a   : > { %v6677_v58 = vpop.f32.mrf.mxu0  ;;  %v7120_v1 = vsel %vm16352_vm9, %v14543_v20, 0 }
 0x80b   : > { %v6741_v53 = vmax.f32 %v6677_v58, 0.0  ;;  %7186 = vrot.lane.b32.xlu2 %v7120_v1, %s11770_s27  ;;  %16699 = vst [vmem:[#allocation34_spill] sm:$0xff] %v14550_v21 }
 0x80d   : > { %v6773_v0 = vpack.c.bf16 %v6741_v53, %v6741_v53 }
 0x80e   : > { %v6424_v61 = vpop.f32.mrf.mxu3 }
 0x80f   : > { %v6835_v33 = vunpack.c.l.b16 %v6773_v0  ;;  %v6461_v51 = vmax.f32 %v6424_v61, 0.0 }
 0x811   : > { %v6859_v11 = vpack.c.b16 %v6835_v33, %v6834_v30  ;;  %v14553_v36 = vadd.f32 %v6461_v51, %v16700_v44 }
 0x812   : > { %v6680_v13 = vpop.f32.mrf.mxu0 }
 0x813   : > { %16701 = vst [vmem:[#allocation35_spill] sm:$0xff] %v14553_v36  ;;  %7140 = vrot.lane.b32.xlu2 %v6858_v28, %s11770_s27  ;;  %11201 = vmatmul.msk.bf16.gmra.mxu3 %vm16702_vm6, %v6859_v11  ;;  %v6574_v1 = vpack.c.bf16 %v14553_v36, %v14550_v21  ;;  %v6909_v39 = vshrl.u32 %v6859_v11, 16  ;;  %v6912_v26 = vshll.u32 %v6859_v11, 16  ;;  %v6742_v35 = vmax.f32 %v6680_v13, 0.0 }
 0x814   : > { %v7004_v13 = vsel %vm16670_vm10, %v14430_v38, 0  ;;  %v16710_v38 = vld [vmem:[#allocation42_spill] sm:$0xff] }
 0x815   : > { %6719 = vmatmul.bf16.gmra.mxu0 %v6574_v1  ;;  %v6911_v0 = vrot.slane %v6909_v39, 7  ;;  %v7036_v55 = vrot.slane %v6912_v26, 1  ;;  %v6774_v44 = vpack.c.bf16 %v6742_v35, %v6742_v35 }
 0x816   : > { %v6427_v58 = vpop.f32.mrf.mxu3 }
 0x817   : > { %v6914_v53 = vor.u32 %v6912_v26, %v6911_v0  ;;  %v14560_v33 = vsel %vm16703_vm5, %v7035_v57, %v7036_v55  ;;  %v7038_v4 = vor.u32 %v7036_v55, %v6909_v39  ;;  %v6462_v1 = vmax.f32 %v6427_v58, 0.0  ;;  %vm16712_vm5 = vmmov %vm16702_vm6 }
 0x818   : > { %v6836_v55 = vunpack.c.l.b16 %v6774_v44  ;;  %vm16715_vm10 = vmmov %vm16712_vm5 }
 0x819   : > { %v14563_v61 = vsel %vm16704_vm14, %v6903_v56, %v6914_v53  ;;  %v14574_v17 = vadd.f32 %v6462_v1, %v16706_v52  ;;  %vm16711_vm14 = vnez %v16710_v38 }
 0x81a   : > { %v6682_v28 = vpop.f32.mrf.mxu0  ;;  %v7121_v51 = vsel %vm16362_vm7, %v14563_v61, 0 }
 0x81b   : > { %v6743_v36 = vmax.f32 %v6682_v28, 0.0  ;;  %7188 = vrot.lane.b32.xlu1 %v7121_v51, %s11770_s27  ;;  %16707 = vst [vmem:[#allocation37_spill] sm:$0xff] %v14574_v17  ;;  %v16708_v51 = vld [vmem:[#allocation38_spill] sm:$0xff] }
 0x81d   : > { %v6775_v57 = vpack.c.bf16 %v6743_v36, %v6743_v36  ;;  %v7133_v26 = vpop.permute.xlu0 %7132  ;;  %v7181_v28 = vpop.permute.xlu2 %7180  ;;  %v7087_v36 = vsel %vm16711_vm14, 0, %v14419_v40  ;;  %vm16716_vm14 = vsmask.f32 7424 }
 0x81e   : > { %v6429_v39 = vpop.f32.mrf.mxu3  ;;  %v7212_v56 = vsel %vm16702_vm6, %v7004_v13, %v7133_v26  ;;  %v16713_v13 = vld [vmem:[#allocation44_spill] sm:$0xff] }
 0x81f   : > { %v6837_v53 = vunpack.c.l.b16 %v6775_v57  ;;  %v6463_v21 = vmax.f32 %v6429_v39, 0.0  ;;  %7540 = vmatmul.bf16.gmra.mxu1 %v7212_v56  ;;  %vm16714_vm6 = vnez %v16713_v13 }
 0x820   : > { %v7088_v1 = vsel %vm16714_vm6, %v7087_v36, 0  ;;  %vm16722_vm6 = vmmov %vm16715_vm10 }
 0x821   : > { %v6860_v35 = vpack.c.b16 %v6837_v53, %v6836_v55  ;;  %v14577_v49 = vadd.f32 %v6463_v21, %v16708_v51 }
 0x822   : > { %v6685_v31 = vpop.f32.mrf.mxu0 }
 0x823   : > { %16709 = vst [vmem:[#allocation38_spill] sm:$0xff] %v14577_v49  ;;  %7142 = vrot.lane.b32.xlu1 %v6859_v11, %s11770_s27  ;;  %11202 = vmatmul.msk.bf16.gmra.mxu3 %vm16712_vm5, %v6860_v35  ;;  %v6575_v58 = vpack.c.bf16 %v14577_v49, %v14574_v17  ;;  %v6917_v44 = vshrl.u32 %v6860_v35, 16  ;;  %v6920_v52 = vshll.u32 %v6860_v35, 16  ;;  %v6744_v56 = vmax.f32 %v6685_v31, 0.0 }
 0x824   : > { %vm16717_vm5 = vsmask.f32 256  ;;  %v7005_v31 = vsel %vm16682_vm1, %v14449_v16, 0  ;;  %vm16724_vm1 = vsmask.f32 256 }
 0x825   : > { %v7179_v57 = vpop.permute.xlu1 %7178  ;;  %6724 = vmatmul.bf16.gmra.mxu0 %v6575_v58  ;;  %v6919_v21 = vrot.slane %v6917_v44, 7  ;;  %v7039_v26 = vrot.slane %v6920_v52, 1  ;;  %v6776_v58 = vpack.c.bf16 %v6744_v56, %v6744_v56  ;;  %v7135_v17 = vpop.permute.xlu2 %7134  ;;  %v16720_v56 = vld [vmem:[#allocation46_spill] sm:$0xff] }
 0x826   : > { %v7272_v39 = vsel %vm16715_vm10, %v7088_v1, %v7179_v57 }
 0x827   : > { %7624 = vmatmul.bf16.vlgmr.msra.gmra.mxu2 %v7272_v39  ;;  %v6922_v40 = vor.u32 %v6920_v52, %v6919_v21  ;;  %v14590_v11 = vsel %vm16716_vm14, %v7038_v4, %v7039_v26  ;;  %v7041_v55 = vor.u32 %v7039_v26, %v6917_v44  ;;  %v7216_v44 = vsel %vm16715_vm10, %v7005_v31, %v7135_v17  ;;  %vm16719_vm14 = vmmov %vm16715_vm10 }
 0x828   : > { %v6838_v52 = vunpack.c.l.b16 %v6776_v58  ;;  %vm16723_vm10 = vsmask.f32 7424 }
 0x829   : > { %v14593_v53 = vsel %vm16717_vm5, %v6911_v0, %v6922_v40  ;;  %vm16721_vm5 = vnez %v16720_v56 }
 0x82a   : > { %v6687_v51 = vpop.f32.mrf.mxu0  ;;  %v7122_v36 = vsel %vm16544_vm8, %v14593_v53, 0  ;;  %v7089_v40 = vsel %vm16721_vm5, %v14440_v23, 0  ;;  %vm16736_vm5 = vsmask.f32 256 }
 0x82b   : > { %v6745_v13 = vmax.f32 %v6687_v51, 0.0  ;;  %7190 = vrot.lane.b32.xlu0 %v7122_v36, %s11770_s27 }
 0x82d   : > { %v6777_v4 = vpack.c.bf16 %v6745_v13, %v6745_v13  ;;  %v7276_v13 = vsel %vm16722_vm6, %v7089_v40, %v7181_v28 }
 0x82f   : > { %v6839_v0 = vunpack.c.l.b16 %v6777_v4  ;;  %7545 = vmatmul.bf16.gmra.mxu1 %v7216_v44 }
 0x831   : > { %v6861_v1 = vpack.c.b16 %v6839_v0, %v6838_v52 }
 0x832   : > { %v6690_v57 = vpop.f32.mrf.mxu0 }
 0x833   : > { %7144 = vrot.lane.b32.xlu0 %v6860_v35, %s11770_s27  ;;  %11203 = vmatmul.msk.bf16.gmra.mxu3 %vm16719_vm14, %v6861_v1  ;;  %v6925_v26 = vshrl.u32 %v6861_v1, 16  ;;  %v6928_v39 = vshll.u32 %v6861_v1, 16  ;;  %v6746_v17 = vmax.f32 %v6690_v57, 0.0  ;;  %vm16727_vm14 = vsmask.f32 256 }
 0x835   : > { %v6927_v51 = vrot.slane %v6925_v26, 7  ;;  %v7042_v16 = vrot.slane %v6928_v39, 1  ;;  %v6778_v23 = vpack.c.bf16 %v6746_v17, %v6746_v17 }
 0x837   : > { %7629 = vmatmul.bf16.gmra.mxu2 %v7276_v13  ;;  %v6930_v36 = vor.u32 %v6928_v39, %v6927_v51  ;;  %v14610_v58 = vsel %vm16723_vm10, %v7041_v55, %v7042_v16  ;;  %v7044_v31 = vor.u32 %v7042_v16, %v6925_v26  ;;  %v6840_v57 = vunpack.c.l.b16 %v6778_v23 }
 0x839   : > { %v14613_v35 = vsel %vm16724_vm1, %v6919_v21, %v6930_v36  ;;  %vm16726_vm1 = vmmov %vm16723_vm10 }
 0x83a   : > { %v6692_v4 = vpop.f32.mrf.mxu0  ;;  %v7123_v52 = vsel %vm16551_vm4, %v14613_v35, 0 }
 0x83b   : > { %v6747_v0 = vmax.f32 %v6692_v4, 0.0  ;;  %7192 = vrot.lane.b32.xlu2 %v7123_v52, %s11770_s27 }
 0x83d   : > { %v6779_v28 = vpack.c.bf16 %v6747_v0, %v6747_v0  ;;  %v16728_v0 = vld [vmem:[#allocation45_spill] sm:$0xff] }
 0x83e   : > { %vm16729_vm10 = vnez %v16728_v0 }
 0x83f   : > { %v6841_v40 = vunpack.c.l.b16 %v6779_v28 }
 0x841   : > { %v6862_v39 = vpack.c.b16 %v6841_v40, %v6840_v57 }
 0x842   : > { %v6695_v13 = vpop.f32.mrf.mxu0 }
 0x843   : > { %7146 = vrot.lane.b32.xlu2 %v6861_v1, %s11770_s27  ;;  %11204 = vmatmul.msk.bf16.gmra.mxu3 %vm16722_vm6, %v6862_v39  ;;  %v6933_v21 = vshrl.u32 %v6862_v39, 16  ;;  %v6936_v55 = vshll.u32 %v6862_v39, 16  ;;  %v6748_v36 = vmax.f32 %v6695_v13, 0.0 }
 0x845   : > { %v6935_v26 = vrot.slane %v6933_v21, 7  ;;  %v7045_v16 = vrot.slane %v6936_v55, 1  ;;  %v6780_v28 = vpack.c.bf16 %v6748_v36, %v6748_v36 }
 0x847   : > { %v6938_v56 = vor.u32 %v6936_v55, %v6935_v26  ;;  %v14622_v17 = vsel %vm16726_vm1, %v7044_v31, %v7045_v16  ;;  %v7047_v4 = vor.u32 %v7045_v16, %v6933_v21  ;;  %v6842_v38 = vunpack.c.l.b16 %v6780_v28 }
 0x849   : > { %v14625_v52 = vsel %vm16727_vm14, %v6927_v51, %v6938_v56 }
 0x84a   : > { %v6697_v23 = vpop.f32.mrf.mxu0  ;;  %v7124_v1 = vsel %vm16729_vm10, %v14625_v52, 0 }
 0x84b   : > { %v6749_v57 = vmax.f32 %v6697_v23, 0.0  ;;  %7194 = vrot.lane.b32.xlu1 %v7124_v1, %s11770_s27 }
 0x84d   : > { %v6781_v40 = vpack.c.bf16 %v6749_v57, %v6749_v57 }
 0x84f   : > { %v6843_v13 = vunpack.c.l.b16 %v6781_v40 }
 0x851   : > { %v6863_v55 = vpack.c.b16 %v6843_v13, %v6842_v38 }
 0x852   : > { %v6700_v50 = vpop.f32.mrf.mxu0 }
 0x853   : > { %7148 = vrot.lane.b32.xlu1 %v6862_v39, %s11770_s27  ;;  %11205 = vmatmul.msk.bf16.gmra.mxu3 %vm16722_vm6, %v6863_v55  ;;  %v6941_v56 = vshrl.u32 %v6863_v55, 16  ;;  %v6944_v51 = vshll.u32 %v6863_v55, 16  ;;  %v6750_v16 = vmax.f32 %v6700_v50, 0.0  ;;  %v16730_v50 = vld [vmem:[#allocation47_spill] sm:$0xff] }
 0x854   : > { %vm16731_vm6 = vnez %v16730_v50 }
 0x855   : > { %v6943_v31 = vrot.slane %v6941_v56, 7  ;;  %v7048_v21 = vrot.slane %v6944_v51, 1  ;;  %v6782_v39 = vpack.c.bf16 %v6750_v16, %v6750_v16 }
 0x857   : > { %v6946_v24 = vor.u32 %v6944_v51, %v6943_v31  ;;  %v14634_v36 = vsel %vm16726_vm1, %v7047_v4, %v7048_v21  ;;  %v7050_v23 = vor.u32 %v7048_v21, %v6941_v56  ;;  %v7090_v4 = vsel %vm16731_vm6, %v14479_v3, 0 }
 0x858   : > { %vm16732_vm1 = vcmask 523264   ;;  %v6844_v51 = vunpack.c.l.b16 %v6782_v39 }
 0x859   : > { %v14637_v1 = vsel %vm16727_vm14, %v6935_v26, %v6946_v24  ;;  %vm16733_vm14 = vmmov %vm16732_vm1 }
 0x85a   : > { %v6702_v28 = vpop.f32.mrf.mxu0  ;;  %v7125_v38 = vsel %vm12526_vm3, %v14637_v1, 0  ;;  %vm16734_vm6 = vmmov %vm16732_vm1 }
 0x85b   : > { %v6751_v57 = vmax.f32 %v6702_v28, 0.0  ;;  %7196 = vrot.lane.b32.xlu0 %v7125_v38, %s11770_s27  ;;  %v7006_v38 = vsel %vm16341_vm12, %v14482_v41, 0 }
 0x85d   : > { %v6783_v40 = vpack.c.bf16 %v6751_v57, %v6751_v57  ;;  %v7183_v13 = vpop.permute.xlu1 %7182 }
 0x85e   : > { %v7280_v56 = vsel %vm16732_vm1, %v7090_v4, %v7183_v13  ;;  %vm16735_vm1 = vsmask.f32 7424 }
 0x85f   : > { %v6845_v24 = vunpack.c.l.b16 %v6783_v40  ;;  %7634 = vmatmul.bf16.gmra.mxu2 %v7280_v56 }
 0x861   : > { %v6864_v26 = vpack.c.b16 %v6845_v24, %v6844_v51 }
 0x862   : > { %v6705_v21 = vpop.f32.mrf.mxu0 }
 0x863   : > { %7150 = vrot.lane.b32.xlu0 %v6863_v55, %s11770_s27  ;;  %11206 = vmatmul.msk.bf16.gmra.mxu3 %vm16733_vm14, %v6864_v26  ;;  %v6949_v16 = vshrl.u32 %v6864_v26, 16  ;;  %v6952_v28 = vshll.u32 %v6864_v26, 16  ;;  %v6752_v39 = vmax.f32 %v6705_v21, 0.0 }
 0x865   : > { %v7137_v57 = vpop.permute.xlu1 %7136  ;;  %v6951_v50 = vrot.slane %v6949_v16, 7  ;;  %v7051_v3 = vrot.slane %v6952_v28, 1  ;;  %v6784_v24 = vpack.c.bf16 %v6752_v39, %v6752_v39 }
 0x866   : > { %v7220_v13 = vsel %vm16734_vm6, %v7006_v38, %v7137_v57  ;;  %v14667_v57 = vpop.f32.mrf.mxu3 }
 0x867   : > { %7550 = vmatmul.bf16.gmra.mxu1 %v7220_v13  ;;  %v6954_v40 = vor.u32 %v6952_v28, %v6951_v50  ;;  %v14654_v4 = vsel %vm16735_vm1, %v7050_v23, %v7051_v3  ;;  %v7053_v55 = vor.u32 %v7051_v3, %v6949_v16  ;;  %v16737_v28 = vld [vmem:[#allocation48_spill] sm:$0xff] }
 0x868   : > { %vm16738_vm6 = vnez %v16737_v28  ;;  %v7187_v28 = vpop.permute.xlu2 %7186 }
 0x869   : > { %v14657_v56 = vsel %vm16736_vm5, %v6943_v31, %v6954_v40  ;;  %v7091_v23 = vsel %vm16738_vm6, %v14511_v5, 0  ;;  %v6846_v31 = vunpack.c.l.b16 %v6784_v24  ;;  %vm16739_vm5 = vmmov %vm16733_vm14  ;;  %vm16749_vm6 = vsmask.f32 256 }
 0x86a   : > { %v6707_v51 = vpop.f32.mrf.mxu0  ;;  %v7126_v41 = vsel %vm12578_vm11, %v14657_v56, 0  ;;  %vm16740_vm1 = vmmov %vm16739_vm5 }
 0x86b   : > { %v6753_v60 = vmax.f32 %v6707_v51, 0.0  ;;  %7198 = vrot.lane.b32.xlu2 %v7126_v41, %s11770_s27  ;;  %v7007_v51 = vsel %vm16352_vm9, %v14514_v25, 0 }
 0x86d   : > { %v6785_v38 = vpack.c.bf16 %v6753_v60, %v6753_v60  ;;  %v7185_v21 = vpop.permute.xlu0 %7184 }
 0x86e   : > { %v7284_v16 = vsel %vm16733_vm14, %v7091_v23, %v7185_v21  ;;  %vm16741_vm14 = vsmask.f32 7424 }
 0x86f   : > { %v6847_v3 = vunpack.c.l.b16 %v6785_v38  ;;  %7639 = vmatmul.bf16.gmra.mxu2 %v7284_v16 }
 0x870   : > { %v7141_v10 = vpop.permute.xlu2 %7140 }
 0x871   : > { %v6865_v13 = vpack.c.b16 %v6847_v3, %v6846_v31  ;;  %v14681_v3 = vpop.f32.mrf.mxu3 }
 0x872   : > { %v6710_v40 = vpop.f32.mrf.mxu0 }
 0x873   : > { %7152 = vrot.lane.b32.xlu2 %v6864_v26, %s11770_s27  ;;  %11207 = vmatmul.msk.bf16.gmra.mxu3 %vm16739_vm5, %v6865_v13  ;;  %v6957_v39 = vshrl.u32 %v6865_v13, 16  ;;  %v6960_v60 = vshll.u32 %v6865_v13, 16  ;;  %v6754_v24 = vmax.f32 %v6710_v40, 0.0  ;;  %v11689_v26 = vld [vmem:[%s15688_s4 + $0x78] sm:$0xff]  ;;  %vm16742_vm5 = vsmask.f32 256 }
 0x874   : > { %7927 = vmatpush.bf16.msrb.mxu0 %v11689_v26 }
 0x875   : > { %v7139_v5 = vpop.permute.xlu0 %7138  ;;  %v6959_v41 = vrot.slane %v6957_v39, 7  ;;  %v7054_v21 = vrot.slane %v6960_v60, 1 }
 0x876   : > { %v7224_v23 = vsel %vm16740_vm1, %v7007_v51, %v7139_v5 }
 0x877   : > { %7555 = vmatmul.bf16.gmra.mxu1 %v7224_v23  ;;  %v6962_v38 = vor.u32 %v6960_v60, %v6959_v41  ;;  %v14679_v16 = vsel %vm16741_vm14, %v7053_v55, %v7054_v21  ;;  %v7056_v31 = vor.u32 %v7054_v21, %v6957_v39  ;;  %v6786_v60 = vpack.c.bf16 %v6754_v24, %v6754_v24  ;;  %v16743_v55 = vld [vmem:[#allocation49_spill] sm:$0xff] }
 0x878   : > { %vm16744_vm1 = vnez %v16743_v55  ;;  %vm16745_vm14 = vcmask 523264  }
 0x879   : > { %v14684_v25 = vsel %vm16742_vm5, %v6951_v50, %v6962_v38  ;;  %v7092_v39 = vsel %vm16744_vm1, %v14540_v54, 0  ;;  %v6848_v23 = vunpack.c.l.b16 %v6786_v60  ;;  %v14694_v34 = vpop.f32.mrf.mxu3  ;;  %vm16746_vm5 = vmmov %vm16745_vm14  ;;  %v7008_v54 = vsel %vm16362_vm7, %v14543_v20, 0 }
 0x87a   : > { %v6712_v48 = vpop.f32.mrf.mxu0  ;;  %v7127_v40 = vsel %vm12637_vm2, %v14684_v25, 0  ;;  %v7288_v21 = vsel %vm16745_vm14, %v7092_v39, %v7187_v28  ;;  %vm16747_vm14 = vmmov %vm16746_vm5  ;;  %vm16748_vm1 = vsmask.f32 7424 }
 0x87b   : > { %v6755_v51 = vmax.f32 %v6712_v48, 0.0  ;;  %7200 = vrot.lane.b32.xlu1 %v7127_v40, %s11770_s27  ;;  %v7228_v60 = vsel %vm16747_vm14, %v7008_v54, %v7141_v10  ;;  %vm16753_vm14 = vmmov %vm16746_vm5 }
 0x87d   : > { %v6787_v5 = vpack.c.bf16 %v6755_v51, %v6755_v51 }
 0x87f   : > { %v6849_v50 = vunpack.c.l.b16 %v6787_v5  ;;  %7644 = vmatmul.bf16.gmra.mxu2 %v7288_v21 }
 0x881   : > { %v6866_v38 = vpack.c.b16 %v6849_v50, %v6848_v23  ;;  %v14712_v10 = vpop.f32.mrf.mxu3 }
 0x882   : > { %v6715_v26 = vpop.f32.mrf.mxu0 }
 0x883   : > { %7154 = vrot.lane.b32.xlu1 %v6865_v13, %s11770_s27  ;;  %11208 = vmatmul.msk.bf16.gmra.mxu3 %vm16746_vm5, %v6866_v38  ;;  %v6965_v48 = vshrl.u32 %v6866_v38, 16  ;;  %v6968_v24 = vshll.u32 %v6866_v38, 16  ;;  %v6756_v51 = vmax.f32 %v6715_v26, 0.0 }
 0x885   : > { %v6967_v40 = vrot.slane %v6965_v48, 7  ;;  %v7057_v28 = vrot.slane %v6968_v24, 1  ;;  %v6788_v20 = vpack.c.bf16 %v6756_v51, %v6756_v51 }
 0x887   : > { %7560 = vmatmul.bf16.gmra.mxu1 %v7228_v60  ;;  %v6970_v5 = vor.u32 %v6968_v24, %v6967_v40  ;;  %v14703_v39 = vsel %vm16748_vm1, %v7056_v31, %v7057_v28  ;;  %v7059_v21 = vor.u32 %v7057_v28, %v6965_v48  ;;  %v16750_v31 = vld [vmem:[#allocation50_spill] sm:$0xff]  ;;  %v6850_v54 = vunpack.c.l.b16 %v6788_v20 }
 0x888   : > { %vm16751_vm1 = vnez %v16750_v31  ;;  %v11688_v60 = vld [vmem:[%s15688_s4 + $0x70] sm:$0xff] }
 0x889   : > { %v14706_v13 = vsel %vm16749_vm6, %v6959_v41, %v6970_v5  ;;  %v7093_v48 = vsel %vm16751_vm1, %v14560_v33, 0  ;;  %7928 = vmatpush.bf16.msrb.mxu0 %v11688_v60  ;;  %vm16752_vm6 = vmmov %vm16746_vm5  ;;  %v11687_v33 = vld [vmem:[%s15688_s4 + $0x68] sm:$0xff]  ;;  %v14729_v20 = vpop.f32.mrf.mxu3 }
 0x88a   : > { %v6717_v23 = vpop.f32.mrf.mxu0  ;;  %v7128_v50 = vsel %vm16228_vm15, %v14706_v13, 0 }
 0x88b   : > { %v6757_v55 = vmax.f32 %v6717_v23, 0.0  ;;  %7202 = vrot.lane.b32.xlu0 %v7128_v50, %s11770_s27  ;;  %v7009_v50 = vsel %vm16544_vm8, %v14563_v61, 0 }
 0x88d   : > { %v6789_v26 = vpack.c.bf16 %v6757_v55, %v6757_v55  ;;  %v7189_v24 = vpop.permute.xlu1 %7188  ;;  %7929 = vmatpush.bf16.msrb.mxu0 %v11687_v33 }
 0x88e   : > { %v7292_v41 = vsel %vm16746_vm5, %v7093_v48, %v7189_v24  ;;  %vm16754_vm5 = vsmask.f32 7424 }
 0x88f   : > { %v6851_v28 = vunpack.c.l.b16 %v6789_v26  ;;  %7649 = vmatmul.bf16.gmra.mxu2 %v7292_v41 }
 0x891   : > { %v6867_v51 = vpack.c.b16 %v6851_v28, %v6850_v54  ;;  %v11686_v28 = vld [vmem:[%s15688_s4 + $0x60] sm:$0xff] }
 0x892   : > { %v6720_v5 = vpop.f32.mrf.mxu0  ;;  %7930 = vmatpush.bf16.msrb.mxu0 %v11686_v28 }
 0x893   : > { %7156 = vrot.lane.b32.xlu0 %v6866_v38, %s11770_s27  ;;  %11209 = vmatmul.msk.bf16.gmra.mxu3 %vm16752_vm6, %v6867_v51  ;;  %v6973_v55 = vshrl.u32 %v6867_v51, 16  ;;  %v6976_v23 = vshll.u32 %v6867_v51, 16  ;;  %v6758_v41 = vmax.f32 %v6720_v5, 0.0  ;;  %vm16755_vm6 = vsmask.f32 256 }
 0x895   : > { %v7143_v26 = vpop.permute.xlu1 %7142  ;;  %v6975_v24 = vrot.slane %v6973_v55, 7  ;;  %v7060_v48 = vrot.slane %v6976_v23, 1  ;;  %v6790_v5 = vpack.c.bf16 %v6758_v41, %v6758_v41 }
 0x896   : > { %v7232_v38 = vsel %vm16753_vm14, %v7009_v50, %v7143_v26 }
 0x897   : > { %7565 = vmatmul.bf16.gmra.mxu1 %v7232_v38  ;;  %v6978_v54 = vor.u32 %v6976_v23, %v6975_v24  ;;  %v14736_v60 = vsel %vm16754_vm5, %v7059_v21, %v7060_v48  ;;  %v7062_v31 = vor.u32 %v7060_v48, %v6973_v55  ;;  %v16756_v38 = vld [vmem:[#allocation51_spill] sm:$0xff]  ;;  %vm16758_vm5 = vcmask 523264  }
 0x898   : > { %vm16757_vm14 = vnez %v16756_v38  ;;  %v6852_v48 = vunpack.c.l.b16 %v6790_v5  ;;  %v7536_v5 = vpop.f32.mrf.mxu1  ;;  %v7193_v38 = vpop.permute.xlu2 %7192  ;;  %vm16768_vm1 = vmmov %vm16758_vm5 }
 0x899   : > { %v14739_v61 = vsel %vm16755_vm6, %v6967_v40, %v6978_v54  ;;  %v7094_v21 = vsel %vm16757_vm14, %v14590_v11, 0  ;;  %v14749_v40 = vpop.f32.mrf.mxu3  ;;  %vm16759_vm6 = vmmov %vm16758_vm5  ;;  %v7010_v11 = vsel %vm16551_vm4, %v14593_v53, 0  ;;  %vm16760_vm14 = vsmask.f32 7424 }
 0x89a   : > { %v6722_v49 = vpop.f32.mrf.mxu0  ;;  %v7129_v33 = vsel %vm16416_vm0, %v14739_v61, 0 }
 0x89b   : > { %v6759_v50 = vmax.f32 %v6722_v49, 0.0  ;;  %7204 = vrot.lane.b32.xlu2 %v7129_v33, %s11770_s27 }
 0x89d   : > { %v6791_v23 = vpack.c.bf16 %v6759_v50, %v6759_v50  ;;  %v7191_v26 = vpop.permute.xlu0 %7190 }
 0x89e   : > { %v7296_v55 = vsel %vm16758_vm5, %v7094_v21, %v7191_v26 }
 0x89f   : > { %v6853_v54 = vunpack.c.l.b16 %v6791_v23  ;;  %7654 = vmatmul.bf16.gmra.mxu2 %v7296_v55 }
 0x8a0   : > { %v7538_v63 = vpop.f32.mrf.mxu1 }
 0x8a1   : > { %v6868_v28 = vpack.c.b16 %v6853_v54, %v6852_v48  ;;  %v14760_v54 = vpop.f32.mrf.mxu3 }
 0x8a2   : > { %v6725_v30 = vpop.f32.mrf.mxu0 }
 0x8a3   : > { %v6760_v7 = vmax.f32 %v6725_v30, 0.0  ;;  %7158 = vrot.lane.b32.xlu2 %v6867_v51, %s11770_s27  ;;  %11210 = vmatmul.msk.bf16.gmra.mxu3 %vm16759_vm6, %v6868_v28  ;;  %v6981_v49 = vshrl.u32 %v6868_v28, 16  ;;  %v6984_v41 = vshll.u32 %v6868_v28, 16  ;;  %vm16761_vm6 = vsmask.f32 256 }
 0x8a5   : > { %v6792_v33 = vpack.c.bf16 %v6760_v7, %v6760_v7  ;;  %v7145_v50 = vpop.permute.xlu0 %7144  ;;  %v6983_v26 = vrot.slane %v6981_v49, 7  ;;  %v7063_v21 = vrot.slane %v6984_v41, 1 }
 0x8a6   : > { %v7236_v23 = vsel %vm16758_vm5, %v7010_v11, %v7145_v50 }
 0x8a7   : > { %v7020_v55 = vunpack.c.l.b16 %v6792_v33  ;;  %7570 = vmatmul.bf16.gmra.mxu1 %v7236_v23  ;;  %v6986_v30 = vor.u32 %v6984_v41, %v6983_v26  ;;  %v14758_v51 = vsel %vm16760_vm14, %v7062_v31, %v7063_v21  ;;  %v7065_v48 = vor.u32 %v7063_v21, %v6981_v49  ;;  %v16762_v49 = vld [vmem:[#allocation52_spill] sm:$0xff] }
 0x8a8   : > { %vm16763_vm14 = vnez %v16762_v49 }
 0x8a9   : > { %v7021_v43 = vpack.c.b16 %v7020_v55, %v7020_v55  ;;  %v14763_v53 = vsel %vm16761_vm6, %v6975_v24, %v6986_v30  ;;  %v7095_v21 = vsel %vm16763_vm14, %v14610_v58, 0  ;;  %vm16764_vm6 = vsmask.f32 7424  ;;  %vm16765_vm14 = vmmov %vm16758_vm5 }
 0x8aa   : > { %v6727_v7 = vpop.f32.mrf.mxu0  ;;  %v7625_v44 = vpop.f32.mrf.mxu2  ;;  %v7130_v11 = vsel %vm16424_vm13, %v14763_v53, 0  ;;  %v7300_v23 = vsel %vm16758_vm5, %v7095_v21, %v7193_v38  ;;  %v7011_v58 = vsel %vm16729_vm10, %v14613_v35, 0  ;;  %vm16770_vm10 = vmmov %vm16768_vm1 }
 0x8ab   : > { %v7067_v33 = vshll.u32 %v7021_v43, 16  ;;  %v6761_v50 = vmax.f32 %v6727_v7, 0.0  ;;  %7206 = vrot.lane.b32.xlu1 %v7130_v11, %s11770_s27  ;;  %v7626_v30 = vadd.f32 %v7625_v44, %v7536_v5  ;;  %v14776_v7 = vpop.f32.mrf.mxu3  ;;  %v7147_v11 = vpop.permute.xlu2 %7146 }
 0x8ad   : > { %v7069_v31 = vrot.slane %v7067_v33, 1  ;;  %v6793_v41 = vpack.c.bf16 %v6761_v50, %v6761_v50  ;;  %v7715_v50 = vadd.f32 %v14667_v57, %v7626_v30  ;;  %v7541_v57 = vpop.f32.mrf.mxu1 }
 0x8af   : > { %v7105_v24 = vunpack.c.l.b16 %v6793_v41  ;;  %7659 = vmatmul.bf16.gmra.mxu2 %v7300_v23  ;;  %v14774_v15 = vsel %vm16764_vm6, %v7065_v48, %v7069_v31  ;;  %v7794_v48 = vmax.f32 %v7715_v50, 0.0  ;;  %vm16766_vm6 = vsmask.f32 256 }
 0x8b1   : > { %v7106_v22 = vpack.c.b16 %v7105_v24, %v7020_v55  ;;  %v7240_v55 = vsel %vm16758_vm5, %v7011_v58, %v7147_v11  ;;  %vm16769_vm5 = vnez %v16211_v19  ;;  %v7012_v11 = vsel %vm12526_vm3, %v14625_v52, 0 }
 0x8b2   : > { %v7627_v43 = vpop.f32.mrf.mxu2 }
 0x8b3   : > { %v7108_v33 = vshrl.u32 %v7106_v22, 16  ;;  %v7628_v14 = vadd.f32 %v7627_v43, %v7538_v63  ;;  %7160 = vrot.lane.b32.xlu1 %v6868_v28, %s11770_s27  ;;  %11211 = vmatmul.msk.bf16.gmra.mxu3 %vm16765_vm14, %v7106_v22  ;;  %v7111_v5 = vshll.u32 %v7106_v22, 16  ;;  %vm16767_vm14 = vnez %v16208_v9 }
 0x8b4   : > { %v7096_v22 = vsel %vm16769_vm5, %v14622_v17, 0  ;;  %vm16773_vm5 = vmmov %vm16768_vm1 }
 0x8b5   : > { %v7717_v44 = vadd.f32 %v14681_v3, %v7628_v14  ;;  %v7110_v38 = vrot.slane %v7108_v33, 7  ;;  %v7543_v24 = vpop.f32.mrf.mxu1 }
 0x8b7   : > { %v7795_v31 = vmax.f32 %v7717_v44, 0.0  ;;  %7575 = vmatmul.bf16.gmra.mxu1 %v7240_v55  ;;  %v7113_v41 = vor.u32 %v7111_v5, %v7110_v38 }
 0x8b9   : > { %v7826_v63 = vpack.c.bf16 %v7795_v31, %v7794_v48  ;;  %v7114_v28 = vsel %vm16766_vm6, %v6983_v26, %v7113_v41  ;;  %vm16772_vm6 = vnez %v16215_v12  ;;  %v14809_v31 = vpop.f32.mrf.mxu3 }
 0x8ba   : > { %v7630_v21 = vpop.f32.mrf.mxu2  ;;  %v7131_v23 = vsel %vm16767_vm14, %v7114_v28, 0 }
 0x8bb   : > { %11236 = vmatmul.msk.bf16.vlgmr.msrb.gmra.mxu0 %vm16768_vm1, %v7826_v63  ;;  %7208 = vrot.lane.b32.xlu0 %v7131_v23, %s11770_s27  ;;  %v7631_v3 = vadd.f32 %v7630_v21, %v7541_v57 }
 0x8bd   : > { %v7195_v14 = vpop.permute.xlu1 %7194  ;;  %v7720_v26 = vadd.f32 %v14694_v34, %v7631_v3  ;;  %v7097_v34 = vsel %vm16772_vm6, %v14634_v36, 0  ;;  %v7546_v52 = vpop.f32.mrf.mxu1  ;;  %vm16775_vm6 = vmmov %vm16768_vm1 }
 0x8be   : > { %v7304_v35 = vsel %vm16770_vm10, %v7096_v22, %v7195_v14  ;;  %vm16771_vm10 = vmmov %vm16768_vm1  ;;  %v7014_v22 = vsel %vm12637_vm2, %v14657_v56, 0 }
 0x8bf   : > { %7664 = vmatmul.bf16.gmra.mxu2 %v7304_v35  ;;  %v7796_v44 = vmax.f32 %v7720_v26, 0.0 }
 0x8c1   : > { %v14816_v21 = vpop.f32.mrf.mxu3 }
 0x8c2   : > { %v7632_v30 = vpop.f32.mrf.mxu2 }
 0x8c3   : > { %v7633_v43 = vadd.f32 %v7632_v30, %v7543_v24 }
 0x8c5   : > { %v7722_v33 = vadd.f32 %v14712_v10, %v7633_v43  ;;  %v7149_v50 = vpop.permute.xlu1 %7148  ;;  %v7013_v10 = vsel %vm12578_vm11, %v14637_v1, 0  ;;  %v7199_v57 = vpop.permute.xlu2 %7198 }
 0x8c6   : > { %v7244_v58 = vsel %vm16768_vm1, %v7012_v11, %v7149_v50  ;;  %v7548_v63 = vpop.f32.mrf.mxu1 }
 0x8c7   : > { %v7797_v17 = vmax.f32 %v7722_v33, 0.0  ;;  %7580 = vmatmul.bf16.gmra.mxu1 %v7244_v58 }
 0x8c9   : > { %v7827_v38 = vpack.c.bf16 %v7797_v17, %v7796_v44  ;;  %v14822_v24 = vpop.f32.mrf.mxu3 }
 0x8cb   : > { %11237 = vmatmul.msk.bf16.gmra.mxu0 %vm16771_vm10, %v7827_v38  ;;  %vm16774_vm10 = vnez %v16219_v18 }
 0x8cc   : > { %v7098_v36 = vsel %vm16774_vm10, %v14654_v4, 0  ;;  %vm16779_vm10 = vmmov %vm16768_vm1 }
 0x8cd   : > { %v7197_v5 = vpop.permute.xlu0 %7196  ;;  %v7312_v28 = vsel %vm16775_vm6, %v7098_v36, %v7199_v57  ;;  %v7153_v14 = vpop.permute.xlu2 %7152  ;;  %vm16777_vm6 = vnez %v16223_v27 }
 0x8ce   : > { %v7308_v55 = vsel %vm16773_vm5, %v7097_v34, %v7197_v5  ;;  %vm16776_vm5 = vmmov %vm16768_vm1  ;;  %v7099_v50 = vsel %vm16777_vm6, %v14679_v16, 0 }
 0x8cf   : > { %7669 = vmatmul.bf16.gmra.mxu2 %v7308_v55  ;;  %v7252_v35 = vsel %vm16776_vm5, %v7014_v22, %v7153_v14  ;;  %vm16778_vm5 = vmmov %vm16768_vm1 }
 0x8d1   : > { %v14831_v5 = vpop.f32.mrf.mxu3 }
 0x8d5   : > { %v7151_v48 = vpop.permute.xlu0 %7150 }
 0x8d6   : > { %v7248_v41 = vsel %vm16768_vm1, %v7013_v10, %v7151_v48 }
 0x8d7   : > { %7585 = vmatmul.bf16.gmra.mxu1 %v7248_v41 }
 0x8df   : > { %7674 = vmatmul.bf16.gmra.mxu2 %v7312_v28  ;;  %v14842_v28 = vpop.f32.mrf.mxu3 }
 0x8e2   : > { %v7635_v23 = vpop.f32.mrf.mxu2 }
 0x8e3   : > { %v7636_v3 = vadd.f32 %v7635_v23, %v7546_v52 }
 0x8e4   : > { %v7551_v1 = vpop.f32.mrf.mxu1 }
 0x8e5   : > { %v7725_v4 = vadd.f32 %v14729_v20, %v7636_v3  ;;  %v7016_v3 = vsel %vm16416_vm0, %v14706_v13, 0  ;;  %v11696_v13 = vld [vmem:[%s15686_s2 + $0x130] sm:$0xff] }
 0x8e7   : > { %7590 = vmatmul.bf16.gmra.mxu1 %v7252_v35  ;;  %v7798_v58 = vmax.f32 %v7725_v4, 0.0 }
 0x8ea   : > { %v7637_v30 = vpop.f32.mrf.mxu2 }
 0x8eb   : > { %v7638_v26 = vadd.f32 %v7637_v30, %v7548_v63 }
 0x8ec   : > { %v7553_v43 = vpop.f32.mrf.mxu1 }
 0x8ed   : > { %v7727_v11 = vadd.f32 %v14749_v40, %v7638_v26  ;;  %v7201_v33 = vpop.permute.xlu1 %7200  ;;  %v7015_v40 = vsel %vm16228_vm15, %v14684_v25, 0 }
 0x8ee   : > { %v7316_v56 = vsel %vm16768_vm1, %v7099_v50, %v7201_v33  ;;  %vm16780_vm1 = vnez %v16226_v32 }
 0x8ef   : > { %v7799_v44 = vmax.f32 %v7727_v11, 0.0  ;;  %7679 = vmatmul.bf16.gmra.mxu2 %v7316_v56  ;;  %v7100_v36 = vsel %vm16780_vm1, %v14703_v39, 0  ;;  %v11704_v39 = vld [vmem:[%s15687_s3 + $0x2b0] sm:$0xff]  ;;  %v14862_v11 = vpop.f32.mrf.mxu3  ;;  %vm16785_vm1 = vmmov %vm16778_vm5 }
 0x8f1   : > { %v7828_v17 = vpack.c.bf16 %v7799_v44, %v7798_v58  ;;  %v11702_v44 = vld [vmem:[%s15687_s3 + $0x2a0] sm:$0xff] }
 0x8f2   : > { %v7640_v38 = vpop.f32.mrf.mxu2 }
 0x8f3   : > { %11238 = vmatmul.msk.bf16.gmra.mxu0 %vm16778_vm5, %v7828_v17  ;;  %v7641_v16 = vadd.f32 %v7640_v38, %v7551_v1 }
 0x8f4   : > { %v7556_v20 = vpop.f32.mrf.mxu1 }
 0x8f5   : > { %v7155_v34 = vpop.permute.xlu1 %7154  ;;  %v7730_v10 = vadd.f32 %v14760_v54, %v7641_v16  ;;  %v11705_v54 = vld [vmem:[%s15687_s3 + $0x2b8] sm:$0xff]  ;;  %v7205_v33 = vpop.permute.xlu2 %7204 }
 0x8f6   : > { %v7256_v55 = vsel %vm16779_vm10, %v7015_v40, %v7155_v34  ;;  %9107 = vmatpush.bf16.msrb.mxu2 %v11705_v54  ;;  %vm16781_vm10 = vmmov %vm16778_vm5  ;;  %v11701_v16 = vld [vmem:[%s15687_s3 + $0x298] sm:$0xff] }
 0x8f7   : > { %7595 = vmatmul.bf16.gmra.mxu1 %v7256_v55  ;;  %v7800_v23 = vmax.f32 %v7730_v10, 0.0  ;;  %v11695_v55 = vld [vmem:[%s15686_s2 + $0x128] sm:$0xff] }
 0x8fa   : > { %v7642_v52 = vpop.f32.mrf.mxu2  ;;  %9108 = vmatpush.bf16.msrb.mxu2 %v11704_v39 }
 0x8fb   : > { %v7643_v48 = vadd.f32 %v7642_v52, %v7553_v43  ;;  %v11703_v43 = vld [vmem:[%s15687_s3 + $0x2a8] sm:$0xff]  ;;  %v14882_v52 = vpop.f32.mrf.mxu3 }
 0x8fc   : > { %v7558_v41 = vpop.f32.mrf.mxu1 }
 0x8fd   : > { %v7732_v57 = vadd.f32 %v14776_v7, %v7643_v48  ;;  %v7203_v63 = vpop.permute.xlu0 %7202  ;;  %v11697_v7 = vld [vmem:[%s15686_s2 + $0x138] sm:$0xff]  ;;  %v7159_v10 = vpop.permute.xlu2 %7158  ;;  %v11694_v48 = vld [vmem:[%s15686_s2 + $0x120] sm:$0xff] }
 0x8fe   : > { %v7320_v25 = vsel %vm16778_vm5, %v7100_v36, %v7203_v63  ;;  %8221 = vmatpush.bf16.msrb.mxu1 %v11697_v7  ;;  %9109 = vmatpush.bf16.msrb.mxu2 %v11703_v43  ;;  %v7017_v63 = vsel %vm16424_vm13, %v14739_v61, 0  ;;  %v11692_v7 = vld [vmem:[%s15686_s2 + $0x110] sm:$0xff] }
 0x8ff   : > { %v7801_v14 = vmax.f32 %v7732_v57, 0.0  ;;  %7684 = vmatmul.bf16.gmra.mxu2 %v7320_v25  ;;  %v7264_v36 = vsel %vm16778_vm5, %v7017_v63, %v7159_v10 }
 0x901   : > { %v7829_v1 = vpack.c.bf16 %v7801_v14, %v7800_v23  ;;  %v11693_v23 = vld [vmem:[%s15686_s2 + $0x118] sm:$0xff]  ;;  %v11699_v14 = vld [vmem:[%s15687_s3 + $0x288] sm:$0xff] }
 0x902   : > { %v7645_v22 = vpop.f32.mrf.mxu2  ;;  %8222 = vmatpush.bf16.msrb.mxu1 %v11696_v13  ;;  %9110 = vmatpush.bf16.msrb.mxu2 %v11702_v44 }
 0x903   : > { %11239 = vmatmul.msk.bf16.gmra.mxu0 %vm16781_vm10, %v7829_v1  ;;  %v7646_v26 = vadd.f32 %v7645_v22, %v7556_v20  ;;  %vm16782_vm10 = vnez %v16231_v42  ;;  %v11698_v22 = vld [vmem:[%s15687_s3 + $0x280] sm:$0xff]  ;;  %v7751_v39 = vpop.f32.mrf.mxu3 }
 0x904   : > { %v7561_v35 = vpop.f32.mrf.mxu1  ;;  %v7101_v20 = vsel %vm16782_vm10, %v14736_v60, 0  ;;  %vm16783_vm10 = vmmov %vm16778_vm5 }
 0x905   : > { %v7157_v30 = vpop.permute.xlu0 %7156  ;;  %v7735_v56 = vadd.f32 %v14809_v31, %v7646_v26  ;;  %v7324_v31 = vsel %vm16778_vm5, %v7101_v20, %v7205_v33  ;;  %v11691_v33 = vld [vmem:[%s15686_s2 + $0x108] sm:$0xff] }
 0x906   : > { %v7260_v4 = vsel %vm16778_vm5, %v7016_v3, %v7157_v30  ;;  %8223 = vmatpush.bf16.msrb.mxu1 %v11695_v55  ;;  %9111 = vmatpush.bf16.msrb.mxu2 %v11701_v16 }
 0x907   : > { %7600 = vmatmul.bf16.gmra.mxu1 %v7260_v4  ;;  %v7802_v40 = vmax.f32 %v7735_v56, 0.0 }
 0x90a   : > { %v7647_v50 = vpop.f32.mrf.mxu2  ;;  %8224 = vmatpush.bf16.msrb.mxu1 %v11694_v48 }
 0x90b   : > { %v7648_v58 = vadd.f32 %v7647_v50, %v7558_v41  ;;  %v11700_v41 = vld [vmem:[%s15687_s3 + $0x290] sm:$0xff]  ;;  %v7754_v44 = vpop.f32.mrf.mxu3 }
 0x90c   : > { %v7563_v17 = vpop.f32.mrf.mxu1  ;;  %9112 = vmatpush.bf16.msrb.mxu2 %v11700_v41 }
 0x90d   : > { %v7737_v38 = vadd.f32 %v14816_v21, %v7648_v58  ;;  %v7018_v58 = vsel %vm16767_vm14, %v14763_v53, 0  ;;  %vm16858_vm14 = vsmask.f32 256 }
 0x90e   : > { %8225 = vmatpush.bf16.msrb.mxu1 %v11693_v23 }
 0x90f   : > { %v7803_v34 = vmax.f32 %v7737_v38, 0.0  ;;  %7689 = vmatmul.bf16.gmra.mxu2 %v7324_v31 }
 0x910   : > { %9113 = vmatpush.bf16.msrb.mxu2 %v11699_v14 }
 0x911   : > { %v7830_v21 = vpack.c.bf16 %v7803_v34, %v7802_v40 }
 0x912   : > { %v7650_v60 = vpop.f32.mrf.mxu2  ;;  %8226 = vmatpush.bf16.msrb.mxu1 %v11692_v7 }
 0x913   : > { %11240 = vmatmul.msk.bf16.gmra.mxu0 %vm16783_vm10, %v7830_v21  ;;  %v7651_v25 = vadd.f32 %v7650_v60, %v7561_v35  ;;  %vm16784_vm10 = vnez %v16237_v59  ;;  %v7756_v48 = vpop.f32.mrf.mxu3 }
 0x914   : > { %v7566_v57 = vpop.f32.mrf.mxu1  ;;  %v7102_v4 = vsel %vm16784_vm10, %v14758_v51, 0  ;;  %9114 = vmatpush.bf16.msrb.mxu2 %v11698_v22  ;;  %v11690_v51 = vld [vmem:[%s15686_s2 + $0x100] sm:$0xff] }
 0x915   : > { %v7740_v1 = vadd.f32 %v14822_v24, %v7651_v25 }
 0x916   : > { %8227 = vmatpush.bf16.msrb.mxu1 %v11691_v33 }
 0x917   : > { %7605 = vmatmul.bf16.gmra.mxu1 %v7264_v36  ;;  %v7804_v26 = vmax.f32 %v7740_v1, 0.0 }
 0x91a   : > { %v7652_v54 = vpop.f32.mrf.mxu2  ;;  %8228 = vmatpush.bf16.msrb.mxu1 %v11690_v51 }
 0x91b   : > { %v7653_v61 = vadd.f32 %v7652_v54, %v7563_v17  ;;  %v7759_v25 = vpop.f32.mrf.mxu3 }
 0x91c   : > { %v7568_v35 = vpop.f32.mrf.mxu1 }
 0x91d   : > { %v7742_v3 = vadd.f32 %v14831_v5, %v7653_v61  ;;  %v7207_v30 = vpop.permute.xlu1 %7206 }
 0x91e   : > { %v7328_v24 = vsel %vm16778_vm5, %v7102_v4, %v7207_v30  ;;  %vm16786_vm5 = vmmov %vm16785_vm1  ;;  %v16790_v4 = vld [vmem:[#allocation53_spill] sm:$0xff] }
 0x91f   : > { %v7805_v43 = vmax.f32 %v7742_v3, 0.0  ;;  %7694 = vmatmul.bf16.gmra.mxu2 %v7328_v24  ;;  %vm16788_vm10 = vmmov %vm16786_vm5 }
 0x921   : > { %v7831_v50 = vpack.c.bf16 %v7805_v43, %v7804_v26  ;;  %v16791_v26 = vld [vmem:[#allocation54_spill] sm:$0xff] }
 0x922   : > { %v7655_v56 = vpop.f32.mrf.mxu2 }
 0x923   : > { %11241 = vmatmul.msk.bf16.gmra.mxu0 %vm16785_vm1, %v7831_v50  ;;  %v7656_v38 = vadd.f32 %v7655_v56, %v7566_v57  ;;  %vm16787_vm1 = vnez %v16241_v29 }
 0x924   : > { %v7571_v5 = vpop.f32.mrf.mxu1  ;;  %v7103_v21 = vsel %vm16787_vm1, %v14774_v15, 0 }
 0x925   : > { %v7161_v13 = vpop.permute.xlu1 %7160  ;;  %v7745_v31 = vadd.f32 %v14842_v28, %v7656_v38 }
 0x926   : > { %v7268_v17 = vsel %vm16786_vm5, %v7018_v58, %v7161_v13 }
 0x927   : > { %7610 = vmatmul.bf16.gmra.mxu1 %v7268_v17  ;;  %v7806_v60 = vmax.f32 %v7745_v31, 0.0 }
 0x92a   : > { %v7657_v20 = vpop.f32.mrf.mxu2 }
 0x92b   : > { %v7658_v40 = vadd.f32 %v7657_v20, %v7568_v35 }
 0x92c   : > { %v7573_v34 = vpop.f32.mrf.mxu1 }
 0x92d   : > { %v7747_v55 = vadd.f32 %v14862_v11, %v7658_v40  ;;  %v7209_v16 = vpop.permute.xlu0 %7208 }
 0x92e   : > { %v7332_v53 = vsel %vm16788_vm10, %v7103_v21, %v7209_v16  ;;  %vm16789_vm10 = vnez %v16108_v62  ;;  %v16792_v16 = vld [vmem:[#allocation40_spill] sm:$0xff] }
 0x92f   : > { %v7807_v10 = vmax.f32 %v7747_v55, 0.0  ;;  %7699 = vmatmul.bf16.gmra.mxu2 %v7332_v53  ;;  %v16793_v53 = vld [vmem:[#allocation4_spill] sm:$0xff] }
 0x931   : > { %v7832_v41 = vpack.c.bf16 %v7807_v10, %v7806_v60 }
 0x932   : > { %v7660_v57 = vpop.f32.mrf.mxu2 }
 0x933   : > { %11242 = vmatmul.msk.bf16.gmra.mxu0 %vm16786_vm5, %v7832_v41  ;;  %v7661_v63 = vadd.f32 %v7660_v57, %v7571_v5 }
 0x934   : > { %v7576_v28 = vpop.f32.mrf.mxu1 }
 0x935   : > { %v7750_v23 = vadd.f32 %v14882_v52, %v7661_v63  ;;  %v7761_v52 = vpop.f32.mrf.mxu3 }
 0x937   : > { %v7808_v1 = vmax.f32 %v7750_v23, 0.0 }
 0x938   : > { %v7932_v36 = vpop.f32.mrf.mxu0 }
 0x939   : > { %v8012_v61 = vmax.f32 %v7932_v36, 0.0 }
 0x93a   : > { %v7662_v11 = vpop.f32.mrf.mxu2 }
 0x93b   : > { %v7663_v14 = vadd.f32 %v7662_v11, %v7573_v34  ;;  %v14936_v24 = vadd.f32 %v8012_v61, %v16790_v4 }
 0x93c   : > { %v7578_v54 = vpop.f32.mrf.mxu1 }
 0x93d   : > { %v7752_v15 = vadd.f32 %v7751_v39, %v7663_v14  ;;  %v7764_v13 = vpop.f32.mrf.mxu3 }
 0x93f   : > { %v7809_v7 = vmax.f32 %v7752_v15, 0.0  ;;  %11421 = vmatmul.msk.bf16.vlgmr.msrb.gmra.mxu2 %vm16789_vm10, %v12449_v2  ;;  %vm16794_vm10 = vmmov %vm16786_vm5 }
 0x940   : > { %v7934_v22 = vpop.f32.mrf.mxu0 }
 0x941   : > { %v7833_v35 = vpack.c.bf16 %v7809_v7, %v7808_v1  ;;  %v8013_v3 = vmax.f32 %v7934_v22, 0.0 }
 0x942   : > { %v7665_v30 = vpop.f32.mrf.mxu2 }
 0x943   : > { %v14939_v43 = vadd.f32 %v8013_v3, %v16791_v26  ;;  %11243 = vmatmul.msk.bf16.gmra.mxu0 %vm16786_vm5, %v7833_v35  ;;  %v7666_v50 = vadd.f32 %v7665_v30, %v7576_v28 }
 0x944   : > { %v7581_v39 = vpop.f32.mrf.mxu1 }
 0x945   : > { %v8140_v33 = vpack.c.bf16 %v14939_v43, %v14936_v24  ;;  %v7755_v56 = vadd.f32 %v7754_v44, %v7666_v50  ;;  %v7766_v41 = vpop.f32.mrf.mxu3 }
 0x947   : > { %8229 = vmatmul.bf16.vlgmr.msrb.gmra.mxu1 %v8140_v33  ;;  %v7810_v17 = vmax.f32 %v7755_v56, 0.0 }
 0x948   : > { %v7937_v62 = vpop.f32.mrf.mxu0 }
 0x949   : > { %v8014_v38 = vmax.f32 %v7937_v62, 0.0 }
 0x94a   : > { %v7667_v2 = vpop.f32.mrf.mxu2 }
 0x94b   : > { %v7668_v51 = vadd.f32 %v7667_v2, %v7578_v54  ;;  %v14945_v21 = vadd.f32 %v8014_v38, %v16792_v16  ;;  %v16796_v38 = vld [vmem:[#allocation5_spill] sm:$0xff] }
 0x94c   : > { %v7583_v5 = vpop.f32.mrf.mxu1 }
 0x94d   : > { %v7757_v58 = vadd.f32 %v7756_v48, %v7668_v51  ;;  %v7769_v15 = vpop.f32.mrf.mxu3 }
 0x94f   : > { %v7811_v20 = vmax.f32 %v7757_v58, 0.0 }
 0x950   : > { %v7939_v31 = vpop.f32.mrf.mxu0 }
 0x951   : > { %v7834_v40 = vpack.c.bf16 %v7811_v20, %v7810_v17  ;;  %v8015_v34 = vmax.f32 %v7939_v31, 0.0  ;;  %v16797_v31 = vld [vmem:[#allocation6_spill] sm:$0xff] }
 0x952   : > { %v7670_v55 = vpop.f32.mrf.mxu2 }
 0x953   : > { %v14948_v60 = vadd.f32 %v8015_v34, %v16793_v53  ;;  %11244 = vmatmul.msk.bf16.gmra.mxu0 %vm16794_vm10, %v7834_v40  ;;  %v7671_v48 = vadd.f32 %v7670_v55, %v7581_v39  ;;  %vm16795_vm10 = vmmov %vm16786_vm5 }
 0x954   : > { %v7586_v44 = vpop.f32.mrf.mxu1 }
 0x955   : > { %v8141_v10 = vpack.c.bf16 %v14948_v60, %v14945_v21  ;;  %v7760_v28 = vadd.f32 %v7759_v25, %v7671_v48  ;;  %v7771_v30 = vpop.f32.mrf.mxu3 }
 0x957   : > { %8234 = vmatmul.bf16.gmra.mxu1 %v8141_v10  ;;  %v7812_v23 = vmax.f32 %v7760_v28, 0.0 }
 0x95a   : > { %v7672_v57 = vpop.f32.mrf.mxu2 }
 0x95b   : > { %v7673_v63 = vadd.f32 %v7672_v57, %v7583_v5 }
 0x95c   : > { %v7588_v36 = vpop.f32.mrf.mxu1 }
 0x95d   : > { %v7762_v11 = vadd.f32 %v7761_v52, %v7673_v63  ;;  %v7774_v2 = vpop.f32.mrf.mxu3 }
 0x95f   : > { %v7813_v14 = vmax.f32 %v7762_v11, 0.0 }
 0x961   : > { %v7835_v54 = vpack.c.bf16 %v7813_v14, %v7812_v23 }
 0x962   : > { %v7675_v1 = vpop.f32.mrf.mxu2 }
 0x963   : > { %11245 = vmatmul.msk.bf16.gmra.mxu0 %vm16786_vm5, %v7835_v54  ;;  %v7676_v7 = vadd.f32 %v7675_v1, %v7586_v44  ;;  %v16799_v1 = vld [vmem:[#allocation7_spill] sm:$0xff] }
 0x964   : > { %v7591_v61 = vpop.f32.mrf.mxu1 }
 0x965   : > { %v7765_v35 = vadd.f32 %v7764_v13, %v7676_v7  ;;  %v7776_v48 = vpop.f32.mrf.mxu3 }
 0x967   : > { %v7814_v39 = vmax.f32 %v7765_v35, 0.0 }
 0x96a   : > { %v7677_v22 = vpop.f32.mrf.mxu2 }
 0x96b   : > { %v7678_v3 = vadd.f32 %v7677_v22, %v7588_v36  ;;  %v16801_v22 = vld [vmem:[#allocation8_spill] sm:$0xff] }
 0x96c   : > { %v7593_v4 = vpop.f32.mrf.mxu1 }
 0x96d   : > { %v7767_v26 = vadd.f32 %v7766_v41, %v7678_v3  ;;  %v7779_v54 = vpop.f32.mrf.mxu3 }
 0x96f   : > { %v7815_v25 = vmax.f32 %v7767_v26, 0.0 }
 0x970   : > { %v7942_v33 = vpop.f32.mrf.mxu0 }
 0x971   : > { %v7836_v50 = vpack.c.bf16 %v7815_v25, %v7814_v39  ;;  %v8016_v56 = vmax.f32 %v7942_v33, 0.0 }
 0x972   : > { %v7680_v52 = vpop.f32.mrf.mxu2 }
 0x973   : > { %11246 = vmatmul.msk.bf16.gmra.mxu0 %vm16795_vm10, %v7836_v50  ;;  %v7681_v51 = vadd.f32 %v7680_v52, %v7591_v61  ;;  %v14956_v13 = vadd.f32 %v8016_v56, %v16796_v38  ;;  %vm16803_vm10 = vmmov %vm16786_vm5 }
 0x974   : > { %v7596_v62 = vpop.f32.mrf.mxu1 }
 0x975   : > { %v7770_v20 = vadd.f32 %v7769_v15, %v7681_v51 }
 0x977   : > { %v7816_v44 = vmax.f32 %v7770_v20, 0.0 }
 0x978   : > { %v7944_v5 = vpop.f32.mrf.mxu0 }
 0x979   : > { %v8017_v58 = vmax.f32 %v7944_v5, 0.0 }
 0x97a   : > { %v7682_v17 = vpop.f32.mrf.mxu2 }
 0x97b   : > { %v14959_v40 = vadd.f32 %v8017_v58, %v16797_v31  ;;  %v7683_v34 = vadd.f32 %v7682_v17, %v7593_v4  ;;  %v16804_v17 = vld [vmem:[#allocation9_spill] sm:$0xff]  ;;  %v16806_v31 = vld [vmem:[#allocation10_spill] sm:$0xff] }
 0x97c   : > { %v7598_v53 = vpop.f32.mrf.mxu1 }
 0x97d   : > { %16798 = vst [vmem:[#allocation45_spill] sm:$0xff] %v14959_v40  ;;  %v7772_v55 = vadd.f32 %v7771_v30, %v7683_v34  ;;  %v8142_v16 = vpack.c.bf16 %v14959_v40, %v14956_v13 }
 0x97f   : > { %v7817_v10 = vmax.f32 %v7772_v55, 0.0  ;;  %8239 = vmatmul.bf16.gmra.mxu1 %v8142_v16 }
 0x980   : > { %v7947_v41 = vpop.f32.mrf.mxu0 }
 0x981   : > { %v7837_v57 = vpack.c.bf16 %v7817_v10, %v7816_v44  ;;  %v8018_v63 = vmax.f32 %v7947_v41, 0.0 }
 0x982   : > { %v7685_v28 = vpop.f32.mrf.mxu2 }
 0x983   : > { %11247 = vmatmul.msk.bf16.gmra.mxu0 %vm16786_vm5, %v7837_v57  ;;  %v7686_v36 = vadd.f32 %v7685_v28, %v7596_v62  ;;  %v14965_v61 = vadd.f32 %v8018_v63, %v16799_v1  ;;  %v7781_v62 = vpop.f32.mrf.mxu3 }
 0x984   : > { %v7601_v11 = vpop.f32.mrf.mxu1 }
 0x985   : > { %16800 = vst [vmem:[#allocation52_spill] sm:$0xff] %v14965_v61  ;;  %v7775_v7 = vadd.f32 %v7774_v2, %v7686_v36  ;;  %v11717_v36 = vld [vmem:[%s15687_s3 + $0x318] sm:$0xff] }
 0x986   : > { %9289 = vmatpush.bf16.msra.mxu0 %v11717_v36 }
 0x987   : > { %v7818_v26 = vmax.f32 %v7775_v7, 0.0  ;;  %v11716_v7 = vld [vmem:[%s15687_s3 + $0x310] sm:$0xff] }
 0x988   : > { %v7949_v23 = vpop.f32.mrf.mxu0 }
 0x989   : > { %v8019_v14 = vmax.f32 %v7949_v23, 0.0 }
 0x98a   : > { %v7687_v15 = vpop.f32.mrf.mxu2  ;;  %9290 = vmatpush.bf16.msra.mxu0 %v11716_v7 }
 0x98b   : > { %v14968_v35 = vadd.f32 %v8019_v14, %v16801_v22  ;;  %v7688_v3 = vadd.f32 %v7687_v15, %v7598_v53  ;;  %v7784_v10 = vpop.f32.mrf.mxu3 }
 0x98c   : > { %v7603_v50 = vpop.f32.mrf.mxu1 }
 0x98d   : > { %16802 = vst [vmem:[#allocation53_spill] sm:$0xff] %v14968_v35  ;;  %v7777_v30 = vadd.f32 %v7776_v48, %v7688_v3  ;;  %v8143_v4 = vpack.c.bf16 %v14968_v35, %v14965_v61  ;;  %v16808_v3 = vld [vmem:[#allocation11_spill] sm:$0xff] }
 0x98f   : > { %v7819_v39 = vmax.f32 %v7777_v30, 0.0  ;;  %8244 = vmatmul.bf16.gmra.mxu1 %v8143_v4 }
 0x990   : > { %v7952_v25 = vpop.f32.mrf.mxu0 }
 0x991   : > { %v7838_v33 = vpack.c.bf16 %v7819_v39, %v7818_v26  ;;  %v8020_v56 = vmax.f32 %v7952_v25, 0.0  ;;  %v16810_v26 = vld [vmem:[#allocation12_spill] sm:$0xff] }
 0x992   : > { %v7690_v52 = vpop.f32.mrf.mxu2 }
 0x993   : > { %11248 = vmatmul.msk.bf16.gmra.mxu0 %vm16803_vm10, %v7838_v33  ;;  %v7691_v2 = vadd.f32 %v7690_v52, %v7601_v11  ;;  %v14974_v38 = vadd.f32 %v8020_v56, %v16804_v17  ;;  %v11715_v52 = vld [vmem:[%s15687_s3 + $0x308] sm:$0xff]  ;;  %vm16812_vm10 = vmmov %vm16786_vm5 }
 0x994   : > { %v7606_v16 = vpop.f32.mrf.mxu1  ;;  %9291 = vmatpush.bf16.msra.mxu0 %v11715_v52  ;;  %v16819_v52 = vld [vmem:[#allocation16_spill] sm:$0xff] }
 0x995   : > { %16805 = vst [vmem:[#allocation54_spill] sm:$0xff] %v14974_v38  ;;  %v7780_v20 = vadd.f32 %v7779_v54, %v7691_v2  ;;  %v7786_v54 = vpop.f32.mrf.mxu3 }
 0x997   : > { %v7820_v48 = vmax.f32 %v7780_v20, 0.0 }
 0x998   : > { %v7954_v51 = vpop.f32.mrf.mxu0 }
 0x999   : > { %v8021_v5 = vmax.f32 %v7954_v51, 0.0 }
 0x99a   : > { %v7692_v58 = vpop.f32.mrf.mxu2 }
 0x99b   : > { %v14977_v34 = vadd.f32 %v8021_v5, %v16806_v31  ;;  %v7693_v55 = vadd.f32 %v7692_v58, %v7603_v50  ;;  %v11714_v58 = vld [vmem:[%s15687_s3 + $0x300] sm:$0xff] }
 0x99c   : > { %v7608_v11 = vpop.f32.mrf.mxu1  ;;  %9292 = vmatpush.bf16.msra.mxu0 %v11714_v58 }
 0x99d   : > { %16807 = vst [vmem:[#allocation40_spill] sm:$0xff] %v14977_v34  ;;  %v7782_v53 = vadd.f32 %v7781_v62, %v7693_v55  ;;  %v8144_v44 = vpack.c.bf16 %v14977_v34, %v14974_v38  ;;  %v7789_v17 = vpop.f32.mrf.mxu3 }
 0x99f   : > { %v7821_v41 = vmax.f32 %v7782_v53, 0.0  ;;  %8249 = vmatmul.bf16.gmra.mxu1 %v8144_v44 }
 0x9a0   : > { %v7957_v57 = vpop.f32.mrf.mxu0 }
 0x9a1   : > { %v7839_v28 = vpack.c.bf16 %v7821_v41, %v7820_v48  ;;  %v8022_v23 = vmax.f32 %v7957_v57, 0.0  ;;  %v16813_v48 = vld [vmem:[#allocation13_spill] sm:$0xff] }
 0x9a2   : > { %v7695_v63 = vpop.f32.mrf.mxu2 }
 0x9a3   : > { %11249 = vmatmul.msk.bf16.gmra.mxu0 %vm16786_vm5, %v7839_v28  ;;  %v7696_v14 = vadd.f32 %v7695_v63, %v7606_v16  ;;  %v14989_v30 = vadd.f32 %v8022_v23, %v16808_v3  ;;  %v16815_v28 = vld [vmem:[#allocation14_spill] sm:$0xff] }
 0x9a4   : > { %v7611_v2 = vpop.f32.mrf.mxu1 }
 0x9a5   : > { %16809 = vst [vmem:[#allocation4_spill] sm:$0xff] %v14989_v30  ;;  %v7785_v4 = vadd.f32 %v7784_v10, %v7696_v14 }
 0x9a7   : > { %v7822_v62 = vmax.f32 %v7785_v4, 0.0 }
 0x9a8   : > { %v7959_v15 = vpop.f32.mrf.mxu0 }
 0x9a9   : > { %v8023_v1 = vmax.f32 %v7959_v15, 0.0 }
 0x9aa   : > { %v7697_v22 = vpop.f32.mrf.mxu2 }
 0x9ab   : > { %v14992_v39 = vadd.f32 %v8023_v1, %v16810_v26  ;;  %v7698_v25 = vadd.f32 %v7697_v22, %v7608_v11  ;;  %v7791_v11 = vpop.f32.mrf.mxu3 }
 0x9ac   : > { %v7613_v44 = vpop.f32.mrf.mxu1 }
 0x9ad   : > { %16811 = vst [vmem:[#allocation5_spill] sm:$0xff] %v14992_v39  ;;  %v7787_v33 = vadd.f32 %v7786_v54, %v7698_v25  ;;  %v8145_v50 = vpack.c.bf16 %v14992_v39, %v14989_v30 }
 0x9af   : > { %v7823_v56 = vmax.f32 %v7787_v33, 0.0  ;;  %8254 = vmatmul.bf16.gmra.mxu1 %v8145_v50  ;;  %v16817_v33 = vld [vmem:[#allocation15_spill] sm:$0xff] }
 0x9b0   : > { %v7962_v51 = vpop.f32.mrf.mxu0 }
 0x9b1   : > { %v7840_v5 = vpack.c.bf16 %v7823_v56, %v7822_v62  ;;  %v8024_v31 = vmax.f32 %v7962_v51, 0.0 }
 0x9b2   : > { %v7700_v20 = vpop.f32.mrf.mxu2 }
 0x9b3   : > { %11250 = vmatmul.msk.bf16.gmra.mxu0 %vm16812_vm10, %v7840_v5  ;;  %v7701_v55 = vadd.f32 %v7700_v20, %v7611_v2  ;;  %v15004_v41 = vadd.f32 %v8024_v31, %v16813_v48  ;;  %vm16821_vm10 = vmmov %vm16786_vm5 }
 0x9b5   : > { %16814 = vst [vmem:[#allocation6_spill] sm:$0xff] %v15004_v41  ;;  %v7790_v57 = vadd.f32 %v7789_v17, %v7701_v55 }
 0x9b7   : > { %v7824_v54 = vmax.f32 %v7790_v57, 0.0 }
 0x9b8   : > { %v7964_v16 = vpop.f32.mrf.mxu0 }
 0x9b9   : > { %v8025_v53 = vmax.f32 %v7964_v16, 0.0 }
 0x9ba   : > { %v7702_v10 = vpop.f32.mrf.mxu2 }
 0x9bb   : > { %v15007_v63 = vadd.f32 %v8025_v53, %v16815_v28  ;;  %v7703_v36 = vadd.f32 %v7702_v10, %v7613_v44 }
 0x9bd   : > { %16816 = vst [vmem:[#allocation7_spill] sm:$0xff] %v15007_v63  ;;  %v7792_v23 = vadd.f32 %v7791_v11, %v7703_v36  ;;  %v8146_v14 = vpack.c.bf16 %v15007_v63, %v15004_v41  ;;  %v16873_v41 = vld [vmem:[#allocation34_spill] sm:$0xff] }
 0x9bf   : > { %v7825_v15 = vmax.f32 %v7792_v23, 0.0  ;;  %8259 = vmatmul.bf16.gmra.mxu1 %v8146_v14 }
 0x9c0   : > { %v7967_v1 = vpop.f32.mrf.mxu0 }
 0x9c1   : > { %v7841_v7 = vpack.c.bf16 %v7825_v15, %v7824_v54  ;;  %v8026_v3 = vmax.f32 %v7967_v1, 0.0  ;;  %v16822_v54 = vld [vmem:[#allocation17_spill] sm:$0xff]  ;;  %v16824_v1 = vld [vmem:[#allocation18_spill] sm:$0xff] }
 0x9c3   : > { %11251 = vmatmul.msk.bf16.gmra.mxu0 %vm16786_vm5, %v7841_v7  ;;  %v15013_v50 = vadd.f32 %v8026_v3, %v16817_v33 }
 0x9c4   : > { %v8230_v22 = vpop.f32.mrf.mxu1 }
 0x9c5   : > { %v8310_v26 = vmax.f32 %v8230_v22, 0.0  ;;  %16818 = vst [vmem:[#allocation8_spill] sm:$0xff] %v15013_v50  ;;  %v16826_v22 = vld [vmem:[#allocation22_spill] sm:$0xff] }
 0x9c6   : > { %vm16827_vm5 = vnez %v16826_v22 }
 0x9c7   : > { %v8342_v2 = vpack.c.bf16 %v8310_v26, %v8310_v26  ;;  %v16828_v26 = vld [vmem:[#allocation23_spill] sm:$0xff] }
 0x9c8   : > { %v7969_v4 = vpop.f32.mrf.mxu0 }
 0x9c9   : > { %v8027_v25 = vmax.f32 %v7969_v4, 0.0  ;;  %v8404_v20 = vunpack.c.l.b16 %v8342_v2 }
 0x9cb   : > { %v15016_v62 = vadd.f32 %v8027_v25, %v16819_v52 }
 0x9cc   : > { %v8232_v56 = vpop.f32.mrf.mxu1 }
 0x9cd   : > { %16820 = vst [vmem:[#allocation9_spill] sm:$0xff] %v15016_v62  ;;  %v8311_v51 = vmax.f32 %v8232_v56, 0.0  ;;  %v8147_v5 = vpack.c.bf16 %v15016_v62, %v15013_v50 }
 0x9cf   : > { %v8343_v58 = vpack.c.bf16 %v8311_v51, %v8311_v51  ;;  %8264 = vmatmul.bf16.gmra.mxu1 %v8147_v5 }
 0x9d0   : > { %v7972_v17 = vpop.f32.mrf.mxu0 }
 0x9d1   : > { %v8405_v31 = vunpack.c.l.b16 %v8343_v58  ;;  %v8028_v10 = vmax.f32 %v7972_v17, 0.0 }
 0x9d3   : > { %v8434_v55 = vpack.c.b16 %v8405_v31, %v8404_v20  ;;  %v15026_v15 = vadd.f32 %v8028_v10, %v16822_v54 }
 0x9d4   : > { %v8235_v16 = vpop.f32.mrf.mxu1 }
 0x9d5   : > { %8712 = vrot.lane.b32.xlu0 %v8434_v55, %s11770_s27  ;;  %11422 = vmatmul.msk.bf16.vlgmr.msra.gmra.mxu0 %vm16821_vm10, %v8434_v55  ;;  %v8450_v53 = vshrl.u32 %v8434_v55, 16  ;;  %v8453_v44 = vshll.u32 %v8434_v55, 16  ;;  %v8312_v36 = vmax.f32 %v8235_v16, 0.0  ;;  %16823 = vst [vmem:[#allocation10_spill] sm:$0xff] %v15026_v15  ;;  %vm16829_vm10 = vnez %v16828_v26  ;;  %v16837_v26 = vld [vmem:[#allocation27_spill] sm:$0xff] }
 0x9d6   : > { %vm16838_vm1 = vnez %v16837_v26 }
 0x9d7   : > { %v8452_v48 = vrot.slane %v8450_v53, 7  ;;  %v15022_v57 = vrot.slane %v8453_v44, 1  ;;  %v8344_v33 = vpack.c.bf16 %v8312_v36, %v8312_v36 }
 0x9d8   : > { %v7974_v28 = vpop.f32.mrf.mxu0 }
 0x9d9   : > { %v8029_v11 = vmax.f32 %v7974_v28, 0.0  ;;  %v8455_v23 = vor.u32 %v8453_v44, %v8452_v48  ;;  %v8603_v14 = vor.u32 %v15022_v57, %v8450_v53  ;;  %v8406_v5 = vunpack.c.l.b16 %v8344_v33 }
 0x9db   : > { %v15029_v7 = vadd.f32 %v8029_v11, %v16824_v1  ;;  %v15033_v3 = vsel %vm16827_vm5, 0, %v8455_v23  ;;  %vm16830_vm5 = vcmask 523264   ;;  %v16832_v23 = vld [vmem:[#allocation19_spill] sm:$0xff]  ;;  %v16834_v1 = vld [vmem:[#allocation20_spill] sm:$0xff] }
 0x9dc   : > { %v8237_v4 = vpop.f32.mrf.mxu1  ;;  %v8696_v25 = vsel %vm16829_vm10, %v15033_v3, 0  ;;  %vm16831_vm10 = vsmask.f32 7424 }
 0x9dd   : > { %16825 = vst [vmem:[#allocation11_spill] sm:$0xff] %v15029_v7  ;;  %v8313_v52 = vmax.f32 %v8237_v4, 0.0  ;;  %8758 = vrot.lane.b32.xlu2 %v8696_v25, %s11770_s27  ;;  %v8148_v56 = vpack.c.bf16 %v15029_v7, %v15026_v15  ;;  %v16860_v7 = vld [vmem:[#allocation31_spill] sm:$0xff] }
 0x9df   : > { %v8345_v2 = vpack.c.bf16 %v8313_v52, %v8313_v52  ;;  %8269 = vmatmul.bf16.gmra.mxu1 %v8148_v56 }
 0x9e0   : > { %v7977_v51 = vpop.f32.mrf.mxu0 }
 0x9e1   : > { %v8407_v58 = vunpack.c.l.b16 %v8345_v2  ;;  %v8030_v55 = vmax.f32 %v7977_v51, 0.0  ;;  %v11713_v51 = vld [vmem:[%s15687_s3 + $0x2f8] sm:$0xff] }
 0x9e2   : > { %9196 = vmatpush.bf16.msrb.mxu3 %v11713_v51 }
 0x9e3   : > { %v8435_v17 = vpack.c.b16 %v8407_v58, %v8406_v5  ;;  %v15050_v54 = vadd.f32 %v8030_v55, %v16832_v23  ;;  %v16841_v58 = vld [vmem:[#allocation24_spill] sm:$0xff]  ;;  %v11712_v55 = vld [vmem:[%s15687_s3 + $0x2f0] sm:$0xff] }
 0x9e5   : > { %8714 = vrot.lane.b32.xlu2 %v8435_v17, %s11770_s27  ;;  %11423 = vmatmul.msk.bf16.gmra.mxu0 %vm16830_vm5, %v8435_v17  ;;  %v8457_v20 = vshrl.u32 %v8435_v17, 16  ;;  %v8460_v31 = vshll.u32 %v8435_v17, 16  ;;  %16833 = vst [vmem:[#allocation12_spill] sm:$0xff] %v15050_v54  ;;  %vm16836_vm5 = vsmask.f32 256 }
 0x9e6   : > { %9197 = vmatpush.bf16.msrb.mxu3 %v11712_v55  ;;  %v16845_v55 = vld [vmem:[#allocation26_spill] sm:$0xff] }
 0x9e7   : > { %v15043_v16 = vrot.slane %v8457_v20, 7  ;;  %v8604_v53 = vrot.slane %v8460_v31, 1 }
 0x9e8   : > { %v7979_v44 = vpop.f32.mrf.mxu0 }
 0x9e9   : > { %v8031_v10 = vmax.f32 %v7979_v44, 0.0  ;;  %v8462_v28 = vor.u32 %v8460_v31, %v15043_v16  ;;  %v15047_v36 = vsel %vm16831_vm10, %v8603_v14, %v8604_v53  ;;  %v8606_v11 = vor.u32 %v8604_v53, %v8457_v20 }
 0x9ea   : > { %vm16847_vm10 = vcmask 523264  }
 0x9eb   : > { %v15053_v22 = vadd.f32 %v8031_v10, %v16834_v1  ;;  %v15056_v4 = vsel %vm16836_vm5, %v8452_v48, %v8462_v28  ;;  %v16839_v48 = vld [vmem:[#allocation21_spill] sm:$0xff]  ;;  %vm16848_vm5 = vsmask.f32 7424 }
 0x9ec   : > { %v8697_v25 = vsel %vm16838_vm1, %v15056_v4, 0  ;;  %v11711_v10 = vld [vmem:[%s15687_s3 + $0x2e8] sm:$0xff] }
 0x9ed   : > { %16835 = vst [vmem:[#allocation13_spill] sm:$0xff] %v15053_v22  ;;  %8760 = vrot.lane.b32.xlu1 %v8697_v25, %s11770_s27  ;;  %v8149_v14 = vpack.c.bf16 %v15053_v22, %v15050_v54  ;;  %9198 = vmatpush.bf16.msrb.mxu3 %v11711_v10  ;;  %v11710_v25 = vld [vmem:[%s15687_s3 + $0x2e0] sm:$0xff] }
 0x9ef   : > { %8274 = vmatmul.bf16.gmra.mxu1 %v8149_v14 }
 0x9f0   : > { %v7982_v33 = vpop.f32.mrf.mxu0 }
 0x9f1   : > { %v8032_v52 = vmax.f32 %v7982_v33, 0.0  ;;  %9199 = vmatpush.bf16.msrb.mxu3 %v11710_v25 }
 0x9f3   : > { %v15068_v5 = vadd.f32 %v8032_v52, %v16839_v48  ;;  %v11709_v48 = vld [vmem:[%s15687_s3 + $0x2d8] sm:$0xff] }
 0x9f5   : > { %16840 = vst [vmem:[#allocation14_spill] sm:$0xff] %v15068_v5  ;;  %9200 = vmatpush.bf16.msrb.mxu3 %v11709_v48 }
 0x9f8   : > { %v7984_v56 = vpop.f32.mrf.mxu0 }
 0x9f9   : > { %v8033_v2 = vmax.f32 %v7984_v56, 0.0 }
 0x9fb   : > { %v15071_v17 = vadd.f32 %v8033_v2, %v16841_v58  ;;  %v16843_v58 = vld [vmem:[#allocation25_spill] sm:$0xff] }
 0x9fc   : > { %v8240_v20 = vpop.f32.mrf.mxu1 }
 0x9fd   : > { %16842 = vst [vmem:[#allocation15_spill] sm:$0xff] %v15071_v17  ;;  %v8150_v31 = vpack.c.bf16 %v15071_v17, %v15068_v5  ;;  %v8314_v44 = vmax.f32 %v8240_v20, 0.0  ;;  %v16854_v5 = vld [vmem:[#allocation29_spill] sm:$0xff] }
 0x9ff   : > { %8279 = vmatmul.bf16.gmra.mxu1 %v8150_v31  ;;  %v8346_v23 = vpack.c.bf16 %v8314_v44, %v8314_v44 }
 0xa00   : > { %v7987_v53 = vpop.f32.mrf.mxu0 }
 0xa01   : > { %v8034_v14 = vmax.f32 %v7987_v53, 0.0  ;;  %v8408_v56 = vunpack.c.l.b16 %v8346_v23 }
 0xa03   : > { %v15088_v20 = vadd.f32 %v8034_v14, %v16843_v58 }
 0xa04   : > { %v8242_v28 = vpop.f32.mrf.mxu1 }
 0xa05   : > { %v8315_v1 = vmax.f32 %v8242_v28, 0.0  ;;  %16844 = vst [vmem:[#allocation16_spill] sm:$0xff] %v15088_v20 }
 0xa07   : > { %v8347_v33 = vpack.c.bf16 %v8315_v1, %v8315_v1  ;;  %v11708_v1 = vld [vmem:[%s15687_s3 + $0x2d0] sm:$0xff] }
 0xa08   : > { %v7989_v52 = vpop.f32.mrf.mxu0  ;;  %9201 = vmatpush.bf16.msrb.mxu3 %v11708_v1 }
 0xa09   : > { %v8409_v2 = vunpack.c.l.b16 %v8347_v33  ;;  %v8035_v51 = vmax.f32 %v7989_v52, 0.0 }
 0xa0b   : > { %v8436_v31 = vpack.c.b16 %v8409_v2, %v8408_v56  ;;  %v15091_v44 = vadd.f32 %v8035_v51, %v16845_v55  ;;  %v11707_v2 = vld [vmem:[%s15687_s3 + $0x2c8] sm:$0xff]  ;;  %v16850_v55 = vld [vmem:[#allocation30_spill] sm:$0xff] }
 0xa0c   : > { %v8245_v10 = vpop.f32.mrf.mxu1  ;;  %9202 = vmatpush.bf16.msrb.mxu3 %v11707_v2  ;;  %vm16851_vm6 = vnez %v16850_v55 }
 0xa0d   : > { %16846 = vst [vmem:[#allocation17_spill] sm:$0xff] %v15091_v44  ;;  %8716 = vrot.lane.b32.xlu1 %v8436_v31, %s11770_s27  ;;  %11424 = vmatmul.msk.bf16.gmra.mxu0 %vm16847_vm10, %v8436_v31  ;;  %v8151_v53 = vpack.c.bf16 %v15091_v44, %v15088_v20  ;;  %v8465_v28 = vshrl.u32 %v8436_v31, 16  ;;  %v8468_v23 = vshll.u32 %v8436_v31, 16  ;;  %v8316_v52 = vmax.f32 %v8245_v10, 0.0  ;;  %v16852_v44 = vld [vmem:[#allocation28_spill] sm:$0xff] }
 0xa0e   : > { %vm16849_vm10 = vsmask.f32 256 }
 0xa0f   : > { %8284 = vmatmul.bf16.gmra.mxu1 %v8151_v53  ;;  %v8467_v25 = vrot.slane %v8465_v28, 7  ;;  %v8607_v14 = vrot.slane %v8468_v23, 1  ;;  %v8348_v10 = vpack.c.bf16 %v8316_v52, %v8316_v52 }
 0xa10   : > { %v7992_v33 = vpop.f32.mrf.mxu0 }
 0xa11   : > { %v8470_v56 = vor.u32 %v8468_v23, %v8467_v25  ;;  %v15104_v51 = vsel %vm16848_vm5, %v8606_v11, %v8607_v14  ;;  %v8609_v48 = vor.u32 %v8607_v14, %v8465_v28  ;;  %v11706_v11 = vld [vmem:[%s15687_s3 + $0x2c0] sm:$0xff]  ;;  %v8036_v1 = vmax.f32 %v7992_v33, 0.0 }
 0xa12   : > { %9203 = vmatpush.bf16.msrb.mxu3 %v11706_v11  ;;  %vm16856_vm5 = vcmask 523264  }
 0xa13   : > { %v15108_v58 = vsel %vm16849_vm10, %v15043_v16, %v8470_v56  ;;  %v8410_v16 = vunpack.c.l.b16 %v8348_v10  ;;  %v15118_v20 = vadd.f32 %v8036_v1, %v16852_v44  ;;  %vm16857_vm10 = vsmask.f32 7424 }
 0xa14   : > { %v8247_v31 = vpop.f32.mrf.mxu1  ;;  %v8698_v53 = vsel %vm16851_vm6, %v15108_v58, 0 }
 0xa15   : > { %v8317_v23 = vmax.f32 %v8247_v31, 0.0  ;;  %8762 = vrot.lane.b32.xlu0 %v8698_v53, %s11770_s27  ;;  %16853 = vst [vmem:[#allocation18_spill] sm:$0xff] %v15118_v20 }
 0xa17   : > { %v8349_v28 = vpack.c.bf16 %v8317_v23, %v8317_v23 }
 0xa18   : > { %v7994_v14 = vpop.f32.mrf.mxu0 }
 0xa19   : > { %v8411_v56 = vunpack.c.l.b16 %v8349_v28  ;;  %v8037_v2 = vmax.f32 %v7994_v14, 0.0 }
 0xa1b   : > { %v8437_v17 = vpack.c.b16 %v8411_v56, %v8410_v16  ;;  %v15121_v52 = vadd.f32 %v8037_v2, %v16854_v5 }
 0xa1c   : > { %v8250_v31 = vpop.f32.mrf.mxu1 }
 0xa1d   : > { %16855 = vst [vmem:[#allocation22_spill] sm:$0xff] %v15121_v52  ;;  %8718 = vrot.lane.b32.xlu0 %v8437_v17, %s11770_s27  ;;  %11425 = vmatmul.msk.bf16.gmra.mxu0 %vm16856_vm5, %v8437_v17  ;;  %v8152_v33 = vpack.c.bf16 %v15121_v52, %v15118_v20  ;;  %v8473_v53 = vshrl.u32 %v8437_v17, 16  ;;  %v8476_v23 = vshll.u32 %v8437_v17, 16  ;;  %v8318_v44 = vmax.f32 %v8250_v31, 0.0 }
 0xa1f   : > { %8289 = vmatmul.bf16.gmra.mxu1 %v8152_v33  ;;  %v8475_v10 = vrot.slane %v8473_v53, 7  ;;  %v8610_v11 = vrot.slane %v8476_v23, 1  ;;  %v8350_v20 = vpack.c.bf16 %v8318_v44, %v8318_v44 }
 0xa20   : > { %v7997_v28 = vpop.f32.mrf.mxu0 }
 0xa21   : > { %v8478_v1 = vor.u32 %v8476_v23, %v8475_v10  ;;  %v15128_v14 = vsel %vm16857_vm10, %v8609_v48, %v8610_v11  ;;  %v8612_v5 = vor.u32 %v8610_v11, %v8473_v53  ;;  %v8038_v33 = vmax.f32 %v7997_v28, 0.0  ;;  %v16862_v11 = vld [vmem:[#allocation32_spill] sm:$0xff] }
 0xa22   : > { %v8412_v23 = vunpack.c.l.b16 %v8350_v20 }
 0xa23   : > { %v15131_v16 = vsel %vm16858_vm14, %v8467_v25, %v8478_v1  ;;  %v15138_v53 = vadd.f32 %v8038_v33, %v16860_v7  ;;  %vm16864_vm14 = vmmov %vm16856_vm5 }
 0xa24   : > { %v8252_v56 = vpop.f32.mrf.mxu1  ;;  %v8699_v52 = vsel %vm16341_vm12, %v15131_v16, 0  ;;  %vm16865_vm5 = vmmov %vm16857_vm10  ;;  %vm16866_vm10 = vsmask.f32 256 }
 0xa25   : > { %v8319_v17 = vmax.f32 %v8252_v56, 0.0  ;;  %8764 = vrot.lane.b32.xlu2 %v8699_v52, %s11770_s27  ;;  %16861 = vst [vmem:[#allocation23_spill] sm:$0xff] %v15138_v53 }
 0xa27   : > { %v8351_v22 = vpack.c.bf16 %v8319_v17, %v8319_v17 }
 0xa28   : > { %v7999_v31 = vpop.f32.mrf.mxu0 }
 0xa29   : > { %v8413_v54 = vunpack.c.l.b16 %v8351_v22  ;;  %v8039_v48 = vmax.f32 %v7999_v31, 0.0 }
 0xa2b   : > { %v8438_v25 = vpack.c.b16 %v8413_v54, %v8412_v23  ;;  %v15141_v1 = vadd.f32 %v8039_v48, %v16862_v11 }
 0xa2c   : > { %v8255_v15 = vpop.f32.mrf.mxu1 }
 0xa2d   : > { %16863 = vst [vmem:[#allocation19_spill] sm:$0xff] %v15141_v1  ;;  %8720 = vrot.lane.b32.xlu2 %v8438_v25, %s11770_s27  ;;  %11426 = vmatmul.msk.bf16.gmra.mxu0 %vm16864_vm14, %v8438_v25  ;;  %v8153_v52 = vpack.c.bf16 %v15141_v1, %v15138_v53  ;;  %v8481_v28 = vshrl.u32 %v8438_v25, 16  ;;  %v8484_v44 = vshll.u32 %v8438_v25, 16  ;;  %v8320_v7 = vmax.f32 %v8255_v15, 0.0  ;;  %v16868_v25 = vld [vmem:[#allocation42_spill] sm:$0xff] }
 0xa2e   : > { %vm16869_vm14 = vnez %v16868_v25 }
 0xa2f   : > { %8294 = vmatmul.bf16.gmra.mxu1 %v8153_v52  ;;  %v8483_v22 = vrot.slane %v8481_v28, 7  ;;  %v8613_v20 = vrot.slane %v8484_v44, 1  ;;  %v8667_v52 = vsel %vm16869_vm14, 0, %v15022_v57  ;;  %v8352_v1 = vpack.c.bf16 %v8320_v7, %v8320_v7  ;;  %v16875_v7 = vld [vmem:[#allocation35_spill] sm:$0xff] }
 0xa30   : > { %v8002_v56 = vpop.f32.mrf.mxu0 }
 0xa31   : > { %v8486_v17 = vor.u32 %v8484_v44, %v8483_v22  ;;  %v15148_v54 = vsel %vm16865_vm5, %v8612_v5, %v8613_v20  ;;  %v8615_v33 = vor.u32 %v8613_v20, %v8481_v28  ;;  %v8040_v15 = vmax.f32 %v8002_v56, 0.0  ;;  %v16870_v44 = vld [vmem:[#allocation44_spill] sm:$0xff] }
 0xa32   : > { %vm16871_vm5 = vnez %v16870_v44  ;;  %v8414_v62 = vunpack.c.l.b16 %v8352_v1 }
 0xa33   : > { %v15151_v31 = vsel %vm16866_vm10, %v8475_v10, %v8486_v17  ;;  %v8668_v28 = vsel %vm16871_vm5, %v8667_v52, 0  ;;  %vm16872_vm10 = vcmask 523264   ;;  %v15164_v25 = vadd.f32 %v8040_v15, %v16873_v41 }
 0xa34   : > { %v8257_v23 = vpop.f32.mrf.mxu1  ;;  %v8700_v11 = vsel %vm16352_vm9, %v15151_v31, 0  ;;  %vm16877_vm14 = vmmov %vm16872_vm10  ;;  %vm16878_vm5 = vsmask.f32 7424 }
 0xa35   : > { %v8321_v53 = vmax.f32 %v8257_v23, 0.0  ;;  %8766 = vrot.lane.b32.xlu1 %v8700_v11, %s11770_s27  ;;  %16874 = vst [vmem:[#allocation20_spill] sm:$0xff] %v15164_v25 }
 0xa37   : > { %v8353_v5 = vpack.c.bf16 %v8321_v53, %v8321_v53  ;;  %v8759_v10 = vpop.permute.xlu2 %8758 }
 0xa38   : > { %v8852_v20 = vsel %vm16872_vm10, %v8668_v28, %v8759_v10  ;;  %v8004_v17 = vpop.f32.mrf.mxu0  ;;  %vm16879_vm10 = vsmask.f32 256 }
 0xa39   : > { %v8415_v50 = vunpack.c.l.b16 %v8353_v5  ;;  %v8041_v63 = vmax.f32 %v8004_v17, 0.0  ;;  %9204 = vmatmul.bf16.vlgmr.msrb.gmra.mxu3 %v8852_v20 }
 0xa3b   : > { %v8439_v57 = vpack.c.b16 %v8415_v50, %v8414_v62  ;;  %v15167_v23 = vadd.f32 %v8041_v63, %v16875_v7  ;;  %v8584_v7 = vsel %vm16838_vm1, %v15033_v3, 0  ;;  %vm16885_vm1 = vmmov %vm16877_vm14 }
 0xa3c   : > { %v8260_v56 = vpop.f32.mrf.mxu1 }
 0xa3d   : > { %16876 = vst [vmem:[#allocation27_spill] sm:$0xff] %v15167_v23  ;;  %8722 = vrot.lane.b32.xlu1 %v8439_v57, %s11770_s27  ;;  %11427 = vmatmul.msk.bf16.gmra.mxu0 %vm16877_vm14, %v8439_v57  ;;  %v8154_v53 = vpack.c.bf16 %v15167_v23, %v15164_v25  ;;  %v8489_v11 = vshrl.u32 %v8439_v57, 16  ;;  %v8492_v1 = vshll.u32 %v8439_v57, 16  ;;  %v8322_v41 = vmax.f32 %v8260_v56, 0.0  ;;  %v16881_v23 = vld [vmem:[#allocation37_spill] sm:$0xff] }
 0xa3f   : > { %8299 = vmatmul.bf16.gmra.mxu1 %v8154_v53  ;;  %v8491_v52 = vrot.slane %v8489_v11, 7  ;;  %v8616_v5 = vrot.slane %v8492_v1, 1  ;;  %v8354_v17 = vpack.c.bf16 %v8322_v41, %v8322_v41 }
 0xa40   : > { %v8007_v44 = vpop.f32.mrf.mxu0 }
 0xa41   : > { %v8494_v15 = vor.u32 %v8492_v1, %v8491_v52  ;;  %v15174_v50 = vsel %vm16878_vm5, %v8615_v33, %v8616_v5  ;;  %v8618_v63 = vor.u32 %v8616_v5, %v8489_v11  ;;  %v8042_v56 = vmax.f32 %v8007_v44, 0.0 }
 0xa42   : > { %v8416_v1 = vunpack.c.l.b16 %v8354_v17 }
 0xa43   : > { %v15177_v62 = vsel %vm16879_vm10, %v8483_v22, %v8494_v15  ;;  %v15188_v25 = vadd.f32 %v8042_v56, %v16881_v23 }
 0xa44   : > { %v8262_v28 = vpop.f32.mrf.mxu1  ;;  %v8701_v20 = vsel %vm16362_vm7, %v15177_v62, 0 }
 0xa45   : > { %v8323_v57 = vmax.f32 %v8262_v28, 0.0  ;;  %8768 = vrot.lane.b32.xlu0 %v8701_v20, %s11770_s27  ;;  %16882 = vst [vmem:[#allocation21_spill] sm:$0xff] %v15188_v25  ;;  %v16883_v28 = vld [vmem:[#allocation38_spill] sm:$0xff] }
 0xa47   : > { %v8355_v33 = vpack.c.bf16 %v8323_v57, %v8323_v57  ;;  %v8713_v53 = vpop.permute.xlu0 %8712 }
 0xa48   : > { %v8009_v11 = vpop.f32.mrf.mxu0  ;;  %v8792_v22 = vsel %vm16877_vm14, %v8584_v7, %v8713_v53  ;;  %vm16887_vm14 = vmmov %vm16885_vm1 }
 0xa49   : > { %v8417_v5 = vunpack.c.l.b16 %v8355_v33  ;;  %v8043_v15 = vmax.f32 %v8009_v11, 0.0  ;;  %9120 = vmatmul.bf16.gmra.mxu2 %v8792_v22 }
 0xa4b   : > { %v8440_v41 = vpack.c.b16 %v8417_v5, %v8416_v1  ;;  %v15191_v20 = vadd.f32 %v8043_v15, %v16883_v28  ;;  %v8715_v5 = vpop.permute.xlu2 %8714 }
 0xa4c   : > { %v8265_v39 = vpop.f32.mrf.mxu1 }
 0xa4d   : > { %16884 = vst [vmem:[#allocation24_spill] sm:$0xff] %v15191_v20  ;;  %8724 = vrot.lane.b32.xlu0 %v8440_v41, %s11770_s27  ;;  %11428 = vmatmul.msk.bf16.gmra.mxu0 %vm16885_vm1, %v8440_v41  ;;  %v8155_v3 = vpack.c.bf16 %v15191_v20, %v15188_v25  ;;  %v8497_v26 = vshrl.u32 %v8440_v41, 16  ;;  %v8500_v44 = vshll.u32 %v8440_v41, 16  ;;  %v8324_v7 = vmax.f32 %v8265_v39, 0.0 }
 0xa4e   : > { %v8585_v39 = vsel %vm16851_vm6, %v15056_v4, 0  ;;  %vm16890_vm6 = vmmov %vm16885_vm1 }
 0xa4f   : > { %8304 = vmatmul.bf16.gmra.mxu1 %v8155_v3  ;;  %v8499_v17 = vrot.slane %v8497_v26, 7  ;;  %v8619_v57 = vrot.slane %v8500_v44, 1  ;;  %v8356_v15 = vpack.c.bf16 %v8324_v7, %v8324_v7  ;;  %v8796_v28 = vsel %vm16887_vm14, %v8585_v39, %v8715_v5 }
 0xa50   : > { %vm16892_vm14 = vsmask.f32 256 }
 0xa51   : > { %v8502_v23 = vor.u32 %v8500_v44, %v8499_v17  ;;  %v15198_v56 = vsel %vm16878_vm5, %v8618_v63, %v8619_v57  ;;  %v8621_v33 = vor.u32 %v8619_v57, %v8497_v26  ;;  %v8418_v3 = vunpack.c.l.b16 %v8356_v15 }
 0xa53   : > { %v15201_v53 = vsel %vm16879_vm10, %v8491_v52, %v8502_v23  ;;  %vm16891_vm10 = vsmask.f32 7424 }
 0xa54   : > { %v8267_v11 = vpop.f32.mrf.mxu1  ;;  %v8702_v1 = vsel %vm16544_vm8, %v15201_v53, 0 }
 0xa55   : > { %v8325_v41 = vmax.f32 %v8267_v11, 0.0  ;;  %8770 = vrot.lane.b32.xlu2 %v8702_v1, %s11770_s27  ;;  %v16888_v11 = vld [vmem:[#allocation46_spill] sm:$0xff] }
 0xa56   : > { %vm16889_vm5 = vnez %v16888_v11 }
 0xa57   : > { %v8357_v63 = vpack.c.bf16 %v8325_v41, %v8325_v41  ;;  %v8669_v55 = vsel %vm16889_vm5, %v15047_v36, 0  ;;  %vm16894_vm5 = vmmov %vm16891_vm10 }
 0xa59   : > { %v8419_v52 = vunpack.c.l.b16 %v8357_v63  ;;  %9125 = vmatmul.bf16.gmra.mxu2 %v8796_v28 }
 0xa5b   : > { %v8441_v26 = vpack.c.b16 %v8419_v52, %v8418_v3 }
 0xa5c   : > { %v8270_v44 = vpop.f32.mrf.mxu1 }
 0xa5d   : > { %8726 = vrot.lane.b32.xlu2 %v8441_v26, %s11770_s27  ;;  %11429 = vmatmul.msk.bf16.gmra.mxu0 %vm16885_vm1, %v8441_v26  ;;  %v8505_v57 = vshrl.u32 %v8441_v26, 16  ;;  %v8508_v7 = vshll.u32 %v8441_v26, 16  ;;  %v8326_v15 = vmax.f32 %v8270_v44, 0.0 }
 0xa5f   : > { %v8761_v23 = vpop.permute.xlu1 %8760  ;;  %v8507_v4 = vrot.slane %v8505_v57, 7  ;;  %v8622_v1 = vrot.slane %v8508_v7, 1  ;;  %v8358_v36 = vpack.c.bf16 %v8326_v15, %v8326_v15 }
 0xa60   : > { %v8856_v5 = vsel %vm16890_vm6, %v8669_v55, %v8761_v23  ;;  %vm16895_vm6 = vmmov %vm16892_vm14 }
 0xa61   : > { %9209 = vmatmul.bf16.gmra.mxu3 %v8856_v5  ;;  %v8510_v41 = vor.u32 %v8508_v7, %v8507_v4  ;;  %v15218_v39 = vsel %vm16891_vm10, %v8621_v33, %v8622_v1  ;;  %v8624_v63 = vor.u32 %v8622_v1, %v8505_v57  ;;  %v8420_v44 = vunpack.c.l.b16 %v8358_v36 }
 0xa62   : > { %vm16896_vm10 = vnez %v16728_v0 }
 0xa63   : > { %v15221_v28 = vsel %vm16892_vm14, %v8499_v17, %v8510_v41  ;;  %vm16897_vm14 = vmmov %vm16885_vm1 }
 0xa64   : > { %v8272_v3 = vpop.f32.mrf.mxu1  ;;  %v8703_v26 = vsel %vm16551_vm4, %v15221_v28, 0 }
 0xa65   : > { %v8327_v11 = vmax.f32 %v8272_v3, 0.0  ;;  %8772 = vrot.lane.b32.xlu1 %v8703_v26, %s11770_s27 }
 0xa67   : > { %v8359_v23 = vpack.c.bf16 %v8327_v11, %v8327_v11 }
 0xa69   : > { %v8421_v55 = vunpack.c.l.b16 %v8359_v23 }
 0xa6b   : > { %v8442_v7 = vpack.c.b16 %v8421_v55, %v8420_v44 }
 0xa6c   : > { %v8275_v5 = vpop.f32.mrf.mxu1 }
 0xa6d   : > { %8728 = vrot.lane.b32.xlu1 %v8442_v7, %s11770_s27  ;;  %11430 = vmatmul.msk.bf16.gmra.mxu0 %vm16885_vm1, %v8442_v7  ;;  %v8513_v17 = vshrl.u32 %v8442_v7, 16  ;;  %v8516_v33 = vshll.u32 %v8442_v7, 16  ;;  %v8328_v41 = vmax.f32 %v8275_v5, 0.0 }
 0xa6f   : > { %v8515_v57 = vrot.slane %v8513_v17, 7  ;;  %v8625_v1 = vrot.slane %v8516_v33, 1  ;;  %v8360_v23 = vpack.c.bf16 %v8328_v41, %v8328_v41 }
 0xa71   : > { %v8518_v20 = vor.u32 %v8516_v33, %v8515_v57  ;;  %v15230_v15 = vsel %vm16894_vm5, %v8624_v63, %v8625_v1  ;;  %v8627_v3 = vor.u32 %v8625_v1, %v8513_v17  ;;  %v8422_v7 = vunpack.c.l.b16 %v8360_v23 }
 0xa72   : > { %v8586_v63 = vsel %vm16341_vm12, %v15108_v58, 0 }
 0xa73   : > { %v15233_v26 = vsel %vm16895_vm6, %v8507_v4, %v8518_v20 }
 0xa74   : > { %v8277_v36 = vpop.f32.mrf.mxu1  ;;  %v8704_v11 = vsel %vm16896_vm10, %v15233_v26, 0 }
 0xa75   : > { %v8329_v44 = vmax.f32 %v8277_v36, 0.0  ;;  %8774 = vrot.lane.b32.xlu0 %v8704_v11, %s11770_s27 }
 0xa77   : > { %v8361_v55 = vpack.c.bf16 %v8329_v44, %v8329_v44 }
 0xa79   : > { %v8423_v5 = vunpack.c.l.b16 %v8361_v55 }
 0xa7b   : > { %v8443_v33 = vpack.c.b16 %v8423_v5, %v8422_v7 }
 0xa7c   : > { %v8280_v25 = vpop.f32.mrf.mxu1 }
 0xa7d   : > { %8730 = vrot.lane.b32.xlu0 %v8443_v33, %s11770_s27  ;;  %11431 = vmatmul.msk.bf16.gmra.mxu0 %vm16897_vm14, %v8443_v33  ;;  %v8521_v20 = vshrl.u32 %v8443_v33, 16  ;;  %v8524_v4 = vshll.u32 %v8443_v33, 16  ;;  %v8330_v11 = vmax.f32 %v8280_v25, 0.0  ;;  %vm16900_vm14 = vmmov %vm16885_vm1 }
 0xa7f   : > { %v8717_v17 = vpop.permute.xlu1 %8716  ;;  %v8523_v1 = vrot.slane %v8521_v20, 7  ;;  %v8628_v41 = vrot.slane %v8524_v4, 1  ;;  %v8362_v2 = vpack.c.bf16 %v8330_v11, %v8330_v11 }
 0xa80   : > { %v8800_v36 = vsel %vm16885_vm1, %v8586_v63, %v8717_v17 }
 0xa81   : > { %9130 = vmatmul.bf16.gmra.mxu2 %v8800_v36  ;;  %v8526_v23 = vor.u32 %v8524_v4, %v8523_v1  ;;  %v15246_v44 = vsel %vm16894_vm5, %v8627_v3, %v8628_v41  ;;  %v8630_v55 = vor.u32 %v8628_v41, %v8521_v20  ;;  %v16898_v4 = vld [vmem:[#allocation47_spill] sm:$0xff]  ;;  %v8424_v17 = vunpack.c.l.b16 %v8362_v2  ;;  %vm16901_vm5 = vmmov %vm16885_vm1 }
 0xa82   : > { %vm16899_vm12 = vnez %v16898_v4 }
 0xa83   : > { %v15249_v7 = vsel %vm16895_vm6, %v8515_v57, %v8526_v23  ;;  %v8670_v3 = vsel %vm16899_vm12, %v15104_v51, 0  ;;  %vm16902_vm6 = vsmask.f32 7424  ;;  %vm16903_vm12 = vsmask.f32 256 }
 0xa84   : > { %v8282_v5 = vpop.f32.mrf.mxu1  ;;  %v8705_v58 = vsel %vm12526_vm3, %v15249_v7, 0 }
 0xa85   : > { %v8331_v33 = vmax.f32 %v8282_v5, 0.0  ;;  %8776 = vrot.lane.b32.xlu2 %v8705_v58, %s11770_s27  ;;  %v8587_v5 = vsel %vm16352_vm9, %v15131_v16, 0 }
 0xa87   : > { %v8363_v63 = vpack.c.bf16 %v8331_v33, %v8331_v33  ;;  %v8763_v25 = vpop.permute.xlu0 %8762 }
 0xa88   : > { %v8860_v20 = vsel %vm16900_vm14, %v8670_v3, %v8763_v25  ;;  %vm16906_vm14 = vmmov %vm16885_vm1 }
 0xa89   : > { %v8425_v57 = vunpack.c.l.b16 %v8363_v63  ;;  %9214 = vmatmul.bf16.gmra.mxu3 %v8860_v20  ;;  %v8765_v20 = vpop.permute.xlu2 %8764 }
 0xa8b   : > { %v8444_v41 = vpack.c.b16 %v8425_v57, %v8424_v17 }
 0xa8c   : > { %v8285_v36 = vpop.f32.mrf.mxu1 }
 0xa8d   : > { %8732 = vrot.lane.b32.xlu2 %v8444_v41, %s11770_s27  ;;  %11432 = vmatmul.msk.bf16.gmra.mxu0 %vm16885_vm1, %v8444_v41  ;;  %v8529_v11 = vshrl.u32 %v8444_v41, 16  ;;  %v8532_v23 = vshll.u32 %v8444_v41, 16  ;;  %v8332_v2 = vmax.f32 %v8285_v36, 0.0 }
 0xa8f   : > { %v8719_v58 = vpop.permute.xlu0 %8718  ;;  %v8531_v33 = vrot.slane %v8529_v11, 7  ;;  %v8631_v51 = vrot.slane %v8532_v23, 1  ;;  %v8364_v48 = vpack.c.bf16 %v8332_v2, %v8332_v2 }
 0xa90   : > { %v8804_v25 = vsel %vm16901_vm5, %v8587_v5, %v8719_v58  ;;  %v15279_v5 = vpop.f32.mrf.mxu0  ;;  %vm16907_vm5 = vmmov %vm16885_vm1 }
 0xa91   : > { %9135 = vmatmul.bf16.gmra.mxu2 %v8804_v25  ;;  %v8534_v63 = vor.u32 %v8532_v23, %v8531_v33  ;;  %v15266_v4 = vsel %vm16902_vm6, %v8630_v55, %v8631_v51  ;;  %v8633_v3 = vor.u32 %v8631_v51, %v8529_v11  ;;  %v16904_v23 = vld [vmem:[#allocation48_spill] sm:$0xff] }
 0xa92   : > { %vm16905_vm9 = vnez %v16904_v23  ;;  %v11720_v23 = vld [vmem:[%s15688_s4 + $0x90] sm:$0xff] }
 0xa93   : > { %v15269_v17 = vsel %vm16903_vm12, %v8523_v1, %v8534_v63  ;;  %v8671_v55 = vsel %vm16905_vm9, %v15128_v14, 0  ;;  %v8426_v1 = vunpack.c.l.b16 %v8364_v48  ;;  %v8721_v63 = vpop.permute.xlu2 %8720  ;;  %v11721_v14 = vld [vmem:[%s15688_s4 + $0x98] sm:$0xff]  ;;  %vm16910_vm9 = vmmov %vm16885_vm1 }
 0xa94   : > { %v8287_v57 = vpop.f32.mrf.mxu1  ;;  %v8706_v16 = vsel %vm12578_vm11, %v15269_v17, 0  ;;  %v8864_v11 = vsel %vm16906_vm14, %v8671_v55, %v8765_v20  ;;  %v8588_v20 = vsel %vm16362_vm7, %v15151_v31, 0  ;;  %9507 = vmatpush.bf16.msra.mxu1 %v11721_v14  ;;  %vm16911_vm14 = vmmov %vm16885_vm1 }
 0xa95   : > { %v8333_v41 = vmax.f32 %v8287_v57, 0.0  ;;  %8778 = vrot.lane.b32.xlu1 %v8706_v16, %s11770_s27  ;;  %v8808_v48 = vsel %vm16907_vm5, %v8588_v20, %v8721_v63  ;;  %vm16912_vm5 = vmmov %vm16902_vm6 }
 0xa97   : > { %v8365_v36 = vpack.c.bf16 %v8333_v41, %v8333_v41 }
 0xa98   : > { %9508 = vmatpush.bf16.msra.mxu1 %v11720_v23 }
 0xa99   : > { %v8427_v58 = vunpack.c.l.b16 %v8365_v36  ;;  %9219 = vmatmul.bf16.gmra.mxu3 %v8864_v11 }
 0xa9b   : > { %v8445_v51 = vpack.c.b16 %v8427_v58, %v8426_v1  ;;  %v15296_v1 = vpop.f32.mrf.mxu0 }
 0xa9c   : > { %v8290_v25 = vpop.f32.mrf.mxu1 }
 0xa9d   : > { %v8537_v30 = vshrl.u32 %v8445_v51, 16  ;;  %8734 = vrot.lane.b32.xlu1 %v8445_v51, %s11770_s27  ;;  %11433 = vmatmul.msk.bf16.gmra.mxu0 %vm16885_vm1, %v8445_v51  ;;  %v8540_v2 = vshll.u32 %v8445_v51, 16  ;;  %v8334_v41 = vmax.f32 %v8290_v25, 0.0 }
 0xa9f   : > { %v8539_v57 = vrot.slane %v8537_v30, 7  ;;  %v8634_v16 = vrot.slane %v8540_v2, 1  ;;  %v8366_v51 = vpack.c.bf16 %v8334_v41, %v8334_v41 }
 0xaa1   : > { %9140 = vmatmul.bf16.gmra.mxu2 %v8808_v48  ;;  %v8542_v36 = vor.u32 %v8540_v2, %v8539_v57  ;;  %v15294_v55 = vsel %vm16902_vm6, %v8633_v3, %v8634_v16  ;;  %v8636_v11 = vor.u32 %v8634_v16, %v8537_v30  ;;  %v11719_v3 = vld [vmem:[%s15688_s4 + $0x88] sm:$0xff]  ;;  %v8428_v20 = vunpack.c.l.b16 %v8366_v51  ;;  %v11718_v48 = vld [vmem:[%s15688_s4 + $0x80] sm:$0xff]  ;;  %vm16913_vm6 = vmmov %vm16903_vm12 }
 0xaa2   : > { %v16908_v2 = vld [vmem:[#allocation49_spill] sm:$0xff]  ;;  %9509 = vmatpush.bf16.msra.mxu1 %v11719_v3 }
 0xaa3   : > { %v15299_v31 = vsel %vm16903_vm12, %v8531_v33, %v8542_v36  ;;  %vm16909_vm7 = vnez %v16908_v2  ;;  %v15315_v23 = vpop.f32.mrf.mxu0  ;;  %vm16916_vm12 = vmmov %vm16885_vm1 }
 0xaa4   : > { %v8292_v10 = vpop.f32.mrf.mxu1  ;;  %v8707_v58 = vsel %vm12637_vm2, %v15299_v31, 0  ;;  %v8672_v33 = vsel %vm16909_vm7, %v15148_v54, 0  ;;  %vm16917_vm7 = vmmov %vm16885_vm1 }
 0xaa5   : > { %v8335_v25 = vmax.f32 %v8292_v10, 0.0  ;;  %8780 = vrot.lane.b32.xlu0 %v8707_v58, %s11770_s27  ;;  %v8589_v58 = vsel %vm16544_vm8, %v15177_v62, 0 }
 0xaa6   : > { %9510 = vmatpush.bf16.msra.mxu1 %v11718_v48 }
 0xaa7   : > { %v8367_v30 = vpack.c.bf16 %v8335_v25, %v8335_v25  ;;  %v8767_v63 = vpop.permute.xlu1 %8766 }
 0xaa8   : > { %v8868_v14 = vsel %vm16910_vm9, %v8672_v33, %v8767_v63  ;;  %vm16918_vm9 = vmmov %vm16885_vm1 }
 0xaa9   : > { %v8429_v16 = vunpack.c.l.b16 %v8367_v30  ;;  %9224 = vmatmul.bf16.gmra.mxu3 %v8868_v14 }
 0xaab   : > { %v8446_v41 = vpack.c.b16 %v8429_v16, %v8428_v20 }
 0xaac   : > { %v8295_v36 = vpop.f32.mrf.mxu1 }
 0xaad   : > { %v8545_v10 = vshrl.u32 %v8446_v41, 16  ;;  %8736 = vrot.lane.b32.xlu0 %v8446_v41, %s11770_s27  ;;  %11434 = vmatmul.msk.bf16.gmra.mxu0 %vm16911_vm14, %v8446_v41  ;;  %v8548_v54 = vshll.u32 %v8446_v41, 16  ;;  %v8336_v63 = vmax.f32 %v8295_v36, 0.0  ;;  %v15333_v41 = vpop.f32.mrf.mxu0  ;;  %vm16919_vm14 = vmmov %vm16912_vm5 }
 0xaaf   : > { %v8723_v51 = vpop.permute.xlu1 %8722  ;;  %v8547_v25 = vrot.slane %v8545_v10, 7  ;;  %v8637_v3 = vrot.slane %v8548_v54, 1  ;;  %v8368_v22 = vpack.c.bf16 %v8336_v63, %v8336_v63  ;;  %v8771_v38 = vpop.permute.xlu2 %8770 }
 0xab0   : > { %v8812_v30 = vsel %vm16885_vm1, %v8589_v58, %v8723_v51  ;;  %v9116_v58 = vpop.f32.mrf.mxu2  ;;  %vm16920_vm1 = vmmov %vm16913_vm6 }
 0xab1   : > { %9145 = vmatmul.bf16.gmra.mxu2 %v8812_v30  ;;  %v8550_v2 = vor.u32 %v8548_v54, %v8547_v25  ;;  %v15324_v33 = vsel %vm16912_vm5, %v8636_v11, %v8637_v3  ;;  %v8639_v14 = vor.u32 %v8637_v3, %v8545_v10  ;;  %v16914_v11 = vld [vmem:[#allocation50_spill] sm:$0xff]  ;;  %v8430_v51 = vunpack.c.l.b16 %v8368_v22  ;;  %vm16923_vm5 = vmmov %vm16917_vm7 }
 0xab2   : > { %vm16915_vm8 = vnez %v16914_v11 }
 0xab3   : > { %v15327_v20 = vsel %vm16913_vm6, %v8539_v57, %v8550_v2  ;;  %v8673_v10 = vsel %vm16915_vm8, %v15174_v50, 0  ;;  %vm16924_vm6 = vmmov %vm16923_vm5 }
 0xab4   : > { %v8297_v16 = vpop.f32.mrf.mxu1  ;;  %v8708_v62 = vsel %vm16228_vm15, %v15327_v20, 0  ;;  %vm16925_vm8 = vmmov %vm16923_vm5 }
 0xab5   : > { %v8337_v48 = vmax.f32 %v8297_v16, 0.0  ;;  %8782 = vrot.lane.b32.xlu2 %v8708_v62, %s11770_s27  ;;  %v15344_v50 = vpop.f32.mrf.mxu0 }
 0xab7   : > { %v8369_v36 = vpack.c.bf16 %v8337_v48, %v8337_v48  ;;  %v8769_v54 = vpop.permute.xlu0 %8768  ;;  %v8590_v48 = vsel %vm16551_vm4, %v15201_v53, 0 }
 0xab8   : > { %v8872_v57 = vsel %vm16916_vm12, %v8673_v10, %v8769_v54  ;;  %vm16926_vm12 = vmmov %vm16923_vm5 }
 0xab9   : > { %v8431_v3 = vunpack.c.l.b16 %v8369_v36  ;;  %9229 = vmatmul.bf16.gmra.mxu3 %v8872_v57 }
 0xabb   : > { %v8447_v30 = vpack.c.b16 %v8431_v3, %v8430_v51 }
 0xabc   : > { %v8300_v2 = vpop.f32.mrf.mxu1  ;;  %v9205_v63 = vpop.f32.mrf.mxu3 }
 0xabd   : > { %v8553_v16 = vshrl.u32 %v8447_v30, 16  ;;  %8738 = vrot.lane.b32.xlu2 %v8447_v30, %s11770_s27  ;;  %11435 = vmatmul.msk.bf16.gmra.mxu0 %vm16917_vm7, %v8447_v30  ;;  %v8556_v62 = vshll.u32 %v8447_v30, 16  ;;  %v8338_v10 = vmax.f32 %v8300_v2, 0.0  ;;  %v9206_v57 = vadd.f32 %v9205_v63, %v9116_v58  ;;  %v9118_v30 = vpop.f32.mrf.mxu2  ;;  %vm16927_vm7 = vmmov %vm16919_vm14 }
 0xabf   : > { %v8725_v54 = vpop.permute.xlu0 %8724  ;;  %v8555_v11 = vrot.slane %v8553_v16, 7  ;;  %v8640_v22 = vrot.slane %v8556_v62, 1  ;;  %v9295_v58 = vadd.f32 %v15279_v5, %v9206_v57 }
 0xac0   : > { %v8816_v36 = vsel %vm16918_vm9, %v8590_v48, %v8725_v54  ;;  %v8370_v48 = vpack.c.bf16 %v8338_v10, %v8338_v10  ;;  %vm16928_vm9 = vmmov %vm16920_vm1 }
 0xac1   : > { %9150 = vmatmul.bf16.gmra.mxu2 %v8816_v36  ;;  %v8558_v51 = vor.u32 %v8556_v62, %v8555_v11  ;;  %v15348_v3 = vsel %vm16919_vm14, %v8639_v14, %v8640_v22  ;;  %v8642_v34 = vor.u32 %v8640_v22, %v8553_v16  ;;  %v16921_v62 = vld [vmem:[#allocation51_spill] sm:$0xff]  ;;  %v15363_v22 = vpop.f32.mrf.mxu0  ;;  %vm16930_vm14 = vmmov %vm16923_vm5 }
 0xac2   : > { %vm16922_vm4 = vnez %v16921_v62  ;;  %v8432_v36 = vunpack.c.l.b16 %v8370_v48 }
 0xac3   : > { %v15351_v52 = vsel %vm16920_vm1, %v8547_v25, %v8558_v51  ;;  %v8674_v25 = vsel %vm16922_vm4, %v15198_v56, 0  ;;  %v9374_v51 = vmax.f32 %v9295_v58, 0.0  ;;  %vm16931_vm1 = vmmov %vm16927_vm7 }
 0xac4   : > { %v8302_v53 = vpop.f32.mrf.mxu1  ;;  %v9207_v35 = vpop.f32.mrf.mxu3  ;;  %v8709_v61 = vsel %vm16416_vm0, %v15351_v52, 0  ;;  %v8876_v54 = vsel %vm16923_vm5, %v8674_v25, %v8771_v38  ;;  %v8591_v38 = vsel %vm16896_vm10, %v15221_v28, 0  ;;  %vm16929_vm10 = vnez %v16762_v49  ;;  %vm16932_vm4 = vmmov %vm16923_vm5 }
 0xac5   : > { %v8339_v2 = vmax.f32 %v8302_v53, 0.0  ;;  %v9208_v63 = vadd.f32 %v9207_v35, %v9118_v30  ;;  %8784 = vrot.lane.b32.xlu1 %v8709_v61, %s11770_s27  ;;  %v8727_v61 = vpop.permute.xlu2 %8726  ;;  %vm16933_vm5 = vmmov %vm16932_vm4 }
 0xac7   : > { %v8371_v14 = vpack.c.bf16 %v8339_v2, %v8339_v2  ;;  %v9297_v16 = vadd.f32 %v15296_v1, %v9208_v63 }
 0xac9   : > { %v8433_v10 = vunpack.c.l.b16 %v8371_v14  ;;  %v9375_v40 = vmax.f32 %v9297_v16, 0.0  ;;  %9234 = vmatmul.bf16.gmra.mxu3 %v8876_v54  ;;  %v15375_v62 = vpop.f32.mrf.mxu0 }
 0xacb   : > { %v8448_v5 = vpack.c.b16 %v8433_v10, %v8432_v36  ;;  %v9406_v35 = vpack.c.bf16 %v9375_v40, %v9374_v51  ;;  %v8820_v40 = vsel %vm16926_vm12, %v8591_v38, %v8727_v61  ;;  %vm16936_vm12 = vnez %v16211_v19 }
 0xacc   : > { %v8305_v57 = vpop.f32.mrf.mxu1  ;;  %v9121_v38 = vpop.f32.mrf.mxu2  ;;  %v8676_v47 = vsel %vm16936_vm12, %v15230_v15, 0 }
 0xacd   : > { %v8561_v30 = vshrl.u32 %v8448_v5, 16  ;;  %v8340_v53 = vmax.f32 %v8305_v57, 0.0  ;;  %8740 = vrot.lane.b32.xlu1 %v8448_v5, %s11770_s27  ;;  %11436 = vmatmul.msk.bf16.gmra.mxu0 %vm16924_vm6, %v8448_v5  ;;  %v8564_v56 = vshll.u32 %v8448_v5, 16  ;;  %vm16934_vm6 = vmmov %vm16928_vm9 }
 0xace   : > { %11462 = vmatmul.msk.bf16.vlgmr.msra.gmra.mxu1 %vm16925_vm8, %v9406_v35  ;;  %v8675_v35 = vsel %vm16929_vm10, %v15218_v39, 0  ;;  %vm16935_vm8 = vnez %v16208_v9  ;;  %vm16940_vm10 = vnez %v16215_v12 }
 0xacf   : > { %v8372_v1 = vpack.c.bf16 %v8340_v53, %v8340_v53  ;;  %v8563_v48 = vrot.slane %v8561_v30, 7  ;;  %v8643_v58 = vrot.slane %v8564_v56, 1 }
 0xad1   : > { %v8600_v2 = vunpack.c.l.b16 %v8372_v1  ;;  %9155 = vmatmul.bf16.gmra.mxu2 %v8820_v40  ;;  %v8566_v63 = vor.u32 %v8564_v56, %v8563_v48  ;;  %v15373_v14 = vsel %vm16927_vm7, %v8642_v34, %v8643_v58  ;;  %v8645_v16 = vor.u32 %v8643_v58, %v8561_v30  ;;  %v15391_v53 = vpop.f32.mrf.mxu0 }
 0xad2   : > { %v8592_v1 = vsel %vm12526_vm3, %v15233_v26, 0  ;;  %vm16937_vm3 = vmmov %vm16932_vm4 }
 0xad3   : > { %v8601_v25 = vpack.c.b16 %v8600_v2, %v8600_v2  ;;  %v15378_v54 = vsel %vm16928_vm9, %v8555_v11, %v8566_v63  ;;  %vm16938_vm7 = vmmov %vm16937_vm3 }
 0xad4   : > { %v8307_v0 = vpop.f32.mrf.mxu1  ;;  %v8710_v28 = vsel %vm16424_vm13, %v15378_v54, 0  ;;  %v9123_v26 = vpop.f32.mrf.mxu2  ;;  %vm16939_vm9 = vmmov %vm16937_vm3 }
 0xad5   : > { %v8647_v36 = vshll.u32 %v8601_v25, 16  ;;  %v8341_v51 = vmax.f32 %v8307_v0, 0.0  ;;  %8786 = vrot.lane.b32.xlu0 %v8710_v28, %s11770_s27 }
 0xad7   : > { %v8649_v10 = vrot.slane %v8647_v36, 1  ;;  %v8373_v5 = vpack.c.bf16 %v8341_v51, %v8341_v51  ;;  %v8773_v34 = vpop.permute.xlu1 %8772 }
 0xad8   : > { %v8880_v57 = vsel %vm16930_vm14, %v8675_v35, %v8773_v34  ;;  %vm16941_vm14 = vmmov %vm16937_vm3 }
 0xad9   : > { %v8685_v11 = vunpack.c.l.b16 %v8373_v5  ;;  %9239 = vmatmul.bf16.gmra.mxu3 %v8880_v57  ;;  %v15389_v61 = vsel %vm16931_vm1, %v8645_v16, %v8649_v10  ;;  %v8593_v5 = vsel %vm12578_vm11, %v15249_v7, 0  ;;  %vm16942_vm11 = vmmov %vm16937_vm3  ;;  %vm16943_vm1 = vnez %v16219_v18 }
 0xada   : > { %v8678_v12 = vsel %vm16943_vm1, %v15266_v4, 0  ;;  %vm16958_vm1 = vnez %v16237_v59 }
 0xadb   : > { %v8686_v30 = vpack.c.b16 %v8685_v11, %v8600_v2 }
 0xadc   : > { %v9126_v11 = vpop.f32.mrf.mxu2 }
 0xadd   : > { %v8688_v56 = vshrl.u32 %v8686_v30, 16  ;;  %11437 = vmatmul.msk.bf16.gmra.mxu0 %vm16932_vm4, %v8686_v30  ;;  %v8691_v39 = vshll.u32 %v8686_v30, 16  ;;  %vm16944_vm4 = vmmov %vm16937_vm3 }
 0xadf   : > { %v8690_v49 = vrot.slane %v8688_v56, 7  ;;  %v8729_v58 = vpop.permute.xlu1 %8728  ;;  %v8777_v30 = vpop.permute.xlu2 %8776 }
 0xae0   : > { %v8824_v40 = vsel %vm16933_vm5, %v8592_v1, %v8729_v58  ;;  %v15420_v1 = vpop.f32.mrf.mxu0  ;;  %vm16946_vm5 = vnez %v16223_v27  ;;  %v11728_v27 = vld [vmem:[%s15689_s5 + $0x30] sm:$0xff] }
 0xae1   : > { %9160 = vmatmul.bf16.gmra.mxu2 %v8824_v40  ;;  %v8693_v63 = vor.u32 %v8691_v39, %v8690_v49 }
 0xae3   : > { %v8694_v16 = vsel %vm16934_vm6, %v8563_v48, %v8693_v63 }
 0xae4   : > { %v9210_v2 = vpop.f32.mrf.mxu3  ;;  %v8711_v25 = vsel %vm16935_vm8, %v8694_v16, 0  ;;  %v9128_v7 = vpop.f32.mrf.mxu2 }
 0xae5   : > { %8788 = vrot.lane.b32.xlu2 %v8711_v25, %s11770_s27  ;;  %v9211_v36 = vadd.f32 %v9210_v2, %v9121_v38  ;;  %v8594_v38 = vsel %vm12637_vm2, %v15269_v17, 0  ;;  %v8595_v17 = vsel %vm16228_vm15, %v15299_v31, 0  ;;  %vm16945_vm2 = vmmov %vm16937_vm3 }
 0xae6   : > { %vm16947_vm6 = vmmov %vm16945_vm2 }
 0xae7   : > { %v8775_v0 = vpop.permute.xlu0 %8774  ;;  %v9300_v10 = vadd.f32 %v15315_v23, %v9211_v36  ;;  %v8677_v23 = vsel %vm16940_vm10, %v15246_v44, 0  ;;  %vm16948_vm15 = vmmov %vm16945_vm2 }
 0xae8   : > { %v8884_v28 = vsel %vm16937_vm3, %v8676_v47, %v8775_v0  ;;  %v8888_v8 = vsel %vm16941_vm14, %v8677_v23, %v8777_v30  ;;  %v15427_v40 = vpop.f32.mrf.mxu0  ;;  %vm16949_vm12 = vmmov %vm16945_vm2 }
 0xae9   : > { %9244 = vmatmul.bf16.gmra.mxu3 %v8884_v28  ;;  %v9376_v19 = vmax.f32 %v9300_v10, 0.0  ;;  %vm16951_vm3 = vmmov %vm16945_vm2 }
 0xaea   : > { %vm16955_vm10 = vmmov %vm16945_vm2 }
 0xaeb   : > { %vm16956_vm14 = vmmov %vm16945_vm2 }
 0xaec   : > { %v9212_v51 = vpop.f32.mrf.mxu3 }
 0xaed   : > { %v9213_v48 = vadd.f32 %v9212_v51, %v9123_v26  ;;  %v8679_v51 = vsel %vm16946_vm5, %v15294_v55, 0  ;;  %vm16962_vm5 = vmmov %vm16951_vm3 }
 0xaef   : > { %v9302_v34 = vadd.f32 %v15333_v41, %v9213_v48  ;;  %v8731_v35 = vpop.permute.xlu0 %8730  ;;  %v8733_v41 = vpop.permute.xlu2 %8732  ;;  %v11729_v48 = vld [vmem:[%s15689_s5 + $0x38] sm:$0xff] }
 0xaf0   : > { %v8828_v57 = vsel %vm16938_vm7, %v8593_v5, %v8731_v35  ;;  %v8832_v49 = vsel %vm16942_vm11, %v8594_v38, %v8733_v41  ;;  %v15433_v0 = vpop.f32.mrf.mxu0  ;;  %9804 = vmatpush.bf16.msra.mxu2 %v11729_v48  ;;  %vm16952_vm7 = vmmov %vm16945_vm2 }
 0xaf1   : > { %v9377_v15 = vmax.f32 %v9302_v34, 0.0  ;;  %9165 = vmatmul.bf16.gmra.mxu2 %v8828_v57  ;;  %vm16957_vm11 = vmmov %vm16945_vm2 }
 0xaf3   : > { %v9407_v56 = vpack.c.bf16 %v9377_v15, %v9376_v19  ;;  %v11727_v15 = vld [vmem:[%s15689_s5 + $0x28] sm:$0xff] }
 0xaf4   : > { %9805 = vmatpush.bf16.msra.mxu2 %v11728_v27 }
 0xaf5   : > { %11463 = vmatmul.msk.bf16.gmra.mxu1 %vm16939_vm9, %v9407_v56  ;;  %vm16953_vm9 = vmmov %vm16945_vm2 }
 0xaf8   : > { %v15444_v35 = vpop.f32.mrf.mxu0  ;;  %9806 = vmatpush.bf16.msra.mxu2 %v11727_v15 }
 0xaf9   : > { %9249 = vmatmul.bf16.gmra.mxu3 %v8888_v8 }
 0xafc   : > { %9807 = vmatpush.bf16.msra.mxu2 %v11726_v37 }
 0xb01   : > { %9170 = vmatmul.bf16.gmra.mxu2 %v8832_v49 }
 0xb04   : > { %v9131_v39 = vpop.f32.mrf.mxu2 }
 0xb07   : > { %v8779_v58 = vpop.permute.xlu1 %8778 }
 0xb08   : > { %v8892_v44 = vsel %vm16944_vm4, %v8678_v12, %v8779_v58  ;;  %vm16959_vm4 = vmmov %vm16945_vm2 }
 0xb09   : > { %9254 = vmatmul.bf16.gmra.mxu3 %v8892_v44 }
 0xb0c   : > { %v9133_v63 = vpop.f32.mrf.mxu2  ;;  %v9215_v16 = vpop.f32.mrf.mxu3 }
 0xb0d   : > { %v9216_v25 = vadd.f32 %v9215_v16, %v9126_v11 }
 0xb0f   : > { %v8735_v46 = vpop.permute.xlu1 %8734  ;;  %v9305_v47 = vadd.f32 %v15344_v50, %v9216_v25  ;;  %v8783_v11 = vpop.permute.xlu2 %8782 }
 0xb10   : > { %v8836_v2 = vsel %vm16945_vm2, %v8595_v17, %v8735_v46  ;;  %v11723_v17 = vld [vmem:[%s15689_s5 + $0x8] sm:$0xff] }
 0xb11   : > { %9175 = vmatmul.bf16.gmra.mxu2 %v8836_v2  ;;  %v9378_v31 = vmax.f32 %v9305_v47, 0.0 }
 0xb14   : > { %v9136_v18 = vpop.f32.mrf.mxu2  ;;  %v9217_v4 = vpop.f32.mrf.mxu3 }
 0xb15   : > { %v9218_v26 = vadd.f32 %v9217_v4, %v9128_v7 }
 0xb17   : > { %v9307_v28 = vadd.f32 %v15363_v22, %v9218_v26  ;;  %v8781_v36 = vpop.permute.xlu0 %8780  ;;  %v8596_v22 = vsel %vm16416_vm0, %v15327_v20, 0  ;;  %v15461_v20 = vpop.f32.mrf.mxu0  ;;  %vm16950_vm0 = vnez %v16226_v32  ;;  %v11724_v32 = vld [vmem:[%s15689_s5 + $0x10] sm:$0xff] }
 0xb18   : > { %v8896_v45 = vsel %vm16947_vm6, %v8679_v51, %v8781_v36  ;;  %v8680_v41 = vsel %vm16950_vm0, %v15324_v33, 0  ;;  %v8597_v33 = vsel %vm16424_vm13, %v15351_v52, 0  ;;  %vm16954_vm13 = vnez %v16231_v42  ;;  %vm16963_vm6 = vmmov %vm16951_vm3 }
 0xb19   : > { %v9379_v10 = vmax.f32 %v9307_v28, 0.0  ;;  %9259 = vmatmul.bf16.gmra.mxu3 %v8896_v45  ;;  %v8900_v38 = vsel %vm16951_vm3, %v8680_v41, %v8783_v11  ;;  %vm16966_vm0 = vmmov %vm16951_vm3 }
 0xb1b   : > { %v9408_v5 = vpack.c.bf16 %v9379_v10, %v9378_v31 }
 0xb1c   : > { %v9138_v50 = vpop.f32.mrf.mxu2  ;;  %v9220_v34 = vpop.f32.mrf.mxu3 }
 0xb1d   : > { %11464 = vmatmul.msk.bf16.gmra.mxu1 %vm16948_vm15, %v9408_v5  ;;  %v9221_v19 = vadd.f32 %v9220_v34, %v9131_v39  ;;  %vm16964_vm15 = vmmov %vm16951_vm3 }
 0xb1f   : > { %v8737_v55 = vpop.permute.xlu0 %8736  ;;  %v9310_v23 = vadd.f32 %v15375_v62, %v9221_v19  ;;  %v11725_v62 = vld [vmem:[%s15689_s5 + $0x18] sm:$0xff]  ;;  %v9326_v16 = vpop.f32.mrf.mxu0  ;;  %v8682_v19 = vsel %vm16958_vm1, %v15373_v14, 0  ;;  %vm17001_vm1 = vcmask 1040384  }
 0xb20   : > { %v8840_v57 = vsel %vm16949_vm12, %v8596_v22, %v8737_v55  ;;  %9808 = vmatpush.bf16.msra.mxu2 %v11725_v62  ;;  %vm16965_vm12 = vmmov %vm16951_vm3 }
 0xb21   : > { %9180 = vmatmul.bf16.gmra.mxu2 %v8840_v57  ;;  %v9380_v49 = vmax.f32 %v9310_v23, 0.0  ;;  %vm16967_vm3 = vmmov %vm16966_vm0 }
 0xb24   : > { %v9141_v30 = vpop.f32.mrf.mxu2  ;;  %v9222_v56 = vpop.f32.mrf.mxu3  ;;  %9809 = vmatpush.bf16.msra.mxu2 %v11724_v32 }
 0xb25   : > { %v9223_v8 = vadd.f32 %v9222_v56, %v9133_v63  ;;  %v8739_v63 = vpop.permute.xlu2 %8738 }
 0xb27   : > { %v9312_v7 = vadd.f32 %v15391_v53, %v9223_v8  ;;  %v8844_v53 = vsel %vm16953_vm9, %v8597_v33, %v8739_v63  ;;  %v9329_v45 = vpop.f32.mrf.mxu0  ;;  %vm16972_vm9 = vmmov %vm16966_vm0 }
 0xb28   : > { %9810 = vmatpush.bf16.msra.mxu2 %v11723_v17 }
 0xb29   : > { %v9381_v39 = vmax.f32 %v9312_v7, 0.0  ;;  %9264 = vmatmul.bf16.gmra.mxu3 %v8900_v38 }
 0xb2b   : > { %v9409_v58 = vpack.c.bf16 %v9381_v39, %v9380_v49 }
 0xb2c   : > { %v9143_v12 = vpop.f32.mrf.mxu2  ;;  %v9225_v44 = vpop.f32.mrf.mxu3  ;;  %9811 = vmatpush.bf16.msra.mxu2 %v11722_v6 }
 0xb2d   : > { %11465 = vmatmul.msk.bf16.gmra.mxu1 %vm16952_vm7, %v9409_v58  ;;  %v9226_v46 = vadd.f32 %v9225_v44, %v9136_v18  ;;  %v8681_v18 = vsel %vm16954_vm13, %v15348_v3, 0  ;;  %vm16969_vm7 = vmmov %vm16966_vm0 }
 0xb2e   : > { %vm16975_vm13 = vmmov %vm16966_vm0 }
 0xb2f   : > { %v9315_v4 = vadd.f32 %v15420_v1, %v9226_v46  ;;  %v9331_v34 = vpop.f32.mrf.mxu0 }
 0xb31   : > { %9185 = vmatmul.bf16.gmra.mxu2 %v8844_v53  ;;  %v9382_v36 = vmax.f32 %v9315_v4, 0.0 }
 0xb34   : > { %v9146_v2 = vpop.f32.mrf.mxu2  ;;  %v9227_v25 = vpop.f32.mrf.mxu3 }
 0xb35   : > { %v9228_v47 = vadd.f32 %v9227_v25, %v9138_v50 }
 0xb37   : > { %v9317_v52 = vadd.f32 %v15427_v40, %v9228_v47  ;;  %v8785_v26 = vpop.permute.xlu1 %8784  ;;  %v8598_v40 = vsel %vm16935_vm8, %v15378_v54, 0  ;;  %vm16960_vm8 = vmmov %vm16945_vm2  ;;  %vm16961_vm2 = vnez %v16241_v29 }
 0xb38   : > { %v8904_v28 = vsel %vm16955_vm10, %v8681_v18, %v8785_v26  ;;  %vm16978_vm10 = vmmov %vm16966_vm0 }
 0xb39   : > { %v9383_v51 = vmax.f32 %v9317_v52, 0.0  ;;  %9269 = vmatmul.bf16.gmra.mxu3 %v8904_v28 }
 0xb3b   : > { %v9410_v1 = vpack.c.bf16 %v9383_v51, %v9382_v36 }
 0xb3c   : > { %v9148_v31 = vpop.f32.mrf.mxu2  ;;  %v9230_v10 = vpop.f32.mrf.mxu3 }
 0xb3d   : > { %11466 = vmatmul.msk.bf16.gmra.mxu1 %vm16956_vm14, %v9410_v1  ;;  %v9231_v3 = vadd.f32 %v9230_v10, %v9141_v30  ;;  %vm16981_vm14 = vmmov %vm16966_vm0 }
 0xb3f   : > { %v8741_v48 = vpop.permute.xlu1 %8740  ;;  %v9320_v27 = vadd.f32 %v15433_v0, %v9231_v3  ;;  %v9334_v0 = vpop.f32.mrf.mxu0 }
 0xb40   : > { %v8848_v42 = vsel %vm16957_vm11, %v8598_v40, %v8741_v48  ;;  %v8789_v59 = vpop.permute.xlu2 %8788 }
 0xb41   : > { %9190 = vmatmul.bf16.gmra.mxu2 %v8848_v42  ;;  %v9384_v54 = vmax.f32 %v9320_v27, 0.0 }
 0xb44   : > { %v9151_v5 = vpop.f32.mrf.mxu2  ;;  %v9232_v50 = vpop.f32.mrf.mxu3 }
 0xb45   : > { %v9233_v55 = vadd.f32 %v9232_v50, %v9143_v12  ;;  %v8683_v12 = vsel %vm16961_vm2, %v15389_v61, 0 }
 0xb46   : > { %v8912_v63 = vsel %vm16962_vm5, %v8683_v12, %v8789_v59 }
 0xb47   : > { %v9322_v22 = vadd.f32 %v15444_v35, %v9233_v55  ;;  %v8787_v57 = vpop.permute.xlu0 %8786  ;;  %v9336_v32 = vpop.f32.mrf.mxu0 }
 0xb48   : > { %v8908_v9 = vsel %vm16959_vm4, %v8682_v19, %v8787_v57 }
 0xb49   : > { %v9385_v15 = vmax.f32 %v9322_v22, 0.0  ;;  %9274 = vmatmul.bf16.gmra.mxu3 %v8908_v9 }
 0xb4b   : > { %v9411_v11 = vpack.c.bf16 %v9385_v15, %v9384_v54  ;;  %v9512_v30 = vpop.f32.mrf.mxu1 }
 0xb4c   : > { %v9153_v56 = vpop.f32.mrf.mxu2  ;;  %v9235_v23 = vpop.f32.mrf.mxu3  ;;  %v9592_v37 = vmax.f32 %v9512_v30, 0.0 }
 0xb4d   : > { %11467 = vmatmul.msk.bf16.gmra.mxu1 %vm16960_vm8, %v9411_v11  ;;  %v9236_v8 = vadd.f32 %v9235_v23, %v9146_v2 }
 0xb4e   : > { %v9624_v39 = vadd.f32 %v9592_v37, %v14936_v24 }
 0xb4f   : > { %v9325_v14 = vadd.f32 %v15461_v20, %v9236_v8 }
 0xb51   : > { %v9386_v33 = vmax.f32 %v9325_v14, 0.0 }
 0xb53   : > { %v9514_v35 = vpop.f32.mrf.mxu1 }
 0xb54   : > { %v9593_v7 = vmax.f32 %v9514_v35, 0.0  ;;  %v9156_v41 = vpop.f32.mrf.mxu2  ;;  %v9237_v38 = vpop.f32.mrf.mxu3 }
 0xb55   : > { %v9238_v49 = vadd.f32 %v9237_v38, %v9148_v31 }
 0xb56   : > { %v9625_v62 = vadd.f32 %v9593_v7, %v14939_v43  ;;  %v9339_v43 = vpop.f32.mrf.mxu0 }
 0xb57   : > { %v9327_v58 = vadd.f32 %v9326_v16, %v9238_v49 }
 0xb58   : > { %v9720_v44 = vpack.c.bf16 %v9625_v62, %v9624_v39 }
 0xb59   : > { %v9387_v53 = vmax.f32 %v9327_v58, 0.0  ;;  %9279 = vmatmul.bf16.gmra.mxu3 %v8912_v63 }
 0xb5a   : > { %9812 = vmatmul.bf16.vlgmr.msra.gmra.mxu2 %v9720_v44 }
 0xb5b   : > { %v9412_v46 = vpack.c.bf16 %v9387_v53, %v9386_v33 }
 0xb5c   : > { %v9158_v20 = vpop.f32.mrf.mxu2  ;;  %v9240_v17 = vpop.f32.mrf.mxu3 }
 0xb5d   : > { %11468 = vmatmul.msk.bf16.gmra.mxu1 %vm16963_vm6, %v9412_v46  ;;  %v9241_v24 = vadd.f32 %v9240_v17, %v9151_v5 }
 0xb5e   : > { %v9341_v18 = vpop.f32.mrf.mxu0 }
 0xb5f   : > { %v9330_v25 = vadd.f32 %v9329_v45, %v9241_v24 }
 0xb61   : > { %v9388_v4 = vmax.f32 %v9330_v25, 0.0  ;;  %v16968_v25 = vld [vmem:[#allocation45_spill] sm:$0xff] }
 0xb64   : > { %v9161_v16 = vpop.f32.mrf.mxu2  ;;  %v9242_v2 = vpop.f32.mrf.mxu3 }
 0xb65   : > { %v9243_v29 = vadd.f32 %v9242_v2, %v9153_v56 }
 0xb66   : > { %v9344_v48 = vpop.f32.mrf.mxu0 }
 0xb67   : > { %v9332_v61 = vadd.f32 %v9331_v34, %v9243_v29 }
 0xb69   : > { %v9389_v47 = vmax.f32 %v9332_v61, 0.0 }
 0xb6b   : > { %v9413_v6 = vpack.c.bf16 %v9389_v47, %v9388_v4 }
 0xb6c   : > { %v9163_v52 = vpop.f32.mrf.mxu2  ;;  %v9245_v26 = vpop.f32.mrf.mxu3 }
 0xb6d   : > { %11469 = vmatmul.msk.bf16.gmra.mxu1 %vm16964_vm15, %v9413_v6  ;;  %v9246_v28 = vadd.f32 %v9245_v26, %v9156_v41 }
 0xb6e   : > { %v9346_v9 = vpop.f32.mrf.mxu0 }
 0xb6f   : > { %v9335_v31 = vadd.f32 %v9334_v0, %v9246_v28 }
 0xb71   : > { %v9390_v42 = vmax.f32 %v9335_v31, 0.0 }
 0xb72   : > { %v9517_v36 = vpop.f32.mrf.mxu1 }
 0xb73   : > { %v9594_v45 = vmax.f32 %v9517_v36, 0.0  ;;  %v11737_v36 = vld [vmem:[%s15691_s7 + $0x38] sm:$0xff] }
 0xb74   : > { %v9166_v51 = vpop.f32.mrf.mxu2  ;;  %v9247_v1 = vpop.f32.mrf.mxu3  ;;  %10009 = vmatpush.bf16.msra.mxu3 %v11737_v36 }
 0xb75   : > { %v9248_v10 = vadd.f32 %v9247_v1, %v9158_v20  ;;  %v9626_v22 = vadd.f32 %v9594_v45, %v14945_v21 }
 0xb76   : > { %v9349_v37 = vpop.f32.mrf.mxu0 }
 0xb77   : > { %v9337_v40 = vadd.f32 %v9336_v32, %v9248_v10 }
 0xb79   : > { %v9391_v3 = vmax.f32 %v9337_v40, 0.0 }
 0xb7a   : > { %v9519_v5 = vpop.f32.mrf.mxu1 }
 0xb7b   : > { %v9414_v50 = vpack.c.bf16 %v9391_v3, %v9390_v42  ;;  %v9595_v34 = vmax.f32 %v9519_v5, 0.0  ;;  %v11735_v42 = vld [vmem:[%s15691_s7 + $0x28] sm:$0xff] }
 0xb7c   : > { %v9168_v27 = vpop.f32.mrf.mxu2  ;;  %v9250_v55 = vpop.f32.mrf.mxu3  ;;  %v16970_v5 = vld [vmem:[#allocation52_spill] sm:$0xff] }
 0xb7d   : > { %v9627_v57 = vadd.f32 %v9595_v34, %v14948_v60  ;;  %11470 = vmatmul.msk.bf16.gmra.mxu1 %vm16965_vm12, %v9414_v50  ;;  %v9251_v54 = vadd.f32 %v9250_v55, %v9161_v16 }
 0xb7e   : > { %v9351_v49 = vpop.f32.mrf.mxu0 }
 0xb7f   : > { %v9721_v19 = vpack.c.bf16 %v9627_v57, %v9626_v22  ;;  %v9340_v30 = vadd.f32 %v9339_v43, %v9251_v54  ;;  %v11734_v54 = vld [vmem:[%s15691_s7 + $0x20] sm:$0xff] }
 0xb81   : > { %9817 = vmatmul.bf16.gmra.mxu2 %v9721_v19  ;;  %v9392_v0 = vmax.f32 %v9340_v30, 0.0 }
 0xb84   : > { %v9171_v15 = vpop.f32.mrf.mxu2  ;;  %v9252_v11 = vpop.f32.mrf.mxu3 }
 0xb85   : > { %v9253_v56 = vadd.f32 %v9252_v11, %v9163_v52 }
 0xb86   : > { %v9354_v33 = vpop.f32.mrf.mxu0 }
 0xb87   : > { %v9342_v23 = vadd.f32 %v9341_v18, %v9253_v56 }
 0xb89   : > { %v9393_v8 = vmax.f32 %v9342_v23, 0.0  ;;  %v11733_v23 = vld [vmem:[%s15691_s7 + $0x18] sm:$0xff] }
 0xb8b   : > { %v9415_v35 = vpack.c.bf16 %v9393_v8, %v9392_v0 }
 0xb8c   : > { %v9173_v7 = vpop.f32.mrf.mxu2  ;;  %v9255_v41 = vpop.f32.mrf.mxu3 }
 0xb8d   : > { %11471 = vmatmul.msk.bf16.gmra.mxu1 %vm16966_vm0, %v9415_v35  ;;  %v9256_v21 = vadd.f32 %v9255_v41, %v9166_v51 }
 0xb8e   : > { %v9356_v26 = vpop.f32.mrf.mxu0 }
 0xb8f   : > { %v9345_v59 = vadd.f32 %v9344_v48, %v9256_v21 }
 0xb91   : > { %v9394_v62 = vmax.f32 %v9345_v59, 0.0 }
 0xb94   : > { %v9176_v60 = vpop.f32.mrf.mxu2  ;;  %v9257_v38 = vpop.f32.mrf.mxu3 }
 0xb95   : > { %v9258_v14 = vadd.f32 %v9257_v38, %v9168_v27  ;;  %v16971_v27 = vld [vmem:[#allocation53_spill] sm:$0xff] }
 0xb96   : > { %v9359_v45 = vpop.f32.mrf.mxu0  ;;  %v11731_v38 = vld [vmem:[%s15691_s7 + $0x8] sm:$0xff] }
 0xb97   : > { %v9347_v39 = vadd.f32 %v9346_v9, %v9258_v14  ;;  %v16973_v14 = vld [vmem:[#allocation54_spill] sm:$0xff] }
 0xb99   : > { %v9395_v58 = vmax.f32 %v9347_v39, 0.0 }
 0xb9a   : > { %v9522_v12 = vpop.f32.mrf.mxu1 }
 0xb9b   : > { %v9416_v44 = vpack.c.bf16 %v9395_v58, %v9394_v62  ;;  %v9596_v53 = vmax.f32 %v9522_v12, 0.0  ;;  %v16974_v62 = vld [vmem:[#allocation40_spill] sm:$0xff] }
 0xb9c   : > { %v9178_v63 = vpop.f32.mrf.mxu2  ;;  %v9260_v32 = vpop.f32.mrf.mxu3 }
 0xb9d   : > { %11472 = vmatmul.msk.bf16.gmra.mxu1 %vm16967_vm3, %v9416_v44  ;;  %v9261_v46 = vadd.f32 %v9260_v32, %v9171_v15  ;;  %v9628_v16 = vadd.f32 %v9596_v53, %v14956_v13  ;;  %v11736_v13 = vld [vmem:[%s15691_s7 + $0x30] sm:$0xff]  ;;  %v11730_v32 = vld [vmem:[%s15691_s7] sm:$0xff] }
 0xb9e   : > { %10010 = vmatpush.bf16.msra.mxu3 %v11736_v13  ;;  %v9361_v8 = vpop.f32.mrf.mxu0 }
 0xb9f   : > { %v9350_v2 = vadd.f32 %v9349_v37, %v9261_v46  ;;  %v11732_v37 = vld [vmem:[%s15691_s7 + $0x10] sm:$0xff] }
 0xba1   : > { %v9396_v6 = vmax.f32 %v9350_v2, 0.0 }
 0xba2   : > { %v9524_v20 = vpop.f32.mrf.mxu1  ;;  %10011 = vmatpush.bf16.msra.mxu3 %v11735_v42 }
 0xba3   : > { %v9597_v17 = vmax.f32 %v9524_v20, 0.0 }
 0xba4   : > { %v9181_v24 = vpop.f32.mrf.mxu2  ;;  %v9262_v43 = vpop.f32.mrf.mxu3 }
 0xba5   : > { %v9629_v29 = vadd.f32 %v9597_v17, %v16968_v25  ;;  %v9263_v61 = vadd.f32 %v9262_v43, %v9173_v7 }
 0xba6   : > { %10012 = vmatpush.bf16.msra.mxu3 %v11734_v54  ;;  %v16980_v54 = vld [vmem:[#allocation7_spill] sm:$0xff] }
 0xba7   : > { %v9352_v4 = vadd.f32 %v9351_v49, %v9263_v61  ;;  %v9722_v47 = vpack.c.bf16 %v9629_v29, %v9628_v16 }
 0xba9   : > { %v9397_v52 = vmax.f32 %v9352_v4, 0.0  ;;  %9822 = vmatmul.bf16.gmra.mxu2 %v9722_v47  ;;  %v16976_v47 = vld [vmem:[#allocation4_spill] sm:$0xff] }
 0xbaa   : > { %v9527_v18 = vpop.f32.mrf.mxu1  ;;  %10013 = vmatpush.bf16.msra.mxu3 %v11733_v23 }
 0xbab   : > { %v9417_v28 = vpack.c.bf16 %v9397_v52, %v9396_v6  ;;  %v9598_v31 = vmax.f32 %v9527_v18, 0.0  ;;  %v16977_v18 = vld [vmem:[#allocation5_spill] sm:$0xff] }
 0xbac   : > { %v9265_v51 = vpop.f32.mrf.mxu3  ;;  %v9183_v1 = vpop.f32.mrf.mxu2 }
 0xbad   : > { %11473 = vmatmul.msk.bf16.gmra.mxu1 %vm16969_vm7, %v9417_v28  ;;  %v9266_v10 = vadd.f32 %v9265_v51, %v9176_v60  ;;  %v9630_v50 = vadd.f32 %v9598_v31, %v16970_v5 }
 0xbae   : > { %10014 = vmatpush.bf16.msra.mxu3 %v11732_v37 }
 0xbaf   : > { %v9355_v34 = vadd.f32 %v9354_v33, %v9266_v10  ;;  %v9364_v33 = vpop.f32.mrf.mxu0 }
 0xbb1   : > { %v9398_v15 = vmax.f32 %v9355_v34, 0.0 }
 0xbb2   : > { %v9529_v48 = vpop.f32.mrf.mxu1  ;;  %10015 = vmatpush.bf16.msra.mxu3 %v11731_v38 }
 0xbb3   : > { %v9599_v40 = vmax.f32 %v9529_v48, 0.0 }
 0xbb4   : > { %v9267_v3 = vpop.f32.mrf.mxu3  ;;  %v9186_v57 = vpop.f32.mrf.mxu2 }
 0xbb5   : > { %v9631_v55 = vadd.f32 %v9599_v40, %v16971_v27  ;;  %v9268_v22 = vadd.f32 %v9267_v3, %v9178_v63  ;;  %v15556_v3 = vld [vmem:[%s15690_s6] ss:$0 sm:$0xff] }
 0xbb6   : > { %10016 = vmatpush.bf16.msra.mxu3 %v11730_v32 }
 0xbb7   : > { %v9357_v19 = vadd.f32 %v9356_v26, %v9268_v22  ;;  %v9723_v9 = vpack.c.bf16 %v9631_v55, %v9630_v50  ;;  %v9366_v25 = vpop.f32.mrf.mxu0 }
 0xbb9   : > { %v9399_v11 = vmax.f32 %v9357_v19, 0.0  ;;  %9827 = vmatmul.bf16.gmra.mxu2 %v9723_v9 }
 0xbba   : > { %v9532_v30 = vpop.f32.mrf.mxu1 }
 0xbbb   : > { %v9418_v56 = vpack.c.bf16 %v9399_v11, %v9398_v15  ;;  %v9600_v35 = vmax.f32 %v9532_v30, 0.0 }
 0xbbc   : > { %v9270_v0 = vpop.f32.mrf.mxu3  ;;  %v9188_v7 = vpop.f32.mrf.mxu2 }
 0xbbd   : > { %11474 = vmatmul.msk.bf16.gmra.mxu1 %vm16972_vm9, %v9418_v56  ;;  %v9271_v41 = vadd.f32 %v9270_v0, %v9181_v24  ;;  %v9632_v49 = vadd.f32 %v9600_v35, %v16973_v14 }
 0xbbf   : > { %v9360_v39 = vadd.f32 %v9359_v45, %v9271_v41  ;;  %v9369_v40 = vpop.f32.mrf.mxu0 }
 0xbc1   : > { %v9400_v53 = vmax.f32 %v9360_v39, 0.0  ;;  %v16982_v39 = vld [vmem:[#allocation8_spill] sm:$0xff] }
 0xbc2   : > { %v9534_v21 = vpop.f32.mrf.mxu1 }
 0xbc3   : > { %v9601_v60 = vmax.f32 %v9534_v21, 0.0 }
 0xbc4   : > { %v9272_v59 = vpop.f32.mrf.mxu3  ;;  %v9191_v17 = vpop.f32.mrf.mxu2 }
 0xbc5   : > { %v9633_v58 = vadd.f32 %v9601_v60, %v16974_v62  ;;  %v9273_v12 = vadd.f32 %v9272_v59, %v9183_v1 }
 0xbc7   : > { %v9362_v44 = vadd.f32 %v9361_v8, %v9273_v12  ;;  %v9724_v63 = vpack.c.bf16 %v9633_v58, %v9632_v49  ;;  %v9371_v56 = vpop.f32.mrf.mxu0  ;;  %v16983_v58 = vld [vmem:[#allocation9_spill] sm:$0xff] }
 0xbc9   : > { %v9401_v46 = vmax.f32 %v9362_v44, 0.0  ;;  %9832 = vmatmul.bf16.gmra.mxu2 %v9724_v63 }
 0xbca   : > { %v9537_v20 = vpop.f32.mrf.mxu1 }
 0xbcb   : > { %v9419_v24 = vpack.c.bf16 %v9401_v46, %v9400_v53  ;;  %v9602_v16 = vmax.f32 %v9537_v20, 0.0  ;;  %v16984_v20 = vld [vmem:[#allocation10_spill] sm:$0xff] }
 0xbcc   : > { %v9275_v43 = vpop.f32.mrf.mxu3  ;;  %v9193_v52 = vpop.f32.mrf.mxu2 }
 0xbcd   : > { %11475 = vmatmul.msk.bf16.gmra.mxu1 %vm16975_vm13, %v9419_v24  ;;  %v9276_v2 = vadd.f32 %v9275_v43, %v9186_v57  ;;  %v9634_v6 = vadd.f32 %v9602_v16, %v16976_v47  ;;  %v16979_v57 = vld [vmem:[#allocation6_spill] sm:$0xff]  ;;  %v16985_v24 = vld [vmem:[#allocation11_spill] sm:$0xff] }
 0xbcf   : > { %v9365_v26 = vadd.f32 %v9364_v33, %v9276_v2 }
 0xbd1   : > { %v9402_v13 = vmax.f32 %v9365_v26, 0.0 }
 0xbd2   : > { %v9539_v29 = vpop.f32.mrf.mxu1 }
 0xbd3   : > { %v9603_v61 = vmax.f32 %v9539_v29, 0.0 }
 0xbd4   : > { %v9277_v4 = vpop.f32.mrf.mxu3 }
 0xbd5   : > { %v9635_v28 = vadd.f32 %v9603_v61, %v16977_v18  ;;  %v9278_v36 = vadd.f32 %v9277_v4, %v9188_v7 }
 0xbd7   : > { %v9367_v51 = vadd.f32 %v9366_v25, %v9278_v36  ;;  %v9725_v1 = vpack.c.bf16 %v9635_v28, %v9634_v6  ;;  %v16986_v28 = vld [vmem:[#allocation12_spill] sm:$0xff] }
 0xbd9   : > { %v9403_v31 = vmax.f32 %v9367_v51, 0.0  ;;  %9837 = vmatmul.bf16.gmra.mxu2 %v9725_v1  ;;  %v16987_v51 = vld [vmem:[#allocation13_spill] sm:$0xff] }
 0xbda   : > { %v9542_v10 = vpop.f32.mrf.mxu1 }
 0xbdb   : > { %v9420_v48 = vpack.c.bf16 %v9403_v31, %v9402_v13  ;;  %v9604_v5 = vmax.f32 %v9542_v10, 0.0 }
 0xbdc   : > { %v9280_v42 = vpop.f32.mrf.mxu3 }
 0xbdd   : > { %v9813_v45 = vpop.f32.mrf.mxu2  ;;  %11476 = vmatmul.msk.bf16.gmra.mxu1 %vm16978_vm10, %v9420_v48  ;;  %v9281_v50 = vadd.f32 %v9280_v42, %v9191_v17  ;;  %v9636_v19 = vadd.f32 %v9604_v5, %v16979_v57  ;;  %v16988_v42 = vld [vmem:[#allocation14_spill] sm:$0xff]  ;;  %v16989_v5 = vld [vmem:[#allocation15_spill] sm:$0xff] }
 0xbde   : > { %v9814_v55 = vadd.f32 %v15556_v3, %v9813_v45 }
 0xbdf   : > { %v9370_v9 = vadd.f32 %v9369_v40, %v9281_v50 }
 0xbe0   : > { %v9893_v37 = vmax.f32 %v9814_v55, 0.0 }
 0xbe1   : > { %v9404_v7 = vmax.f32 %v9370_v9, 0.0 }
 0xbe2   : > { %v9544_v34 = vpop.f32.mrf.mxu1 }
 0xbe3   : > { %v9605_v27 = vmax.f32 %v9544_v34, 0.0 }
 0xbe4   : > { %v9282_v22 = vpop.f32.mrf.mxu3 }
 0xbe5   : > { %v9637_v15 = vadd.f32 %v9605_v27, %v16980_v54  ;;  %v9283_v11 = vadd.f32 %v9282_v22, %v9193_v52  ;;  %v9815_v30 = vpop.f32.mrf.mxu2 }
 0xbe6   : > { %v9816_v23 = vadd.f32 %v15556_v3, %v9815_v30  ;;  %v16991_v30 = vld [vmem:[#allocation17_spill] sm:$0xff] }
 0xbe7   : > { %v9372_v0 = vadd.f32 %v9371_v56, %v9283_v11  ;;  %v9726_v8 = vpack.c.bf16 %v9637_v15, %v9636_v19  ;;  %v16990_v15 = vld [vmem:[#allocation16_spill] sm:$0xff] }
 0xbe8   : > { %v9894_v35 = vmax.f32 %v9816_v23, 0.0 }
 0xbe9   : > { %v9405_v41 = vmax.f32 %v9372_v0, 0.0  ;;  %9842 = vmatmul.bf16.gmra.mxu2 %v9726_v8 }
 0xbea   : > { %v9925_v21 = vpack.c.bf16 %v9894_v35, %v9893_v37  ;;  %v9547_v60 = vpop.f32.mrf.mxu1 }
 0xbeb   : > { %v9421_v38 = vpack.c.bf16 %v9405_v41, %v9404_v7  ;;  %v9606_v59 = vmax.f32 %v9547_v60, 0.0 }
 0xbec   : > { %10017 = vmatmul.bf16.vlgmr.msra.gmra.mxu3 %v9925_v21 }
 0xbed   : > { %11477 = vmatmul.msk.bf16.gmra.mxu1 %vm16981_vm14, %v9421_v38  ;;  %v9638_v62 = vadd.f32 %v9606_v59, %v16982_v39 }
 0xbf2   : > { %v9549_v14 = vpop.f32.mrf.mxu1 }
 0xbf3   : > { %v9607_v49 = vmax.f32 %v9549_v14, 0.0 }
 0xbf5   : > { %v9639_v12 = vadd.f32 %v9607_v49, %v16983_v58  ;;  %v16992_v49 = vld [vmem:[#allocation18_spill] sm:$0xff] }
 0xbf7   : > { %v9727_v44 = vpack.c.bf16 %v9639_v12, %v9638_v62  ;;  %v16993_v62 = vld [vmem:[#allocation22_spill] sm:$0xff] }
 0xbf9   : > { %9847 = vmatmul.bf16.gmra.mxu2 %v9727_v44 }
 0xbfa   : > { %v9552_v63 = vpop.f32.mrf.mxu1 }
 0xbfb   : > { %v9608_v32 = vmax.f32 %v9552_v63, 0.0 }
 0xbfd   : > { %v9640_v17 = vadd.f32 %v9608_v32, %v16984_v20 }
 0xc02   : > { %v9554_v33 = vpop.f32.mrf.mxu1 }
 0xc03   : > { %v9609_v53 = vmax.f32 %v9554_v33, 0.0 }
 0xc04   : > { %v9818_v46 = vpop.f32.mrf.mxu2 }
 0xc05   : > { %v9641_v43 = vadd.f32 %v9609_v53, %v16985_v24  ;;  %v9819_v25 = vadd.f32 %v15556_v3, %v9818_v46 }
 0xc07   : > { %v9728_v16 = vpack.c.bf16 %v9641_v43, %v9640_v17  ;;  %v9895_v4 = vmax.f32 %v9819_v25, 0.0 }
 0xc09   : > { %9852 = vmatmul.bf16.gmra.mxu2 %v9728_v16 }
 0xc0a   : > { %v9557_v2 = vpop.f32.mrf.mxu1 }
 0xc0b   : > { %v9610_v6 = vmax.f32 %v9557_v2, 0.0  ;;  %v16994_v2 = vld [vmem:[#allocation23_spill] sm:$0xff] }
 0xc0c   : > { %v9820_v29 = vpop.f32.mrf.mxu2 }
 0xc0d   : > { %v9821_v61 = vadd.f32 %v15556_v3, %v9820_v29  ;;  %v9642_v36 = vadd.f32 %v9610_v6, %v16986_v28  ;;  %v16995_v29 = vld [vmem:[#allocation19_spill] sm:$0xff] }
 0xc0f   : > { %v9896_v47 = vmax.f32 %v9821_v61, 0.0 }
 0xc11   : > { %v9926_v52 = vpack.c.bf16 %v9896_v47, %v9895_v4 }
 0xc12   : > { %v9559_v26 = vpop.f32.mrf.mxu1 }
 0xc13   : > { %v9611_v18 = vmax.f32 %v9559_v26, 0.0  ;;  %10022 = vmatmul.bf16.gmra.mxu3 %v9926_v52 }
 0xc15   : > { %v9643_v1 = vadd.f32 %v9611_v18, %v16987_v51 }
 0xc17   : > { %v9729_v13 = vpack.c.bf16 %v9643_v1, %v9642_v36 }
 0xc19   : > { %9857 = vmatmul.bf16.gmra.mxu2 %v9729_v13 }
 0xc1a   : > { %v9562_v31 = vpop.f32.mrf.mxu1 }
 0xc1b   : > { %v9612_v10 = vmax.f32 %v9562_v31, 0.0 }
 0xc1d   : > { %v9644_v45 = vadd.f32 %v9612_v10, %v16988_v42  ;;  %v16996_v10 = vld [vmem:[#allocation20_spill] sm:$0xff] }
 0xc22   : > { %v9564_v48 = vpop.f32.mrf.mxu1 }
 0xc23   : > { %v9613_v40 = vmax.f32 %v9564_v48, 0.0 }
 0xc25   : > { %v9645_v50 = vadd.f32 %v9613_v40, %v16989_v5  ;;  %v16997_v40 = vld [vmem:[#allocation27_spill] sm:$0xff] }
 0xc27   : > { %v9730_v34 = vpack.c.bf16 %v9645_v50, %v9644_v45 }
 0xc29   : > { %9862 = vmatmul.bf16.gmra.mxu2 %v9730_v34 }
 0xc2a   : > { %v9567_v27 = vpop.f32.mrf.mxu1 }
 0xc2b   : > { %v9614_v22 = vmax.f32 %v9567_v27, 0.0 }
 0xc2c   : > { %v9823_v55 = vpop.f32.mrf.mxu2 }
 0xc2d   : > { %v9824_v19 = vadd.f32 %v15556_v3, %v9823_v55  ;;  %v9646_v11 = vadd.f32 %v9614_v22, %v16990_v15 }
 0xc2f   : > { %v9897_v0 = vmax.f32 %v9824_v19, 0.0 }
 0xc32   : > { %v9569_v57 = vpop.f32.mrf.mxu1 }
 0xc33   : > { %v9615_v9 = vmax.f32 %v9569_v57, 0.0 }
 0xc34   : > { %v9825_v54 = vpop.f32.mrf.mxu2 }
 0xc35   : > { %v9647_v56 = vadd.f32 %v9615_v9, %v16991_v30  ;;  %v9826_v23 = vadd.f32 %v15556_v3, %v9825_v54 }
 0xc37   : > { %v9898_v8 = vmax.f32 %v9826_v23, 0.0  ;;  %v9731_v37 = vpack.c.bf16 %v9647_v56, %v9646_v11  ;;  %v16998_v11 = vld [vmem:[#allocation21_spill] sm:$0xff]  ;;  %v16999_v56 = vld [vmem:[#allocation24_spill] sm:$0xff] }
 0xc39   : > { %9867 = vmatmul.bf16.gmra.mxu2 %v9731_v37  ;;  %v9927_v35 = vpack.c.bf16 %v9898_v8, %v9897_v0 }
 0xc3a   : > { %v9572_v7 = vpop.f32.mrf.mxu1 }
 0xc3b   : > { %10027 = vmatmul.bf16.gmra.mxu3 %v9927_v35  ;;  %v9616_v21 = vmax.f32 %v9572_v7, 0.0 }
 0xc3c   : > { %v9828_v41 = vpop.f32.mrf.mxu2 }
 0xc3d   : > { %v9829_v38 = vadd.f32 %v15556_v3, %v9828_v41  ;;  %v9648_v39 = vadd.f32 %v9616_v21, %v16992_v49 }
 0xc3f   : > { %v9899_v44 = vmax.f32 %v9829_v38, 0.0 }
 0xc42   : > { %v9574_v60 = vpop.f32.mrf.mxu1 }
 0xc43   : > { %v9617_v59 = vmax.f32 %v9574_v60, 0.0 }
 0xc44   : > { %v9830_v14 = vpop.f32.mrf.mxu2 }
 0xc45   : > { %v9649_v58 = vadd.f32 %v9617_v59, %v16993_v62  ;;  %v9831_v12 = vadd.f32 %v15556_v3, %v9830_v14 }
 0xc47   : > { %v9900_v63 = vmax.f32 %v9831_v12, 0.0  ;;  %v9732_v32 = vpack.c.bf16 %v9649_v58, %v9648_v39 }
 0xc49   : > { %9872 = vmatmul.bf16.gmra.mxu2 %v9732_v32  ;;  %v9928_v33 = vpack.c.bf16 %v9900_v63, %v9899_v44 }
 0xc4a   : > { %v9577_v53 = vpop.f32.mrf.mxu1 }
 0xc4b   : > { %10032 = vmatmul.bf16.gmra.mxu3 %v9928_v33  ;;  %v9618_v20 = vmax.f32 %v9577_v53, 0.0 }
 0xc4c   : > { %v9833_v46 = vpop.f32.mrf.mxu2 }
 0xc4d   : > { %v9834_v24 = vadd.f32 %v15556_v3, %v9833_v46  ;;  %v9650_v25 = vadd.f32 %v9618_v20, %v16994_v2 }
 0xc4f   : > { %v9901_v47 = vmax.f32 %v9834_v24, 0.0 }
 0xc52   : > { %v9579_v17 = vpop.f32.mrf.mxu1 }
 0xc53   : > { %v9619_v43 = vmax.f32 %v9579_v17, 0.0 }
 0xc54   : > { %v9835_v16 = vpop.f32.mrf.mxu2 }
 0xc55   : > { %v9651_v61 = vadd.f32 %v9619_v43, %v16995_v29  ;;  %v9836_v4 = vadd.f32 %v15556_v3, %v9835_v16 }
 0xc57   : > { %v9902_v6 = vmax.f32 %v9836_v4, 0.0  ;;  %v9733_v52 = vpack.c.bf16 %v9651_v61, %v9650_v25 }
 0xc59   : > { %v9929_v26 = vpack.c.bf16 %v9902_v6, %v9901_v47  ;;  %9877 = vmatmul.bf16.gmra.mxu2 %v9733_v52 }
 0xc5a   : > { %v9582_v18 = vpop.f32.mrf.mxu1 }
 0xc5b   : > { %10037 = vmatmul.bf16.gmra.mxu3 %v9929_v26  ;;  %v9620_v36 = vmax.f32 %v9582_v18, 0.0 }
 0xc5c   : > { %v9838_v28 = vpop.f32.mrf.mxu2 }
 0xc5d   : > { %v9839_v1 = vadd.f32 %v15556_v3, %v9838_v28  ;;  %v9652_v48 = vadd.f32 %v9620_v36, %v16996_v10 }
 0xc5f   : > { %v9903_v5 = vmax.f32 %v9839_v1, 0.0 }
 0xc62   : > { %v9584_v51 = vpop.f32.mrf.mxu1 }
 0xc63   : > { %v9621_v13 = vmax.f32 %v9584_v51, 0.0  ;;  %v15612_v51 = vld [vmem:[%s15692_s8] ss:$0 sm:$0xff] }
 0xc64   : > { %v9840_v31 = vpop.f32.mrf.mxu2 }
 0xc65   : > { %v9653_v42 = vadd.f32 %v9621_v13, %v16997_v40  ;;  %v9841_v45 = vadd.f32 %v15556_v3, %v9840_v31 }
 0xc67   : > { %v9904_v50 = vmax.f32 %v9841_v45, 0.0  ;;  %v9734_v34 = vpack.c.bf16 %v9653_v42, %v9652_v48 }
 0xc69   : > { %v9930_v27 = vpack.c.bf16 %v9904_v50, %v9903_v5  ;;  %9882 = vmatmul.bf16.gmra.mxu2 %v9734_v34 }
 0xc6a   : > { %v9587_v55 = vpop.f32.mrf.mxu1 }
 0xc6b   : > { %10042 = vmatmul.bf16.gmra.mxu3 %v9930_v27  ;;  %v9622_v57 = vmax.f32 %v9587_v55, 0.0 }
 0xc6c   : > { %v9843_v22 = vpop.f32.mrf.mxu2 }
 0xc6d   : > { %v9844_v9 = vadd.f32 %v15556_v3, %v9843_v22  ;;  %v9654_v30 = vadd.f32 %v9622_v57, %v16998_v11 }
 0xc6f   : > { %v9905_v8 = vmax.f32 %v9844_v9, 0.0  ;;  %v15597_v33 = vpop.f32.mrf.mxu3 }
 0xc72   : > { %v9589_v19 = vpop.f32.mrf.mxu1 }
 0xc73   : > { %v9623_v54 = vmax.f32 %v9589_v19, 0.0 }
 0xc74   : > { %v9845_v15 = vpop.f32.mrf.mxu2 }
 0xc75   : > { %v9655_v23 = vadd.f32 %v9623_v54, %v16999_v56  ;;  %v9846_v0 = vadd.f32 %v15556_v3, %v9845_v15 }
 0xc77   : > { %v9906_v37 = vmax.f32 %v9846_v0, 0.0  ;;  %v9735_v35 = vpack.c.bf16 %v9655_v23, %v9654_v30  ;;  %v15600_v20 = vpop.f32.mrf.mxu3 }
 0xc79   : > { %v9931_v7 = vpack.c.bf16 %v9906_v37, %v9905_v8  ;;  %9887 = vmatmul.bf16.gmra.mxu2 %v9735_v35 }
 0xc7b   : > { %10047 = vmatmul.bf16.gmra.mxu3 %v9931_v7 }
 0xc7c   : > { %v9848_v41 = vpop.f32.mrf.mxu2 }
 0xc7d   : > { %v9849_v21 = vadd.f32 %v15556_v3, %v9848_v41 }
 0xc7f   : > { %v9907_v59 = vmax.f32 %v9849_v21, 0.0 }
 0xc84   : > { %v9850_v60 = vpop.f32.mrf.mxu2 }
 0xc85   : > { %v9851_v38 = vadd.f32 %v15556_v3, %v9850_v60 }
 0xc87   : > { %v9908_v14 = vmax.f32 %v9851_v38, 0.0 }
 0xc89   : > { %v9932_v49 = vpack.c.bf16 %v9908_v14, %v9907_v59 }
 0xc8b   : > { %10052 = vmatmul.bf16.gmra.mxu3 %v9932_v49 }
 0xc8c   : > { %v9853_v39 = vpop.f32.mrf.mxu2 }
 0xc8d   : > { %v9854_v62 = vadd.f32 %v15556_v3, %v9853_v39 }
 0xc8f   : > { %v9909_v44 = vmax.f32 %v9854_v62, 0.0 }
 0xc94   : > { %v9855_v58 = vpop.f32.mrf.mxu2 }
 0xc95   : > { %v9856_v12 = vadd.f32 %v15556_v3, %v9855_v58 }
 0xc96   : > { %v15603_v25 = vpop.f32.mrf.mxu3 }
 0xc97   : > { %v9910_v63 = vmax.f32 %v9856_v12, 0.0 }
 0xc99   : > { %v9933_v32 = vpack.c.bf16 %v9910_v63, %v9909_v44 }
 0xc9b   : > { %10057 = vmatmul.bf16.gmra.mxu3 %v9933_v32 }
 0xc9c   : > { %v9858_v53 = vpop.f32.mrf.mxu2 }
 0xc9d   : > { %v9859_v46 = vadd.f32 %v15556_v3, %v9858_v53 }
 0xc9e   : > { %v15607_v6 = vpop.f32.mrf.mxu3 }
 0xc9f   : > { %v9911_v43 = vmax.f32 %v9859_v46, 0.0 }
 0xca4   : > { %v9860_v17 = vpop.f32.mrf.mxu2 }
 0xca5   : > { %v9861_v24 = vadd.f32 %v15556_v3, %v9860_v17 }
 0xca7   : > { %v9912_v16 = vmax.f32 %v9861_v24, 0.0 }
 0xca9   : > { %v9934_v2 = vpack.c.bf16 %v9912_v16, %v9911_v43 }
 0xcab   : > { %10062 = vmatmul.bf16.gmra.mxu3 %v9934_v2 }
 0xcac   : > { %v9863_v29 = vpop.f32.mrf.mxu2 }
 0xcad   : > { %v9864_v61 = vadd.f32 %v15556_v3, %v9863_v29 }
 0xcaf   : > { %v9913_v52 = vmax.f32 %v9864_v61, 0.0 }
 0xcb4   : > { %v9865_v4 = vpop.f32.mrf.mxu2 }
 0xcb5   : > { %v9866_v47 = vadd.f32 %v15556_v3, %v9865_v4 }
 0xcb7   : > { %v9914_v26 = vmax.f32 %v9866_v47, 0.0 }
 0xcb9   : > { %v9935_v18 = vpack.c.bf16 %v9914_v26, %v9913_v52 }
 0xcbb   : > { %10067 = vmatmul.bf16.gmra.mxu3 %v9935_v18 }
 0xcbc   : > { %v9868_v28 = vpop.f32.mrf.mxu2 }
 0xcbd   : > { %v9869_v1 = vadd.f32 %v15556_v3, %v9868_v28 }
 0xcbe   : > { %v10028_v36 = vpop.f32.mrf.mxu3 }
 0xcbf   : > { %v10029_v31 = vadd.f32 %v15612_v51, %v10028_v36  ;;  %v9915_v40 = vmax.f32 %v9869_v1, 0.0 }
 0xcc1   : > { %v10102_v5 = vmax.f32 %v10029_v31, 0.0 }
 0xcc4   : > { %v9870_v13 = vpop.f32.mrf.mxu2 }
 0xcc5   : > { %v9871_v10 = vadd.f32 %v15556_v3, %v9870_v13 }
 0xcc6   : > { %v10030_v48 = vpop.f32.mrf.mxu3 }
 0xcc7   : > { %v9916_v42 = vmax.f32 %v9871_v10, 0.0  ;;  %v10031_v45 = vadd.f32 %v15612_v51, %v10030_v48 }
 0xcc9   : > { %v9936_v50 = vpack.c.bf16 %v9916_v42, %v9915_v40  ;;  %v10103_v34 = vmax.f32 %v10031_v45, 0.0 }
 0xccb   : > { %10072 = vmatmul.bf16.gmra.mxu3 %v9936_v50  ;;  %v15618_v27 = vpack.c.bf16 %v10103_v34, %v10102_v5 }
 0xccc   : > { %v9873_v55 = vpop.f32.mrf.mxu2 }
 0xccd   : > { %v9874_v57 = vadd.f32 %v15556_v3, %v9873_v55 }
 0xcce   : > { %v10033_v22 = vpop.f32.mrf.mxu3 }
 0xccf   : > { %v10034_v9 = vadd.f32 %v15612_v51, %v10033_v22  ;;  %v9917_v11 = vmax.f32 %v9874_v57, 0.0 }
 0xcd1   : > { %v10104_v23 = vmax.f32 %v10034_v9, 0.0 }
 0xcd4   : > { %v9875_v19 = vpop.f32.mrf.mxu2 }
 0xcd5   : > { %v9876_v54 = vadd.f32 %v15556_v3, %v9875_v19 }
 0xcd6   : > { %v10035_v15 = vpop.f32.mrf.mxu3 }
 0xcd7   : > { %v9918_v30 = vmax.f32 %v9876_v54, 0.0  ;;  %v10036_v56 = vadd.f32 %v15612_v51, %v10035_v15 }
 0xcd9   : > { %v9937_v0 = vpack.c.bf16 %v9918_v30, %v9917_v11  ;;  %v10105_v8 = vmax.f32 %v10036_v56, 0.0 }
 0xcdb   : > { %10077 = vmatmul.bf16.gmra.mxu3 %v9937_v0  ;;  %v15624_v37 = vpack.c.bf16 %v10105_v8, %v10104_v23 }
 0xcdc   : > { %v9878_v35 = vpop.f32.mrf.mxu2 }
 0xcdd   : > { %v9879_v41 = vadd.f32 %v15556_v3, %v9878_v35 }
 0xcde   : > { %v10038_v7 = vpop.f32.mrf.mxu3 }
 0xcdf   : > { %v10039_v60 = vadd.f32 %v15612_v51, %v10038_v7  ;;  %v9919_v14 = vmax.f32 %v9879_v41, 0.0 }
 0xce1   : > { %v10106_v62 = vmax.f32 %v10039_v60, 0.0 }
 0xce4   : > { %v9880_v21 = vpop.f32.mrf.mxu2 }
 0xce5   : > { %v9881_v38 = vadd.f32 %v15556_v3, %v9880_v21 }
 0xce6   : > { %v10040_v59 = vpop.f32.mrf.mxu3 }
 0xce7   : > { %v9920_v49 = vmax.f32 %v9881_v38, 0.0  ;;  %v10041_v39 = vadd.f32 %v15612_v51, %v10040_v59 }
 0xce9   : > { %v9938_v58 = vpack.c.bf16 %v9920_v49, %v9919_v14  ;;  %v10107_v12 = vmax.f32 %v10041_v39, 0.0  ;;  %v10026_v14 = vadd.f32 %v15612_v51, %v15607_v6  ;;  %v10024_v49 = vadd.f32 %v15612_v51, %v15603_v25 }
 0xcea   : > { %v10019_v6 = vadd.f32 %v15612_v51, %v15597_v33 }
 0xceb   : > { %v10135_v44 = vpack.c.bf16 %v10107_v12, %v10106_v62  ;;  %10082 = vmatmul.bf16.gmra.mxu3 %v9938_v58  ;;  %v10101_v58 = vmax.f32 %v10026_v14, 0.0 }
 0xcec   : > { %v9883_v63 = vpop.f32.mrf.mxu2 }
 0xced   : > { %v9884_v53 = vadd.f32 %v15556_v3, %v9883_v63 }
 0xcee   : > { %v10043_v32 = vpop.f32.mrf.mxu3 }
 0xcef   : > { %v9921_v43 = vmax.f32 %v9884_v53, 0.0  ;;  %v10044_v57 = vadd.f32 %v15612_v51, %v10043_v32 }
 0xcf1   : > { %v10108_v11 = vmax.f32 %v10044_v57, 0.0 }
 0xcf4   : > { %v9885_v46 = vpop.f32.mrf.mxu2 }
 0xcf5   : > { %v9886_v17 = vadd.f32 %v15556_v3, %v9885_v46 }
 0xcf6   : > { %v10045_v24 = vpop.f32.mrf.mxu3 }
 0xcf7   : > { %v9922_v16 = vmax.f32 %v9886_v17, 0.0  ;;  %v10046_v55 = vadd.f32 %v15612_v51, %v10045_v24  ;;  %v10098_v24 = vmax.f32 %v10019_v6, 0.0 }
 0xcf9   : > { %v9939_v2 = vpack.c.bf16 %v9922_v16, %v9921_v43  ;;  %v10109_v54 = vmax.f32 %v10046_v55, 0.0 }
 0xcfb   : > { %10087 = vmatmul.bf16.gmra.mxu3 %v9939_v2  ;;  %v10136_v23 = vpack.c.bf16 %v10109_v54, %v10108_v11 }
 0xcfc   : > { %v9888_v29 = vpop.f32.mrf.mxu2 }
 0xcfd   : > { %v9889_v4 = vadd.f32 %v15556_v3, %v9888_v29 }
 0xcfe   : > { %v10048_v61 = vpop.f32.mrf.mxu3 }
 0xcff   : > { %v9923_v18 = vmax.f32 %v9889_v4, 0.0  ;;  %v10049_v5 = vadd.f32 %v15612_v51, %v10048_v61 }
 0xd01   : > { %v10110_v34 = vmax.f32 %v10049_v5, 0.0 }
 0xd04   : > { %v9890_v47 = vpop.f32.mrf.mxu2 }
 0xd05   : > { %v9891_v52 = vadd.f32 %v15556_v3, %v9890_v47 }
 0xd06   : > { %v10050_v26 = vpop.f32.mrf.mxu3 }
 0xd07   : > { %v9924_v28 = vmax.f32 %v9891_v52, 0.0  ;;  %v10051_v42 = vadd.f32 %v15612_v51, %v10050_v26 }
 0xd09   : > { %v9940_v36 = vpack.c.bf16 %v9924_v28, %v9923_v18  ;;  %v10111_v50 = vmax.f32 %v10051_v42, 0.0 }
 0xd0b   : > { %10092 = vmatmul.bf16.gmra.mxu3 %v9940_v36  ;;  %v10137_v22 = vpack.c.bf16 %v10111_v50, %v10110_v34 }
 0xd0e   : > { %v10053_v1 = vpop.f32.mrf.mxu3 }
 0xd0f   : > { %v10054_v13 = vadd.f32 %v15612_v51, %v10053_v1 }
 0xd11   : > { %v10112_v48 = vmax.f32 %v10054_v13, 0.0 }
 0xd16   : > { %v10055_v31 = vpop.f32.mrf.mxu3 }
 0xd17   : > { %v10056_v10 = vadd.f32 %v15612_v51, %v10055_v31 }
 0xd19   : > { %v10113_v40 = vmax.f32 %v10056_v10, 0.0 }
 0xd1b   : > { %v10138_v45 = vpack.c.bf16 %v10113_v40, %v10112_v48 }
 0xd1d   : > { %10154 = vmatpush.bf16.xpose.msrb.mxu0 %v10138_v45 }
 0xd1e   : > { %v10058_v3 = vpop.f32.mrf.mxu3 }
 0xd1f   : > { %v10059_v19 = vadd.f32 %v15612_v51, %v10058_v3 }
 0xd21   : > { %v10114_v30 = vmax.f32 %v10059_v19, 0.0 }
 0xd25   : > { %10155 = vmatpush.bf16.xpose.msrb.mxu0 %v10137_v22 }
 0xd26   : > { %v10060_v9 = vpop.f32.mrf.mxu3 }
 0xd27   : > { %v10061_v15 = vadd.f32 %v15612_v51, %v10060_v9 }
 0xd29   : > { %v10115_v56 = vmax.f32 %v10061_v15, 0.0 }
 0xd2b   : > { %v15642_v0 = vpack.c.bf16 %v10115_v56, %v10114_v30  ;;  %v10130_v30 = vld [vmem:[%s15693_s9] sm:$0x1] }
 0xd2c   : > { %v10147_v56 = vld [vmem:[#allocation3] sm:$0x1] }
 0xd2d   : > { %10156 = vmatpush.bf16.xpose.msrb.mxu0 %v10136_v23  ;;  %10150 = vperm.xlu0 %11749, %v10147_v56  }
 0xd2e   : > { %v10063_v8 = vpop.f32.mrf.mxu3 }
 0xd2f   : > { %v10064_v35 = vadd.f32 %v15612_v51, %v10063_v8 }
 0xd31   : > { %v10116_v21 = vmax.f32 %v10064_v35, 0.0 }
 0xd35   : > { %10157 = vmatpush.bf16.xpose.msrb.mxu0 %v10135_v44  ;;  %v10100_v44 = vmax.f32 %v10024_v49, 0.0 }
 0xd36   : > { %v10065_v7 = vpop.f32.mrf.mxu3 }
 0xd37   : > { %v10066_v41 = vadd.f32 %v15612_v51, %v10065_v7  ;;  %v10132_v46 = vpack.c.bf16 %v10101_v58, %v10100_v44 }
 0xd39   : > { %v10117_v60 = vmax.f32 %v10066_v41, 0.0 }
 0xd3b   : > { %v15646_v38 = vpack.c.bf16 %v10117_v60, %v10116_v21 }
 0xd3d   : > { %10158 = vmatpush.bf16.xpose.msrb.mxu0 %v15624_v37  ;;  %v10021_v37 = vadd.f32 %v15612_v51, %v15600_v20 }
 0xd3e   : > { %v10068_v59 = vpop.f32.mrf.mxu3 }
 0xd3f   : > { %v10069_v39 = vadd.f32 %v15612_v51, %v10068_v59  ;;  %v10099_v17 = vmax.f32 %v10021_v37, 0.0 }
 0xd41   : > { %v10118_v63 = vmax.f32 %v10069_v39, 0.0 }
 0xd45   : > { %10159 = vmatpush.bf16.xpose.msrb.mxu0 %v15618_v27  ;;  %v10131_v27 = vpack.c.bf16 %v10099_v17, %v10098_v24 }
 0xd46   : > { %v10070_v62 = vpop.f32.mrf.mxu3 }
 0xd47   : > { %v10071_v12 = vadd.f32 %v15612_v51, %v10070_v62 }
 0xd49   : > { %v10119_v32 = vmax.f32 %v10071_v12, 0.0 }
 0xd4b   : > { %v10141_v53 = vpack.c.bf16 %v10119_v32, %v10118_v63  ;;  %v17000_v32 = vlaneseq }
 0xd4d   : > { %10160 = vmatpush.bf16.xpose.msrb.mxu0 %v10132_v46  ;;  %vm10200_vm11 = vcmp.lt.s32.totalorder %v17000_v32, 256 }
 0xd4e   : > { %v10073_v25 = vpop.f32.mrf.mxu3 }
 0xd4f   : > { %v10074_v43 = vadd.f32 %v15612_v51, %v10073_v25 }
 0xd51   : > { %v10120_v29 = vmax.f32 %v10074_v43, 0.0 }
 0xd55   : > { %10161 = vmatpush.bf16.xpose.msrb.mxu0 %v10131_v27 }
 0xd56   : > { %v10075_v16 = vpop.f32.mrf.mxu3 }
 0xd57   : > { %v10076_v2 = vadd.f32 %v15612_v51, %v10075_v16 }
 0xd59   : > { %v10121_v61 = vmax.f32 %v10076_v2, 0.0 }
 0xd5b   : > { %v10142_v4 = vpack.c.bf16 %v10121_v61, %v10120_v29 }
 0xd5c   : > { %10162 = vmatmul.bf16.vlgmr.msrb.gmra.mxu0 %v10130_v30 }
 0xd5e   : > { %v10078_v20 = vpop.f32.mrf.mxu3 }
 0xd5f   : > { %v10079_v47 = vadd.f32 %v15612_v51, %v10078_v20 }
 0xd61   : > { %v10122_v26 = vmax.f32 %v10079_v47, 0.0 }
 0xd66   : > { %v10080_v52 = vpop.f32.mrf.mxu3 }
 0xd67   : > { %v10081_v33 = vadd.f32 %v15612_v51, %v10080_v52 }
 0xd69   : > { %v10123_v18 = vmax.f32 %v10081_v33, 0.0 }
 0xd6b   : > { %v10143_v28 = vpack.c.bf16 %v10123_v18, %v10122_v26 }
 0xd6e   : > { %v10083_v36 = vpop.f32.mrf.mxu3 }
 0xd6f   : > { %v10084_v9 = vadd.f32 %v15612_v51, %v10083_v36 }
 0xd71   : > { %v10124_v15 = vmax.f32 %v10084_v9, 0.0 }
 0xd76   : > { %v10085_v1 = vpop.f32.mrf.mxu3 }
 0xd77   : > { %v10086_v57 = vadd.f32 %v15612_v51, %v10085_v1 }
 0xd79   : > { %v10125_v54 = vmax.f32 %v10086_v57, 0.0 }
 0xd7b   : > { %v10144_v11 = vpack.c.bf16 %v10125_v54, %v10124_v15 }
 0xd7e   : > { %v10088_v13 = vpop.f32.mrf.mxu3 }
 0xd7f   : > { %v10089_v34 = vadd.f32 %v15612_v51, %v10088_v13 }
 0xd81   : > { %v10126_v22 = vmax.f32 %v10089_v34, 0.0 }
 0xd86   : > { %v10090_v31 = vpop.f32.mrf.mxu3 }
 0xd87   : > { %v10091_v3 = vadd.f32 %v15612_v51, %v10090_v31 }
 0xd89   : > { %v10127_v55 = vmax.f32 %v10091_v3, 0.0 }
 0xd8b   : > { %v10145_v19 = vpack.c.bf16 %v10127_v55, %v10126_v22 }
 0xd8e   : > { %v10093_v10 = vpop.f32.mrf.mxu3 }
 0xd8f   : > { %v10094_v48 = vadd.f32 %v15612_v51, %v10093_v10 }
 0xd91   : > { %v10128_v45 = vmax.f32 %v10094_v48, 0.0 }
 0xd96   : > { %v10095_v40 = vpop.f32.mrf.mxu3 }
 0xd97   : > { %v10096_v42 = vadd.f32 %v15612_v51, %v10095_v40 }
 0xd99   : > { %v10129_v5 = vmax.f32 %v10096_v42, 0.0 }
 0xd9b   : > { %v10146_v50 = vpack.c.bf16 %v10129_v5, %v10128_v45 }
 0xd9d   : > { %10167 = vmatpush.bf16.xpose.msrb.mxu1 %v10146_v50 }
 0xd9f   : > { %v10151_v8 = vpop.permute.xlu0 %10150 }
 0xda0   : > { %v10153_v35 = vperm.slane %v10151_v8, 0 }
 0xda5   : > { %10168 = vmatpush.bf16.xpose.msrb.mxu1 %v10145_v19 }
 0xdad   : > { %10169 = vmatpush.bf16.xpose.msrb.mxu1 %v10144_v11 }
 0xdb5   : > { %10170 = vmatpush.bf16.xpose.msrb.mxu1 %v10143_v28 }
 0xdbd   : > { %10171 = vmatpush.bf16.xpose.msrb.mxu1 %v10142_v4 }
 0xdc5   : > { %10172 = vmatpush.bf16.xpose.msrb.mxu1 %v10141_v53 }
 0xdcd   : > { %10173 = vmatpush.bf16.xpose.msrb.mxu1 %v15646_v38 }
 0xdd5   : > { %10174 = vmatpush.bf16.xpose.msrb.mxu1 %v15642_v0 }
 0xdd9   : > { %v10163_v51 = vpop.f32.mrf.mxu0 }
 0xdda   : > { %v10164_v7 = vadd.f32 %v10163_v51, %v10153_v35 }
 0xddc   : > { %10175 = vmatmul.bf16.vlgmr.msrb.gmra.mxu1 %v10130_v30  ;;  %v10180_v41 = vsub.f32 0.0, %v10164_v7 }
 0xdde   : > { %v10182_v21 = vmul.f32 1.442695, %v10180_v41 }
 0xde0   : > { %11752 = vpow2.f32 %v10182_v21 }
 0xde1   : > { %v10165_v23 = vpop.f32.mrf.mxu0 }
 0xde6   : > { %v11753_v39 = vpop.eup %11752 }
 0xde7   : > { %v10186_v38 = vadd.f32 1.0, %v11753_v39 }
 0xe59   : > { %v10176_v60 = vpop.f32.mrf.mxu1 }
 0xe5a   : > { %v10177_v59 = vadd.f32 %v10176_v60, %v10153_v35 }
 0xe5c   : > { %v10181_v14 = vsub.f32 0.0, %v10177_v59 }
 0xe5e   : > { %v10184_v49 = vmul.f32 1.442695, %v10181_v14 }
 0xe60   : > { %11754 = vpow2.f32 %v10184_v49 }
 0xe61   : > { %v10178_v62 = vpop.f32.mrf.mxu1  ;;  %11756 = vrcp.f32 %v10186_v38 }
 0xe66   : > { %v11755_v58 = vpop.eup %11754 }
 0xe67   : > { %v10187_v0 = vadd.f32 1.0, %v11755_v58  ;;  %v11757_v12 = vpop.eup %11756 }
 0xe68   : > { %v10190_v37 = vmin.f32 %v11757_v12, 1.0 }
 0xe69   : > { %11758 = vrcp.f32 %v10187_v0 }
 0xe6f   : > { %v11759_v44 = vpop.eup %11758 }
 0xe70   : > { %v10191_v63 = vmin.f32 %v11759_v44, 1.0 }
 0xe72   : > { %v10194_v53 = vrot.slane %v10191_v63, 7 }
 0xe74   : > { %v10196_v46 = vsel %vm17001_vm1, %v10190_v37, %v10194_v53 }
 0xe75   : > { %10202 = vst.msk [vmem:[%s386_s29] sm:$0x3] %vm10200_vm11, %v10196_v46 }
 0xe76 PF: > { %s23_s19 = sadd.s32 1, %s11766_s19  }
 0xe77   : > { %p20_p4 = scmp.ge.s32.totalorder %s23_s19, 4  }
 0xe79   :  { %22 = sbr.rel (!%p20_p4) target bundleno = 3 (0x3), region = 106 }

</bundles_post_ra>
